<compile_context>
chip_gen: v6e
topology: v6e:2x2x1
jax: 0.10.0
libtpu: 0.0.40
codegen_flags: <defaults>
</compile_context>

<pallas_src>
import jax
import jax.numpy as jnp
from jax import lax
from jax.experimental import pallas as pl
from jax.experimental.pallas import tpu as pltpu

# ----------------------------- static config --------------------------------
B, V = 2, 4                       # batch size, number of camera views
C = 8                             # image channels fed to the synthetic backbone
H_IMG, W_IMG = 64, 48             # small stand-in for 384x288 images
DOWN = 4                          # backbone output stride
H_HM, W_HM = H_IMG // DOWN, W_IMG // DOWN   # heatmap spatial (16, 12)
S = H_HM * W_HM                   # 192 (flattened heatmap spatial, lane axis)
J = 16                            # number of joints (heatmap channels)

N_SAMP = B * V                    # 8  flattened samples (view-major order)
NJ = N_SAMP * J                   # 128 = full vreg lane width
BJ = B * J                        # 32  triangulation lane width
HW = H_IMG * W_IMG                # 3072
NC = N_SAMP * C                   # 64

HEATMAP_MULTIPLIER = 100.0        # config.model.heatmap_multiplier (> 0)
SCALE_X = float(W_IMG) / float(W_HM)   # image_shape[1] / heatmap_shape[1]
SCALE_Y = float(H_IMG) / float(H_HM)   # image_shape[0] / heatmap_shape[0]
N_POWER_ITERS = 20


# ------------------------------ fused kernel ---------------------------------
def _fused_kernel(x_ref, pool_ref, w_ref, b_ref, coord_ref, proj_ref,
                  hm_ref, kp_ref, conf_ref, pts_ref):
    # ---- backbone stem: 4x4 mean pool (pooling-matrix matmul) + 1x1 conv -----
    pooled_t = jnp.dot(pool_ref[...], x_ref[...],
                       preferred_element_type=jnp.float32)              # (S, N*C)
    hm = jnp.dot(pooled_t, w_ref[...],
                 preferred_element_type=jnp.float32) + b_ref[...]       # (S, N*J)

    # ---- alg confidences: max over spatial of the RAW heatmaps ---------------
    conf_raw = jnp.max(hm, axis=0, keepdims=True)                       # (1, N*J)

    # ---- spatial softmax of (heatmap * multiplier) ----------------------------
    m = conf_raw * HEATMAP_MULTIPLIER          # multiplier > 0: reuse the max
    e = jnp.exp(hm * HEATMAP_MULTIPLIER - m)                            # (S, N*J)
    denom = jnp.sum(e, axis=0, keepdims=True)                           # (1, N*J)
    p = e * (1.0 / denom)
    hm_ref[...] = p

    # ---- soft-argmax 2D keypoints via a (2, S) coordinate matmul --------------
    kp = jnp.dot(coord_ref[...], p, preferred_element_type=jnp.float32)  # (2, N*J)
    kp_ref[...] = kp

    # ---- confidence normalization over views (+1e-5), lanes = (b, j) ----------
    cf = [conf_raw[:, v * BJ:(v + 1) * BJ] for v in range(V)]            # V x (1, B*J)
    cf_sum = cf[0] + cf[1] + cf[2] + cf[3]
    cf = [c / cf_sum + 1e-5 for c in cf]
    conf_ref[...] = jnp.concatenate(cf, axis=0)                          # (V, B*J)

    # ---- weighted DLT: M = A^T A accumulated over views -----------------------
    m_rows = [jnp.zeros((4, BJ), jnp.float32) for _ in range(4)]
    for v in range(V):
        kx_v = kp[0:1, v * BJ:(v + 1) * BJ]                              # (1, B*J)
        ky_v = kp[1:2, v * BJ:(v + 1) * BJ]
        p0 = proj_ref[v, 0, :, :]                                        # (4, B*J)
        p1 = proj_ref[v, 1, :, :]
        p2 = proj_ref[v, 2, :, :]
        rx = cf[v] * (kx_v * p2 - p0)                                    # (4, B*J)
        ry = cf[v] * (ky_v * p2 - p1)
        for a in range(4):
            m_rows[a] = m_rows[a] + rx[a:a + 1, :] * rx + ry[a:a + 1, :] * ry

    # trace normalization for conditioning
    tr = (m_rows[0][0:1, :] + m_rows[1][1:2, :]
          + m_rows[2][2:3, :] + m_rows[3][3:4, :]) + 1e-20
    inv_tr = 1.0 / tr
    mn = [[m_rows[a][bb:bb + 1, :] * inv_tr for bb in range(4)]
          for a in range(4)]

    def minor(r, c_):
        rs = [i for i in range(4) if i != r]
        cs = [jj for jj in range(4) if jj != c_]
        g = lambda i, jj: mn[rs[i]][cs[jj]]
        return (g(0, 0) * (g(1, 1) * g(2, 2) - g(1, 2) * g(2, 1))
                - g(0, 1) * (g(1, 0) * g(2, 2) - g(1, 2) * g(2, 0))
                + g(0, 2) * (g(1, 0) * g(2, 1) - g(1, 1) * g(2, 0)))

    # adj(M): dominant eigenvector of adj(M) == eigenvector of M's smallest
    # eigenvalue == right singular vector of A (what torch.svd gives).
    # Packed row-wise as 4 x (4, B*J); M symmetric => adj(M) symmetric.
    adj = [jnp.concatenate([((-1.0) ** (a + bb)) * minor(bb, a)
                            for bb in range(4)], axis=0)
           for a in range(4)]

    # init from the largest-norm row (== column) of adj(M)
    vec0 = adj[0]
    best = jnp.sum(adj[0] * adj[0], axis=0, keepdims=True)
    for k in range(1, 4):
        nk = jnp.sum(adj[k] * adj[k], axis=0, keepdims=True)
        vec0 = jnp.where(nk > best, adj[k], vec0)
        best = jnp.maximum(best, nk)
    vec0 = vec0 * lax.rsqrt(jnp.sum(vec0 * vec0, axis=0, keepdims=True) + 1e-30)

    def piter(_, vec):
        w = jnp.concatenate(
            [jnp.sum(adj[a] * vec, axis=0, keepdims=True) for a in range(4)],
            axis=0)                                                      # (4, B*J)
        return w * lax.rsqrt(jnp.sum(w * w, axis=0, keepdims=True) + 1e-30)

    vec = lax.fori_loop(0, N_POWER_ITERS, piter, vec0)

    # homogeneous -> euclidean (sign of the singular vector cancels out);
    # guard the division for points at (near) infinity.
    wh = vec[3:4, :]
    wh = jnp.where(jnp.abs(wh) < 1e-12,
                   jnp.where(wh >= 0.0, 1e-12, -1e-12), wh)
    pts_ref[...] = vec[0:3, :] * (1.0 / wh)


# ------------------------------ constant builders -----------------------------
def make_pool_matrix():
    """(S, H*W) matrix: pool_t[s, p] = 1/16 if pixel p lies in pooled cell s."""
    cell_h = jnp.arange(H_IMG) // DOWN
    cell_w = jnp.arange(W_IMG) // DOWN
    cell = (cell_h[:, None] * W_HM + cell_w[None, :]).reshape(HW)
    s_idx = jnp.arange(S)
    return (s_idx[:, None] == cell[None, :]).astype(jnp.float32) / float(DOWN * DOWN)


# --------------------------------- forward ------------------------------------
@jax.jit
def algebraic_triangulation_forward(images, proj_matricies, w_head, b_head, pool_t):
    """images: (B, V, C, H, W) float32 (NCHW per view, PyTorch convention)."""
    # view-major sample order n = v*B + b so per-view lane slices are contiguous
    x_t = jnp.transpose(images, (3, 4, 1, 0, 2)).reshape(HW, NC)      # (H*W, N*C)

    # block-diagonal 1x1-conv weights and tiled bias (whole batch in one matmul)
    w_big_t = jnp.kron(jnp.eye(N_SAMP, dtype=w_head.dtype), w_head.T)  # (N*C, N*J)
    b_row = jnp.tile(b_head.reshape(1, J), (1, N_SAMP))                # (1, N*J)

    # (2, S) coordinate matrix: row 0 = x (col index, scaled), row 1 = y
    s_idx = jnp.arange(S)
    coord = jnp.stack(
        [(s_idx % W_HM).astype(jnp.float32) * SCALE_X,
         (s_idx // W_HM).astype(jnp.float32) * SCALE_Y], axis=0)       # (2, S)

    # projection-matrix rows broadcast over joints: (V, 3, 4, B*J)
    proj_b = jnp.broadcast_to(
        jnp.transpose(proj_matricies, (1, 2, 3, 0))[..., None],
        (V, 3, 4, B, J)).reshape(V, 3, 4, BJ)

    hm_soft, kp, conf_n, pts = pl.pallas_call(
        _fused_kernel,
        out_shape=(
            jax.ShapeDtypeStruct((S, NJ), jnp.float32),    # softmax heatmaps
            jax.ShapeDtypeStruct((2, NJ), jnp.float32),    # 2D keypoints (x; y)
            jax.ShapeDtypeStruct((V, BJ), jnp.float32),    # normalized confidences
            jax.ShapeDtypeStruct((3, BJ), jnp.float32),    # 3D points (x; y; z)
        ),
        grid=(1,),
        in_specs=[
            pl.BlockSpec((HW, NC), lambda i: (0, 0)),
            pl.BlockSpec((S, HW), lambda i: (0, 0)),
            pl.BlockSpec((NC, NJ), lambda i: (0, 0)),
            pl.BlockSpec((1, NJ), lambda i: (0, 0)),
            pl.BlockSpec((2, S), lambda i: (0, 0)),
            pl.BlockSpec((V, 3, 4, BJ), lambda i: (0, 0, 0, 0)),
        ],
        out_specs=(
            pl.BlockSpec((S, NJ), lambda i: (0, 0)),
            pl.BlockSpec((2, NJ), lambda i: (0, 0)),
            pl.BlockSpec((V, BJ), lambda i: (0, 0)),
            pl.BlockSpec((3, BJ), lambda i: (0, 0)),
        ),
        compiler_params=pltpu.CompilerParams(dimension_semantics=("arbitrary",)),
    )(x_t, pool_t, w_big_t, b_row, coord, proj_b)

    # wrapper-side layout plumbing back to the PyTorch output conventions
    heatmaps = jnp.transpose(hm_soft.reshape(H_HM, W_HM, V, B, J),
                             (3, 2, 4, 0, 1))                          # (B,V,J,H,W)
    keypoints_2d = jnp.transpose(kp.reshape(2, V, B, J), (2, 1, 3, 0))  # (B,V,J,2)
    alg_confidences = jnp.transpose(conf_n.reshape(V, B, J), (1, 0, 2))  # (B,V,J)
    keypoints_3d = jnp.transpose(pts.reshape(3, B, J), (1, 2, 0))       # (B,J,3)
    return keypoints_3d, keypoints_2d, heatmaps, alg_confidences


if __name__ == "__main__":
    key = jax.random.PRNGKey(0)
    k_img, k_proj, k_w, k_b = jax.random.split(key, 4)
    images = jax.random.normal(k_img, (B, V, C, H_IMG, W_IMG), dtype=jnp.float32)
    proj_matricies = jax.random.normal(k_proj, (B, V, 3, 4), dtype=jnp.float32)
    # deterministic synthetic backbone-head parameters
    w_head = 0.3 * jax.random.normal(k_w, (J, C), dtype=jnp.float32)
    b_head = 0.1 * jax.random.normal(k_b, (J, 1), dtype=jnp.float32)
    pool_t = make_pool_matrix()

    out = algebraic_triangulation_forward(images, proj_matricies,
                                          w_head, b_head, pool_t)
    out = jax.block_until_ready(out)
    keypoints_3d, keypoints_2d, heatmaps, alg_confidences = out
    assert keypoints_3d.shape == (B, J, 3)
    assert keypoints_2d.shape == (B, V, J, 2)
    assert heatmaps.shape == (B, V, J, H_HM, W_HM)
    assert alg_confidences.shape == (B, V, J)
    print("KERNEL_OK")
</pallas_src>

<mosaic_0001>
module attributes {stable_mosaic.version = 11 : i64} {
  func.func @_fused_kernel(%arg0: i32, %arg1: memref<3072x64xf32, #tpu.memory_space<vmem>>, %arg2: memref<192x3072xf32, #tpu.memory_space<vmem>>, %arg3: memref<64x128xf32, #tpu.memory_space<vmem>>, %arg4: memref<1x128xf32, #tpu.memory_space<vmem>>, %arg5: memref<2x192xf32, #tpu.memory_space<vmem>>, %arg6: memref<4x3x4x32xf32, #tpu.memory_space<vmem>>, %arg7: memref<192x128xf32, #tpu.memory_space<vmem>>, %arg8: memref<2x128xf32, #tpu.memory_space<vmem>>, %arg9: memref<4x32xf32, #tpu.memory_space<vmem>>, %arg10: memref<3x32xf32, #tpu.memory_space<vmem>>) attributes {dimension_semantics = [#tpu.dimension_semantics<arbitrary>], iteration_bounds = array<i64: 1>, scalar_prefetch = 0 : i64, scratch_operands = 0 : i64, tpu.core_type = #tpu.core_type<tc>, window_params = [{pipeline_mode = #tpu.pipeline_mode<synchronous>, transform_indices = @transform_0, window_bounds = array<i64: 3072, 64>}, {pipeline_mode = #tpu.pipeline_mode<synchronous>, transform_indices = @transform_1, window_bounds = array<i64: 192, 3072>}, {pipeline_mode = #tpu.pipeline_mode<synchronous>, transform_indices = @transform_2, window_bounds = array<i64: 64, 128>}, {pipeline_mode = #tpu.pipeline_mode<synchronous>, transform_indices = @transform_3, window_bounds = array<i64: 1, 128>}, {pipeline_mode = #tpu.pipeline_mode<synchronous>, transform_indices = @transform_4, window_bounds = array<i64: 2, 192>}, {pipeline_mode = #tpu.pipeline_mode<synchronous>, transform_indices = @transform_5, window_bounds = array<i64: 4, 3, 4, 32>}, {pipeline_mode = #tpu.pipeline_mode<synchronous>, transform_indices = @transform_6, window_bounds = array<i64: 192, 128>}, {pipeline_mode = #tpu.pipeline_mode<synchronous>, transform_indices = @transform_7, window_bounds = array<i64: 2, 128>}, {pipeline_mode = #tpu.pipeline_mode<synchronous>, transform_indices = @transform_8, window_bounds = array<i64: 4, 32>}, {pipeline_mode = #tpu.pipeline_mode<synchronous>, transform_indices = @transform_9, window_bounds = array<i64: 3, 32>}]} {
    %c0 = arith.constant 0 : index
    %c0_0 = arith.constant 0 : index
    %0 = vector.load %arg2[%c0, %c0_0] : memref<192x3072xf32, #tpu.memory_space<vmem>>, vector<192x3072xf32>
    %c0_1 = arith.constant 0 : index
    %c0_2 = arith.constant 0 : index
    %1 = vector.load %arg1[%c0_1, %c0_2] : memref<3072x64xf32, #tpu.memory_space<vmem>>, vector<3072x64xf32>
    %cst = arith.constant dense<0.000000e+00> : vector<192x64xf32>
    %2 = tpu.matmul %0, %1, %cst {dimension_numbers = #tpu.dot_dimension_numbers<[1], [0], [0], [1], [0, 0, 1, 1], [], []>} : vector<192x3072xf32>, vector<3072x64xf32>, vector<192x64xf32> -> vector<192x64xf32>
    %c0_3 = arith.constant 0 : index
    %c0_4 = arith.constant 0 : index
    %3 = vector.load %arg3[%c0_3, %c0_4] : memref<64x128xf32, #tpu.memory_space<vmem>>, vector<64x128xf32>
    %cst_5 = arith.constant dense<0.000000e+00> : vector<192x128xf32>
    %4 = tpu.matmul %2, %3, %cst_5 {dimension_numbers = #tpu.dot_dimension_numbers<[1], [0], [0], [1], [0, 0, 1, 1], [], []>} : vector<192x64xf32>, vector<64x128xf32>, vector<192x128xf32> -> vector<192x128xf32>
    %c0_6 = arith.constant 0 : index
    %c0_7 = arith.constant 0 : index
    %5 = vector.load %arg4[%c0_6, %c0_7] : memref<1x128xf32, #tpu.memory_space<vmem>>, vector<1x128xf32>
    %6 = vector.broadcast %5 : vector<1x128xf32> to vector<192x128xf32>
    %7 = arith.addf %4, %6 : vector<192x128xf32>
    %cst_8 = arith.constant dense<0xFF800000> : vector<128xf32>
    %8 = vector.multi_reduction <maximumf>, %7, %cst_8 [0] : vector<192x128xf32> to vector<128xf32>
    %9 = vector.shape_cast %8 : vector<128xf32> to vector<1x128xf32>
    %cst_9 = arith.constant 1.000000e+02 : f32
    %10 = vector.broadcast %cst_9 : f32 to vector<1x128xf32>
    %11 = arith.mulf %9, %10 : vector<1x128xf32>
    %cst_10 = arith.constant 1.000000e+02 : f32
    %12 = vector.broadcast %cst_10 : f32 to vector<192x128xf32>
    %13 = arith.mulf %7, %12 : vector<192x128xf32>
    %14 = vector.broadcast %11 : vector<1x128xf32> to vector<192x128xf32>
    %15 = arith.subf %13, %14 : vector<192x128xf32>
    %16 = math.exp %15 : vector<192x128xf32>
    %cst_11 = arith.constant dense<0.000000e+00> : vector<128xf32>
    %17 = vector.multi_reduction <add>, %16, %cst_11 [0] : vector<192x128xf32> to vector<128xf32>
    %18 = vector.shape_cast %17 : vector<128xf32> to vector<1x128xf32>
    %cst_12 = arith.constant 1.000000e+00 : f32
    %19 = vector.broadcast %cst_12 : f32 to vector<1x128xf32>
    %20 = arith.divf %19, %18 : vector<1x128xf32>
    %21 = vector.broadcast %20 : vector<1x128xf32> to vector<192x128xf32>
    %22 = arith.mulf %16, %21 : vector<192x128xf32>
    %c0_13 = arith.constant 0 : index
    %c0_14 = arith.constant 0 : index
    %23 = vector.load %arg7[%c0_13, %c0_14] : memref<192x128xf32, #tpu.memory_space<vmem>>, vector<192x128xf32>
    tpu.vector_store %arg7[%c0_13, %c0_14], %22 {strides = array<i32>} : memref<192x128xf32, #tpu.memory_space<vmem>>, vector<192x128xf32>,
    %c0_15 = arith.constant 0 : index
    %c0_16 = arith.constant 0 : index
    %24 = vector.load %arg5[%c0_15, %c0_16] : memref<2x192xf32, #tpu.memory_space<vmem>>, vector<2x192xf32>
    %cst_17 = arith.constant dense<0.000000e+00> : vector<2x128xf32>
    %25 = tpu.matmul %24, %22, %cst_17 {dimension_numbers = #tpu.dot_dimension_numbers<[1], [0], [0], [1], [0, 0, 1, 1], [], []>} : vector<2x192xf32>, vector<192x128xf32>, vector<2x128xf32> -> vector<2x128xf32>
    %c0_18 = arith.constant 0 : index
    %c0_19 = arith.constant 0 : index
    %26 = vector.load %arg8[%c0_18, %c0_19] : memref<2x128xf32, #tpu.memory_space<vmem>>, vector<2x128xf32>
    tpu.vector_store %arg8[%c0_18, %c0_19], %25 {strides = array<i32>} : memref<2x128xf32, #tpu.memory_space<vmem>>, vector<2x128xf32>,
    %27 = vector.extract_strided_slice %9 {offsets = [0, 0], sizes = [1, 32], strides = [1, 1]} : vector<1x128xf32> to vector<1x32xf32>
    %28 = vector.extract_strided_slice %9 {offsets = [0, 32], sizes = [1, 32], strides = [1, 1]} : vector<1x128xf32> to vector<1x32xf32>
    %29 = vector.extract_strided_slice %9 {offsets = [0, 64], sizes = [1, 32], strides = [1, 1]} : vector<1x128xf32> to vector<1x32xf32>
    %30 = vector.extract_strided_slice %9 {offsets = [0, 96], sizes = [1, 32], strides = [1, 1]} : vector<1x128xf32> to vector<1x32xf32>
    %31 = arith.addf %27, %28 : vector<1x32xf32>
    %32 = arith.addf %31, %29 : vector<1x32xf32>
    %33 = arith.addf %32, %30 : vector<1x32xf32>
    %34 = arith.divf %27, %33 : vector<1x32xf32>
    %cst_20 = arith.constant 9.99999974E-6 : f32
    %35 = vector.broadcast %cst_20 : f32 to vector<1x32xf32>
    %36 = arith.addf %34, %35 : vector<1x32xf32>
    %37 = arith.divf %28, %33 : vector<1x32xf32>
    %cst_21 = arith.constant 9.99999974E-6 : f32
    %38 = vector.broadcast %cst_21 : f32 to vector<1x32xf32>
    %39 = arith.addf %37, %38 : vector<1x32xf32>
    %40 = arith.divf %29, %33 : vector<1x32xf32>
    %cst_22 = arith.constant 9.99999974E-6 : f32
    %41 = vector.broadcast %cst_22 : f32 to vector<1x32xf32>
    %42 = arith.addf %40, %41 : vector<1x32xf32>
    %43 = arith.divf %30, %33 : vector<1x32xf32>
    %cst_23 = arith.constant 9.99999974E-6 : f32
    %44 = vector.broadcast %cst_23 : f32 to vector<1x32xf32>
    %45 = arith.addf %43, %44 : vector<1x32xf32>
    %46 = tpu.concatenate %36, %39, %42, %45 in 0 : vector<1x32xf32>, vector<1x32xf32>, vector<1x32xf32>, vector<1x32xf32> -> vector<4x32xf32>
    %c0_24 = arith.constant 0 : index
    %c0_25 = arith.constant 0 : index
    %47 = vector.load %arg9[%c0_24, %c0_25] : memref<4x32xf32, #tpu.memory_space<vmem>>, vector<4x32xf32>
    tpu.vector_store %arg9[%c0_24, %c0_25], %46 {strides = array<i32>} : memref<4x32xf32, #tpu.memory_space<vmem>>, vector<4x32xf32>,
    %cst_26 = arith.constant 0.000000e+00 : f32
    %48 = vector.broadcast %cst_26 : f32 to vector<4x32xf32>
    %cst_27 = arith.constant 0.000000e+00 : f32
    %49 = vector.broadcast %cst_27 : f32 to vector<4x32xf32>
    %cst_28 = arith.constant 0.000000e+00 : f32
    %50 = vector.broadcast %cst_28 : f32 to vector<4x32xf32>
    %cst_29 = arith.constant 0.000000e+00 : f32
    %51 = vector.broadcast %cst_29 : f32 to vector<4x32xf32>
    %52 = vector.extract_strided_slice %25 {offsets = [0, 0], sizes = [1, 32], strides = [1, 1]} : vector<2x128xf32> to vector<1x32xf32>
    %53 = vector.extract_strided_slice %25 {offsets = [1, 0], sizes = [1, 32], strides = [1, 1]} : vector<2x128xf32> to vector<1x32xf32>
    %c0_30 = arith.constant 0 : index
    %c0_31 = arith.constant 0 : index
    %c0_32 = arith.constant 0 : index
    %c0_33 = arith.constant 0 : index
    %54 = vector.load %arg6[%c0_30, %c0_31, %c0_32, %c0_33] : memref<4x3x4x32xf32, #tpu.memory_space<vmem>>, vector<1x1x4x32xf32>
    %55 = vector.shape_cast %54 : vector<1x1x4x32xf32> to vector<4x32xf32>
    %c0_34 = arith.constant 0 : index
    %c1 = arith.constant 1 : index
    %c0_35 = arith.constant 0 : index
    %c0_36 = arith.constant 0 : index
    %56 = vector.load %arg6[%c0_34, %c1, %c0_35, %c0_36] : memref<4x3x4x32xf32, #tpu.memory_space<vmem>>, vector<1x1x4x32xf32>
    %57 = vector.shape_cast %56 : vector<1x1x4x32xf32> to vector<4x32xf32>
    %c0_37 = arith.constant 0 : index
    %c2 = arith.constant 2 : index
    %c0_38 = arith.constant 0 : index
    %c0_39 = arith.constant 0 : index
    %58 = vector.load %arg6[%c0_37, %c2, %c0_38, %c0_39] : memref<4x3x4x32xf32, #tpu.memory_space<vmem>>, vector<1x1x4x32xf32>
    %59 = vector.shape_cast %58 : vector<1x1x4x32xf32> to vector<4x32xf32>
    %60 = vector.broadcast %52 : vector<1x32xf32> to vector<4x32xf32>
    %61 = arith.mulf %60, %59 : vector<4x32xf32>
    %62 = arith.subf %61, %55 : vector<4x32xf32>
    %63 = vector.broadcast %36 : vector<1x32xf32> to vector<4x32xf32>
    %64 = arith.mulf %63, %62 : vector<4x32xf32>
    %65 = vector.broadcast %53 : vector<1x32xf32> to vector<4x32xf32>
    %66 = arith.mulf %65, %59 : vector<4x32xf32>
    %67 = arith.subf %66, %57 : vector<4x32xf32>
    %68 = vector.broadcast %36 : vector<1x32xf32> to vector<4x32xf32>
    %69 = arith.mulf %68, %67 : vector<4x32xf32>
    %70 = vector.extract_strided_slice %64 {offsets = [0, 0], sizes = [1, 32], strides = [1, 1]} : vector<4x32xf32> to vector<1x32xf32>
    %71 = vector.broadcast %70 : vector<1x32xf32> to vector<4x32xf32>
    %72 = arith.mulf %71, %64 : vector<4x32xf32>
    %73 = arith.addf %48, %72 : vector<4x32xf32>
    %74 = vector.extract_strided_slice %69 {offsets = [0, 0], sizes = [1, 32], strides = [1, 1]} : vector<4x32xf32> to vector<1x32xf32>
    %75 = vector.broadcast %74 : vector<1x32xf32> to vector<4x32xf32>
    %76 = arith.mulf %75, %69 : vector<4x32xf32>
    %77 = arith.addf %73, %76 : vector<4x32xf32>
    %78 = vector.extract_strided_slice %64 {offsets = [1, 0], sizes = [1, 32], strides = [1, 1]} : vector<4x32xf32> to vector<1x32xf32>
    %79 = vector.broadcast %78 : vector<1x32xf32> to vector<4x32xf32>
    %80 = arith.mulf %79, %64 : vector<4x32xf32>
    %81 = arith.addf %49, %80 : vector<4x32xf32>
    %82 = vector.extract_strided_slice %69 {offsets = [1, 0], sizes = [1, 32], strides = [1, 1]} : vector<4x32xf32> to vector<1x32xf32>
    %83 = vector.broadcast %82 : vector<1x32xf32> to vector<4x32xf32>
    %84 = arith.mulf %83, %69 : vector<4x32xf32>
    %85 = arith.addf %81, %84 : vector<4x32xf32>
    %86 = vector.extract_strided_slice %64 {offsets = [2, 0], sizes = [1, 32], strides = [1, 1]} : vector<4x32xf32> to vector<1x32xf32>
    %87 = vector.broadcast %86 : vector<1x32xf32> to vector<4x32xf32>
    %88 = arith.mulf %87, %64 : vector<4x32xf32>
    %89 = arith.addf %50, %88 : vector<4x32xf32>
    %90 = vector.extract_strided_slice %69 {offsets = [2, 0], sizes = [1, 32], strides = [1, 1]} : vector<4x32xf32> to vector<1x32xf32>
    %91 = vector.broadcast %90 : vector<1x32xf32> to vector<4x32xf32>
    %92 = arith.mulf %91, %69 : vector<4x32xf32>
    %93 = arith.addf %89, %92 : vector<4x32xf32>
    %94 = vector.extract_strided_slice %64 {offsets = [3, 0], sizes = [1, 32], strides = [1, 1]} : vector<4x32xf32> to vector<1x32xf32>
    %95 = vector.broadcast %94 : vector<1x32xf32> to vector<4x32xf32>
    %96 = arith.mulf %95, %64 : vector<4x32xf32>
    %97 = arith.addf %51, %96 : vector<4x32xf32>
    %98 = vector.extract_strided_slice %69 {offsets = [3, 0], sizes = [1, 32], strides = [1, 1]} : vector<4x32xf32> to vector<1x32xf32>
    %99 = vector.broadcast %98 : vector<1x32xf32> to vector<4x32xf32>
    %100 = arith.mulf %99, %69 : vector<4x32xf32>
    %101 = arith.addf %97, %100 : vector<4x32xf32>
    %102 = vector.extract_strided_slice %25 {offsets = [0, 32], sizes = [1, 32], strides = [1, 1]} : vector<2x128xf32> to vector<1x32xf32>
    %103 = vector.extract_strided_slice %25 {offsets = [1, 32], sizes = [1, 32], strides = [1, 1]} : vector<2x128xf32> to vector<1x32xf32>
    %c1_40 = arith.constant 1 : index
    %c0_41 = arith.constant 0 : index
    %c0_42 = arith.constant 0 : index
    %c0_43 = arith.constant 0 : index
    %104 = vector.load %arg6[%c1_40, %c0_41, %c0_42, %c0_43] : memref<4x3x4x32xf32, #tpu.memory_space<vmem>>, vector<1x1x4x32xf32>
    %105 = vector.shape_cast %104 : vector<1x1x4x32xf32> to vector<4x32xf32>
    %c1_44 = arith.constant 1 : index
    %c1_45 = arith.constant 1 : index
    %c0_46 = arith.constant 0 : index
    %c0_47 = arith.constant 0 : index
    %106 = vector.load %arg6[%c1_44, %c1_45, %c0_46, %c0_47] : memref<4x3x4x32xf32, #tpu.memory_space<vmem>>, vector<1x1x4x32xf32>
    %107 = vector.shape_cast %106 : vector<1x1x4x32xf32> to vector<4x32xf32>
    %c1_48 = arith.constant 1 : index
    %c2_49 = arith.constant 2 : index
    %c0_50 = arith.constant 0 : index
    %c0_51 = arith.constant 0 : index
    %108 = vector.load %arg6[%c1_48, %c2_49, %c0_50, %c0_51] : memref<4x3x4x32xf32, #tpu.memory_space<vmem>>, vector<1x1x4x32xf32>
    %109 = vector.shape_cast %108 : vector<1x1x4x32xf32> to vector<4x32xf32>
    %110 = vector.broadcast %102 : vector<1x32xf32> to vector<4x32xf32>
    %111 = arith.mulf %110, %109 : vector<4x32xf32>
    %112 = arith.subf %111, %105 : vector<4x32xf32>
    %113 = vector.broadcast %39 : vector<1x32xf32> to vector<4x32xf32>
    %114 = arith.mulf %113, %112 : vector<4x32xf32>
    %115 = vector.broadcast %103 : vector<1x32xf32> to vector<4x32xf32>
    %116 = arith.mulf %115, %109 : vector<4x32xf32>
    %117 = arith.subf %116, %107 : vector<4x32xf32>
    %118 = vector.broadcast %39 : vector<1x32xf32> to vector<4x32xf32>
    %119 = arith.mulf %118, %117 : vector<4x32xf32>
    %120 = vector.extract_strided_slice %114 {offsets = [0, 0], sizes = [1, 32], strides = [1, 1]} : vector<4x32xf32> to vector<1x32xf32>
    %121 = vector.broadcast %120 : vector<1x32xf32> to vector<4x32xf32>
    %122 = arith.mulf %121, %114 : vector<4x32xf32>
    %123 = arith.addf %77, %122 : vector<4x32xf32>
    %124 = vector.extract_strided_slice %119 {offsets = [0, 0], sizes = [1, 32], strides = [1, 1]} : vector<4x32xf32> to vector<1x32xf32>
    %125 = vector.broadcast %124 : vector<1x32xf32> to vector<4x32xf32>
    %126 = arith.mulf %125, %119 : vector<4x32xf32>
    %127 = arith.addf %123, %126 : vector<4x32xf32>
    %128 = vector.extract_strided_slice %114 {offsets = [1, 0], sizes = [1, 32], strides = [1, 1]} : vector<4x32xf32> to vector<1x32xf32>
    %129 = vector.broadcast %128 : vector<1x32xf32> to vector<4x32xf32>
    %130 = arith.mulf %129, %114 : vector<4x32xf32>
    %131 = arith.addf %85, %130 : vector<4x32xf32>
    %132 = vector.extract_strided_slice %119 {offsets = [1, 0], sizes = [1, 32], strides = [1, 1]} : vector<4x32xf32> to vector<1x32xf32>
    %133 = vector.broadcast %132 : vector<1x32xf32> to vector<4x32xf32>
    %134 = arith.mulf %133, %119 : vector<4x32xf32>
    %135 = arith.addf %131, %134 : vector<4x32xf32>
    %136 = vector.extract_strided_slice %114 {offsets = [2, 0], sizes = [1, 32], strides = [1, 1]} : vector<4x32xf32> to vector<1x32xf32>
    %137 = vector.broadcast %136 : vector<1x32xf32> to vector<4x32xf32>
    %138 = arith.mulf %137, %114 : vector<4x32xf32>
    %139 = arith.addf %93, %138 : vector<4x32xf32>
    %140 = vector.extract_strided_slice %119 {offsets = [2, 0], sizes = [1, 32], strides = [1, 1]} : vector<4x32xf32> to vector<1x32xf32>
    %141 = vector.broadcast %140 : vector<1x32xf32> to vector<4x32xf32>
    %142 = arith.mulf %141, %119 : vector<4x32xf32>
    %143 = arith.addf %139, %142 : vector<4x32xf32>
    %144 = vector.extract_strided_slice %114 {offsets = [3, 0], sizes = [1, 32], strides = [1, 1]} : vector<4x32xf32> to vector<1x32xf32>
    %145 = vector.broadcast %144 : vector<1x32xf32> to vector<4x32xf32>
    %146 = arith.mulf %145, %114 : vector<4x32xf32>
    %147 = arith.addf %101, %146 : vector<4x32xf32>
    %148 = vector.extract_strided_slice %119 {offsets = [3, 0], sizes = [1, 32], strides = [1, 1]} : vector<4x32xf32> to vector<1x32xf32>
    %149 = vector.broadcast %148 : vector<1x32xf32> to vector<4x32xf32>
    %150 = arith.mulf %149, %119 : vector<4x32xf32>
    %151 = arith.addf %147, %150 : vector<4x32xf32>
    %152 = vector.extract_strided_slice %25 {offsets = [0, 64], sizes = [1, 32], strides = [1, 1]} : vector<2x128xf32> to vector<1x32xf32>
    %153 = vector.extract_strided_slice %25 {offsets = [1, 64], sizes = [1, 32], strides = [1, 1]} : vector<2x128xf32> to vector<1x32xf32>
    %c2_52 = arith.constant 2 : index
    %c0_53 = arith.constant 0 : index
    %c0_54 = arith.constant 0 : index
    %c0_55 = arith.constant 0 : index
    %154 = vector.load %arg6[%c2_52, %c0_53, %c0_54, %c0_55] : memref<4x3x4x32xf32, #tpu.memory_space<vmem>>, vector<1x1x4x32xf32>
    %155 = vector.shape_cast %154 : vector<1x1x4x32xf32> to vector<4x32xf32>
    %c2_56 = arith.constant 2 : index
    %c1_57 = arith.constant 1 : index
    %c0_58 = arith.constant 0 : index
    %c0_59 = arith.constant 0 : index
    %156 = vector.load %arg6[%c2_56, %c1_57, %c0_58, %c0_59] : memref<4x3x4x32xf32, #tpu.memory_space<vmem>>, vector<1x1x4x32xf32>
    %157 = vector.shape_cast %156 : vector<1x1x4x32xf32> to vector<4x32xf32>
    %c2_60 = arith.constant 2 : index
    %c2_61 = arith.constant 2 : index
    %c0_62 = arith.constant 0 : index
    %c0_63 = arith.constant 0 : index
    %158 = vector.load %arg6[%c2_60, %c2_61, %c0_62, %c0_63] : memref<4x3x4x32xf32, #tpu.memory_space<vmem>>, vector<1x1x4x32xf32>
    %159 = vector.shape_cast %158 : vector<1x1x4x32xf32> to vector<4x32xf32>
    %160 = vector.broadcast %152 : vector<1x32xf32> to vector<4x32xf32>
    %161 = arith.mulf %160, %159 : vector<4x32xf32>
    %162 = arith.subf %161, %155 : vector<4x32xf32>
    %163 = vector.broadcast %42 : vector<1x32xf32> to vector<4x32xf32>
    %164 = arith.mulf %163, %162 : vector<4x32xf32>
    %165 = vector.broadcast %153 : vector<1x32xf32> to vector<4x32xf32>
    %166 = arith.mulf %165, %159 : vector<4x32xf32>
    %167 = arith.subf %166, %157 : vector<4x32xf32>
    %168 = vector.broadcast %42 : vector<1x32xf32> to vector<4x32xf32>
    %169 = arith.mulf %168, %167 : vector<4x32xf32>
    %170 = vector.extract_strided_slice %164 {offsets = [0, 0], sizes = [1, 32], strides = [1, 1]} : vector<4x32xf32> to vector<1x32xf32>
    %171 = vector.broadcast %170 : vector<1x32xf32> to vector<4x32xf32>
    %172 = arith.mulf %171, %164 : vector<4x32xf32>
    %173 = arith.addf %127, %172 : vector<4x32xf32>
    %174 = vector.extract_strided_slice %169 {offsets = [0, 0], sizes = [1, 32], strides = [1, 1]} : vector<4x32xf32> to vector<1x32xf32>
    %175 = vector.broadcast %174 : vector<1x32xf32> to vector<4x32xf32>
    %176 = arith.mulf %175, %169 : vector<4x32xf32>
    %177 = arith.addf %173, %176 : vector<4x32xf32>
    %178 = vector.extract_strided_slice %164 {offsets = [1, 0], sizes = [1, 32], strides = [1, 1]} : vector<4x32xf32> to vector<1x32xf32>
    %179 = vector.broadcast %178 : vector<1x32xf32> to vector<4x32xf32>
    %180 = arith.mulf %179, %164 : vector<4x32xf32>
    %181 = arith.addf %135, %180 : vector<4x32xf32>
    %182 = vector.extract_strided_slice %169 {offsets = [1, 0], sizes = [1, 32], strides = [1, 1]} : vector<4x32xf32> to vector<1x32xf32>
    %183 = vector.broadcast %182 : vector<1x32xf32> to vector<4x32xf32>
    %184 = arith.mulf %183, %169 : vector<4x32xf32>
    %185 = arith.addf %181, %184 : vector<4x32xf32>
    %186 = vector.extract_strided_slice %164 {offsets = [2, 0], sizes = [1, 32], strides = [1, 1]} : vector<4x32xf32> to vector<1x32xf32>
    %187 = vector.broadcast %186 : vector<1x32xf32> to vector<4x32xf32>
    %188 = arith.mulf %187, %164 : vector<4x32xf32>
    %189 = arith.addf %143, %188 : vector<4x32xf32>
    %190 = vector.extract_strided_slice %169 {offsets = [2, 0], sizes = [1, 32], strides = [1, 1]} : vector<4x32xf32> to vector<1x32xf32>
    %191 = vector.broadcast %190 : vector<1x32xf32> to vector<4x32xf32>
    %192 = arith.mulf %191, %169 : vector<4x32xf32>
    %193 = arith.addf %189, %192 : vector<4x32xf32>
    %194 = vector.extract_strided_slice %164 {offsets = [3, 0], sizes = [1, 32], strides = [1, 1]} : vector<4x32xf32> to vector<1x32xf32>
    %195 = vector.broadcast %194 : vector<1x32xf32> to vector<4x32xf32>
    %196 = arith.mulf %195, %164 : vector<4x32xf32>
    %197 = arith.addf %151, %196 : vector<4x32xf32>
    %198 = vector.extract_strided_slice %169 {offsets = [3, 0], sizes = [1, 32], strides = [1, 1]} : vector<4x32xf32> to vector<1x32xf32>
    %199 = vector.broadcast %198 : vector<1x32xf32> to vector<4x32xf32>
    %200 = arith.mulf %199, %169 : vector<4x32xf32>
    %201 = arith.addf %197, %200 : vector<4x32xf32>
    %202 = vector.extract_strided_slice %25 {offsets = [0, 96], sizes = [1, 32], strides = [1, 1]} : vector<2x128xf32> to vector<1x32xf32>
    %203 = vector.extract_strided_slice %25 {offsets = [1, 96], sizes = [1, 32], strides = [1, 1]} : vector<2x128xf32> to vector<1x32xf32>
    %c3 = arith.constant 3 : index
    %c0_64 = arith.constant 0 : index
    %c0_65 = arith.constant 0 : index
    %c0_66 = arith.constant 0 : index
    %204 = vector.load %arg6[%c3, %c0_64, %c0_65, %c0_66] : memref<4x3x4x32xf32, #tpu.memory_space<vmem>>, vector<1x1x4x32xf32>
    %205 = vector.shape_cast %204 : vector<1x1x4x32xf32> to vector<4x32xf32>
    %c3_67 = arith.constant 3 : index
    %c1_68 = arith.constant 1 : index
    %c0_69 = arith.constant 0 : index
    %c0_70 = arith.constant 0 : index
    %206 = vector.load %arg6[%c3_67, %c1_68, %c0_69, %c0_70] : memref<4x3x4x32xf32, #tpu.memory_space<vmem>>, vector<1x1x4x32xf32>
    %207 = vector.shape_cast %206 : vector<1x1x4x32xf32> to vector<4x32xf32>
    %c3_71 = arith.constant 3 : index
    %c2_72 = arith.constant 2 : index
    %c0_73 = arith.constant 0 : index
    %c0_74 = arith.constant 0 : index
    %208 = vector.load %arg6[%c3_71, %c2_72, %c0_73, %c0_74] : memref<4x3x4x32xf32, #tpu.memory_space<vmem>>, vector<1x1x4x32xf32>
    %209 = vector.shape_cast %208 : vector<1x1x4x32xf32> to vector<4x32xf32>
    %210 = vector.broadcast %202 : vector<1x32xf32> to vector<4x32xf32>
    %211 = arith.mulf %210, %209 : vector<4x32xf32>
    %212 = arith.subf %211, %205 : vector<4x32xf32>
    %213 = vector.broadcast %45 : vector<1x32xf32> to vector<4x32xf32>
    %214 = arith.mulf %213, %212 : vector<4x32xf32>
    %215 = vector.broadcast %203 : vector<1x32xf32> to vector<4x32xf32>
    %216 = arith.mulf %215, %209 : vector<4x32xf32>
    %217 = arith.subf %216, %207 : vector<4x32xf32>
    %218 = vector.broadcast %45 : vector<1x32xf32> to vector<4x32xf32>
    %219 = arith.mulf %218, %217 : vector<4x32xf32>
    %220 = vector.extract_strided_slice %214 {offsets = [0, 0], sizes = [1, 32], strides = [1, 1]} : vector<4x32xf32> to vector<1x32xf32>
    %221 = vector.broadcast %220 : vector<1x32xf32> to vector<4x32xf32>
    %222 = arith.mulf %221, %214 : vector<4x32xf32>
    %223 = arith.addf %177, %222 : vector<4x32xf32>
    %224 = vector.extract_strided_slice %219 {offsets = [0, 0], sizes = [1, 32], strides = [1, 1]} : vector<4x32xf32> to vector<1x32xf32>
    %225 = vector.broadcast %224 : vector<1x32xf32> to vector<4x32xf32>
    %226 = arith.mulf %225, %219 : vector<4x32xf32>
    %227 = arith.addf %223, %226 : vector<4x32xf32>
    %228 = vector.extract_strided_slice %214 {offsets = [1, 0], sizes = [1, 32], strides = [1, 1]} : vector<4x32xf32> to vector<1x32xf32>
    %229 = vector.broadcast %228 : vector<1x32xf32> to vector<4x32xf32>
    %230 = arith.mulf %229, %214 : vector<4x32xf32>
    %231 = arith.addf %185, %230 : vector<4x32xf32>
    %232 = vector.extract_strided_slice %219 {offsets = [1, 0], sizes = [1, 32], strides = [1, 1]} : vector<4x32xf32> to vector<1x32xf32>
    %233 = vector.broadcast %232 : vector<1x32xf32> to vector<4x32xf32>
    %234 = arith.mulf %233, %219 : vector<4x32xf32>
    %235 = arith.addf %231, %234 : vector<4x32xf32>
    %236 = vector.extract_strided_slice %214 {offsets = [2, 0], sizes = [1, 32], strides = [1, 1]} : vector<4x32xf32> to vector<1x32xf32>
    %237 = vector.broadcast %236 : vector<1x32xf32> to vector<4x32xf32>
    %238 = arith.mulf %237, %214 : vector<4x32xf32>
    %239 = arith.addf %193, %238 : vector<4x32xf32>
    %240 = vector.extract_strided_slice %219 {offsets = [2, 0], sizes = [1, 32], strides = [1, 1]} : vector<4x32xf32> to vector<1x32xf32>
    %241 = vector.broadcast %240 : vector<1x32xf32> to vector<4x32xf32>
    %242 = arith.mulf %241, %219 : vector<4x32xf32>
    %243 = arith.addf %239, %242 : vector<4x32xf32>
    %244 = vector.extract_strided_slice %214 {offsets = [3, 0], sizes = [1, 32], strides = [1, 1]} : vector<4x32xf32> to vector<1x32xf32>
    %245 = vector.broadcast %244 : vector<1x32xf32> to vector<4x32xf32>
    %246 = arith.mulf %245, %214 : vector<4x32xf32>
    %247 = arith.addf %201, %246 : vector<4x32xf32>
    %248 = vector.extract_strided_slice %219 {offsets = [3, 0], sizes = [1, 32], strides = [1, 1]} : vector<4x32xf32> to vector<1x32xf32>
    %249 = vector.broadcast %248 : vector<1x32xf32> to vector<4x32xf32>
    %250 = arith.mulf %249, %219 : vector<4x32xf32>
    %251 = arith.addf %247, %250 : vector<4x32xf32>
    %252 = vector.extract_strided_slice %227 {offsets = [0, 0], sizes = [1, 32], strides = [1, 1]} : vector<4x32xf32> to vector<1x32xf32>
    %253 = vector.extract_strided_slice %235 {offsets = [1, 0], sizes = [1, 32], strides = [1, 1]} : vector<4x32xf32> to vector<1x32xf32>
    %254 = arith.addf %252, %253 : vector<1x32xf32>
    %255 = vector.extract_strided_slice %243 {offsets = [2, 0], sizes = [1, 32], strides = [1, 1]} : vector<4x32xf32> to vector<1x32xf32>
    %256 = arith.addf %254, %255 : vector<1x32xf32>
    %257 = vector.extract_strided_slice %251 {offsets = [3, 0], sizes = [1, 32], strides = [1, 1]} : vector<4x32xf32> to vector<1x32xf32>
    %258 = arith.addf %256, %257 : vector<1x32xf32>
    %cst_75 = arith.constant 9.99999968E-21 : f32
    %259 = vector.broadcast %cst_75 : f32 to vector<1x32xf32>
    %260 = arith.addf %258, %259 : vector<1x32xf32>
    %cst_76 = arith.constant 1.000000e+00 : f32
    %261 = vector.broadcast %cst_76 : f32 to vector<1x32xf32>
    %262 = arith.divf %261, %260 : vector<1x32xf32>
    %263 = vector.extract_strided_slice %227 {offsets = [0, 0], sizes = [1, 32], strides = [1, 1]} : vector<4x32xf32> to vector<1x32xf32>
    %264 = arith.mulf %263, %262 : vector<1x32xf32>
    %265 = vector.extract_strided_slice %227 {offsets = [1, 0], sizes = [1, 32], strides = [1, 1]} : vector<4x32xf32> to vector<1x32xf32>
    %266 = arith.mulf %265, %262 : vector<1x32xf32>
    %267 = vector.extract_strided_slice %227 {offsets = [2, 0], sizes = [1, 32], strides = [1, 1]} : vector<4x32xf32> to vector<1x32xf32>
    %268 = arith.mulf %267, %262 : vector<1x32xf32>
    %269 = vector.extract_strided_slice %227 {offsets = [3, 0], sizes = [1, 32], strides = [1, 1]} : vector<4x32xf32> to vector<1x32xf32>
    %270 = arith.mulf %269, %262 : vector<1x32xf32>
    %271 = vector.extract_strided_slice %235 {offsets = [0, 0], sizes = [1, 32], strides = [1, 1]} : vector<4x32xf32> to vector<1x32xf32>
    %272 = arith.mulf %271, %262 : vector<1x32xf32>
    %273 = vector.extract_strided_slice %235 {offsets = [1, 0], sizes = [1, 32], strides = [1, 1]} : vector<4x32xf32> to vector<1x32xf32>
    %274 = arith.mulf %273, %262 : vector<1x32xf32>
    %275 = vector.extract_strided_slice %235 {offsets = [2, 0], sizes = [1, 32], strides = [1, 1]} : vector<4x32xf32> to vector<1x32xf32>
    %276 = arith.mulf %275, %262 : vector<1x32xf32>
    %277 = vector.extract_strided_slice %235 {offsets = [3, 0], sizes = [1, 32], strides = [1, 1]} : vector<4x32xf32> to vector<1x32xf32>
    %278 = arith.mulf %277, %262 : vector<1x32xf32>
    %279 = vector.extract_strided_slice %243 {offsets = [0, 0], sizes = [1, 32], strides = [1, 1]} : vector<4x32xf32> to vector<1x32xf32>
    %280 = arith.mulf %279, %262 : vector<1x32xf32>
    %281 = vector.extract_strided_slice %243 {offsets = [1, 0], sizes = [1, 32], strides = [1, 1]} : vector<4x32xf32> to vector<1x32xf32>
    %282 = arith.mulf %281, %262 : vector<1x32xf32>
    %283 = vector.extract_strided_slice %243 {offsets = [2, 0], sizes = [1, 32], strides = [1, 1]} : vector<4x32xf32> to vector<1x32xf32>
    %284 = arith.mulf %283, %262 : vector<1x32xf32>
    %285 = vector.extract_strided_slice %243 {offsets = [3, 0], sizes = [1, 32], strides = [1, 1]} : vector<4x32xf32> to vector<1x32xf32>
    %286 = arith.mulf %285, %262 : vector<1x32xf32>
    %287 = vector.extract_strided_slice %251 {offsets = [0, 0], sizes = [1, 32], strides = [1, 1]} : vector<4x32xf32> to vector<1x32xf32>
    %288 = arith.mulf %287, %262 : vector<1x32xf32>
    %289 = vector.extract_strided_slice %251 {offsets = [1, 0], sizes = [1, 32], strides = [1, 1]} : vector<4x32xf32> to vector<1x32xf32>
    %290 = arith.mulf %289, %262 : vector<1x32xf32>
    %291 = vector.extract_strided_slice %251 {offsets = [2, 0], sizes = [1, 32], strides = [1, 1]} : vector<4x32xf32> to vector<1x32xf32>
    %292 = arith.mulf %291, %262 : vector<1x32xf32>
    %293 = vector.extract_strided_slice %251 {offsets = [3, 0], sizes = [1, 32], strides = [1, 1]} : vector<4x32xf32> to vector<1x32xf32>
    %294 = arith.mulf %293, %262 : vector<1x32xf32>
    %295 = arith.mulf %284, %294 : vector<1x32xf32>
    %296 = arith.mulf %286, %292 : vector<1x32xf32>
    %297 = arith.subf %295, %296 : vector<1x32xf32>
    %298 = arith.mulf %274, %297 : vector<1x32xf32>
    %299 = arith.mulf %282, %294 : vector<1x32xf32>
    %300 = arith.mulf %286, %290 : vector<1x32xf32>
    %301 = arith.subf %299, %300 : vector<1x32xf32>
    %302 = arith.mulf %276, %301 : vector<1x32xf32>
    %303 = arith.subf %298, %302 : vector<1x32xf32>
    %304 = arith.mulf %282, %292 : vector<1x32xf32>
    %305 = arith.mulf %284, %290 : vector<1x32xf32>
    %306 = arith.subf %304, %305 : vector<1x32xf32>
    %307 = arith.mulf %278, %306 : vector<1x32xf32>
    %308 = arith.addf %303, %307 : vector<1x32xf32>
    %cst_77 = arith.constant 1.000000e+00 : f32
    %309 = vector.broadcast %cst_77 : f32 to vector<1x32xf32>
    %310 = arith.mulf %309, %308 : vector<1x32xf32>
    %311 = arith.mulf %284, %294 : vector<1x32xf32>
    %312 = arith.mulf %286, %292 : vector<1x32xf32>
    %313 = arith.subf %311, %312 : vector<1x32xf32>
    %314 = arith.mulf %266, %313 : vector<1x32xf32>
    %315 = arith.mulf %282, %294 : vector<1x32xf32>
    %316 = arith.mulf %286, %290 : vector<1x32xf32>
    %317 = arith.subf %315, %316 : vector<1x32xf32>
    %318 = arith.mulf %268, %317 : vector<1x32xf32>
    %319 = arith.subf %314, %318 : vector<1x32xf32>
    %320 = arith.mulf %282, %292 : vector<1x32xf32>
    %321 = arith.mulf %284, %290 : vector<1x32xf32>
    %322 = arith.subf %320, %321 : vector<1x32xf32>
    %323 = arith.mulf %270, %322 : vector<1x32xf32>
    %324 = arith.addf %319, %323 : vector<1x32xf32>
    %cst_78 = arith.constant -1.000000e+00 : f32
    %325 = vector.broadcast %cst_78 : f32 to vector<1x32xf32>
    %326 = arith.mulf %325, %324 : vector<1x32xf32>
    %327 = arith.mulf %276, %294 : vector<1x32xf32>
    %328 = arith.mulf %278, %292 : vector<1x32xf32>
    %329 = arith.subf %327, %328 : vector<1x32xf32>
    %330 = arith.mulf %266, %329 : vector<1x32xf32>
    %331 = arith.mulf %274, %294 : vector<1x32xf32>
    %332 = arith.mulf %278, %290 : vector<1x32xf32>
    %333 = arith.subf %331, %332 : vector<1x32xf32>
    %334 = arith.mulf %268, %333 : vector<1x32xf32>
    %335 = arith.subf %330, %334 : vector<1x32xf32>
    %336 = arith.mulf %274, %292 : vector<1x32xf32>
    %337 = arith.mulf %276, %290 : vector<1x32xf32>
    %338 = arith.subf %336, %337 : vector<1x32xf32>
    %339 = arith.mulf %270, %338 : vector<1x32xf32>
    %340 = arith.addf %335, %339 : vector<1x32xf32>
    %cst_79 = arith.constant 1.000000e+00 : f32
    %341 = vector.broadcast %cst_79 : f32 to vector<1x32xf32>
    %342 = arith.mulf %341, %340 : vector<1x32xf32>
    %343 = arith.mulf %276, %286 : vector<1x32xf32>
    %344 = arith.mulf %278, %284 : vector<1x32xf32>
    %345 = arith.subf %343, %344 : vector<1x32xf32>
    %346 = arith.mulf %266, %345 : vector<1x32xf32>
    %347 = arith.mulf %274, %286 : vector<1x32xf32>
    %348 = arith.mulf %278, %282 : vector<1x32xf32>
    %349 = arith.subf %347, %348 : vector<1x32xf32>
    %350 = arith.mulf %268, %349 : vector<1x32xf32>
    %351 = arith.subf %346, %350 : vector<1x32xf32>
    %352 = arith.mulf %274, %284 : vector<1x32xf32>
    %353 = arith.mulf %276, %282 : vector<1x32xf32>
    %354 = arith.subf %352, %353 : vector<1x32xf32>
    %355 = arith.mulf %270, %354 : vector<1x32xf32>
    %356 = arith.addf %351, %355 : vector<1x32xf32>
    %cst_80 = arith.constant -1.000000e+00 : f32
    %357 = vector.broadcast %cst_80 : f32 to vector<1x32xf32>
    %358 = arith.mulf %357, %356 : vector<1x32xf32>
    %359 = tpu.concatenate %310, %326, %342, %358 in 0 : vector<1x32xf32>, vector<1x32xf32>, vector<1x32xf32>, vector<1x32xf32> -> vector<4x32xf32>
    %360 = arith.mulf %284, %294 : vector<1x32xf32>
    %361 = arith.mulf %286, %292 : vector<1x32xf32>
    %362 = arith.subf %360, %361 : vector<1x32xf32>
    %363 = arith.mulf %272, %362 : vector<1x32xf32>
    %364 = arith.mulf %280, %294 : vector<1x32xf32>
    %365 = arith.mulf %286, %288 : vector<1x32xf32>
    %366 = arith.subf %364, %365 : vector<1x32xf32>
    %367 = arith.mulf %276, %366 : vector<1x32xf32>
    %368 = arith.subf %363, %367 : vector<1x32xf32>
    %369 = arith.mulf %280, %292 : vector<1x32xf32>
    %370 = arith.mulf %284, %288 : vector<1x32xf32>
    %371 = arith.subf %369, %370 : vector<1x32xf32>
    %372 = arith.mulf %278, %371 : vector<1x32xf32>
    %373 = arith.addf %368, %372 : vector<1x32xf32>
    %cst_81 = arith.constant -1.000000e+00 : f32
    %374 = vector.broadcast %cst_81 : f32 to vector<1x32xf32>
    %375 = arith.mulf %374, %373 : vector<1x32xf32>
    %376 = arith.mulf %284, %294 : vector<1x32xf32>
    %377 = arith.mulf %286, %292 : vector<1x32xf32>
    %378 = arith.subf %376, %377 : vector<1x32xf32>
    %379 = arith.mulf %264, %378 : vector<1x32xf32>
    %380 = arith.mulf %280, %294 : vector<1x32xf32>
    %381 = arith.mulf %286, %288 : vector<1x32xf32>
    %382 = arith.subf %380, %381 : vector<1x32xf32>
    %383 = arith.mulf %268, %382 : vector<1x32xf32>
    %384 = arith.subf %379, %383 : vector<1x32xf32>
    %385 = arith.mulf %280, %292 : vector<1x32xf32>
    %386 = arith.mulf %284, %288 : vector<1x32xf32>
    %387 = arith.subf %385, %386 : vector<1x32xf32>
    %388 = arith.mulf %270, %387 : vector<1x32xf32>
    %389 = arith.addf %384, %388 : vector<1x32xf32>
    %cst_82 = arith.constant 1.000000e+00 : f32
    %390 = vector.broadcast %cst_82 : f32 to vector<1x32xf32>
    %391 = arith.mulf %390, %389 : vector<1x32xf32>
    %392 = arith.mulf %276, %294 : vector<1x32xf32>
    %393 = arith.mulf %278, %292 : vector<1x32xf32>
    %394 = arith.subf %392, %393 : vector<1x32xf32>
    %395 = arith.mulf %264, %394 : vector<1x32xf32>
    %396 = arith.mulf %272, %294 : vector<1x32xf32>
    %397 = arith.mulf %278, %288 : vector<1x32xf32>
    %398 = arith.subf %396, %397 : vector<1x32xf32>
    %399 = arith.mulf %268, %398 : vector<1x32xf32>
    %400 = arith.subf %395, %399 : vector<1x32xf32>
    %401 = arith.mulf %272, %292 : vector<1x32xf32>
    %402 = arith.mulf %276, %288 : vector<1x32xf32>
    %403 = arith.subf %401, %402 : vector<1x32xf32>
    %404 = arith.mulf %270, %403 : vector<1x32xf32>
    %405 = arith.addf %400, %404 : vector<1x32xf32>
    %cst_83 = arith.constant -1.000000e+00 : f32
    %406 = vector.broadcast %cst_83 : f32 to vector<1x32xf32>
    %407 = arith.mulf %406, %405 : vector<1x32xf32>
    %408 = arith.mulf %276, %286 : vector<1x32xf32>
    %409 = arith.mulf %278, %284 : vector<1x32xf32>
    %410 = arith.subf %408, %409 : vector<1x32xf32>
    %411 = arith.mulf %264, %410 : vector<1x32xf32>
    %412 = arith.mulf %272, %286 : vector<1x32xf32>
    %413 = arith.mulf %278, %280 : vector<1x32xf32>
    %414 = arith.subf %412, %413 : vector<1x32xf32>
    %415 = arith.mulf %268, %414 : vector<1x32xf32>
    %416 = arith.subf %411, %415 : vector<1x32xf32>
    %417 = arith.mulf %272, %284 : vector<1x32xf32>
    %418 = arith.mulf %276, %280 : vector<1x32xf32>
    %419 = arith.subf %417, %418 : vector<1x32xf32>
    %420 = arith.mulf %270, %419 : vector<1x32xf32>
    %421 = arith.addf %416, %420 : vector<1x32xf32>
    %cst_84 = arith.constant 1.000000e+00 : f32
    %422 = vector.broadcast %cst_84 : f32 to vector<1x32xf32>
    %423 = arith.mulf %422, %421 : vector<1x32xf32>
    %424 = tpu.concatenate %375, %391, %407, %423 in 0 : vector<1x32xf32>, vector<1x32xf32>, vector<1x32xf32>, vector<1x32xf32> -> vector<4x32xf32>
    %425 = arith.mulf %282, %294 : vector<1x32xf32>
    %426 = arith.mulf %286, %290 : vector<1x32xf32>
    %427 = arith.subf %425, %426 : vector<1x32xf32>
    %428 = arith.mulf %272, %427 : vector<1x32xf32>
    %429 = arith.mulf %280, %294 : vector<1x32xf32>
    %430 = arith.mulf %286, %288 : vector<1x32xf32>
    %431 = arith.subf %429, %430 : vector<1x32xf32>
    %432 = arith.mulf %274, %431 : vector<1x32xf32>
    %433 = arith.subf %428, %432 : vector<1x32xf32>
    %434 = arith.mulf %280, %290 : vector<1x32xf32>
    %435 = arith.mulf %282, %288 : vector<1x32xf32>
    %436 = arith.subf %434, %435 : vector<1x32xf32>
    %437 = arith.mulf %278, %436 : vector<1x32xf32>
    %438 = arith.addf %433, %437 : vector<1x32xf32>
    %cst_85 = arith.constant 1.000000e+00 : f32
    %439 = vector.broadcast %cst_85 : f32 to vector<1x32xf32>
    %440 = arith.mulf %439, %438 : vector<1x32xf32>
    %441 = arith.mulf %282, %294 : vector<1x32xf32>
    %442 = arith.mulf %286, %290 : vector<1x32xf32>
    %443 = arith.subf %441, %442 : vector<1x32xf32>
    %444 = arith.mulf %264, %443 : vector<1x32xf32>
    %445 = arith.mulf %280, %294 : vector<1x32xf32>
    %446 = arith.mulf %286, %288 : vector<1x32xf32>
    %447 = arith.subf %445, %446 : vector<1x32xf32>
    %448 = arith.mulf %266, %447 : vector<1x32xf32>
    %449 = arith.subf %444, %448 : vector<1x32xf32>
    %450 = arith.mulf %280, %290 : vector<1x32xf32>
    %451 = arith.mulf %282, %288 : vector<1x32xf32>
    %452 = arith.subf %450, %451 : vector<1x32xf32>
    %453 = arith.mulf %270, %452 : vector<1x32xf32>
    %454 = arith.addf %449, %453 : vector<1x32xf32>
    %cst_86 = arith.constant -1.000000e+00 : f32
    %455 = vector.broadcast %cst_86 : f32 to vector<1x32xf32>
    %456 = arith.mulf %455, %454 : vector<1x32xf32>
    %457 = arith.mulf %274, %294 : vector<1x32xf32>
    %458 = arith.mulf %278, %290 : vector<1x32xf32>
    %459 = arith.subf %457, %458 : vector<1x32xf32>
    %460 = arith.mulf %264, %459 : vector<1x32xf32>
    %461 = arith.mulf %272, %294 : vector<1x32xf32>
    %462 = arith.mulf %278, %288 : vector<1x32xf32>
    %463 = arith.subf %461, %462 : vector<1x32xf32>
    %464 = arith.mulf %266, %463 : vector<1x32xf32>
    %465 = arith.subf %460, %464 : vector<1x32xf32>
    %466 = arith.mulf %272, %290 : vector<1x32xf32>
    %467 = arith.mulf %274, %288 : vector<1x32xf32>
    %468 = arith.subf %466, %467 : vector<1x32xf32>
    %469 = arith.mulf %270, %468 : vector<1x32xf32>
    %470 = arith.addf %465, %469 : vector<1x32xf32>
    %cst_87 = arith.constant 1.000000e+00 : f32
    %471 = vector.broadcast %cst_87 : f32 to vector<1x32xf32>
    %472 = arith.mulf %471, %470 : vector<1x32xf32>
    %473 = arith.mulf %274, %286 : vector<1x32xf32>
    %474 = arith.mulf %278, %282 : vector<1x32xf32>
    %475 = arith.subf %473, %474 : vector<1x32xf32>
    %476 = arith.mulf %264, %475 : vector<1x32xf32>
    %477 = arith.mulf %272, %286 : vector<1x32xf32>
    %478 = arith.mulf %278, %280 : vector<1x32xf32>
    %479 = arith.subf %477, %478 : vector<1x32xf32>
    %480 = arith.mulf %266, %479 : vector<1x32xf32>
    %481 = arith.subf %476, %480 : vector<1x32xf32>
    %482 = arith.mulf %272, %282 : vector<1x32xf32>
    %483 = arith.mulf %274, %280 : vector<1x32xf32>
    %484 = arith.subf %482, %483 : vector<1x32xf32>
    %485 = arith.mulf %270, %484 : vector<1x32xf32>
    %486 = arith.addf %481, %485 : vector<1x32xf32>
    %cst_88 = arith.constant -1.000000e+00 : f32
    %487 = vector.broadcast %cst_88 : f32 to vector<1x32xf32>
    %488 = arith.mulf %487, %486 : vector<1x32xf32>
    %489 = tpu.concatenate %440, %456, %472, %488 in 0 : vector<1x32xf32>, vector<1x32xf32>, vector<1x32xf32>, vector<1x32xf32> -> vector<4x32xf32>
    %490 = arith.mulf %282, %292 : vector<1x32xf32>
    %491 = arith.mulf %284, %290 : vector<1x32xf32>
    %492 = arith.subf %490, %491 : vector<1x32xf32>
    %493 = arith.mulf %272, %492 : vector<1x32xf32>
    %494 = arith.mulf %280, %292 : vector<1x32xf32>
    %495 = arith.mulf %284, %288 : vector<1x32xf32>
    %496 = arith.subf %494, %495 : vector<1x32xf32>
    %497 = arith.mulf %274, %496 : vector<1x32xf32>
    %498 = arith.subf %493, %497 : vector<1x32xf32>
    %499 = arith.mulf %280, %290 : vector<1x32xf32>
    %500 = arith.mulf %282, %288 : vector<1x32xf32>
    %501 = arith.subf %499, %500 : vector<1x32xf32>
    %502 = arith.mulf %276, %501 : vector<1x32xf32>
    %503 = arith.addf %498, %502 : vector<1x32xf32>
    %cst_89 = arith.constant -1.000000e+00 : f32
    %504 = vector.broadcast %cst_89 : f32 to vector<1x32xf32>
    %505 = arith.mulf %504, %503 : vector<1x32xf32>
    %506 = arith.mulf %282, %292 : vector<1x32xf32>
    %507 = arith.mulf %284, %290 : vector<1x32xf32>
    %508 = arith.subf %506, %507 : vector<1x32xf32>
    %509 = arith.mulf %264, %508 : vector<1x32xf32>
    %510 = arith.mulf %280, %292 : vector<1x32xf32>
    %511 = arith.mulf %284, %288 : vector<1x32xf32>
    %512 = arith.subf %510, %511 : vector<1x32xf32>
    %513 = arith.mulf %266, %512 : vector<1x32xf32>
    %514 = arith.subf %509, %513 : vector<1x32xf32>
    %515 = arith.mulf %280, %290 : vector<1x32xf32>
    %516 = arith.mulf %282, %288 : vector<1x32xf32>
    %517 = arith.subf %515, %516 : vector<1x32xf32>
    %518 = arith.mulf %268, %517 : vector<1x32xf32>
    %519 = arith.addf %514, %518 : vector<1x32xf32>
    %cst_90 = arith.constant 1.000000e+00 : f32
    %520 = vector.broadcast %cst_90 : f32 to vector<1x32xf32>
    %521 = arith.mulf %520, %519 : vector<1x32xf32>
    %522 = arith.mulf %274, %292 : vector<1x32xf32>
    %523 = arith.mulf %276, %290 : vector<1x32xf32>
    %524 = arith.subf %522, %523 : vector<1x32xf32>
    %525 = arith.mulf %264, %524 : vector<1x32xf32>
    %526 = arith.mulf %272, %292 : vector<1x32xf32>
    %527 = arith.mulf %276, %288 : vector<1x32xf32>
    %528 = arith.subf %526, %527 : vector<1x32xf32>
    %529 = arith.mulf %266, %528 : vector<1x32xf32>
    %530 = arith.subf %525, %529 : vector<1x32xf32>
    %531 = arith.mulf %272, %290 : vector<1x32xf32>
    %532 = arith.mulf %274, %288 : vector<1x32xf32>
    %533 = arith.subf %531, %532 : vector<1x32xf32>
    %534 = arith.mulf %268, %533 : vector<1x32xf32>
    %535 = arith.addf %530, %534 : vector<1x32xf32>
    %cst_91 = arith.constant -1.000000e+00 : f32
    %536 = vector.broadcast %cst_91 : f32 to vector<1x32xf32>
    %537 = arith.mulf %536, %535 : vector<1x32xf32>
    %538 = arith.mulf %274, %284 : vector<1x32xf32>
    %539 = arith.mulf %276, %282 : vector<1x32xf32>
    %540 = arith.subf %538, %539 : vector<1x32xf32>
    %541 = arith.mulf %264, %540 : vector<1x32xf32>
    %542 = arith.mulf %272, %284 : vector<1x32xf32>
    %543 = arith.mulf %276, %280 : vector<1x32xf32>
    %544 = arith.subf %542, %543 : vector<1x32xf32>
    %545 = arith.mulf %266, %544 : vector<1x32xf32>
    %546 = arith.subf %541, %545 : vector<1x32xf32>
    %547 = arith.mulf %272, %282 : vector<1x32xf32>
    %548 = arith.mulf %274, %280 : vector<1x32xf32>
    %549 = arith.subf %547, %548 : vector<1x32xf32>
    %550 = arith.mulf %268, %549 : vector<1x32xf32>
    %551 = arith.addf %546, %550 : vector<1x32xf32>
    %cst_92 = arith.constant 1.000000e+00 : f32
    %552 = vector.broadcast %cst_92 : f32 to vector<1x32xf32>
    %553 = arith.mulf %552, %551 : vector<1x32xf32>
    %554 = tpu.concatenate %505, %521, %537, %553 in 0 : vector<1x32xf32>, vector<1x32xf32>, vector<1x32xf32>, vector<1x32xf32> -> vector<4x32xf32>
    %555 = arith.mulf %359, %359 : vector<4x32xf32>
    %cst_93 = arith.constant dense<0.000000e+00> : vector<32xf32>
    %556 = vector.multi_reduction <add>, %555, %cst_93 [0] : vector<4x32xf32> to vector<32xf32>
    %557 = vector.shape_cast %556 : vector<32xf32> to vector<1x32xf32>
    %558 = arith.mulf %424, %424 : vector<4x32xf32>
    %cst_94 = arith.constant dense<0.000000e+00> : vector<32xf32>
    %559 = vector.multi_reduction <add>, %558, %cst_94 [0] : vector<4x32xf32> to vector<32xf32>
    %560 = vector.shape_cast %559 : vector<32xf32> to vector<1x32xf32>
    %561 = arith.cmpf ogt, %560, %557 : vector<1x32xf32>
    %562 = vector.shape_cast %561 : vector<1x32xi1> to vector<1x32xi1>
    %563 = vector.broadcast %562 : vector<1x32xi1> to vector<4x32xi1>
    %564 = arith.select %563, %424, %359 : vector<4x32xi1>, vector<4x32xf32>
    %565 = arith.maximumf %557, %560 : vector<1x32xf32>
    %566 = arith.mulf %489, %489 : vector<4x32xf32>
    %cst_95 = arith.constant dense<0.000000e+00> : vector<32xf32>
    %567 = vector.multi_reduction <add>, %566, %cst_95 [0] : vector<4x32xf32> to vector<32xf32>
    %568 = vector.shape_cast %567 : vector<32xf32> to vector<1x32xf32>
    %569 = arith.cmpf ogt, %568, %565 : vector<1x32xf32>
    %570 = vector.shape_cast %569 : vector<1x32xi1> to vector<1x32xi1>
    %571 = vector.broadcast %570 : vector<1x32xi1> to vector<4x32xi1>
    %572 = arith.select %571, %489, %564 : vector<4x32xi1>, vector<4x32xf32>
    %573 = arith.maximumf %565, %568 : vector<1x32xf32>
    %574 = arith.mulf %554, %554 : vector<4x32xf32>
    %cst_96 = arith.constant dense<0.000000e+00> : vector<32xf32>
    %575 = vector.multi_reduction <add>, %574, %cst_96 [0] : vector<4x32xf32> to vector<32xf32>
    %576 = vector.shape_cast %575 : vector<32xf32> to vector<1x32xf32>
    %577 = arith.cmpf ogt, %576, %573 : vector<1x32xf32>
    %578 = vector.shape_cast %577 : vector<1x32xi1> to vector<1x32xi1>
    %579 = vector.broadcast %578 : vector<1x32xi1> to vector<4x32xi1>
    %580 = arith.select %579, %554, %572 : vector<4x32xi1>, vector<4x32xf32>
    %581 = arith.mulf %580, %580 : vector<4x32xf32>
    %cst_97 = arith.constant dense<0.000000e+00> : vector<32xf32>
    %582 = vector.multi_reduction <add>, %581, %cst_97 [0] : vector<4x32xf32> to vector<32xf32>
    %583 = vector.shape_cast %582 : vector<32xf32> to vector<1x32xf32>
    %cst_98 = arith.constant 1.000000e-30 : f32
    %584 = vector.broadcast %cst_98 : f32 to vector<1x32xf32>
    %585 = arith.addf %583, %584 : vector<1x32xf32>
    %586 = math.rsqrt %585 : vector<1x32xf32>
    %587 = vector.broadcast %586 : vector<1x32xf32> to vector<4x32xf32>
    %588 = arith.mulf %580, %587 : vector<4x32xf32>
    %c0_i32 = arith.constant 0 : i32
    %c20_i32 = arith.constant 20 : i32
    %589 = arith.addi %c0_i32, %c20_i32 : i32
    %c1_i32 = arith.constant 1 : i32
    %590 = scf.for %arg11 = %c0_i32 to %589 step %c1_i32 iter_args(%arg12 = %588) -> (vector<4x32xf32>)  : i32 {
      %607 = arith.mulf %359, %arg12 : vector<4x32xf32>
      %cst_106 = arith.constant dense<0.000000e+00> : vector<32xf32>
      %608 = vector.multi_reduction <add>, %607, %cst_106 [0] : vector<4x32xf32> to vector<32xf32>
      %609 = vector.shape_cast %608 : vector<32xf32> to vector<1x32xf32>
      %610 = arith.mulf %424, %arg12 : vector<4x32xf32>
      %cst_107 = arith.constant dense<0.000000e+00> : vector<32xf32>
      %611 = vector.multi_reduction <add>, %610, %cst_107 [0] : vector<4x32xf32> to vector<32xf32>
      %612 = vector.shape_cast %611 : vector<32xf32> to vector<1x32xf32>
      %613 = arith.mulf %489, %arg12 : vector<4x32xf32>
      %cst_108 = arith.constant dense<0.000000e+00> : vector<32xf32>
      %614 = vector.multi_reduction <add>, %613, %cst_108 [0] : vector<4x32xf32> to vector<32xf32>
      %615 = vector.shape_cast %614 : vector<32xf32> to vector<1x32xf32>
      %616 = arith.mulf %554, %arg12 : vector<4x32xf32>
      %cst_109 = arith.constant dense<0.000000e+00> : vector<32xf32>
      %617 = vector.multi_reduction <add>, %616, %cst_109 [0] : vector<4x32xf32> to vector<32xf32>
      %618 = vector.shape_cast %617 : vector<32xf32> to vector<1x32xf32>
      %619 = tpu.concatenate %609, %612, %615, %618 in 0 : vector<1x32xf32>, vector<1x32xf32>, vector<1x32xf32>, vector<1x32xf32> -> vector<4x32xf32>
      %620 = arith.mulf %619, %619 : vector<4x32xf32>
      %cst_110 = arith.constant dense<0.000000e+00> : vector<32xf32>
      %621 = vector.multi_reduction <add>, %620, %cst_110 [0] : vector<4x32xf32> to vector<32xf32>
      %622 = vector.shape_cast %621 : vector<32xf32> to vector<1x32xf32>
      %cst_111 = arith.constant 1.000000e-30 : f32
      %623 = vector.broadcast %cst_111 : f32 to vector<1x32xf32>
      %624 = arith.addf %622, %623 : vector<1x32xf32>
      %625 = math.rsqrt %624 : vector<1x32xf32>
      %626 = vector.broadcast %625 : vector<1x32xf32> to vector<4x32xf32>
      %627 = arith.mulf %619, %626 : vector<4x32xf32>
      scf.yield %627 : vector<4x32xf32>
    }
    %591 = vector.extract_strided_slice %590 {offsets = [3, 0], sizes = [1, 32], strides = [1, 1]} : vector<4x32xf32> to vector<1x32xf32>
    %592 = math.absf %591 : vector<1x32xf32>
    %cst_99 = arith.constant 9.99999996E-13 : f32
    %593 = vector.broadcast %cst_99 : f32 to vector<1x32xf32>
    %594 = arith.cmpf olt, %592, %593 : vector<1x32xf32>
    %cst_100 = arith.constant 0.000000e+00 : f32
    %595 = vector.broadcast %cst_100 : f32 to vector<1x32xf32>
    %596 = arith.cmpf oge, %591, %595 : vector<1x32xf32>
    %cst_101 = arith.constant 9.99999996E-13 : f32
    %cst_102 = arith.constant -9.99999996E-13 : f32
    %597 = vector.broadcast %cst_101 : f32 to vector<1x32xf32>
    %598 = vector.broadcast %cst_102 : f32 to vector<1x32xf32>
    %599 = arith.select %596, %597, %598 : vector<1x32xi1>, vector<1x32xf32>
    %600 = arith.select %594, %599, %591 : vector<1x32xi1>, vector<1x32xf32>
    %601 = vector.extract_strided_slice %590 {offsets = [0, 0], sizes = [3, 32], strides = [1, 1]} : vector<4x32xf32> to vector<3x32xf32>
    %cst_103 = arith.constant 1.000000e+00 : f32
    %602 = vector.broadcast %cst_103 : f32 to vector<1x32xf32>
    %603 = arith.divf %602, %600 : vector<1x32xf32>
    %604 = vector.broadcast %603 : vector<1x32xf32> to vector<3x32xf32>
    %605 = arith.mulf %601, %604 : vector<3x32xf32>
    %c0_104 = arith.constant 0 : index
    %c0_105 = arith.constant 0 : index
    %606 = vector.load %arg10[%c0_104, %c0_105] : memref<3x32xf32, #tpu.memory_space<vmem>>, vector<3x32xf32>
    tpu.vector_store %arg10[%c0_104, %c0_105], %605 {strides = array<i32>} : memref<3x32xf32, #tpu.memory_space<vmem>>, vector<3x32xf32>,
    return
  }
  func.func @transform_0(%arg0: i32) -> (i32, i32) {
    %c0_i32 = arith.constant 0 : i32
    %c0_i32_0 = arith.constant 0 : i32
    %c0_i32_1 = arith.constant 0 : i32
    return %c0_i32, %c0_i32_0 : i32, i32
  }
  func.func @transform_1(%arg0: i32) -> (i32, i32) {
    %c0_i32 = arith.constant 0 : i32
    %c0_i32_0 = arith.constant 0 : i32
    %c0_i32_1 = arith.constant 0 : i32
    return %c0_i32, %c0_i32_0 : i32, i32
  }
  func.func @transform_2(%arg0: i32) -> (i32, i32) {
    %c0_i32 = arith.constant 0 : i32
    %c0_i32_0 = arith.constant 0 : i32
    %c0_i32_1 = arith.constant 0 : i32
    return %c0_i32, %c0_i32_0 : i32, i32
  }
  func.func @transform_3(%arg0: i32) -> (i32, i32) {
    %c0_i32 = arith.constant 0 : i32
    %c0_i32_0 = arith.constant 0 : i32
    %c0_i32_1 = arith.constant 0 : i32
    return %c0_i32, %c0_i32_0 : i32, i32
  }
  func.func @transform_4(%arg0: i32) -> (i32, i32) {
    %c0_i32 = arith.constant 0 : i32
    %c0_i32_0 = arith.constant 0 : i32
    %c0_i32_1 = arith.constant 0 : i32
    return %c0_i32, %c0_i32_0 : i32, i32
  }
  func.func @transform_5(%arg0: i32) -> (i32, i32, i32, i32) {
    %c0_i32 = arith.constant 0 : i32
    %c0_i32_0 = arith.constant 0 : i32
    %c0_i32_1 = arith.constant 0 : i32
    %c0_i32_2 = arith.constant 0 : i32
    %c0_i32_3 = arith.constant 0 : i32
    return %c0_i32, %c0_i32_0, %c0_i32_1, %c0_i32_2 : i32, i32, i32, i32
  }
  func.func @transform_6(%arg0: i32) -> (i32, i32) {
    %c0_i32 = arith.constant 0 : i32
    %c0_i32_0 = arith.constant 0 : i32
    %c0_i32_1 = arith.constant 0 : i32
    return %c0_i32, %c0_i32_0 : i32, i32
  }
  func.func @transform_7(%arg0: i32) -> (i32, i32) {
    %c0_i32 = arith.constant 0 : i32
    %c0_i32_0 = arith.constant 0 : i32
    %c0_i32_1 = arith.constant 0 : i32
    return %c0_i32, %c0_i32_0 : i32, i32
  }
  func.func @transform_8(%arg0: i32) -> (i32, i32) {
    %c0_i32 = arith.constant 0 : i32
    %c0_i32_0 = arith.constant 0 : i32
    %c0_i32_1 = arith.constant 0 : i32
    return %c0_i32, %c0_i32_0 : i32, i32
  }
  func.func @transform_9(%arg0: i32) -> (i32, i32) {
    %c0_i32 = arith.constant 0 : i32
    %c0_i32_0 = arith.constant 0 : i32
    %c0_i32_1 = arith.constant 0 : i32
    return %c0_i32, %c0_i32_0 : i32, i32
  }
}

</mosaic_0001>

<bundles_post_ra>
// kernel: algebraic_triangulation_forward.1
= control target key start
LH: loop header
LB: loop body
LE: loop exit
PB: predicated region body
PF: predicated region fallthrough
CT: control target
= control target key end

     0   :  { %v5119_v0 = vmov 0.0   ;;  %vm3222_vm0 = vcmask 523264   ;;  %s5121_s24 = smov 96   ;;  %s5122_s25 = smov 64   ;;  %vm3819_vm1 = vcmask 1040384   ;;  %vm3821_vm2 = vcmask 1041408   ;;  %s9608_s9 = inlined_call_operand.vmem [shape: f32[3,32], index: 9, kind: output, shape index: {3}]   ;;  %s9609_s0 = inlined_call_operand.vmem [shape: f32[3072,64], index: 0, kind: input, shape index: {}]   ;;  %s9610_s1 = inlined_call_operand.vmem [shape: f32[192,3072], index: 1, kind: input, shape index: {}]   ;;  %s9611_s2 = inlined_call_operand.vmem [shape: f32[64,128], index: 2, kind: input, shape index: {}]   ;;  %s9612_s3 = inlined_call_operand.vmem [shape: f32[1,128], index: 3, kind: input, shape index: {}]   ;;  %s9613_s4 = inlined_call_operand.vmem [shape: f32[2,192], index: 4, kind: input, shape index: {}]   ;;  %s9614_s6 = inlined_call_operand.vmem [shape: f32[192,128], index: 6, kind: output, shape index: {0}]   ;;  %s9615_s5 = inlined_call_operand.vmem [shape: f32[4,3,4,32], index: 5, kind: input, shape index: {}]   ;;  %s9616_s7 = inlined_call_operand.vmem [shape: f32[2,128], index: 7, kind: output, shape index: {1}]   ;;  %s9617_s8 = inlined_call_operand.vmem [shape: f32[4,32], index: 8, kind: output, shape index: {2}]  }
   0x1   :  { %987 = vmatprep.subr.mxu0 %v5119_v0  ;;  %1172 = vmatprep.subr.mxu1 %v5119_v0  ;;  %v618_v1 = vld [vmem:[%s9609_s0 + $0x78] sm:$0xff]  ;;  %v617_v3 = vld [vmem:[%s9609_s0 + $0x70] sm:$0xff]  ;;  %v616_v5 = vld [vmem:[%s9609_s0 + $0x68] sm:$0xff]  ;;  %vm3823_vm3 = vcmask 1042432   ;;  %vm3825_vm4 = vcmask 257024  }
   0x2   :  { %v650_v2 = vld [vmem:[%s9609_s0 + $0x178] sm:$0xff]  ;;  %988 = vmatpush1.msra.mxu0 %v618_v1  ;;  %v649_v4 = vld [vmem:[%s9609_s0 + $0x170] sm:$0xff]  ;;  %v648_v6 = vld [vmem:[%s9609_s0 + $0x168] sm:$0xff] }
   0x3   :  { %1173 = vmatpush1.msra.mxu1 %v650_v2  ;;  %989 = vmatprep.subr.mxu0 %v5119_v0  ;;  %v615_v7 = vld [vmem:[%s9609_s0 + $0x60] sm:$0xff]  ;;  %v614_v9 = vld [vmem:[%s9609_s0 + $0x58] sm:$0xff]  ;;  %v613_v11 = vld [vmem:[%s9609_s0 + $0x50] sm:$0xff] }
   0x4   :  { %1174 = vmatprep.subr.mxu1 %v5119_v0  ;;  %990 = vmatpush1.msra.mxu0 %v617_v3  ;;  %v647_v8 = vld [vmem:[%s9609_s0 + $0x160] sm:$0xff]  ;;  %v646_v10 = vld [vmem:[%s9609_s0 + $0x158] sm:$0xff]  ;;  %v645_v12 = vld [vmem:[%s9609_s0 + $0x150] sm:$0xff] }
   0x5   :  { %1175 = vmatpush1.msra.mxu1 %v649_v4  ;;  %991 = vmatprep.subr.mxu0 %v5119_v0  ;;  %v612_v13 = vld [vmem:[%s9609_s0 + $0x48] sm:$0xff]  ;;  %v611_v15 = vld [vmem:[%s9609_s0 + $0x40] sm:$0xff]  ;;  %v610_v17 = vld [vmem:[%s9609_s0 + $0x38] sm:$0xff] }
   0x6   :  { %1176 = vmatprep.subr.mxu1 %v5119_v0  ;;  %992 = vmatpush1.msra.mxu0 %v616_v5  ;;  %v644_v14 = vld [vmem:[%s9609_s0 + $0x148] sm:$0xff]  ;;  %v643_v16 = vld [vmem:[%s9609_s0 + $0x140] sm:$0xff]  ;;  %v642_v18 = vld [vmem:[%s9609_s0 + $0x138] sm:$0xff] }
   0x7   :  { %1177 = vmatpush1.msra.mxu1 %v648_v6  ;;  %993 = vmatprep.subr.mxu0 %v5119_v0  ;;  %v609_v19 = vld [vmem:[%s9609_s0 + $0x30] sm:$0xff]  ;;  %v608_v21 = vld [vmem:[%s9609_s0 + $0x28] sm:$0xff]  ;;  %v607_v23 = vld [vmem:[%s9609_s0 + $0x20] sm:$0xff] }
   0x8   :  { %1178 = vmatprep.subr.mxu1 %v5119_v0  ;;  %994 = vmatpush1.msra.mxu0 %v615_v7  ;;  %v641_v20 = vld [vmem:[%s9609_s0 + $0x130] sm:$0xff]  ;;  %v640_v22 = vld [vmem:[%s9609_s0 + $0x128] sm:$0xff]  ;;  %v639_v24 = vld [vmem:[%s9609_s0 + $0x120] sm:$0xff] }
   0x9   :  { %1179 = vmatpush1.msra.mxu1 %v647_v8  ;;  %995 = vmatprep.subr.mxu0 %v5119_v0  ;;  %v606_v25 = vld [vmem:[%s9609_s0 + $0x18] sm:$0xff]  ;;  %v605_v27 = vld [vmem:[%s9609_s0 + $0x10] sm:$0xff]  ;;  %v604_v29 = vld [vmem:[%s9609_s0 + $0x8] sm:$0xff] }
   0xa   :  { %1180 = vmatprep.subr.mxu1 %v5119_v0  ;;  %996 = vmatpush1.msra.mxu0 %v614_v9  ;;  %v638_v26 = vld [vmem:[%s9609_s0 + $0x118] sm:$0xff]  ;;  %v637_v28 = vld [vmem:[%s9609_s0 + $0x110] sm:$0xff]  ;;  %v636_v30 = vld [vmem:[%s9609_s0 + $0x108] sm:$0xff] }
   0xb   :  { %1181 = vmatpush1.msra.mxu1 %v646_v10  ;;  %997 = vmatprep.subr.mxu0 %v5119_v0  ;;  %v603_v31 = vld [vmem:[%s9609_s0] sm:$0xff]  ;;  %v634_v33 = vld [vmem:[%s9609_s0 + $0xf8] sm:$0xff]  ;;  %v633_v35 = vld [vmem:[%s9609_s0 + $0xf0] sm:$0xff] }
   0xc   :  { %1182 = vmatprep.subr.mxu1 %v5119_v0  ;;  %998 = vmatpush1.msra.mxu0 %v613_v11  ;;  %v635_v32 = vld [vmem:[%s9609_s0 + $0x100] sm:$0xff]  ;;  %v666_v34 = vld [vmem:[%s9609_s0 + $0x1f8] sm:$0xff]  ;;  %v665_v36 = vld [vmem:[%s9609_s0 + $0x1f0] sm:$0xff] }
   0xd   :  { %1183 = vmatpush1.msra.mxu1 %v645_v12  ;;  %999 = vmatprep.subr.mxu0 %v5119_v0  ;;  %v632_v37 = vld [vmem:[%s9609_s0 + $0xe8] sm:$0xff]  ;;  %v631_v39 = vld [vmem:[%s9609_s0 + $0xe0] sm:$0xff]  ;;  %v630_v41 = vld [vmem:[%s9609_s0 + $0xd8] sm:$0xff] }
   0xe   :  { %1184 = vmatprep.subr.mxu1 %v5119_v0  ;;  %1000 = vmatpush1.msra.mxu0 %v612_v13  ;;  %v664_v38 = vld [vmem:[%s9609_s0 + $0x1e8] sm:$0xff]  ;;  %v663_v40 = vld [vmem:[%s9609_s0 + $0x1e0] sm:$0xff]  ;;  %v662_v42 = vld [vmem:[%s9609_s0 + $0x1d8] sm:$0xff] }
   0xf   :  { %1185 = vmatpush1.msra.mxu1 %v644_v14  ;;  %1001 = vmatprep.subr.mxu0 %v5119_v0  ;;  %v629_v43 = vld [vmem:[%s9609_s0 + $0xd0] sm:$0xff]  ;;  %v628_v45 = vld [vmem:[%s9609_s0 + $0xc8] sm:$0xff]  ;;  %v627_v47 = vld [vmem:[%s9609_s0 + $0xc0] sm:$0xff] }
  0x10   :  { %1186 = vmatprep.subr.mxu1 %v5119_v0  ;;  %1002 = vmatpush1.msra.mxu0 %v611_v15  ;;  %v661_v44 = vld [vmem:[%s9609_s0 + $0x1d0] sm:$0xff]  ;;  %v660_v46 = vld [vmem:[%s9609_s0 + $0x1c8] sm:$0xff]  ;;  %v659_v48 = vld [vmem:[%s9609_s0 + $0x1c0] sm:$0xff] }
  0x11   :  { %1187 = vmatpush1.msra.mxu1 %v643_v16  ;;  %1003 = vmatprep.subr.mxu0 %v5119_v0  ;;  %v626_v49 = vld [vmem:[%s9609_s0 + $0xb8] sm:$0xff]  ;;  %v625_v51 = vld [vmem:[%s9609_s0 + $0xb0] sm:$0xff]  ;;  %v624_v53 = vld [vmem:[%s9609_s0 + $0xa8] sm:$0xff] }
  0x12   :  { %1188 = vmatprep.subr.mxu1 %v5119_v0  ;;  %1004 = vmatpush1.msra.mxu0 %v610_v17  ;;  %v658_v50 = vld [vmem:[%s9609_s0 + $0x1b8] sm:$0xff]  ;;  %v657_v52 = vld [vmem:[%s9609_s0 + $0x1b0] sm:$0xff]  ;;  %v656_v54 = vld [vmem:[%s9609_s0 + $0x1a8] sm:$0xff] }
  0x13   :  { %1189 = vmatpush1.msra.mxu1 %v642_v18  ;;  %1005 = vmatprep.subr.mxu0 %v5119_v0  ;;  %v623_v55 = vld [vmem:[%s9609_s0 + $0xa0] sm:$0xff]  ;;  %v622_v57 = vld [vmem:[%s9609_s0 + $0x98] sm:$0xff]  ;;  %v621_v59 = vld [vmem:[%s9609_s0 + $0x90] sm:$0xff] }
  0x14   :  { %1190 = vmatprep.subr.mxu1 %v5119_v0  ;;  %1006 = vmatpush1.msra.mxu0 %v609_v19  ;;  %v655_v56 = vld [vmem:[%s9609_s0 + $0x1a0] sm:$0xff]  ;;  %v654_v58 = vld [vmem:[%s9609_s0 + $0x198] sm:$0xff]  ;;  %v653_v60 = vld [vmem:[%s9609_s0 + $0x190] sm:$0xff] }
  0x15   :  { %1191 = vmatpush1.msra.mxu1 %v641_v20  ;;  %1007 = vmatprep.subr.mxu0 %v5119_v0  ;;  %v620_v61 = vld [vmem:[%s9609_s0 + $0x88] sm:$0xff]  ;;  %v619_v63 = vld [vmem:[%s9609_s0 + $0x80] sm:$0xff]  ;;  %v30_v3 = vld [vmem:[%s9610_s1 + $0x18] sm:$0xff] }
  0x16   :  { %1192 = vmatprep.subr.mxu1 %v5119_v0  ;;  %1008 = vmatpush1.msra.mxu0 %v608_v21  ;;  %v652_v62 = vld [vmem:[%s9609_s0 + $0x188] sm:$0xff]  ;;  %v651_v2 = vld [vmem:[%s9609_s0 + $0x180] sm:$0xff]  ;;  %v29_v5 = vld [vmem:[%s9610_s1 + $0x10] sm:$0xff] }
  0x17   :  { %1193 = vmatpush1.msra.mxu1 %v640_v22  ;;  %1009 = vmatprep.subr.mxu0 %v5119_v0  ;;  %v28_v1 = vld [vmem:[%s9610_s1 + $0x8] sm:$0xff]  ;;  %v27_v4 = vld [vmem:[%s9610_s1] sm:$0xff]  ;;  %v54_v7 = vld [vmem:[%s9610_s1 + $0xd8] sm:$0xff] }
  0x18   :  { %1194 = vmatprep.subr.mxu1 %v5119_v0  ;;  %1010 = vmatpush1.msra.mxu0 %v607_v23  ;;  %v52_v6 = vld [vmem:[%s9610_s1 + $0xc8] sm:$0xff]  ;;  %v682_v8 = vld [vmem:[%s9609_s0 + $0x278] sm:$0xff]  ;;  %v51_v10 = vld [vmem:[%s9610_s1 + $0xc0] sm:$0xff] }
  0x19   :  { %1195 = vmatpush1.msra.mxu1 %v639_v24  ;;  %1011 = vmatprep.subr.mxu0 %v5119_v0  ;;  %v714_v9 = vld [vmem:[%s9609_s0 + $0x378] sm:$0xff]  ;;  %v53_v11 = vld [vmem:[%s9610_s1 + $0xd0] sm:$0xff]  ;;  %v76_v12 = vld [vmem:[%s9610_s1 + $0x188] sm:$0xff] }
  0x1a   :  { %1196 = vmatprep.subr.mxu1 %v5119_v0  ;;  %1012 = vmatpush1.msra.mxu0 %v606_v25  ;;  %v78_v13 = vld [vmem:[%s9610_s1 + $0x198] sm:$0xff]  ;;  %v681_v14 = vld [vmem:[%s9609_s0 + $0x270] sm:$0xff]  ;;  %v75_v16 = vld [vmem:[%s9610_s1 + $0x180] sm:$0xff] }
  0x1b   :  { %1197 = vmatpush1.msra.mxu1 %v638_v26  ;;  %1013 = vmatprep.subr.mxu0 %v5119_v0  ;;  %v713_v15 = vld [vmem:[%s9609_s0 + $0x370] sm:$0xff]  ;;  %v100_v18 = vld [vmem:[%s9610_s1 + $0x248] sm:$0xff]  ;;  %v102_v19 = vld [vmem:[%s9610_s1 + $0x258] sm:$0xff] }
  0x1c   :  { %1198 = vmatprep.subr.mxu1 %v5119_v0  ;;  %1014 = vmatpush1.msra.mxu0 %v605_v27  ;;  %v77_v17 = vld [vmem:[%s9610_s1 + $0x190] sm:$0xff]  ;;  %v680_v20 = vld [vmem:[%s9609_s0 + $0x268] sm:$0xff]  ;;  %v99_v22 = vld [vmem:[%s9610_s1 + $0x240] sm:$0xff] }
  0x1d   :  { %1199 = vmatpush1.msra.mxu1 %v637_v28  ;;  %1015 = vmatprep.subr.mxu0 %v5119_v0  ;;  %v712_v21 = vld [vmem:[%s9609_s0 + $0x368] sm:$0xff]  ;;  %v101_v23 = vld [vmem:[%s9610_s1 + $0x250] sm:$0xff]  ;;  %v126_v25 = vld [vmem:[%s9610_s1 + $0x318] sm:$0xff] }
  0x1e   :  { %1200 = vmatprep.subr.mxu1 %v5119_v0  ;;  %1016 = vmatpush1.msra.mxu0 %v604_v29  ;;  %v124_v24 = vld [vmem:[%s9610_s1 + $0x308] sm:$0xff]  ;;  %v679_v26 = vld [vmem:[%s9609_s0 + $0x260] sm:$0xff]  ;;  %v125_v29 = vld [vmem:[%s9610_s1 + $0x310] sm:$0xff] }
  0x1f   :  { %1201 = vmatpush1.msra.mxu1 %v636_v30  ;;  %1017 = vmatprep.subr.mxu0 %v5119_v0  ;;  %v711_v27 = vld [vmem:[%s9609_s0 + $0x360] sm:$0xff]  ;;  %v148_v30 = vld [vmem:[%s9610_s1 + $0x3c8] sm:$0xff] }
  0x20   :  { %1202 = vmatprep.subr.mxu1 %v5119_v0  ;;  %1018 = vmatpush1.msra.mxu0 %v603_v31  ;;  %v123_v28 = vld [vmem:[%s9610_s1 + $0x300] sm:$0xff]  ;;  %v150_v31 = vld [vmem:[%s9610_s1 + $0x3d8] sm:$0xff] }
  0x21   :  { %1203 = vmatpush1.msra.mxu1 %v635_v32  ;;  %1019 = vmatprep.subr.mxu0 %v5119_v0  ;;  %v678_v32 = vld [vmem:[%s9609_s0 + $0x258] sm:$0xff] }
  0x22   :  { %1204 = vmatprep.subr.mxu1 %v5119_v0  ;;  %1020 = vmatpush2.msra.mxu0 %v634_v33  ;;  %v710_v33 = vld [vmem:[%s9609_s0 + $0x358] sm:$0xff] }
  0x23   :  { %1205 = vmatpush2.msra.mxu1 %v666_v34  ;;  %1021 = vmatprep.subr.mxu0 %v5119_v0  ;;  %v147_v34 = vld [vmem:[%s9610_s1 + $0x3c0] sm:$0xff] }
  0x24   :  { %1206 = vmatprep.subr.mxu1 %v5119_v0  ;;  %1022 = vmatpush2.msra.mxu0 %v633_v35  ;;  %v149_v35 = vld [vmem:[%s9610_s1 + $0x3d0] sm:$0xff] }
  0x25   :  { %1207 = vmatpush2.msra.mxu1 %v665_v36  ;;  %1023 = vmatprep.subr.mxu0 %v5119_v0  ;;  %v172_v36 = vld [vmem:[%s9610_s1 + $0x488] sm:$0xff] }
  0x26   :  { %1208 = vmatprep.subr.mxu1 %v5119_v0  ;;  %1024 = vmatpush2.msra.mxu0 %v632_v37  ;;  %v174_v37 = vld [vmem:[%s9610_s1 + $0x498] sm:$0xff] }
  0x27   :  { %1209 = vmatpush2.msra.mxu1 %v664_v38  ;;  %1025 = vmatprep.subr.mxu0 %v5119_v0  ;;  %v677_v38 = vld [vmem:[%s9609_s0 + $0x250] sm:$0xff] }
  0x28   :  { %1210 = vmatprep.subr.mxu1 %v5119_v0  ;;  %1026 = vmatpush2.msra.mxu0 %v631_v39  ;;  %v709_v39 = vld [vmem:[%s9609_s0 + $0x350] sm:$0xff] }
  0x29   :  { %1211 = vmatpush2.msra.mxu1 %v663_v40  ;;  %1027 = vmatprep.subr.mxu0 %v5119_v0  ;;  %v171_v40 = vld [vmem:[%s9610_s1 + $0x480] sm:$0xff] }
  0x2a   :  { %1212 = vmatprep.subr.mxu1 %v5119_v0  ;;  %1028 = vmatpush2.msra.mxu0 %v630_v41  ;;  %v173_v41 = vld [vmem:[%s9610_s1 + $0x490] sm:$0xff] }
  0x2b   :  { %1213 = vmatpush2.msra.mxu1 %v662_v42  ;;  %1029 = vmatprep.subr.mxu0 %v5119_v0  ;;  %v196_v42 = vld [vmem:[%s9610_s1 + $0x548] sm:$0xff] }
  0x2c   :  { %1214 = vmatprep.subr.mxu1 %v5119_v0  ;;  %1030 = vmatpush2.msra.mxu0 %v629_v43  ;;  %v198_v43 = vld [vmem:[%s9610_s1 + $0x558] sm:$0xff] }
  0x2d   :  { %1215 = vmatpush2.msra.mxu1 %v661_v44  ;;  %1031 = vmatprep.subr.mxu0 %v5119_v0  ;;  %v676_v44 = vld [vmem:[%s9609_s0 + $0x248] sm:$0xff] }
  0x2e   :  { %1216 = vmatprep.subr.mxu1 %v5119_v0  ;;  %1032 = vmatpush2.msra.mxu0 %v628_v45  ;;  %v708_v45 = vld [vmem:[%s9609_s0 + $0x348] sm:$0xff] }
  0x2f   :  { %1217 = vmatpush2.msra.mxu1 %v660_v46  ;;  %1033 = vmatprep.subr.mxu0 %v5119_v0  ;;  %v195_v46 = vld [vmem:[%s9610_s1 + $0x540] sm:$0xff] }
  0x30   :  { %1218 = vmatprep.subr.mxu1 %v5119_v0  ;;  %1034 = vmatpush2.msra.mxu0 %v627_v47  ;;  %v197_v47 = vld [vmem:[%s9610_s1 + $0x550] sm:$0xff] }
  0x31   :  { %1219 = vmatpush2.msra.mxu1 %v659_v48  ;;  %1035 = vmatprep.subr.mxu0 %v5119_v0  ;;  %v220_v48 = vld [vmem:[%s9610_s1 + $0x608] sm:$0xff] }
  0x32   :  { %1220 = vmatprep.subr.mxu1 %v5119_v0  ;;  %1036 = vmatpush2.msra.mxu0 %v626_v49  ;;  %v222_v49 = vld [vmem:[%s9610_s1 + $0x618] sm:$0xff] }
  0x33   :  { %1221 = vmatpush2.msra.mxu1 %v658_v50  ;;  %1037 = vmatprep.subr.mxu0 %v5119_v0  ;;  %v675_v50 = vld [vmem:[%s9609_s0 + $0x240] sm:$0xff] }
  0x34   :  { %1222 = vmatprep.subr.mxu1 %v5119_v0  ;;  %1038 = vmatpush2.msra.mxu0 %v625_v51  ;;  %v707_v51 = vld [vmem:[%s9609_s0 + $0x340] sm:$0xff] }
  0x35   :  { %1223 = vmatpush2.msra.mxu1 %v657_v52  ;;  %1039 = vmatprep.subr.mxu0 %v5119_v0  ;;  %v219_v52 = vld [vmem:[%s9610_s1 + $0x600] sm:$0xff] }
  0x36   :  { %1224 = vmatprep.subr.mxu1 %v5119_v0  ;;  %1040 = vmatpush2.msra.mxu0 %v624_v53  ;;  %v221_v53 = vld [vmem:[%s9610_s1 + $0x610] sm:$0xff] }
  0x37   :  { %1225 = vmatpush2.msra.mxu1 %v656_v54  ;;  %1041 = vmatprep.subr.mxu0 %v5119_v0  ;;  %v244_v54 = vld [vmem:[%s9610_s1 + $0x6c8] sm:$0xff] }
  0x38   :  { %1226 = vmatprep.subr.mxu1 %v5119_v0  ;;  %1042 = vmatpush2.msra.mxu0 %v623_v55  ;;  %v246_v55 = vld [vmem:[%s9610_s1 + $0x6d8] sm:$0xff] }
  0x39   :  { %1227 = vmatpush2.msra.mxu1 %v655_v56  ;;  %1043 = vmatprep.subr.mxu0 %v5119_v0  ;;  %v674_v56 = vld [vmem:[%s9609_s0 + $0x238] sm:$0xff] }
  0x3a   :  { %1228 = vmatprep.subr.mxu1 %v5119_v0  ;;  %1044 = vmatpush2.msra.mxu0 %v622_v57  ;;  %v706_v57 = vld [vmem:[%s9609_s0 + $0x338] sm:$0xff] }
  0x3b   :  { %1229 = vmatpush2.msra.mxu1 %v654_v58  ;;  %1045 = vmatprep.subr.mxu0 %v5119_v0  ;;  %v243_v58 = vld [vmem:[%s9610_s1 + $0x6c0] sm:$0xff] }
  0x3c   :  { %1230 = vmatprep.subr.mxu1 %v5119_v0  ;;  %1046 = vmatpush2.msra.mxu0 %v621_v59  ;;  %v245_v59 = vld [vmem:[%s9610_s1 + $0x6d0] sm:$0xff] }
  0x3d   :  { %1231 = vmatpush2.msra.mxu1 %v653_v60  ;;  %1047 = vmatprep.subr.mxu0 %v5119_v0  ;;  %v268_v60 = vld [vmem:[%s9610_s1 + $0x788] sm:$0xff] }
  0x3e   :  { %1232 = vmatprep.subr.mxu1 %v5119_v0  ;;  %1048 = vmatpush2.msra.mxu0 %v620_v61  ;;  %v270_v61 = vld [vmem:[%s9610_s1 + $0x798] sm:$0xff] }
  0x3f   :  { %1233 = vmatpush2.msra.mxu1 %v652_v62  ;;  %1049 = vmatprep.subr.mxu0 %v5119_v0  ;;  %v673_v62 = vld [vmem:[%s9609_s0 + $0x230] sm:$0xff] }
  0x40   :  { %1234 = vmatprep.subr.mxu1 %v5119_v0  ;;  %1050 = vmatpush2.msra.mxu0 %v619_v63  ;;  %v705_v63 = vld [vmem:[%s9609_s0 + $0x330] sm:$0xff] }
  0x41   :  { %1051 = vmatprep.mubr.f32.mxu0 %v28_v1  ;;  %1235 = vmatpush2.msra.mxu1 %v651_v2  ;;  %v267_v1 = vld [vmem:[%s9610_s1 + $0x780] sm:$0xff]  ;;  %v269_v2 = vld [vmem:[%s9610_s1 + $0x790] sm:$0xff] }
  0x42   :  { %1236 = vmatprep.mubr.f32.mxu1 %v30_v3  ;;  %1052 = vmatmul.mubr.f32.vlgmr.msra.gmra.mxu0 %v27_v4  ;;  %v292_v3 = vld [vmem:[%s9610_s1 + $0x848] sm:$0xff]  ;;  %v294_v4 = vld [vmem:[%s9610_s1 + $0x858] sm:$0xff] }
  0x43   :  { %1237 = vmatmul.mubr.f32.vlgmr.msra.gmra.mxu1 %v29_v5  ;;  %1056 = vmatprep.mubr.f32.mxu0 %v52_v6  ;;  %v672_v5 = vld [vmem:[%s9609_s0 + $0x228] sm:$0xff] }
  0x44   :  { %1241 = vmatprep.mubr.f32.mxu1 %v54_v7  ;;  %1357 = vmatprep.subr.mxu0 %v5119_v0  ;;  %v704_v6 = vld [vmem:[%s9609_s0 + $0x328] sm:$0xff]  ;;  %v291_v7 = vld [vmem:[%s9610_s1 + $0x840] sm:$0xff] }
  0x45   :  { %1542 = vmatprep.subr.mxu1 %v5119_v0  ;;  %1358 = vmatpush1.msra.mxu0 %v682_v8  ;;  %v293_v8 = vld [vmem:[%s9610_s1 + $0x850] sm:$0xff] }
  0x46   :  { %1543 = vmatpush1.msra.mxu1 %v714_v9  ;;  %1057 = vmatmul.mubr.f32.gmra.mxu0 %v51_v10  ;;  %v316_v9 = vld [vmem:[%s9610_s1 + $0x908] sm:$0xff]  ;;  %v318_v10 = vld [vmem:[%s9610_s1 + $0x918] sm:$0xff] }
  0x47   :  { %1242 = vmatmul.mubr.f32.gmra.mxu1 %v53_v11  ;;  %1061 = vmatprep.mubr.f32.mxu0 %v76_v12  ;;  %v671_v11 = vld [vmem:[%s9609_s0 + $0x220] sm:$0xff] }
  0x48   :  { %1246 = vmatprep.mubr.f32.mxu1 %v78_v13  ;;  %1359 = vmatprep.subr.mxu0 %v5119_v0  ;;  %v703_v12 = vld [vmem:[%s9609_s0 + $0x320] sm:$0xff] }
  0x49   :  { %1544 = vmatprep.subr.mxu1 %v5119_v0  ;;  %1360 = vmatpush1.msra.mxu0 %v681_v14  ;;  %v315_v13 = vld [vmem:[%s9610_s1 + $0x900] sm:$0xff]  ;;  %v317_v14 = vld [vmem:[%s9610_s1 + $0x910] sm:$0xff] }
  0x4a   :  { %1545 = vmatpush1.msra.mxu1 %v713_v15  ;;  %1062 = vmatmul.mubr.f32.gmra.mxu0 %v75_v16  ;;  %v340_v15 = vld [vmem:[%s9610_s1 + $0x9c8] sm:$0xff]  ;;  %v342_v16 = vld [vmem:[%s9610_s1 + $0x9d8] sm:$0xff] }
  0x4b   :  { %1247 = vmatmul.mubr.f32.gmra.mxu1 %v77_v17  ;;  %1066 = vmatprep.mubr.f32.mxu0 %v100_v18  ;;  %v670_v17 = vld [vmem:[%s9609_s0 + $0x218] sm:$0xff] }
  0x4c   :  { %1251 = vmatprep.mubr.f32.mxu1 %v102_v19  ;;  %1361 = vmatprep.subr.mxu0 %v5119_v0  ;;  %v702_v18 = vld [vmem:[%s9609_s0 + $0x318] sm:$0xff]  ;;  %v339_v19 = vld [vmem:[%s9610_s1 + $0x9c0] sm:$0xff] }
  0x4d   :  { %1546 = vmatprep.subr.mxu1 %v5119_v0  ;;  %1362 = vmatpush1.msra.mxu0 %v680_v20  ;;  %v341_v20 = vld [vmem:[%s9610_s1 + $0x9d0] sm:$0xff] }
  0x4e   :  { %1547 = vmatpush1.msra.mxu1 %v712_v21  ;;  %1067 = vmatmul.mubr.f32.gmra.mxu0 %v99_v22  ;;  %v364_v21 = vld [vmem:[%s9610_s1 + $0xa88] sm:$0xff]  ;;  %v366_v22 = vld [vmem:[%s9610_s1 + $0xa98] sm:$0xff] }
  0x4f   :  { %1252 = vmatmul.mubr.f32.gmra.mxu1 %v101_v23  ;;  %1071 = vmatprep.mubr.f32.mxu0 %v124_v24  ;;  %v669_v23 = vld [vmem:[%s9609_s0 + $0x210] sm:$0xff] }
  0x50   :  { %1256 = vmatprep.mubr.f32.mxu1 %v126_v25  ;;  %1363 = vmatprep.subr.mxu0 %v5119_v0  ;;  %v701_v24 = vld [vmem:[%s9609_s0 + $0x310] sm:$0xff]  ;;  %v363_v25 = vld [vmem:[%s9610_s1 + $0xa80] sm:$0xff] }
  0x51   :  { %1548 = vmatprep.subr.mxu1 %v5119_v0  ;;  %1364 = vmatpush1.msra.mxu0 %v679_v26  ;;  %v365_v26 = vld [vmem:[%s9610_s1 + $0xa90] sm:$0xff] }
  0x52   :  { %1549 = vmatpush1.msra.mxu1 %v711_v27  ;;  %1072 = vmatmul.mubr.f32.gmra.mxu0 %v123_v28  ;;  %v388_v27 = vld [vmem:[%s9610_s1 + $0xb48] sm:$0xff]  ;;  %v390_v28 = vld [vmem:[%s9610_s1 + $0xb58] sm:$0xff] }
  0x53   :  { %1257 = vmatmul.mubr.f32.gmra.mxu1 %v125_v29  ;;  %1076 = vmatprep.mubr.f32.mxu0 %v148_v30  ;;  %v668_v29 = vld [vmem:[%s9609_s0 + $0x208] sm:$0xff] }
  0x54   :  { %1261 = vmatprep.mubr.f32.mxu1 %v150_v31  ;;  %1365 = vmatprep.subr.mxu0 %v5119_v0  ;;  %v700_v30 = vld [vmem:[%s9609_s0 + $0x308] sm:$0xff]  ;;  %v387_v31 = vld [vmem:[%s9610_s1 + $0xb40] sm:$0xff] }
  0x55   :  { %1550 = vmatprep.subr.mxu1 %v5119_v0  ;;  %1366 = vmatpush1.msra.mxu0 %v678_v32  ;;  %v389_v32 = vld [vmem:[%s9610_s1 + $0xb50] sm:$0xff] }
  0x56   :  { %1551 = vmatpush1.msra.mxu1 %v710_v33  ;;  %1077 = vmatmul.mubr.f32.gmra.mxu0 %v147_v34  ;;  %v412_v33 = vld [vmem:[%s9610_s1 + $0xc08] sm:$0xff]  ;;  %v414_v34 = vld [vmem:[%s9610_s1 + $0xc18] sm:$0xff] }
  0x57   :  { %1262 = vmatmul.mubr.f32.gmra.mxu1 %v149_v35  ;;  %1081 = vmatprep.mubr.f32.mxu0 %v172_v36  ;;  %v667_v35 = vld [vmem:[%s9609_s0 + $0x200] sm:$0xff] }
  0x58   :  { %1266 = vmatprep.mubr.f32.mxu1 %v174_v37  ;;  %1367 = vmatprep.subr.mxu0 %v5119_v0  ;;  %v699_v36 = vld [vmem:[%s9609_s0 + $0x300] sm:$0xff] }
  0x59   :  { %1552 = vmatprep.subr.mxu1 %v5119_v0  ;;  %1368 = vmatpush1.msra.mxu0 %v677_v38  ;;  %v411_v37 = vld [vmem:[%s9610_s1 + $0xc00] sm:$0xff]  ;;  %v413_v38 = vld [vmem:[%s9610_s1 + $0xc10] sm:$0xff] }
  0x5a   :  { %1553 = vmatpush1.msra.mxu1 %v709_v39  ;;  %1082 = vmatmul.mubr.f32.gmra.mxu0 %v171_v40  ;;  %v698_v39 = vld [vmem:[%s9609_s0 + $0x2f8] sm:$0xff] }
  0x5b   :  { %1267 = vmatmul.mubr.f32.gmra.mxu1 %v173_v41  ;;  %1086 = vmatprep.mubr.f32.mxu0 %v196_v42  ;;  %v730_v40 = vld [vmem:[%s9609_s0 + $0x3f8] sm:$0xff]  ;;  %v436_v41 = vld [vmem:[%s9610_s1 + $0xcc8] sm:$0xff] }
  0x5c   :  { %1271 = vmatprep.mubr.f32.mxu1 %v198_v43  ;;  %1369 = vmatprep.subr.mxu0 %v5119_v0  ;;  %v438_v42 = vld [vmem:[%s9610_s1 + $0xcd8] sm:$0xff]  ;;  %v697_v43 = vld [vmem:[%s9609_s0 + $0x2f0] sm:$0xff] }
  0x5d   :  { %1554 = vmatprep.subr.mxu1 %v5119_v0  ;;  %1370 = vmatpush1.msra.mxu0 %v676_v44  ;;  %v729_v44 = vld [vmem:[%s9609_s0 + $0x3f0] sm:$0xff] }
  0x5e   :  { %1555 = vmatpush1.msra.mxu1 %v708_v45  ;;  %1087 = vmatmul.mubr.f32.gmra.mxu0 %v195_v46  ;;  %v435_v45 = vld [vmem:[%s9610_s1 + $0xcc0] sm:$0xff]  ;;  %v437_v46 = vld [vmem:[%s9610_s1 + $0xcd0] sm:$0xff] }
  0x5f   :  { %1272 = vmatmul.mubr.f32.gmra.mxu1 %v197_v47  ;;  %1091 = vmatprep.mubr.f32.mxu0 %v220_v48  ;;  %v696_v47 = vld [vmem:[%s9609_s0 + $0x2e8] sm:$0xff] }
  0x60   :  { %1276 = vmatprep.mubr.f32.mxu1 %v222_v49  ;;  %1371 = vmatprep.subr.mxu0 %v5119_v0  ;;  %v728_v48 = vld [vmem:[%s9609_s0 + $0x3e8] sm:$0xff] }
  0x61   :  { %1556 = vmatprep.subr.mxu1 %v5119_v0  ;;  %1372 = vmatpush1.msra.mxu0 %v675_v50  ;;  %v460_v49 = vld [vmem:[%s9610_s1 + $0xd88] sm:$0xff]  ;;  %v462_v50 = vld [vmem:[%s9610_s1 + $0xd98] sm:$0xff] }
  0x62   :  { %1557 = vmatpush1.msra.mxu1 %v707_v51  ;;  %1092 = vmatmul.mubr.f32.gmra.mxu0 %v219_v52  ;;  %v695_v51 = vld [vmem:[%s9609_s0 + $0x2e0] sm:$0xff] }
  0x63   :  { %1277 = vmatmul.mubr.f32.gmra.mxu1 %v221_v53  ;;  %1096 = vmatprep.mubr.f32.mxu0 %v244_v54  ;;  %v727_v52 = vld [vmem:[%s9609_s0 + $0x3e0] sm:$0xff]  ;;  %v461_v54 = vld [vmem:[%s9610_s1 + $0xd90] sm:$0xff] }
  0x64   :  { %1281 = vmatprep.mubr.f32.mxu1 %v246_v55  ;;  %1373 = vmatprep.subr.mxu0 %v5119_v0  ;;  %v459_v53 = vld [vmem:[%s9610_s1 + $0xd80] sm:$0xff]  ;;  %v694_v55 = vld [vmem:[%s9609_s0 + $0x2d8] sm:$0xff] }
  0x65   :  { %1558 = vmatprep.subr.mxu1 %v5119_v0  ;;  %1374 = vmatpush1.msra.mxu0 %v674_v56  ;;  %v726_v56 = vld [vmem:[%s9609_s0 + $0x3d8] sm:$0xff] }
  0x66   :  { %1559 = vmatpush1.msra.mxu1 %v706_v57  ;;  %1097 = vmatmul.mubr.f32.gmra.mxu0 %v243_v58  ;;  %v484_v57 = vld [vmem:[%s9610_s1 + $0xe48] sm:$0xff]  ;;  %v486_v58 = vld [vmem:[%s9610_s1 + $0xe58] sm:$0xff] }
  0x67   :  { %1282 = vmatmul.mubr.f32.gmra.mxu1 %v245_v59  ;;  %1101 = vmatprep.mubr.f32.mxu0 %v268_v60  ;;  %v693_v59 = vld [vmem:[%s9609_s0 + $0x2d0] sm:$0xff] }
  0x68   :  { %1286 = vmatprep.mubr.f32.mxu1 %v270_v61  ;;  %1375 = vmatprep.subr.mxu0 %v5119_v0  ;;  %v725_v60 = vld [vmem:[%s9609_s0 + $0x3d0] sm:$0xff]  ;;  %v483_v61 = vld [vmem:[%s9610_s1 + $0xe40] sm:$0xff] }
  0x69   :  { %1560 = vmatprep.subr.mxu1 %v5119_v0  ;;  %1376 = vmatpush1.msra.mxu0 %v673_v62  ;;  %v485_v62 = vld [vmem:[%s9610_s1 + $0xe50] sm:$0xff] }
  0x6a   :  { %1561 = vmatpush1.msra.mxu1 %v705_v63  ;;  %1102 = vmatmul.mubr.f32.gmra.mxu0 %v267_v1  ;;  %v692_v63 = vld [vmem:[%s9609_s0 + $0x2c8] sm:$0xff] }
  0x6b   :  { %1287 = vmatmul.mubr.f32.gmra.mxu1 %v269_v2  ;;  %1106 = vmatprep.mubr.f32.mxu0 %v292_v3  ;;  %v724_v1 = vld [vmem:[%s9609_s0 + $0x3c8] sm:$0xff]  ;;  %v510_v3 = vld [vmem:[%s9610_s1 + $0xf18] sm:$0xff] }
  0x6c   :  { %1291 = vmatprep.mubr.f32.mxu1 %v294_v4  ;;  %1377 = vmatprep.subr.mxu0 %v5119_v0  ;;  %v508_v2 = vld [vmem:[%s9610_s1 + $0xf08] sm:$0xff]  ;;  %v691_v4 = vld [vmem:[%s9609_s0 + $0x2c0] sm:$0xff] }
  0x6d   :  { %1562 = vmatprep.subr.mxu1 %v5119_v0  ;;  %1378 = vmatpush1.msra.mxu0 %v672_v5  ;;  %v723_v5 = vld [vmem:[%s9609_s0 + $0x3c0] sm:$0xff] }
  0x6e   :  { %1563 = vmatpush1.msra.mxu1 %v704_v6  ;;  %1107 = vmatmul.mubr.f32.gmra.mxu0 %v291_v7  ;;  %v507_v6 = vld [vmem:[%s9610_s1 + $0xf00] sm:$0xff]  ;;  %v509_v7 = vld [vmem:[%s9610_s1 + $0xf10] sm:$0xff] }
  0x6f   :  { %1292 = vmatmul.mubr.f32.gmra.mxu1 %v293_v8  ;;  %1111 = vmatprep.mubr.f32.mxu0 %v316_v9  ;;  %v690_v8 = vld [vmem:[%s9609_s0 + $0x2b8] sm:$0xff] }
  0x70   :  { %1296 = vmatprep.mubr.f32.mxu1 %v318_v10  ;;  %1379 = vmatprep.subr.mxu0 %v5119_v0  ;;  %v722_v9 = vld [vmem:[%s9609_s0 + $0x3b8] sm:$0xff]  ;;  %v532_v10 = vld [vmem:[%s9610_s1 + $0xfc8] sm:$0xff] }
  0x71   :  { %1564 = vmatprep.subr.mxu1 %v5119_v0  ;;  %1380 = vmatpush1.msra.mxu0 %v671_v11  ;;  %v534_v11 = vld [vmem:[%s9610_s1 + $0xfd8] sm:$0xff] }
  0x72   :  { %1565 = vmatpush1.msra.mxu1 %v703_v12  ;;  %1112 = vmatmul.mubr.f32.gmra.mxu0 %v315_v13  ;;  %v689_v12 = vld [vmem:[%s9609_s0 + $0x2b0] sm:$0xff] }
  0x73   :  { %1297 = vmatmul.mubr.f32.gmra.mxu1 %v317_v14  ;;  %1116 = vmatprep.mubr.f32.mxu0 %v340_v15  ;;  %v721_v13 = vld [vmem:[%s9609_s0 + $0x3b0] sm:$0xff]  ;;  %v531_v14 = vld [vmem:[%s9610_s1 + $0xfc0] sm:$0xff] }
  0x74   :  { %1301 = vmatprep.mubr.f32.mxu1 %v342_v16  ;;  %1381 = vmatprep.subr.mxu0 %v5119_v0  ;;  %v533_v15 = vld [vmem:[%s9610_s1 + $0xfd0] sm:$0xff]  ;;  %v688_v16 = vld [vmem:[%s9609_s0 + $0x2a8] sm:$0xff] }
  0x75   :  { %1566 = vmatprep.subr.mxu1 %v5119_v0  ;;  %1382 = vmatpush1.msra.mxu0 %v670_v17  ;;  %v720_v17 = vld [vmem:[%s9609_s0 + $0x3a8] sm:$0xff] }
  0x76   :  { %1567 = vmatpush1.msra.mxu1 %v702_v18  ;;  %1117 = vmatmul.mubr.f32.gmra.mxu0 %v339_v19  ;;  %v556_v18 = vld [vmem:[%s9610_s1 + $0x1088] sm:$0xff]  ;;  %v558_v19 = vld [vmem:[%s9610_s1 + $0x1098] sm:$0xff] }
  0x77   :  { %1302 = vmatmul.mubr.f32.gmra.mxu1 %v341_v20  ;;  %1121 = vmatprep.mubr.f32.mxu0 %v364_v21  ;;  %v687_v20 = vld [vmem:[%s9609_s0 + $0x2a0] sm:$0xff] }
  0x78   :  { %1306 = vmatprep.mubr.f32.mxu1 %v366_v22  ;;  %1383 = vmatprep.subr.mxu0 %v5119_v0  ;;  %v719_v21 = vld [vmem:[%s9609_s0 + $0x3a0] sm:$0xff] }
  0x79   :  { %1568 = vmatprep.subr.mxu1 %v5119_v0  ;;  %1384 = vmatpush1.msra.mxu0 %v669_v23  ;;  %v555_v22 = vld [vmem:[%s9610_s1 + $0x1080] sm:$0xff]  ;;  %v557_v23 = vld [vmem:[%s9610_s1 + $0x1090] sm:$0xff] }
  0x7a   :  { %1569 = vmatpush1.msra.mxu1 %v701_v24  ;;  %1122 = vmatmul.mubr.f32.gmra.mxu0 %v363_v25  ;;  %v686_v24 = vld [vmem:[%s9609_s0 + $0x298] sm:$0xff] }
  0x7b   :  { %1307 = vmatmul.mubr.f32.gmra.mxu1 %v365_v26  ;;  %1126 = vmatprep.mubr.f32.mxu0 %v388_v27  ;;  %v718_v25 = vld [vmem:[%s9609_s0 + $0x398] sm:$0xff]  ;;  %v580_v26 = vld [vmem:[%s9610_s1 + $0x1148] sm:$0xff] }
  0x7c   :  { %1311 = vmatprep.mubr.f32.mxu1 %v390_v28  ;;  %1385 = vmatprep.subr.mxu0 %v5119_v0  ;;  %v582_v27 = vld [vmem:[%s9610_s1 + $0x1158] sm:$0xff]  ;;  %v685_v28 = vld [vmem:[%s9609_s0 + $0x290] sm:$0xff] }
  0x7d   :  { %1570 = vmatprep.subr.mxu1 %v5119_v0  ;;  %1386 = vmatpush1.msra.mxu0 %v668_v29  ;;  %v717_v29 = vld [vmem:[%s9609_s0 + $0x390] sm:$0xff] }
  0x7e   :  { %1571 = vmatpush1.msra.mxu1 %v700_v30  ;;  %1127 = vmatmul.mubr.f32.gmra.mxu0 %v387_v31  ;;  %v579_v30 = vld [vmem:[%s9610_s1 + $0x1140] sm:$0xff]  ;;  %v581_v31 = vld [vmem:[%s9610_s1 + $0x1150] sm:$0xff] }
  0x7f   :  { %1312 = vmatmul.mubr.f32.gmra.mxu1 %v389_v32  ;;  %1387 = vmatprep.subr.mxu0 %v5119_v0  ;;  %v684_v32 = vld [vmem:[%s9609_s0 + $0x288] sm:$0xff] }
  0x80   :  { %1572 = vmatprep.subr.mxu1 %v5119_v0  ;;  %1131 = vmatprep.mubr.f32.mxu0 %v412_v33  ;;  %v716_v33 = vld [vmem:[%s9609_s0 + $0x388] sm:$0xff] }
  0x81   :  { %1316 = vmatprep.mubr.f32.mxu1 %v414_v34  ;;  %1388 = vmatpush1.msra.mxu0 %v667_v35  ;;  %v683_v34 = vld [vmem:[%s9609_s0 + $0x280] sm:$0xff]  ;;  %v32_v35 = vld [vmem:[%s9610_s1 + $0x28] sm:$0xff] }
  0x82   :  { %1573 = vmatpush1.msra.mxu1 %v699_v36  ;;  %1132 = vmatmul.mubr.f32.gmra.mxu0 %v411_v37  ;;  %v715_v36 = vld [vmem:[%s9609_s0 + $0x380] sm:$0xff]  ;;  %v34_v37 = vld [vmem:[%s9610_s1 + $0x38] sm:$0xff] }
  0x83   :  { %1317 = vmatmul.mubr.f32.gmra.mxu1 %v413_v38  ;;  %1389 = vmatprep.subr.mxu0 %v5119_v0  ;;  %v31_v38 = vld [vmem:[%s9610_s1 + $0x20] sm:$0xff] }
  0x84   :  { %1574 = vmatprep.subr.mxu1 %v5119_v0  ;;  %1390 = vmatpush2.msra.mxu0 %v698_v39  ;;  %v33_v39 = vld [vmem:[%s9610_s1 + $0x30] sm:$0xff] }
  0x85   :  { %1575 = vmatpush2.msra.mxu1 %v730_v40  ;;  %1391 = vmatprep.subr.mxu0 %v5119_v0  ;;  %v56_v40 = vld [vmem:[%s9610_s1 + $0xe8] sm:$0xff] }
  0x86   :  { %1576 = vmatprep.subr.mxu1 %v5119_v0  ;;  %1136 = vmatprep.mubr.f32.mxu0 %v436_v41  ;;  %v58_v41 = vld [vmem:[%s9610_s1 + $0xf8] sm:$0xff] }
  0x87   :  { %1321 = vmatprep.mubr.f32.mxu1 %v438_v42  ;;  %1392 = vmatpush2.msra.mxu0 %v697_v43  ;;  %v746_v42 = vld [vmem:[%s9609_s0 + $0x478] sm:$0xff] }
  0x88   :  { %1577 = vmatpush2.msra.mxu1 %v729_v44  ;;  %1137 = vmatmul.mubr.f32.gmra.mxu0 %v435_v45  ;;  %v778_v43 = vld [vmem:[%s9609_s0 + $0x578] sm:$0xff]  ;;  %v55_v44 = vld [vmem:[%s9610_s1 + $0xe0] sm:$0xff]  ;;  %v57_v45 = vld [vmem:[%s9610_s1 + $0xf0] sm:$0xff] }
  0x89   :  { %1322 = vmatmul.mubr.f32.gmra.mxu1 %v437_v46  ;;  %1393 = vmatprep.subr.mxu0 %v5119_v0  ;;  %v80_v46 = vld [vmem:[%s9610_s1 + $0x1a8] sm:$0xff] }
  0x8a   :  { %1578 = vmatprep.subr.mxu1 %v5119_v0  ;;  %1394 = vmatpush2.msra.mxu0 %v696_v47  ;;  %v82_v47 = vld [vmem:[%s9610_s1 + $0x1b8] sm:$0xff] }
  0x8b   :  { %1579 = vmatpush2.msra.mxu1 %v728_v48  ;;  %1395 = vmatprep.subr.mxu0 %v5119_v0  ;;  %v745_v48 = vld [vmem:[%s9609_s0 + $0x470] sm:$0xff] }
  0x8c   :  { %1580 = vmatprep.subr.mxu1 %v5119_v0  ;;  %1141 = vmatprep.mubr.f32.mxu0 %v460_v49  ;;  %v777_v49 = vld [vmem:[%s9609_s0 + $0x570] sm:$0xff] }
  0x8d   :  { %1326 = vmatprep.mubr.f32.mxu1 %v462_v50  ;;  %1396 = vmatpush2.msra.mxu0 %v695_v51  ;;  %v79_v50 = vld [vmem:[%s9610_s1 + $0x1a0] sm:$0xff]  ;;  %v81_v51 = vld [vmem:[%s9610_s1 + $0x1b0] sm:$0xff] }
  0x8e   :  { %1581 = vmatpush2.msra.mxu1 %v727_v52  ;;  %1142 = vmatmul.mubr.f32.gmra.mxu0 %v459_v53  ;;  %v104_v52 = vld [vmem:[%s9610_s1 + $0x268] sm:$0xff]  ;;  %v106_v53 = vld [vmem:[%s9610_s1 + $0x278] sm:$0xff] }
  0x8f   :  { %1327 = vmatmul.mubr.f32.gmra.mxu1 %v461_v54  ;;  %1397 = vmatprep.subr.mxu0 %v5119_v0  ;;  %v744_v54 = vld [vmem:[%s9609_s0 + $0x468] sm:$0xff] }
  0x90   :  { %1582 = vmatprep.subr.mxu1 %v5119_v0  ;;  %1398 = vmatpush2.msra.mxu0 %v694_v55  ;;  %v776_v55 = vld [vmem:[%s9609_s0 + $0x568] sm:$0xff] }
  0x91   :  { %1583 = vmatpush2.msra.mxu1 %v726_v56  ;;  %1399 = vmatprep.subr.mxu0 %v5119_v0  ;;  %v103_v56 = vld [vmem:[%s9610_s1 + $0x260] sm:$0xff] }
  0x92   :  { %1584 = vmatprep.subr.mxu1 %v5119_v0  ;;  %1146 = vmatprep.mubr.f32.mxu0 %v484_v57  ;;  %v105_v57 = vld [vmem:[%s9610_s1 + $0x270] sm:$0xff] }
  0x93   :  { %1331 = vmatprep.mubr.f32.mxu1 %v486_v58  ;;  %1400 = vmatpush2.msra.mxu0 %v693_v59  ;;  %v128_v58 = vld [vmem:[%s9610_s1 + $0x328] sm:$0xff]  ;;  %v130_v59 = vld [vmem:[%s9610_s1 + $0x338] sm:$0xff] }
  0x94   :  { %1585 = vmatpush2.msra.mxu1 %v725_v60  ;;  %1147 = vmatmul.mubr.f32.gmra.mxu0 %v483_v61  ;;  %v743_v60 = vld [vmem:[%s9609_s0 + $0x460] sm:$0xff] }
  0x95   :  { %1332 = vmatmul.mubr.f32.gmra.mxu1 %v485_v62  ;;  %1401 = vmatprep.subr.mxu0 %v5119_v0  ;;  %v775_v61 = vld [vmem:[%s9609_s0 + $0x560] sm:$0xff] }
  0x96   :  { %1586 = vmatprep.subr.mxu1 %v5119_v0  ;;  %1402 = vmatpush2.msra.mxu0 %v692_v63  ;;  %v127_v62 = vld [vmem:[%s9610_s1 + $0x320] sm:$0xff]  ;;  %v129_v63 = vld [vmem:[%s9610_s1 + $0x330] sm:$0xff] }
  0x97   :  { %1587 = vmatpush2.msra.mxu1 %v724_v1  ;;  %1403 = vmatprep.subr.mxu0 %v5119_v0  ;;  %v152_v1 = vld [vmem:[%s9610_s1 + $0x3e8] sm:$0xff] }
  0x98   :  { %1588 = vmatprep.subr.mxu1 %v5119_v0  ;;  %1151 = vmatprep.mubr.f32.mxu0 %v508_v2  ;;  %v154_v2 = vld [vmem:[%s9610_s1 + $0x3f8] sm:$0xff] }
  0x99   :  { %1336 = vmatprep.mubr.f32.mxu1 %v510_v3  ;;  %1404 = vmatpush2.msra.mxu0 %v691_v4  ;;  %v742_v3 = vld [vmem:[%s9609_s0 + $0x458] sm:$0xff] }
  0x9a   :  { %1589 = vmatpush2.msra.mxu1 %v723_v5  ;;  %1152 = vmatmul.mubr.f32.gmra.mxu0 %v507_v6  ;;  %v774_v4 = vld [vmem:[%s9609_s0 + $0x558] sm:$0xff]  ;;  %v151_v5 = vld [vmem:[%s9610_s1 + $0x3e0] sm:$0xff]  ;;  %v153_v6 = vld [vmem:[%s9610_s1 + $0x3f0] sm:$0xff] }
  0x9b   :  { %1337 = vmatmul.mubr.f32.gmra.mxu1 %v509_v7  ;;  %1405 = vmatprep.subr.mxu0 %v5119_v0  ;;  %v176_v7 = vld [vmem:[%s9610_s1 + $0x4a8] sm:$0xff] }
  0x9c   :  { %1590 = vmatprep.subr.mxu1 %v5119_v0  ;;  %1406 = vmatpush2.msra.mxu0 %v690_v8  ;;  %v178_v8 = vld [vmem:[%s9610_s1 + $0x4b8] sm:$0xff] }
  0x9d   :  { %1591 = vmatpush2.msra.mxu1 %v722_v9  ;;  %1407 = vmatprep.subr.mxu0 %v5119_v0  ;;  %v741_v9 = vld [vmem:[%s9609_s0 + $0x450] sm:$0xff] }
  0x9e   :  { %1592 = vmatprep.subr.mxu1 %v5119_v0  ;;  %1156 = vmatprep.mubr.f32.mxu0 %v532_v10  ;;  %v773_v10 = vld [vmem:[%s9609_s0 + $0x550] sm:$0xff] }
  0x9f   :  { %1341 = vmatprep.mubr.f32.mxu1 %v534_v11  ;;  %1408 = vmatpush2.msra.mxu0 %v689_v12  ;;  %v175_v11 = vld [vmem:[%s9610_s1 + $0x4a0] sm:$0xff]  ;;  %v177_v12 = vld [vmem:[%s9610_s1 + $0x4b0] sm:$0xff] }
  0xa0   :  { %1593 = vmatpush2.msra.mxu1 %v721_v13  ;;  %1157 = vmatmul.mubr.f32.gmra.mxu0 %v531_v14  ;;  %v200_v13 = vld [vmem:[%s9610_s1 + $0x568] sm:$0xff]  ;;  %v202_v14 = vld [vmem:[%s9610_s1 + $0x578] sm:$0xff] }
  0xa1   :  { %1342 = vmatmul.mubr.f32.gmra.mxu1 %v533_v15  ;;  %1409 = vmatprep.subr.mxu0 %v5119_v0  ;;  %v740_v15 = vld [vmem:[%s9609_s0 + $0x448] sm:$0xff] }
  0xa2   :  { %1594 = vmatprep.subr.mxu1 %v5119_v0  ;;  %1410 = vmatpush2.msra.mxu0 %v688_v16  ;;  %v772_v16 = vld [vmem:[%s9609_s0 + $0x548] sm:$0xff] }
  0xa3   :  { %1595 = vmatpush2.msra.mxu1 %v720_v17  ;;  %1411 = vmatprep.subr.mxu0 %v5119_v0  ;;  %v199_v17 = vld [vmem:[%s9610_s1 + $0x560] sm:$0xff] }
  0xa4   :  { %1596 = vmatprep.subr.mxu1 %v5119_v0  ;;  %1161 = vmatprep.mubr.f32.mxu0 %v556_v18  ;;  %v201_v18 = vld [vmem:[%s9610_s1 + $0x570] sm:$0xff] }
  0xa5   :  { %1346 = vmatprep.mubr.f32.mxu1 %v558_v19  ;;  %1412 = vmatpush2.msra.mxu0 %v687_v20  ;;  %v224_v19 = vld [vmem:[%s9610_s1 + $0x628] sm:$0xff]  ;;  %v226_v20 = vld [vmem:[%s9610_s1 + $0x638] sm:$0xff] }
  0xa6   :  { %1597 = vmatpush2.msra.mxu1 %v719_v21  ;;  %1162 = vmatmul.mubr.f32.gmra.mxu0 %v555_v22  ;;  %v739_v21 = vld [vmem:[%s9609_s0 + $0x440] sm:$0xff] }
  0xa7   :  { %1347 = vmatmul.mubr.f32.gmra.mxu1 %v557_v23  ;;  %1413 = vmatprep.subr.mxu0 %v5119_v0  ;;  %v771_v22 = vld [vmem:[%s9609_s0 + $0x540] sm:$0xff] }
  0xa8   :  { %1598 = vmatprep.subr.mxu1 %v5119_v0  ;;  %1414 = vmatpush2.msra.mxu0 %v686_v24  ;;  %v223_v23 = vld [vmem:[%s9610_s1 + $0x620] sm:$0xff]  ;;  %v225_v24 = vld [vmem:[%s9610_s1 + $0x630] sm:$0xff] }
  0xa9   :  { %1599 = vmatpush2.msra.mxu1 %v718_v25  ;;  %1415 = vmatprep.subr.mxu0 %v5119_v0  ;;  %v248_v25 = vld [vmem:[%s9610_s1 + $0x6e8] sm:$0xff] }
  0xaa   :  { %1600 = vmatprep.subr.mxu1 %v5119_v0  ;;  %1166 = vmatprep.mubr.f32.mxu0 %v580_v26  ;;  %v250_v26 = vld [vmem:[%s9610_s1 + $0x6f8] sm:$0xff] }
  0xab   :  { %1351 = vmatprep.mubr.f32.mxu1 %v582_v27  ;;  %1416 = vmatpush2.msra.mxu0 %v685_v28  ;;  %v738_v27 = vld [vmem:[%s9609_s0 + $0x438] sm:$0xff] }
  0xac   :  { %1601 = vmatpush2.msra.mxu1 %v717_v29  ;;  %1167 = vmatmul.mubr.f32.gmra.mxu0 %v579_v30  ;;  %v770_v28 = vld [vmem:[%s9609_s0 + $0x538] sm:$0xff]  ;;  %v247_v29 = vld [vmem:[%s9610_s1 + $0x6e0] sm:$0xff]  ;;  %v249_v30 = vld [vmem:[%s9610_s1 + $0x6f0] sm:$0xff] }
  0xad   :  { %1352 = vmatmul.mubr.f32.gmra.mxu1 %v581_v31  ;;  %1417 = vmatprep.subr.mxu0 %v5119_v0  ;;  %v272_v31 = vld [vmem:[%s9610_s1 + $0x7a8] sm:$0xff] }
  0xae   :  { %1602 = vmatprep.subr.mxu1 %v5119_v0  ;;  %1418 = vmatpush2.msra.mxu0 %v684_v32  ;;  %v274_v32 = vld [vmem:[%s9610_s1 + $0x7b8] sm:$0xff] }
  0xaf   :  { %1603 = vmatpush2.msra.mxu1 %v716_v33  ;;  %1419 = vmatprep.subr.mxu0 %v5119_v0  ;;  %v737_v33 = vld [vmem:[%s9609_s0 + $0x430] sm:$0xff] }
  0xb0   :  { %1604 = vmatprep.subr.mxu1 %v5119_v0  ;;  %1420 = vmatpush2.msra.mxu0 %v683_v34  ;;  %v769_v34 = vld [vmem:[%s9609_s0 + $0x530] sm:$0xff] }
  0xb1   :  { %1421 = vmatprep.mubr.f32.mxu0 %v32_v35  ;;  %1605 = vmatpush2.msra.mxu1 %v715_v36  ;;  %v271_v35 = vld [vmem:[%s9610_s1 + $0x7a0] sm:$0xff]  ;;  %v273_v36 = vld [vmem:[%s9610_s1 + $0x7b0] sm:$0xff] }
  0xb2   :  { %1606 = vmatprep.mubr.f32.mxu1 %v34_v37  ;;  %1422 = vmatmul.mubr.f32.vlgmr.msra.gmra.mxu0 %v31_v38  ;;  %v296_v37 = vld [vmem:[%s9610_s1 + $0x868] sm:$0xff]  ;;  %v298_v38 = vld [vmem:[%s9610_s1 + $0x878] sm:$0xff] }
  0xb3   :  { %1607 = vmatmul.mubr.f32.vlgmr.msra.gmra.mxu1 %v33_v39  ;;  %1426 = vmatprep.mubr.f32.mxu0 %v56_v40  ;;  %v736_v39 = vld [vmem:[%s9609_s0 + $0x428] sm:$0xff] }
  0xb4   :  { %1611 = vmatprep.mubr.f32.mxu1 %v58_v41  ;;  %1727 = vmatprep.subr.mxu0 %v5119_v0  ;;  %v768_v40 = vld [vmem:[%s9609_s0 + $0x528] sm:$0xff]  ;;  %v295_v41 = vld [vmem:[%s9610_s1 + $0x860] sm:$0xff] }
  0xb5   :  { %1912 = vmatprep.subr.mxu1 %v5119_v0  ;;  %1728 = vmatpush1.msra.mxu0 %v746_v42  ;;  %v297_v42 = vld [vmem:[%s9610_s1 + $0x870] sm:$0xff] }
  0xb6   :  { %1913 = vmatpush1.msra.mxu1 %v778_v43  ;;  %1427 = vmatmul.mubr.f32.gmra.mxu0 %v55_v44  ;;  %v320_v43 = vld [vmem:[%s9610_s1 + $0x928] sm:$0xff]  ;;  %v322_v44 = vld [vmem:[%s9610_s1 + $0x938] sm:$0xff] }
  0xb7   :  { %1612 = vmatmul.mubr.f32.gmra.mxu1 %v57_v45  ;;  %1431 = vmatprep.mubr.f32.mxu0 %v80_v46  ;;  %v735_v45 = vld [vmem:[%s9609_s0 + $0x420] sm:$0xff] }
  0xb8   :  { %1616 = vmatprep.mubr.f32.mxu1 %v82_v47  ;;  %1729 = vmatprep.subr.mxu0 %v5119_v0  ;;  %v767_v46 = vld [vmem:[%s9609_s0 + $0x520] sm:$0xff] }
  0xb9   :  { %1914 = vmatprep.subr.mxu1 %v5119_v0  ;;  %1730 = vmatpush1.msra.mxu0 %v745_v48  ;;  %v319_v47 = vld [vmem:[%s9610_s1 + $0x920] sm:$0xff]  ;;  %v321_v48 = vld [vmem:[%s9610_s1 + $0x930] sm:$0xff] }
  0xba   :  { %1915 = vmatpush1.msra.mxu1 %v777_v49  ;;  %1432 = vmatmul.mubr.f32.gmra.mxu0 %v79_v50  ;;  %v344_v49 = vld [vmem:[%s9610_s1 + $0x9e8] sm:$0xff]  ;;  %v346_v50 = vld [vmem:[%s9610_s1 + $0x9f8] sm:$0xff] }
  0xbb   :  { %1617 = vmatmul.mubr.f32.gmra.mxu1 %v81_v51  ;;  %1436 = vmatprep.mubr.f32.mxu0 %v104_v52  ;;  %v734_v51 = vld [vmem:[%s9609_s0 + $0x418] sm:$0xff] }
  0xbc   :  { %1621 = vmatprep.mubr.f32.mxu1 %v106_v53  ;;  %1731 = vmatprep.subr.mxu0 %v5119_v0  ;;  %v766_v52 = vld [vmem:[%s9609_s0 + $0x518] sm:$0xff]  ;;  %v343_v53 = vld [vmem:[%s9610_s1 + $0x9e0] sm:$0xff] }
  0xbd   :  { %1916 = vmatprep.subr.mxu1 %v5119_v0  ;;  %1732 = vmatpush1.msra.mxu0 %v744_v54  ;;  %v345_v54 = vld [vmem:[%s9610_s1 + $0x9f0] sm:$0xff] }
  0xbe   :  { %1917 = vmatpush1.msra.mxu1 %v776_v55  ;;  %1437 = vmatmul.mubr.f32.gmra.mxu0 %v103_v56  ;;  %v368_v55 = vld [vmem:[%s9610_s1 + $0xaa8] sm:$0xff]  ;;  %v370_v56 = vld [vmem:[%s9610_s1 + $0xab8] sm:$0xff] }
  0xbf   :  { %1622 = vmatmul.mubr.f32.gmra.mxu1 %v105_v57  ;;  %1441 = vmatprep.mubr.f32.mxu0 %v128_v58  ;;  %v733_v57 = vld [vmem:[%s9609_s0 + $0x410] sm:$0xff] }
  0xc0   :  { %1626 = vmatprep.mubr.f32.mxu1 %v130_v59  ;;  %1733 = vmatprep.subr.mxu0 %v5119_v0  ;;  %v765_v58 = vld [vmem:[%s9609_s0 + $0x510] sm:$0xff]  ;;  %v367_v59 = vld [vmem:[%s9610_s1 + $0xaa0] sm:$0xff] }
  0xc1   :  { %1918 = vmatprep.subr.mxu1 %v5119_v0  ;;  %1734 = vmatpush1.msra.mxu0 %v743_v60  ;;  %v369_v60 = vld [vmem:[%s9610_s1 + $0xab0] sm:$0xff] }
  0xc2   :  { %1919 = vmatpush1.msra.mxu1 %v775_v61  ;;  %1442 = vmatmul.mubr.f32.gmra.mxu0 %v127_v62  ;;  %v392_v61 = vld [vmem:[%s9610_s1 + $0xb68] sm:$0xff]  ;;  %v394_v62 = vld [vmem:[%s9610_s1 + $0xb78] sm:$0xff] }
  0xc3   :  { %1627 = vmatmul.mubr.f32.gmra.mxu1 %v129_v63  ;;  %1446 = vmatprep.mubr.f32.mxu0 %v152_v1  ;;  %v732_v63 = vld [vmem:[%s9609_s0 + $0x408] sm:$0xff] }
  0xc4   :  { %1631 = vmatprep.mubr.f32.mxu1 %v154_v2  ;;  %1735 = vmatprep.subr.mxu0 %v5119_v0  ;;  %v764_v1 = vld [vmem:[%s9609_s0 + $0x508] sm:$0xff]  ;;  %v391_v2 = vld [vmem:[%s9610_s1 + $0xb60] sm:$0xff] }
  0xc5   :  { %1920 = vmatprep.subr.mxu1 %v5119_v0  ;;  %1736 = vmatpush1.msra.mxu0 %v742_v3  ;;  %v393_v3 = vld [vmem:[%s9610_s1 + $0xb70] sm:$0xff] }
  0xc6   :  { %1921 = vmatpush1.msra.mxu1 %v774_v4  ;;  %1447 = vmatmul.mubr.f32.gmra.mxu0 %v151_v5  ;;  %v416_v4 = vld [vmem:[%s9610_s1 + $0xc28] sm:$0xff]  ;;  %v418_v5 = vld [vmem:[%s9610_s1 + $0xc38] sm:$0xff] }
  0xc7   :  { %1632 = vmatmul.mubr.f32.gmra.mxu1 %v153_v6  ;;  %1451 = vmatprep.mubr.f32.mxu0 %v176_v7  ;;  %v731_v6 = vld [vmem:[%s9609_s0 + $0x400] sm:$0xff] }
  0xc8   :  { %1636 = vmatprep.mubr.f32.mxu1 %v178_v8  ;;  %1737 = vmatprep.subr.mxu0 %v5119_v0  ;;  %v763_v7 = vld [vmem:[%s9609_s0 + $0x500] sm:$0xff] }
  0xc9   :  { %1922 = vmatprep.subr.mxu1 %v5119_v0  ;;  %1738 = vmatpush1.msra.mxu0 %v741_v9  ;;  %v415_v8 = vld [vmem:[%s9610_s1 + $0xc20] sm:$0xff]  ;;  %v417_v9 = vld [vmem:[%s9610_s1 + $0xc30] sm:$0xff] }
  0xca   :  { %1923 = vmatpush1.msra.mxu1 %v773_v10  ;;  %1452 = vmatmul.mubr.f32.gmra.mxu0 %v175_v11  ;;  %v762_v10 = vld [vmem:[%s9609_s0 + $0x4f8] sm:$0xff] }
  0xcb   :  { %1637 = vmatmul.mubr.f32.gmra.mxu1 %v177_v12  ;;  %1456 = vmatprep.mubr.f32.mxu0 %v200_v13  ;;  %v794_v11 = vld [vmem:[%s9609_s0 + $0x5f8] sm:$0xff]  ;;  %v440_v12 = vld [vmem:[%s9610_s1 + $0xce8] sm:$0xff] }
  0xcc   :  { %1641 = vmatprep.mubr.f32.mxu1 %v202_v14  ;;  %1739 = vmatprep.subr.mxu0 %v5119_v0  ;;  %v442_v13 = vld [vmem:[%s9610_s1 + $0xcf8] sm:$0xff]  ;;  %v761_v14 = vld [vmem:[%s9609_s0 + $0x4f0] sm:$0xff] }
  0xcd   :  { %1924 = vmatprep.subr.mxu1 %v5119_v0  ;;  %1740 = vmatpush1.msra.mxu0 %v740_v15  ;;  %v793_v15 = vld [vmem:[%s9609_s0 + $0x5f0] sm:$0xff] }
  0xce   :  { %1925 = vmatpush1.msra.mxu1 %v772_v16  ;;  %1457 = vmatmul.mubr.f32.gmra.mxu0 %v199_v17  ;;  %v439_v16 = vld [vmem:[%s9610_s1 + $0xce0] sm:$0xff]  ;;  %v441_v17 = vld [vmem:[%s9610_s1 + $0xcf0] sm:$0xff] }
  0xcf   :  { %1642 = vmatmul.mubr.f32.gmra.mxu1 %v201_v18  ;;  %1461 = vmatprep.mubr.f32.mxu0 %v224_v19  ;;  %v760_v18 = vld [vmem:[%s9609_s0 + $0x4e8] sm:$0xff] }
  0xd0   :  { %1646 = vmatprep.mubr.f32.mxu1 %v226_v20  ;;  %1741 = vmatprep.subr.mxu0 %v5119_v0  ;;  %v792_v19 = vld [vmem:[%s9609_s0 + $0x5e8] sm:$0xff] }
  0xd1   :  { %1926 = vmatprep.subr.mxu1 %v5119_v0  ;;  %1742 = vmatpush1.msra.mxu0 %v739_v21  ;;  %v464_v20 = vld [vmem:[%s9610_s1 + $0xda8] sm:$0xff]  ;;  %v466_v21 = vld [vmem:[%s9610_s1 + $0xdb8] sm:$0xff] }
  0xd2   :  { %1927 = vmatpush1.msra.mxu1 %v771_v22  ;;  %1462 = vmatmul.mubr.f32.gmra.mxu0 %v223_v23  ;;  %v759_v22 = vld [vmem:[%s9609_s0 + $0x4e0] sm:$0xff] }
  0xd3   :  { %1647 = vmatmul.mubr.f32.gmra.mxu1 %v225_v24  ;;  %1466 = vmatprep.mubr.f32.mxu0 %v248_v25  ;;  %v791_v23 = vld [vmem:[%s9609_s0 + $0x5e0] sm:$0xff]  ;;  %v465_v25 = vld [vmem:[%s9610_s1 + $0xdb0] sm:$0xff] }
  0xd4   :  { %1651 = vmatprep.mubr.f32.mxu1 %v250_v26  ;;  %1743 = vmatprep.subr.mxu0 %v5119_v0  ;;  %v463_v24 = vld [vmem:[%s9610_s1 + $0xda0] sm:$0xff]  ;;  %v758_v26 = vld [vmem:[%s9609_s0 + $0x4d8] sm:$0xff] }
  0xd5   :  { %1928 = vmatprep.subr.mxu1 %v5119_v0  ;;  %1744 = vmatpush1.msra.mxu0 %v738_v27  ;;  %v790_v27 = vld [vmem:[%s9609_s0 + $0x5d8] sm:$0xff] }
  0xd6   :  { %1929 = vmatpush1.msra.mxu1 %v770_v28  ;;  %1467 = vmatmul.mubr.f32.gmra.mxu0 %v247_v29  ;;  %v488_v28 = vld [vmem:[%s9610_s1 + $0xe68] sm:$0xff]  ;;  %v490_v29 = vld [vmem:[%s9610_s1 + $0xe78] sm:$0xff] }
  0xd7   :  { %1652 = vmatmul.mubr.f32.gmra.mxu1 %v249_v30  ;;  %1471 = vmatprep.mubr.f32.mxu0 %v272_v31  ;;  %v757_v30 = vld [vmem:[%s9609_s0 + $0x4d0] sm:$0xff] }
  0xd8   :  { %1656 = vmatprep.mubr.f32.mxu1 %v274_v32  ;;  %1745 = vmatprep.subr.mxu0 %v5119_v0  ;;  %v789_v31 = vld [vmem:[%s9609_s0 + $0x5d0] sm:$0xff]  ;;  %v487_v32 = vld [vmem:[%s9610_s1 + $0xe60] sm:$0xff] }
  0xd9   :  { %1930 = vmatprep.subr.mxu1 %v5119_v0  ;;  %1746 = vmatpush1.msra.mxu0 %v737_v33  ;;  %v489_v33 = vld [vmem:[%s9610_s1 + $0xe70] sm:$0xff] }
  0xda   :  { %1931 = vmatpush1.msra.mxu1 %v769_v34  ;;  %1472 = vmatmul.mubr.f32.gmra.mxu0 %v271_v35 }
  0xdb   :  { %1657 = vmatmul.mubr.f32.gmra.mxu1 %v273_v36  ;;  %1476 = vmatprep.mubr.f32.mxu0 %v296_v37  ;;  %v756_v36 = vld [vmem:[%s9609_s0 + $0x4c8] sm:$0xff] }
  0xdc   :  { %1661 = vmatprep.mubr.f32.mxu1 %v298_v38  ;;  %1747 = vmatprep.subr.mxu0 %v5119_v0  ;;  %v788_v37 = vld [vmem:[%s9609_s0 + $0x5c8] sm:$0xff] }
  0xdd   :  { %1932 = vmatprep.subr.mxu1 %v5119_v0  ;;  %1748 = vmatpush1.msra.mxu0 %v736_v39 }
  0xde   :  { %1933 = vmatpush1.msra.mxu1 %v768_v40  ;;  %1477 = vmatmul.mubr.f32.gmra.mxu0 %v295_v41  ;;  %v512_v41 = vld [vmem:[%s9610_s1 + $0xf28] sm:$0xff] }
  0xdf   :  { %1662 = vmatmul.mubr.f32.gmra.mxu1 %v297_v42  ;;  %1481 = vmatprep.mubr.f32.mxu0 %v320_v43  ;;  %v514_v42 = vld [vmem:[%s9610_s1 + $0xf38] sm:$0xff]  ;;  %v755_v43 = vld [vmem:[%s9609_s0 + $0x4c0] sm:$0xff] }
  0xe0   :  { %1666 = vmatprep.mubr.f32.mxu1 %v322_v44  ;;  %1749 = vmatprep.subr.mxu0 %v5119_v0  ;;  %v787_v44 = vld [vmem:[%s9609_s0 + $0x5c0] sm:$0xff] }
  0xe1   :  { %1934 = vmatprep.subr.mxu1 %v5119_v0  ;;  %1750 = vmatpush1.msra.mxu0 %v735_v45 }
  0xe2   :  { %1935 = vmatpush1.msra.mxu1 %v767_v46  ;;  %1482 = vmatmul.mubr.f32.gmra.mxu0 %v319_v47  ;;  %v511_v47 = vld [vmem:[%s9610_s1 + $0xf20] sm:$0xff] }
  0xe3   :  { %1667 = vmatmul.mubr.f32.gmra.mxu1 %v321_v48  ;;  %1486 = vmatprep.mubr.f32.mxu0 %v344_v49  ;;  %v513_v48 = vld [vmem:[%s9610_s1 + $0xf30] sm:$0xff] }
  0xe4   :  { %1671 = vmatprep.mubr.f32.mxu1 %v346_v50  ;;  %1751 = vmatprep.subr.mxu0 %v5119_v0 }
  0xe5   :  { %1936 = vmatprep.subr.mxu1 %v5119_v0  ;;  %1752 = vmatpush1.msra.mxu0 %v734_v51 }
  0xe6   :  { %1937 = vmatpush1.msra.mxu1 %v766_v52  ;;  %1487 = vmatmul.mubr.f32.gmra.mxu0 %v343_v53  ;;  %v754_v52 = vld [vmem:[%s9609_s0 + $0x4b8] sm:$0xff] }
  0xe7   :  { %1672 = vmatmul.mubr.f32.gmra.mxu1 %v345_v54  ;;  %1491 = vmatprep.mubr.f32.mxu0 %v368_v55  ;;  %v786_v53 = vld [vmem:[%s9609_s0 + $0x5b8] sm:$0xff] }
  0xe8   :  { %1676 = vmatprep.mubr.f32.mxu1 %v370_v56  ;;  %1753 = vmatprep.subr.mxu0 %v5119_v0  ;;  %v536_v56 = vld [vmem:[%s9610_s1 + $0xfe8] sm:$0xff] }
  0xe9   :  { %1938 = vmatprep.subr.mxu1 %v5119_v0  ;;  %1754 = vmatpush1.msra.mxu0 %v733_v57  ;;  %v538_v57 = vld [vmem:[%s9610_s1 + $0xff8] sm:$0xff] }
  0xea   :  { %1939 = vmatpush1.msra.mxu1 %v765_v58  ;;  %1492 = vmatmul.mubr.f32.gmra.mxu0 %v367_v59  ;;  %v753_v59 = vld [vmem:[%s9609_s0 + $0x4b0] sm:$0xff] }
  0xeb   :  { %1677 = vmatmul.mubr.f32.gmra.mxu1 %v369_v60  ;;  %1496 = vmatprep.mubr.f32.mxu0 %v392_v61  ;;  %v785_v60 = vld [vmem:[%s9609_s0 + $0x5b0] sm:$0xff] }
  0xec   :  { %1681 = vmatprep.mubr.f32.mxu1 %v394_v62  ;;  %1755 = vmatprep.subr.mxu0 %v5119_v0 }
  0xed   :  { %1940 = vmatprep.subr.mxu1 %v5119_v0  ;;  %1756 = vmatpush1.msra.mxu0 %v732_v63  ;;  %v535_v63 = vld [vmem:[%s9610_s1 + $0xfe0] sm:$0xff] }
  0xee   :  { %1941 = vmatpush1.msra.mxu1 %v764_v1  ;;  %1497 = vmatmul.mubr.f32.gmra.mxu0 %v391_v2  ;;  %v537_v1 = vld [vmem:[%s9610_s1 + $0xff0] sm:$0xff] }
  0xef   :  { %1682 = vmatmul.mubr.f32.gmra.mxu1 %v393_v3  ;;  %1757 = vmatprep.subr.mxu0 %v5119_v0 }
  0xf0   :  { %1942 = vmatprep.subr.mxu1 %v5119_v0  ;;  %1501 = vmatprep.mubr.f32.mxu0 %v416_v4  ;;  %v752_v4 = vld [vmem:[%s9609_s0 + $0x4a8] sm:$0xff] }
  0xf1   :  { %1686 = vmatprep.mubr.f32.mxu1 %v418_v5  ;;  %1758 = vmatpush1.msra.mxu0 %v731_v6  ;;  %v784_v5 = vld [vmem:[%s9609_s0 + $0x5a8] sm:$0xff] }
  0xf2   :  { %1943 = vmatpush1.msra.mxu1 %v763_v7  ;;  %1502 = vmatmul.mubr.f32.gmra.mxu0 %v415_v8 }
  0xf3   :  { %1687 = vmatmul.mubr.f32.gmra.mxu1 %v417_v9  ;;  %1759 = vmatprep.subr.mxu0 %v5119_v0  ;;  %v560_v9 = vld [vmem:[%s9610_s1 + $0x10a8] sm:$0xff] }
  0xf4   :  { %1944 = vmatprep.subr.mxu1 %v5119_v0  ;;  %1760 = vmatpush2.msra.mxu0 %v762_v10  ;;  %v562_v10 = vld [vmem:[%s9610_s1 + $0x10b8] sm:$0xff] }
  0xf5   :  { %1945 = vmatpush2.msra.mxu1 %v794_v11  ;;  %1761 = vmatprep.subr.mxu0 %v5119_v0  ;;  %v751_v11 = vld [vmem:[%s9609_s0 + $0x4a0] sm:$0xff] }
  0xf6   :  { %1946 = vmatprep.subr.mxu1 %v5119_v0  ;;  %1506 = vmatprep.mubr.f32.mxu0 %v440_v12  ;;  %v783_v12 = vld [vmem:[%s9609_s0 + $0x5a0] sm:$0xff] }
  0xf7   :  { %1691 = vmatprep.mubr.f32.mxu1 %v442_v13  ;;  %1762 = vmatpush2.msra.mxu0 %v761_v14 }
  0xf8   :  { %1947 = vmatpush2.msra.mxu1 %v793_v15  ;;  %1507 = vmatmul.mubr.f32.gmra.mxu0 %v439_v16  ;;  %v559_v15 = vld [vmem:[%s9610_s1 + $0x10a0] sm:$0xff]  ;;  %v561_v16 = vld [vmem:[%s9610_s1 + $0x10b0] sm:$0xff] }
  0xf9   :  { %1692 = vmatmul.mubr.f32.gmra.mxu1 %v441_v17  ;;  %1763 = vmatprep.subr.mxu0 %v5119_v0 }
  0xfa   :  { %1948 = vmatprep.subr.mxu1 %v5119_v0  ;;  %1764 = vmatpush2.msra.mxu0 %v760_v18 }
  0xfb   :  { %1949 = vmatpush2.msra.mxu1 %v792_v19  ;;  %1765 = vmatprep.subr.mxu0 %v5119_v0 }
  0xfc   :  { %1950 = vmatprep.subr.mxu1 %v5119_v0  ;;  %1511 = vmatprep.mubr.f32.mxu0 %v464_v20  ;;  %v750_v20 = vld [vmem:[%s9609_s0 + $0x498] sm:$0xff] }
  0xfd   :  { %1696 = vmatprep.mubr.f32.mxu1 %v466_v21  ;;  %1766 = vmatpush2.msra.mxu0 %v759_v22  ;;  %v782_v21 = vld [vmem:[%s9609_s0 + $0x598] sm:$0xff] }
  0xfe   :  { %1951 = vmatpush2.msra.mxu1 %v791_v23  ;;  %1512 = vmatmul.mubr.f32.gmra.mxu0 %v463_v24  ;;  %v584_v24 = vld [vmem:[%s9610_s1 + $0x1168] sm:$0xff] }
  0xff   :  { %1697 = vmatmul.mubr.f32.gmra.mxu1 %v465_v25  ;;  %1767 = vmatprep.subr.mxu0 %v5119_v0  ;;  %v586_v25 = vld [vmem:[%s9610_s1 + $0x1178] sm:$0xff] }
 0x100   :  { %1952 = vmatprep.subr.mxu1 %v5119_v0  ;;  %1768 = vmatpush2.msra.mxu0 %v758_v26 }
 0x101   :  { %1953 = vmatpush2.msra.mxu1 %v790_v27  ;;  %1769 = vmatprep.subr.mxu0 %v5119_v0  ;;  %v749_v27 = vld [vmem:[%s9609_s0 + $0x490] sm:$0xff] }
 0x102   :  { %1954 = vmatprep.subr.mxu1 %v5119_v0  ;;  %1516 = vmatprep.mubr.f32.mxu0 %v488_v28  ;;  %v1053_v34 = vpop.f32.mrf.mxu0  ;;  %v781_v28 = vld [vmem:[%s9609_s0 + $0x590] sm:$0xff] }
 0x103   :  { %1701 = vmatprep.mubr.f32.mxu1 %v490_v29  ;;  %v1238_v35 = vpop.f32.mrf.mxu1  ;;  %1770 = vmatpush2.msra.mxu0 %v757_v30 }
 0x104   :  { %1955 = vmatpush2.msra.mxu1 %v789_v31  ;;  %v6396_v38 = vadd.f32 %v1238_v35, %v1053_v34  ;;  %1517 = vmatmul.mubr.f32.gmra.mxu0 %v487_v32  ;;  %v1055_v39 = vpop.f32.mrf.mxu0  ;;  %v583_v31 = vld [vmem:[%s9610_s1 + $0x1160] sm:$0xff]  ;;  %v585_v32 = vld [vmem:[%s9610_s1 + $0x1170] sm:$0xff]  ;;  %v748_v35 = vld [vmem:[%s9609_s0 + $0x488] sm:$0xff] }
 0x105   :  { %1702 = vmatmul.mubr.f32.gmra.mxu1 %v489_v33  ;;  %v1240_v40 = vpop.f32.mrf.mxu1  ;;  %1771 = vmatprep.subr.mxu0 %v5119_v0 }
 0x106   :  { %1956 = vmatprep.subr.mxu1 %v5119_v0  ;;  %1772 = vmatpush2.msra.mxu0 %v756_v36  ;;  %v1058_v45 = vpop.f32.mrf.mxu0  ;;  %v780_v36 = vld [vmem:[%s9609_s0 + $0x588] sm:$0xff] }
 0x107   :  { %1957 = vmatpush2.msra.mxu1 %v788_v37  ;;  %v1243_v46 = vpop.f32.mrf.mxu1  ;;  %1773 = vmatprep.subr.mxu0 %v5119_v0 }
 0x108   :  { %1958 = vmatprep.subr.mxu1 %v5119_v0  ;;  %v6420_v49 = vadd.f32 %v1243_v46, %v1058_v45  ;;  %1521 = vmatprep.mubr.f32.mxu0 %v512_v41  ;;  %v1060_v50 = vpop.f32.mrf.mxu0  ;;  %v747_v41 = vld [vmem:[%s9609_s0 + $0x480] sm:$0xff] }
 0x109   :  { %1706 = vmatprep.mubr.f32.mxu1 %v514_v42  ;;  %v1245_v51 = vpop.f32.mrf.mxu1  ;;  %1774 = vmatpush2.msra.mxu0 %v755_v43  ;;  %v36_v42 = vld [vmem:[%s9610_s1 + $0x48] sm:$0xff]  ;;  %v779_v43 = vld [vmem:[%s9609_s0 + $0x580] sm:$0xff] }
 0x10a   :  { %1959 = vmatpush2.msra.mxu1 %v787_v44  ;;  %1522 = vmatmul.mubr.f32.gmra.mxu0 %v511_v47  ;;  %v1063_v54 = vpop.f32.mrf.mxu0  ;;  %v38_v44 = vld [vmem:[%s9610_s1 + $0x58] sm:$0xff]  ;;  %v35_v47 = vld [vmem:[%s9610_s1 + $0x40] sm:$0xff]  ;;  %v60_v51 = vld [vmem:[%s9610_s1 + $0x108] sm:$0xff] }
 0x10b   :  { %1707 = vmatmul.mubr.f32.gmra.mxu1 %v513_v48  ;;  %v1248_v55 = vpop.f32.mrf.mxu1  ;;  %1775 = vmatprep.subr.mxu0 %v5119_v0  ;;  %v37_v48 = vld [vmem:[%s9610_s1 + $0x50] sm:$0xff] }
 0x10c   :  { %1960 = vmatprep.subr.mxu1 %v5119_v0  ;;  %v6436_v58 = vadd.f32 %v1248_v55, %v1063_v54  ;;  %1776 = vmatpush2.msra.mxu0 %v754_v52  ;;  %v1065_v61 = vpop.f32.mrf.mxu0  ;;  %v62_v52 = vld [vmem:[%s9610_s1 + $0x118] sm:$0xff] }
 0x10d   :  { %1961 = vmatpush2.msra.mxu1 %v786_v53  ;;  %v1250_v62 = vpop.f32.mrf.mxu1  ;;  %1777 = vmatprep.subr.mxu0 %v5119_v0  ;;  %v61_v61 = vld [vmem:[%s9610_s1 + $0x110] sm:$0xff] }
 0x10e   :  { %1962 = vmatprep.subr.mxu1 %v5119_v0  ;;  %1526 = vmatprep.mubr.f32.mxu0 %v536_v56  ;;  %v1068_v2 = vpop.f32.mrf.mxu0 }
 0x10f   :  { %1711 = vmatprep.mubr.f32.mxu1 %v538_v57  ;;  %v1253_v3 = vpop.f32.mrf.mxu1  ;;  %1778 = vmatpush2.msra.mxu0 %v753_v59  ;;  %v810_v57 = vld [vmem:[%s9609_s0 + $0x678] sm:$0xff] }
 0x110   :  { %1963 = vmatpush2.msra.mxu1 %v785_v60  ;;  %v6458_v6 = vadd.f32 %v1253_v3, %v1068_v2  ;;  %1527 = vmatmul.mubr.f32.gmra.mxu0 %v535_v63  ;;  %v1070_v7 = vpop.f32.mrf.mxu0  ;;  %v842_v59 = vld [vmem:[%s9609_s0 + $0x778] sm:$0xff]  ;;  %v59_v60 = vld [vmem:[%s9610_s1 + $0x100] sm:$0xff]  ;;  %v84_v63 = vld [vmem:[%s9610_s1 + $0x1c8] sm:$0xff] }
 0x111   :  { %1712 = vmatmul.mubr.f32.gmra.mxu1 %v537_v1  ;;  %v1255_v8 = vpop.f32.mrf.mxu1  ;;  %1779 = vmatprep.subr.mxu0 %v5119_v0  ;;  %v86_v1 = vld [vmem:[%s9610_s1 + $0x1d8] sm:$0xff] }
 0x112   :  { %1964 = vmatprep.subr.mxu1 %v5119_v0  ;;  %1780 = vmatpush2.msra.mxu0 %v752_v4  ;;  %v1073_v13 = vpop.f32.mrf.mxu0  ;;  %v809_v4 = vld [vmem:[%s9609_s0 + $0x670] sm:$0xff] }
 0x113   :  { %1965 = vmatpush2.msra.mxu1 %v784_v5  ;;  %v1258_v14 = vpop.f32.mrf.mxu1  ;;  %1781 = vmatprep.subr.mxu0 %v5119_v0  ;;  %v841_v5 = vld [vmem:[%s9609_s0 + $0x770] sm:$0xff] }
 0x114   :  { %1966 = vmatprep.subr.mxu1 %v5119_v0  ;;  %v6482_v17 = vadd.f32 %v1258_v14, %v1073_v13  ;;  %1531 = vmatprep.mubr.f32.mxu0 %v560_v9  ;;  %v1075_v18 = vpop.f32.mrf.mxu0  ;;  %v83_v9 = vld [vmem:[%s9610_s1 + $0x1c0] sm:$0xff]  ;;  %v110_v13 = vld [vmem:[%s9610_s1 + $0x298] sm:$0xff] }
 0x115   :  { %1716 = vmatprep.mubr.f32.mxu1 %v562_v10  ;;  %v1260_v19 = vpop.f32.mrf.mxu1  ;;  %1782 = vmatpush2.msra.mxu0 %v751_v11  ;;  %v85_v10 = vld [vmem:[%s9610_s1 + $0x1d0] sm:$0xff]  ;;  %v840_v18 = vld [vmem:[%s9609_s0 + $0x768] sm:$0xff] }
 0x116   :  { %1967 = vmatpush2.msra.mxu1 %v783_v12  ;;  %1532 = vmatmul.mubr.f32.gmra.mxu0 %v559_v15  ;;  %v1078_v22 = vpop.f32.mrf.mxu0  ;;  %v108_v12 = vld [vmem:[%s9610_s1 + $0x288] sm:$0xff] }
 0x117   :  { %1717 = vmatmul.mubr.f32.gmra.mxu1 %v561_v16  ;;  %v1263_v23 = vpop.f32.mrf.mxu1  ;;  %1783 = vmatprep.subr.mxu0 %v5119_v0  ;;  %v808_v16 = vld [vmem:[%s9609_s0 + $0x668] sm:$0xff] }
 0x118   :  { %1968 = vmatprep.subr.mxu1 %v5119_v0  ;;  %v6498_v26 = vadd.f32 %v1263_v23, %v1078_v22  ;;  %1784 = vmatpush2.msra.mxu0 %v750_v20  ;;  %v1080_v29 = vpop.f32.mrf.mxu0  ;;  %v109_v22 = vld [vmem:[%s9610_s1 + $0x290] sm:$0xff] }
 0x119   :  { %1969 = vmatpush2.msra.mxu1 %v782_v21  ;;  %v1265_v30 = vpop.f32.mrf.mxu1  ;;  %1785 = vmatprep.subr.mxu0 %v5119_v0  ;;  %v107_v21 = vld [vmem:[%s9610_s1 + $0x280] sm:$0xff] }
 0x11a   :  { %1970 = vmatprep.subr.mxu1 %v5119_v0  ;;  %1536 = vmatprep.mubr.f32.mxu0 %v584_v24  ;;  %v1083_v33 = vpop.f32.mrf.mxu0  ;;  %v132_v24 = vld [vmem:[%s9610_s1 + $0x348] sm:$0xff]  ;;  %v807_v29 = vld [vmem:[%s9609_s0 + $0x660] sm:$0xff] }
 0x11b   :  { %1721 = vmatprep.mubr.f32.mxu1 %v586_v25  ;;  %v1268_v34 = vpop.f32.mrf.mxu1  ;;  %1786 = vmatpush2.msra.mxu0 %v749_v27  ;;  %v134_v25 = vld [vmem:[%s9610_s1 + $0x358] sm:$0xff]  ;;  %v839_v30 = vld [vmem:[%s9609_s0 + $0x760] sm:$0xff] }
 0x11c   :  { %1971 = vmatpush2.msra.mxu1 %v781_v28  ;;  %v6520_v37 = vadd.f32 %v1268_v34, %v1083_v33  ;;  %1537 = vmatmul.mubr.f32.gmra.mxu0 %v583_v31  ;;  %v1085_v39 = vpop.f32.mrf.mxu0  ;;  %v131_v33 = vld [vmem:[%s9610_s1 + $0x340] sm:$0xff]  ;;  %v133_v34 = vld [vmem:[%s9610_s1 + $0x350] sm:$0xff] }
 0x11d   :  { %1722 = vmatmul.mubr.f32.gmra.mxu1 %v585_v32  ;;  %v1270_v40 = vpop.f32.mrf.mxu1  ;;  %1787 = vmatprep.subr.mxu0 %v5119_v0  ;;  %v158_v39 = vld [vmem:[%s9610_s1 + $0x418] sm:$0xff] }
 0x11e   :  { %1972 = vmatprep.subr.mxu1 %v5119_v0  ;;  %1788 = vmatpush2.msra.mxu0 %v748_v35  ;;  %v1088_v45 = vpop.f32.mrf.mxu0 }
 0x11f   :  { %1973 = vmatpush2.msra.mxu1 %v780_v36  ;;  %v1273_v46 = vpop.f32.mrf.mxu1  ;;  %1789 = vmatprep.subr.mxu0 %v5119_v0  ;;  %v156_v36 = vld [vmem:[%s9610_s1 + $0x408] sm:$0xff] }
 0x120   :  { %1974 = vmatprep.subr.mxu1 %v5119_v0  ;;  %v6544_v50 = vadd.f32 %v1273_v46, %v1088_v45  ;;  %1790 = vmatpush2.msra.mxu0 %v747_v41  ;;  %v1090_v53 = vpop.f32.mrf.mxu0  ;;  %v155_v46 = vld [vmem:[%s9610_s1 + $0x400] sm:$0xff] }
 0x121   :  { %1791 = vmatprep.mubr.f32.mxu0 %v36_v42  ;;  %v1275_v54 = vpop.f32.mrf.mxu1  ;;  %1975 = vmatpush2.msra.mxu1 %v779_v43  ;;  %v806_v42 = vld [vmem:[%s9609_s0 + $0x658] sm:$0xff] }
 0x122   :  { %1976 = vmatprep.mubr.f32.mxu1 %v38_v44  ;;  %1792 = vmatmul.mubr.f32.vlgmr.msra.gmra.mxu0 %v35_v47  ;;  %v1093_v55 = vpop.f32.mrf.mxu0  ;;  %v838_v43 = vld [vmem:[%s9609_s0 + $0x758] sm:$0xff]  ;;  %v157_v47 = vld [vmem:[%s9610_s1 + $0x410] sm:$0xff] }
 0x123   :  { %1977 = vmatmul.mubr.f32.vlgmr.msra.gmra.mxu1 %v37_v48  ;;  %v1278_v56 = vpop.f32.mrf.mxu1  ;;  %1796 = vmatprep.mubr.f32.mxu0 %v60_v51  ;;  %v180_v51 = vld [vmem:[%s9610_s1 + $0x4c8] sm:$0xff] }
 0x124   :  { %1981 = vmatprep.mubr.f32.mxu1 %v62_v52  ;;  %v6564_v62 = vadd.f32 %v1278_v56, %v1093_v55  ;;  %2097 = vmatprep.subr.mxu0 %v5119_v0  ;;  %v1095_v2 = vpop.f32.mrf.mxu0  ;;  %v182_v52 = vld [vmem:[%s9610_s1 + $0x4d8] sm:$0xff]  ;;  %v805_v55 = vld [vmem:[%s9609_s0 + $0x650] sm:$0xff] }
 0x125   :  { %2282 = vmatprep.subr.mxu1 %v5119_v0  ;;  %v1280_v3 = vpop.f32.mrf.mxu1  ;;  %2098 = vmatpush1.msra.mxu0 %v810_v57  ;;  %v837_v56 = vld [vmem:[%s9609_s0 + $0x750] sm:$0xff]  ;;  %v206_v2 = vld [vmem:[%s9610_s1 + $0x598] sm:$0xff] }
 0x126   :  { %2283 = vmatpush1.msra.mxu1 %v842_v59  ;;  %1797 = vmatmul.mubr.f32.gmra.mxu0 %v59_v60  ;;  %v1098_v7 = vpop.f32.mrf.mxu0  ;;  %v179_v60 = vld [vmem:[%s9610_s1 + $0x4c0] sm:$0xff] }
 0x127   :  { %1982 = vmatmul.mubr.f32.gmra.mxu1 %v61_v61  ;;  %v1283_v8 = vpop.f32.mrf.mxu1  ;;  %1801 = vmatprep.mubr.f32.mxu0 %v84_v63  ;;  %v181_v61 = vld [vmem:[%s9610_s1 + $0x4d0] sm:$0xff] }
 0x128   :  { %1986 = vmatprep.mubr.f32.mxu1 %v86_v1  ;;  %v6586_v11 = vadd.f32 %v1283_v8, %v1098_v7  ;;  %2099 = vmatprep.subr.mxu0 %v5119_v0  ;;  %v1100_v14 = vpop.f32.mrf.mxu0  ;;  %v204_v1 = vld [vmem:[%s9610_s1 + $0x588] sm:$0xff] }
 0x129   :  { %2284 = vmatprep.subr.mxu1 %v5119_v0  ;;  %v1285_v15 = vpop.f32.mrf.mxu1  ;;  %2100 = vmatpush1.msra.mxu0 %v809_v4  ;;  %v836_v7 = vld [vmem:[%s9609_s0 + $0x748] sm:$0xff] }
 0x12a   :  { %2285 = vmatpush1.msra.mxu1 %v841_v5  ;;  %1802 = vmatmul.mubr.f32.gmra.mxu0 %v83_v9  ;;  %v1103_v19 = vpop.f32.mrf.mxu0  ;;  %v804_v5 = vld [vmem:[%s9609_s0 + $0x648] sm:$0xff]  ;;  %v230_v15 = vld [vmem:[%s9610_s1 + $0x658] sm:$0xff] }
 0x12b   :  { %1987 = vmatmul.mubr.f32.gmra.mxu1 %v85_v10  ;;  %v1288_v20 = vpop.f32.mrf.mxu1  ;;  %1806 = vmatprep.mubr.f32.mxu0 %v108_v12  ;;  %v203_v10 = vld [vmem:[%s9610_s1 + $0x580] sm:$0xff]  ;;  %v205_v12 = vld [vmem:[%s9610_s1 + $0x590] sm:$0xff]  ;;  %v228_v14 = vld [vmem:[%s9610_s1 + $0x648] sm:$0xff] }
 0x12c   :  { %1991 = vmatprep.mubr.f32.mxu1 %v110_v13  ;;  %v6608_v23 = vadd.f32 %v1288_v20, %v1103_v19  ;;  %2101 = vmatprep.subr.mxu0 %v5119_v0  ;;  %v1105_v27 = vpop.f32.mrf.mxu0  ;;  %v803_v19 = vld [vmem:[%s9609_s0 + $0x640] sm:$0xff] }
 0x12d   :  { %2286 = vmatprep.subr.mxu1 %v5119_v0  ;;  %v1290_v28 = vpop.f32.mrf.mxu1  ;;  %2102 = vmatpush1.msra.mxu0 %v808_v16  ;;  %v835_v20 = vld [vmem:[%s9609_s0 + $0x740] sm:$0xff] }
 0x12e   :  { %2287 = vmatpush1.msra.mxu1 %v840_v18  ;;  %1807 = vmatmul.mubr.f32.gmra.mxu0 %v107_v21  ;;  %v1108_v31 = vpop.f32.mrf.mxu0  ;;  %v252_v28 = vld [vmem:[%s9610_s1 + $0x708] sm:$0xff] }
 0x12f   :  { %1992 = vmatmul.mubr.f32.gmra.mxu1 %v109_v22  ;;  %v1293_v32 = vpop.f32.mrf.mxu1  ;;  %1811 = vmatprep.mubr.f32.mxu0 %v132_v24  ;;  %v227_v24 = vld [vmem:[%s9610_s1 + $0x640] sm:$0xff] }
 0x130   :  { %1996 = vmatprep.mubr.f32.mxu1 %v134_v25  ;;  %v6630_v35 = vadd.f32 %v1293_v32, %v1108_v31  ;;  %2103 = vmatprep.subr.mxu0 %v5119_v0  ;;  %v1110_v40 = vpop.f32.mrf.mxu0  ;;  %v229_v25 = vld [vmem:[%s9610_s1 + $0x650] sm:$0xff]  ;;  %v802_v32 = vld [vmem:[%s9609_s0 + $0x638] sm:$0xff] }
 0x131   :  { %2288 = vmatprep.subr.mxu1 %v5119_v0  ;;  %v1295_v41 = vpop.f32.mrf.mxu1  ;;  %2104 = vmatpush1.msra.mxu0 %v807_v29  ;;  %v254_v29 = vld [vmem:[%s9610_s1 + $0x718] sm:$0xff]  ;;  %v253_v40 = vld [vmem:[%s9610_s1 + $0x710] sm:$0xff] }
 0x132   :  { %2289 = vmatpush1.msra.mxu1 %v839_v30  ;;  %1812 = vmatmul.mubr.f32.gmra.mxu0 %v131_v33  ;;  %v1113_v44 = vpop.f32.mrf.mxu0  ;;  %v834_v33 = vld [vmem:[%s9609_s0 + $0x738] sm:$0xff] }
 0x133   :  { %1997 = vmatmul.mubr.f32.gmra.mxu1 %v133_v34  ;;  %v1298_v45 = vpop.f32.mrf.mxu1  ;;  %1816 = vmatprep.mubr.f32.mxu0 %v156_v36 }
 0x134   :  { %2001 = vmatprep.mubr.f32.mxu1 %v158_v39  ;;  %v6652_v48 = vadd.f32 %v1298_v45, %v1113_v44  ;;  %2105 = vmatprep.subr.mxu0 %v5119_v0  ;;  %v1115_v53 = vpop.f32.mrf.mxu0  ;;  %v251_v39 = vld [vmem:[%s9610_s1 + $0x700] sm:$0xff] }
 0x135   :  { %2290 = vmatprep.subr.mxu1 %v5119_v0  ;;  %v1300_v54 = vpop.f32.mrf.mxu1  ;;  %2106 = vmatpush1.msra.mxu0 %v806_v42  ;;  %v276_v42 = vld [vmem:[%s9610_s1 + $0x7c8] sm:$0xff] }
 0x136   :  { %2291 = vmatpush1.msra.mxu1 %v838_v43  ;;  %1817 = vmatmul.mubr.f32.gmra.mxu0 %v155_v46  ;;  %v1118_v57 = vpop.f32.mrf.mxu0  ;;  %v278_v43 = vld [vmem:[%s9610_s1 + $0x7d8] sm:$0xff]  ;;  %v801_v46 = vld [vmem:[%s9609_s0 + $0x630] sm:$0xff]  ;;  %v300_v53 = vld [vmem:[%s9610_s1 + $0x888] sm:$0xff] }
 0x137   :  { %2002 = vmatmul.mubr.f32.gmra.mxu1 %v157_v47  ;;  %v1303_v59 = vpop.f32.mrf.mxu1  ;;  %1821 = vmatprep.mubr.f32.mxu0 %v180_v51  ;;  %v833_v47 = vld [vmem:[%s9609_s0 + $0x730] sm:$0xff]  ;;  %v275_v51 = vld [vmem:[%s9610_s1 + $0x7c0] sm:$0xff]  ;;  %v302_v54 = vld [vmem:[%s9610_s1 + $0x898] sm:$0xff] }
 0x138   :  { %2006 = vmatprep.mubr.f32.mxu1 %v182_v52  ;;  %v6674_v63 = vadd.f32 %v1303_v59, %v1118_v57  ;;  %2107 = vmatprep.subr.mxu0 %v5119_v0  ;;  %v1120_v3 = vpop.f32.mrf.mxu0  ;;  %v277_v52 = vld [vmem:[%s9610_s1 + $0x7d0] sm:$0xff]  ;;  %v800_v59 = vld [vmem:[%s9609_s0 + $0x628] sm:$0xff] }
 0x139   :  { %2292 = vmatprep.subr.mxu1 %v5119_v0  ;;  %v1305_v4 = vpop.f32.mrf.mxu1  ;;  %2108 = vmatpush1.msra.mxu0 %v805_v55  ;;  %v301_v3 = vld [vmem:[%s9610_s1 + $0x890] sm:$0xff] }
 0x13a   :  { %2293 = vmatpush1.msra.mxu1 %v837_v56  ;;  %1822 = vmatmul.mubr.f32.gmra.mxu0 %v179_v60  ;;  %v1123_v8 = vpop.f32.mrf.mxu0  ;;  %v832_v60 = vld [vmem:[%s9609_s0 + $0x728] sm:$0xff] }
 0x13b   :  { %2007 = vmatmul.mubr.f32.gmra.mxu1 %v181_v61  ;;  %v1308_v9 = vpop.f32.mrf.mxu1  ;;  %1826 = vmatprep.mubr.f32.mxu0 %v204_v1  ;;  %v324_v4 = vld [vmem:[%s9610_s1 + $0x948] sm:$0xff] }
 0x13c   :  { %2011 = vmatprep.mubr.f32.mxu1 %v206_v2  ;;  %v6696_v13 = vadd.f32 %v1308_v9, %v1123_v8  ;;  %2109 = vmatprep.subr.mxu0 %v5119_v0  ;;  %v1125_v16 = vpop.f32.mrf.mxu0  ;;  %v299_v2 = vld [vmem:[%s9610_s1 + $0x880] sm:$0xff] }
 0x13d   :  { %2294 = vmatprep.subr.mxu1 %v5119_v0  ;;  %v1310_v18 = vpop.f32.mrf.mxu1  ;;  %2110 = vmatpush1.msra.mxu0 %v804_v5  ;;  %v326_v5 = vld [vmem:[%s9610_s1 + $0x958] sm:$0xff]  ;;  %v831_v8 = vld [vmem:[%s9609_s0 + $0x720] sm:$0xff]  ;;  %v348_v16 = vld [vmem:[%s9610_s1 + $0xa08] sm:$0xff] }
 0x13e   :  { %2295 = vmatpush1.msra.mxu1 %v836_v7  ;;  %1827 = vmatmul.mubr.f32.gmra.mxu0 %v203_v10  ;;  %v1128_v21 = vpop.f32.mrf.mxu0  ;;  %v799_v7 = vld [vmem:[%s9609_s0 + $0x620] sm:$0xff]  ;;  %v350_v18 = vld [vmem:[%s9610_s1 + $0xa18] sm:$0xff] }
 0x13f   :  { %2012 = vmatmul.mubr.f32.gmra.mxu1 %v205_v12  ;;  %v1313_v22 = vpop.f32.mrf.mxu1  ;;  %1831 = vmatprep.mubr.f32.mxu0 %v228_v14  ;;  %v323_v12 = vld [vmem:[%s9610_s1 + $0x940] sm:$0xff]  ;;  %v325_v14 = vld [vmem:[%s9610_s1 + $0x950] sm:$0xff] }
 0x140   :  { %2016 = vmatprep.mubr.f32.mxu1 %v230_v15  ;;  %v6718_v27 = vadd.f32 %v1313_v22, %v1128_v21  ;;  %2111 = vmatprep.subr.mxu0 %v5119_v0  ;;  %v1130_v30 = vpop.f32.mrf.mxu0  ;;  %v798_v21 = vld [vmem:[%s9609_s0 + $0x618] sm:$0xff] }
 0x141   :  { %2296 = vmatprep.subr.mxu1 %v5119_v0  ;;  %v1315_v31 = vpop.f32.mrf.mxu1  ;;  %2112 = vmatpush1.msra.mxu0 %v803_v19  ;;  %v830_v22 = vld [vmem:[%s9609_s0 + $0x718] sm:$0xff] }
 0x142   :  { %2297 = vmatpush1.msra.mxu1 %v835_v20  ;;  %1832 = vmatmul.mubr.f32.gmra.mxu0 %v227_v24  ;;  %v1133_v34 = vpop.f32.mrf.mxu0  ;;  %v347_v24 = vld [vmem:[%s9610_s1 + $0xa00] sm:$0xff] }
 0x143   :  { %2017 = vmatmul.mubr.f32.gmra.mxu1 %v229_v25  ;;  %v1318_v36 = vpop.f32.mrf.mxu1  ;;  %1836 = vmatprep.mubr.f32.mxu0 %v252_v28  ;;  %v349_v25 = vld [vmem:[%s9610_s1 + $0xa10] sm:$0xff]  ;;  %v372_v28 = vld [vmem:[%s9610_s1 + $0xac8] sm:$0xff] }
 0x144   :  { %2021 = vmatprep.mubr.f32.mxu1 %v254_v29  ;;  %v6740_v41 = vadd.f32 %v1318_v36, %v1133_v34  ;;  %2113 = vmatprep.subr.mxu0 %v5119_v0  ;;  %v1135_v44 = vpop.f32.mrf.mxu0  ;;  %v374_v29 = vld [vmem:[%s9610_s1 + $0xad8] sm:$0xff]  ;;  %v829_v34 = vld [vmem:[%s9609_s0 + $0x710] sm:$0xff] }
 0x145   :  { %2298 = vmatprep.subr.mxu1 %v5119_v0  ;;  %v1320_v45 = vpop.f32.mrf.mxu1  ;;  %2114 = vmatpush1.msra.mxu0 %v802_v32  ;;  %v398_v44 = vld [vmem:[%s9610_s1 + $0xb98] sm:$0xff] }
 0x146   :  { %2299 = vmatpush1.msra.mxu1 %v834_v33  ;;  %1837 = vmatmul.mubr.f32.gmra.mxu0 %v251_v39  ;;  %v797_v33 = vld [vmem:[%s9609_s0 + $0x610] sm:$0xff]  ;;  %v796_v45 = vld [vmem:[%s9609_s0 + $0x608] sm:$0xff] }
 0x147   :  { %2022 = vmatmul.mubr.f32.gmra.mxu1 %v253_v40  ;;  %1841 = vmatprep.mubr.f32.mxu0 %v276_v42  ;;  %v371_v40 = vld [vmem:[%s9610_s1 + $0xac0] sm:$0xff]  ;;  %v373_v42 = vld [vmem:[%s9610_s1 + $0xad0] sm:$0xff] }
 0x148   :  { %2026 = vmatprep.mubr.f32.mxu1 %v278_v43  ;;  %2115 = vmatprep.subr.mxu0 %v5119_v0  ;;  %v1138_v55 = vpop.f32.mrf.mxu0  ;;  %v396_v43 = vld [vmem:[%s9610_s1 + $0xb88] sm:$0xff] }
 0x149   :  { %2300 = vmatprep.subr.mxu1 %v5119_v0  ;;  %v1323_v56 = vpop.f32.mrf.mxu1  ;;  %2116 = vmatpush1.msra.mxu0 %v801_v46  ;;  %v828_v46 = vld [vmem:[%s9609_s0 + $0x708] sm:$0xff] }
 0x14a   :  { %2301 = vmatpush1.msra.mxu1 %v833_v47  ;;  %v6770_v57 = vadd.f32 %v1323_v56, %v1138_v55  ;;  %1842 = vmatmul.mubr.f32.gmra.mxu0 %v275_v51  ;;  %v1140_v61 = vpop.f32.mrf.mxu0 }
 0x14b   :  { %2027 = vmatmul.mubr.f32.gmra.mxu1 %v277_v52  ;;  %v1325_v1 = vpop.f32.mrf.mxu1  ;;  %1846 = vmatprep.mubr.f32.mxu0 %v300_v53  ;;  %v395_v52 = vld [vmem:[%s9610_s1 + $0xb80] sm:$0xff]  ;;  %v397_v53 = vld [vmem:[%s9610_s1 + $0xb90] sm:$0xff] }
 0x14c   :  { %2031 = vmatprep.mubr.f32.mxu1 %v302_v54  ;;  %2117 = vmatprep.subr.mxu0 %v5119_v0  ;;  %v795_v61 = vld [vmem:[%s9609_s0 + $0x600] sm:$0xff] }
 0x14d   :  { %2302 = vmatprep.subr.mxu1 %v5119_v0  ;;  %2118 = vmatpush1.msra.mxu0 %v800_v59  ;;  %v420_v59 = vld [vmem:[%s9610_s1 + $0xc48] sm:$0xff]  ;;  %v827_v1 = vld [vmem:[%s9609_s0 + $0x700] sm:$0xff] }
 0x14e   :  { %2303 = vmatpush1.msra.mxu1 %v832_v60  ;;  %1847 = vmatmul.mubr.f32.gmra.mxu0 %v299_v2  ;;  %v1143_v9 = vpop.f32.mrf.mxu0  ;;  %v422_v60 = vld [vmem:[%s9610_s1 + $0xc58] sm:$0xff]  ;;  %v419_v2 = vld [vmem:[%s9610_s1 + $0xc40] sm:$0xff] }
 0x14f   :  { %2032 = vmatmul.mubr.f32.gmra.mxu1 %v301_v3  ;;  %v1328_v10 = vpop.f32.mrf.mxu1  ;;  %1851 = vmatprep.mubr.f32.mxu0 %v324_v4  ;;  %v421_v3 = vld [vmem:[%s9610_s1 + $0xc50] sm:$0xff] }
 0x150   :  { %2036 = vmatprep.mubr.f32.mxu1 %v326_v5  ;;  %v6804_v15 = vadd.f32 %v1328_v10, %v1143_v9  ;;  %2119 = vmatprep.subr.mxu0 %v5119_v0  ;;  %v1145_v19 = vpop.f32.mrf.mxu0 }
 0x151   :  { %2304 = vmatprep.subr.mxu1 %v5119_v0  ;;  %v1330_v20 = vpop.f32.mrf.mxu1  ;;  %2120 = vmatpush1.msra.mxu0 %v799_v7  ;;  %v826_v7 = vld [vmem:[%s9609_s0 + $0x6f8] sm:$0xff]  ;;  %v857_v19 = vld [vmem:[%s9609_s0 + $0x7f0] sm:$0xff] }
 0x152   :  { %2305 = vmatpush1.msra.mxu1 %v831_v8  ;;  %1852 = vmatmul.mubr.f32.gmra.mxu0 %v323_v12  ;;  %v858_v8 = vld [vmem:[%s9609_s0 + $0x7f8] sm:$0xff]  ;;  %v443_v20 = vld [vmem:[%s9610_s1 + $0xd00] sm:$0xff] }
 0x153   :  { %2037 = vmatmul.mubr.f32.gmra.mxu1 %v325_v14  ;;  %1856 = vmatprep.mubr.f32.mxu0 %v348_v16  ;;  %v444_v14 = vld [vmem:[%s9610_s1 + $0xd08] sm:$0xff]  ;;  %v446_v16 = vld [vmem:[%s9610_s1 + $0xd18] sm:$0xff] }
 0x154   :  { %2041 = vmatprep.mubr.f32.mxu1 %v350_v18  ;;  %2121 = vmatprep.subr.mxu0 %v5119_v0  ;;  %v1148_v30 = vpop.f32.mrf.mxu0  ;;  %v825_v18 = vld [vmem:[%s9609_s0 + $0x6f0] sm:$0xff] }
 0x155   :  { %2306 = vmatprep.subr.mxu1 %v5119_v0  ;;  %v1333_v31 = vpop.f32.mrf.mxu1  ;;  %2122 = vmatpush1.msra.mxu0 %v798_v21  ;;  %v445_v21 = vld [vmem:[%s9610_s1 + $0xd10] sm:$0xff] }
 0x156   :  { %2307 = vmatpush1.msra.mxu1 %v830_v22  ;;  %v6834_v32 = vadd.f32 %v1333_v31, %v1148_v30  ;;  %1857 = vmatmul.mubr.f32.gmra.mxu0 %v347_v24  ;;  %v1150_v36 = vpop.f32.mrf.mxu0 }
 0x157   :  { %2042 = vmatmul.mubr.f32.gmra.mxu1 %v349_v25  ;;  %v1335_v39 = vpop.f32.mrf.mxu1  ;;  %1861 = vmatprep.mubr.f32.mxu0 %v372_v28  ;;  %v824_v25 = vld [vmem:[%s9609_s0 + $0x6e8] sm:$0xff]  ;;  %v823_v36 = vld [vmem:[%s9609_s0 + $0x6e0] sm:$0xff] }
 0x158   :  { %2046 = vmatprep.mubr.f32.mxu1 %v374_v29  ;;  %2123 = vmatprep.subr.mxu0 %v5119_v0  ;;  %v856_v28 = vld [vmem:[%s9609_s0 + $0x7e8] sm:$0xff]  ;;  %v855_v39 = vld [vmem:[%s9609_s0 + $0x7e0] sm:$0xff] }
 0x159   :  { %2308 = vmatprep.subr.mxu1 %v5119_v0  ;;  %2124 = vmatpush1.msra.mxu0 %v797_v33  ;;  %v468_v33 = vld [vmem:[%s9610_s1 + $0xdc8] sm:$0xff] }
 0x15a   :  { %2309 = vmatpush1.msra.mxu1 %v829_v34  ;;  %1862 = vmatmul.mubr.f32.gmra.mxu0 %v371_v40  ;;  %v1153_v47 = vpop.f32.mrf.mxu0  ;;  %v470_v34 = vld [vmem:[%s9610_s1 + $0xdd8] sm:$0xff]  ;;  %v467_v40 = vld [vmem:[%s9610_s1 + $0xdc0] sm:$0xff] }
 0x15b   :  { %2047 = vmatmul.mubr.f32.gmra.mxu1 %v373_v42  ;;  %v1338_v51 = vpop.f32.mrf.mxu1  ;;  %1866 = vmatprep.mubr.f32.mxu0 %v396_v43  ;;  %v469_v42 = vld [vmem:[%s9610_s1 + $0xdd0] sm:$0xff] }
 0x15c   :  { %2051 = vmatprep.mubr.f32.mxu1 %v398_v44  ;;  %v6868_v54 = vadd.f32 %v1338_v51, %v1153_v47  ;;  %2125 = vmatprep.subr.mxu0 %v5119_v0  ;;  %v1155_v55 = vpop.f32.mrf.mxu0 }
 0x15d   :  { %2310 = vmatprep.subr.mxu1 %v5119_v0  ;;  %v1340_v56 = vpop.f32.mrf.mxu1  ;;  %2126 = vmatpush1.msra.mxu0 %v796_v45  ;;  %v822_v45 = vld [vmem:[%s9609_s0 + $0x6d8] sm:$0xff] }
 0x15e   :  { %2311 = vmatpush1.msra.mxu1 %v828_v46  ;;  %1867 = vmatmul.mubr.f32.gmra.mxu0 %v395_v52  ;;  %v854_v46 = vld [vmem:[%s9609_s0 + $0x7d8] sm:$0xff]  ;;  %v821_v56 = vld [vmem:[%s9609_s0 + $0x6d0] sm:$0xff] }
 0x15f   :  { %2052 = vmatmul.mubr.f32.gmra.mxu1 %v397_v53  ;;  %2127 = vmatprep.subr.mxu0 %v5119_v0  ;;  %v492_v53 = vld [vmem:[%s9610_s1 + $0xe88] sm:$0xff]  ;;  %v494_v55 = vld [vmem:[%s9610_s1 + $0xe98] sm:$0xff] }
 0x160   :  { %2312 = vmatprep.subr.mxu1 %v5119_v0  ;;  %1871 = vmatprep.mubr.f32.mxu0 %v420_v59  ;;  %v1158_v4 = vpop.f32.mrf.mxu0  ;;  %v853_v59 = vld [vmem:[%s9609_s0 + $0x7d0] sm:$0xff] }
 0x161   :  { %2056 = vmatprep.mubr.f32.mxu1 %v422_v60  ;;  %v1343_v5 = vpop.f32.mrf.mxu1  ;;  %2128 = vmatpush1.msra.mxu0 %v795_v61  ;;  %v491_v60 = vld [vmem:[%s9610_s1 + $0xe80] sm:$0xff]  ;;  %v493_v61 = vld [vmem:[%s9610_s1 + $0xe90] sm:$0xff] }
 0x162   :  { %2313 = vmatpush1.msra.mxu1 %v827_v1  ;;  %v6898_v9 = vadd.f32 %v1343_v5, %v1158_v4  ;;  %1872 = vmatmul.mubr.f32.gmra.mxu0 %v419_v2  ;;  %v1160_v10 = vpop.f32.mrf.mxu0  ;;  %v852_v4 = vld [vmem:[%s9609_s0 + $0x7c8] sm:$0xff] }
 0x163   :  { %2057 = vmatmul.mubr.f32.gmra.mxu1 %v421_v3  ;;  %v1345_v12 = vpop.f32.mrf.mxu1  ;;  %2129 = vmatprep.subr.mxu0 %v5119_v0  ;;  %v820_v3 = vld [vmem:[%s9609_s0 + $0x6c8] sm:$0xff] }
 0x164   :  { %2314 = vmatprep.subr.mxu1 %v5119_v0  ;;  %2130 = vmatpush2.msra.mxu0 %v826_v7  ;;  %v516_v10 = vld [vmem:[%s9610_s1 + $0xf48] sm:$0xff]  ;;  %v518_v12 = vld [vmem:[%s9610_s1 + $0xf58] sm:$0xff] }
 0x165   :  { %2315 = vmatpush2.msra.mxu1 %v858_v8  ;;  %2131 = vmatprep.subr.mxu0 %v5119_v0 }
 0x166   :  { %2316 = vmatprep.subr.mxu1 %v5119_v0  ;;  %1876 = vmatprep.mubr.f32.mxu0 %v444_v14  ;;  %v1163_v22 = vpop.f32.mrf.mxu0 }
 0x167   :  { %2061 = vmatprep.mubr.f32.mxu1 %v446_v16  ;;  %v1348_v24 = vpop.f32.mrf.mxu1  ;;  %2132 = vmatpush2.msra.mxu0 %v825_v18  ;;  %v851_v16 = vld [vmem:[%s9609_s0 + $0x7c0] sm:$0xff] }
 0x168   :  { %2317 = vmatpush2.msra.mxu1 %v857_v19  ;;  %v6928_v29 = vadd.f32 %v1348_v24, %v1163_v22  ;;  %1877 = vmatmul.mubr.f32.gmra.mxu0 %v443_v20  ;;  %v1165_v30 = vpop.f32.mrf.mxu0  ;;  %v515_v20 = vld [vmem:[%s9610_s1 + $0xf40] sm:$0xff] }
 0x169   :  { %2062 = vmatmul.mubr.f32.gmra.mxu1 %v445_v21  ;;  %v1350_v31 = vpop.f32.mrf.mxu1  ;;  %2133 = vmatprep.subr.mxu0 %v5119_v0  ;;  %v517_v21 = vld [vmem:[%s9610_s1 + $0xf50] sm:$0xff]  ;;  %v850_v30 = vld [vmem:[%s9609_s0 + $0x7b8] sm:$0xff] }
 0x16a   :  { %2318 = vmatprep.subr.mxu1 %v5119_v0  ;;  %2134 = vmatpush2.msra.mxu0 %v824_v25 }
 0x16b   :  { %2319 = vmatpush2.msra.mxu1 %v856_v28  ;;  %2135 = vmatprep.subr.mxu0 %v5119_v0  ;;  %v818_v28 = vld [vmem:[%s9609_s0 + $0x6b8] sm:$0xff] }
 0x16c   :  { %2320 = vmatprep.subr.mxu1 %v5119_v0  ;;  %1881 = vmatprep.mubr.f32.mxu0 %v468_v33  ;;  %v1168_v43 = vpop.f32.mrf.mxu0 }
 0x16d   :  { %2066 = vmatprep.mubr.f32.mxu1 %v470_v34  ;;  %v1353_v44 = vpop.f32.mrf.mxu1  ;;  %2136 = vmatpush2.msra.mxu0 %v823_v36  ;;  %v540_v34 = vld [vmem:[%s9610_s1 + $0x1008] sm:$0xff]  ;;  %v542_v36 = vld [vmem:[%s9610_s1 + $0x1018] sm:$0xff] }
 0x16e   :  { %2321 = vmatpush2.msra.mxu1 %v855_v39  ;;  %v6958_v47 = vadd.f32 %v1353_v44, %v1168_v43  ;;  %1882 = vmatmul.mubr.f32.gmra.mxu0 %v467_v40  ;;  %v1170_v51 = vpop.f32.mrf.mxu0  ;;  %v817_v40 = vld [vmem:[%s9609_s0 + $0x6b0] sm:$0xff] }
 0x16f   :  { %2067 = vmatmul.mubr.f32.gmra.mxu1 %v469_v42  ;;  %v1355_v52 = vpop.f32.mrf.mxu1  ;;  %2137 = vmatprep.subr.mxu0 %v5119_v0  ;;  %v849_v42 = vld [vmem:[%s9609_s0 + $0x7b0] sm:$0xff] }
 0x170   :  { %2322 = vmatprep.subr.mxu1 %v5119_v0  ;;  %2138 = vmatpush2.msra.mxu0 %v822_v45  ;;  %v541_v45 = vld [vmem:[%s9610_s1 + $0x1010] sm:$0xff] }
 0x171   :  { %2323 = vmatpush2.msra.mxu1 %v854_v46  ;;  %2139 = vmatprep.subr.mxu0 %v5119_v0 }
 0x172   :  { %2324 = vmatprep.subr.mxu1 %v5119_v0  ;;  %1886 = vmatprep.mubr.f32.mxu0 %v492_v53  ;;  %v1423_v1 = vpop.f32.mrf.mxu0  ;;  %v816_v53 = vld [vmem:[%s9609_s0 + $0x6a8] sm:$0xff] }
 0x173   :  { %2071 = vmatprep.mubr.f32.mxu1 %v494_v55  ;;  %v1608_v2 = vpop.f32.mrf.mxu1  ;;  %2140 = vmatpush2.msra.mxu0 %v821_v56  ;;  %v1424_v5 = vadd.f32 %v1423_v1, %v6396_v38  ;;  %v819_v38 = vld [vmem:[%s9609_s0 + $0x6c0] sm:$0xff]  ;;  %v848_v55 = vld [vmem:[%s9609_s0 + $0x7a8] sm:$0xff]  ;;  %v566_v1 = vld [vmem:[%s9610_s1 + $0x10d8] sm:$0xff] }
 0x174   :  { %2325 = vmatpush2.msra.mxu1 %v853_v59  ;;  %1887 = vmatmul.mubr.f32.gmra.mxu0 %v491_v60  ;;  %v1425_v7 = vpop.f32.mrf.mxu0 }
 0x175   :  { %2072 = vmatmul.mubr.f32.gmra.mxu1 %v493_v61  ;;  %v1610_v8 = vpop.f32.mrf.mxu1  ;;  %2141 = vmatprep.subr.mxu0 %v5119_v0  ;;  %v6997_v14 = vadd.f32 %v1608_v2, %v1424_v5  ;;  %v564_v61 = vld [vmem:[%s9610_s1 + $0x10c8] sm:$0xff]  ;;  %v563_v7 = vld [vmem:[%s9610_s1 + $0x10c0] sm:$0xff] }
 0x176   :  { %2326 = vmatprep.subr.mxu1 %v5119_v0  ;;  %2142 = vmatpush2.msra.mxu0 %v820_v3  ;;  %v1428_v18 = vpop.f32.mrf.mxu0  ;;  %v847_v3 = vld [vmem:[%s9609_s0 + $0x7a0] sm:$0xff]  ;;  %v565_v8 = vld [vmem:[%s9610_s1 + $0x10d0] sm:$0xff] }
 0x177   :  { %2327 = vmatpush2.msra.mxu1 %v852_v4  ;;  %v1613_v19 = vpop.f32.mrf.mxu1  ;;  %2143 = vmatprep.subr.mxu0 %v5119_v0  ;;  %v1429_v22 = vadd.f32 %v1428_v18, %v6420_v49  ;;  %v846_v18 = vld [vmem:[%s9609_s0 + $0x798] sm:$0xff] }
 0x178   :  { %2328 = vmatprep.subr.mxu1 %v5119_v0  ;;  %1891 = vmatprep.mubr.f32.mxu0 %v516_v10  ;;  %v1430_v24 = vpop.f32.mrf.mxu0 }
 0x179   :  { %2076 = vmatprep.mubr.f32.mxu1 %v518_v12  ;;  %v1615_v25 = vpop.f32.mrf.mxu1  ;;  %2144 = vmatpush2.msra.mxu0 %v819_v38  ;;  %v7020_v31 = vadd.f32 %v1613_v19, %v1429_v22  ;;  %v590_v22 = vld [vmem:[%s9610_s1 + $0x1198] sm:$0xff] }
 0x17a   :  { %2329 = vmatpush2.msra.mxu1 %v851_v16  ;;  %1892 = vmatmul.mubr.f32.gmra.mxu0 %v515_v20  ;;  %v1433_v33 = vpop.f32.mrf.mxu0  ;;  %v814_v16 = vld [vmem:[%s9609_s0 + $0x698] sm:$0xff]  ;;  %v813_v25 = vld [vmem:[%s9609_s0 + $0x690] sm:$0xff] }
 0x17b   :  { %2077 = vmatmul.mubr.f32.gmra.mxu1 %v517_v21  ;;  %v1618_v49 = vpop.f32.mrf.mxu1  ;;  %2145 = vmatprep.subr.mxu0 %v5119_v0  ;;  %v1434_v39 = vadd.f32 %v1433_v33, %v6436_v58  ;;  %v539_v58 = vld [vmem:[%s9610_s1 + $0x1000] sm:$0xff]  ;;  %v588_v21 = vld [vmem:[%s9610_s1 + $0x1188] sm:$0xff] }
 0x17c   :  { %2330 = vmatprep.subr.mxu1 %v5119_v0  ;;  %2146 = vmatpush2.msra.mxu0 %v818_v28  ;;  %v1435_v43 = vpop.f32.mrf.mxu0  ;;  %v845_v28 = vld [vmem:[%s9609_s0 + $0x790] sm:$0xff] }
 0x17d   :  { %2331 = vmatpush2.msra.mxu1 %v850_v30  ;;  %v1620_v44 = vpop.f32.mrf.mxu1  ;;  %2147 = vmatprep.subr.mxu0 %v5119_v0  ;;  %v7045_v46 = vadd.f32 %v1618_v49, %v1434_v39  ;;  %v589_v49 = vld [vmem:[%s9610_s1 + $0x1190] sm:$0xff] }
 0x17e   :  { %2332 = vmatprep.subr.mxu1 %v5119_v0  ;;  %1896 = vmatprep.mubr.f32.mxu0 %v540_v34  ;;  %v1438_v51 = vpop.f32.mrf.mxu0 }
 0x17f   :  { %2081 = vmatprep.mubr.f32.mxu1 %v542_v36  ;;  %v1623_v52 = vpop.f32.mrf.mxu1  ;;  %2148 = vmatpush2.msra.mxu0 %v817_v40  ;;  %v1439_v56 = vadd.f32 %v1438_v51, %v6458_v6  ;;  %v815_v6 = vld [vmem:[%s9609_s0 + $0x6a0] sm:$0xff]  ;;  %v812_v40 = vld [vmem:[%s9609_s0 + $0x688] sm:$0xff] }
 0x180   :  { %2333 = vmatpush2.msra.mxu1 %v849_v42  ;;  %1897 = vmatmul.mubr.f32.gmra.mxu0 %v539_v58  ;;  %v1440_v59 = vpop.f32.mrf.mxu0  ;;  %v844_v42 = vld [vmem:[%s9609_s0 + $0x788] sm:$0xff] }
 0x181   :  { %2082 = vmatmul.mubr.f32.gmra.mxu1 %v541_v45  ;;  %v1625_v60 = vpop.f32.mrf.mxu1  ;;  %2149 = vmatprep.subr.mxu0 %v5119_v0  ;;  %v7062_v2 = vadd.f32 %v1623_v52, %v1439_v56  ;;  %v811_v45 = vld [vmem:[%s9609_s0 + $0x680] sm:$0xff]  ;;  %v40_v51 = vld [vmem:[%s9610_s1 + $0x68] sm:$0xff] }
 0x182   :  { %2334 = vmatprep.subr.mxu1 %v5119_v0  ;;  %2150 = vmatpush2.msra.mxu0 %v816_v53  ;;  %v1443_v4 = vpop.f32.mrf.mxu0  ;;  %v42_v53 = vld [vmem:[%s9610_s1 + $0x78] sm:$0xff]  ;;  %v39_v59 = vld [vmem:[%s9610_s1 + $0x60] sm:$0xff]  ;;  %v41_v60 = vld [vmem:[%s9610_s1 + $0x70] sm:$0xff] }
 0x183   :  { %2335 = vmatpush2.msra.mxu1 %v848_v55  ;;  %v1628_v5 = vpop.f32.mrf.mxu1  ;;  %2151 = vmatprep.subr.mxu0 %v5119_v0  ;;  %v1444_v10 = vadd.f32 %v1443_v4, %v6482_v17 }
 0x184   :  { %2336 = vmatprep.subr.mxu1 %v5119_v0  ;;  %1901 = vmatprep.mubr.f32.mxu0 %v564_v61  ;;  %v1445_v12 = vpop.f32.mrf.mxu0 }
 0x185   :  { %2086 = vmatprep.mubr.f32.mxu1 %v566_v1  ;;  %v1630_v38 = vpop.f32.mrf.mxu1  ;;  %2152 = vmatpush2.msra.mxu0 %v815_v6  ;;  %v7085_v19 = vadd.f32 %v1628_v5, %v1444_v10  ;;  %v64_v1 = vld [vmem:[%s9610_s1 + $0x128] sm:$0xff]  ;;  %v66_v6 = vld [vmem:[%s9610_s1 + $0x138] sm:$0xff]  ;;  %v63_v12 = vld [vmem:[%s9610_s1 + $0x120] sm:$0xff] }
 0x186   :  { %2337 = vmatpush2.msra.mxu1 %v847_v3  ;;  %1902 = vmatmul.mubr.f32.gmra.mxu0 %v563_v7  ;;  %v1448_v20 = vpop.f32.mrf.mxu0  ;;  %v906_v10 = vld [vmem:[%s9609_s0 + $0x978] sm:$0xff]  ;;  %v65_v38 = vld [vmem:[%s9610_s1 + $0x130] sm:$0xff] }
 0x187   :  { %2087 = vmatmul.mubr.f32.gmra.mxu1 %v565_v8  ;;  %v1633_v17 = vpop.f32.mrf.mxu1  ;;  %2153 = vmatprep.subr.mxu0 %v5119_v0  ;;  %v1449_v24 = vadd.f32 %v1448_v20, %v6498_v26  ;;  %v587_v26 = vld [vmem:[%s9610_s1 + $0x1180] sm:$0xff]  ;;  %v874_v8 = vld [vmem:[%s9609_s0 + $0x878] sm:$0xff] }
 0x188   :  { %2338 = vmatprep.subr.mxu1 %v5119_v0  ;;  %2154 = vmatpush2.msra.mxu0 %v814_v16  ;;  %v1450_v30 = vpop.f32.mrf.mxu0  ;;  %v90_v20 = vld [vmem:[%s9610_s1 + $0x1f8] sm:$0xff] }
 0x189   :  { %2339 = vmatpush2.msra.mxu1 %v846_v18  ;;  %v1635_v33 = vpop.f32.mrf.mxu1  ;;  %2155 = vmatprep.subr.mxu0 %v5119_v0  ;;  %v7110_v34 = vadd.f32 %v1633_v17, %v1449_v24  ;;  %v88_v18 = vld [vmem:[%s9610_s1 + $0x1e8] sm:$0xff]  ;;  %v905_v24 = vld [vmem:[%s9609_s0 + $0x970] sm:$0xff]  ;;  %v87_v30 = vld [vmem:[%s9610_s1 + $0x1e0] sm:$0xff] }
 0x18a   :  { %2340 = vmatprep.subr.mxu1 %v5119_v0  ;;  %1906 = vmatprep.mubr.f32.mxu0 %v588_v21  ;;  %v1453_v36 = vpop.f32.mrf.mxu0  ;;  %v89_v33 = vld [vmem:[%s9610_s1 + $0x1f0] sm:$0xff] }
 0x18b   :  { %2091 = vmatprep.mubr.f32.mxu1 %v590_v22  ;;  %v1638_v39 = vpop.f32.mrf.mxu1  ;;  %2156 = vmatpush2.msra.mxu0 %v813_v25  ;;  %v1454_v43 = vadd.f32 %v1453_v36, %v6520_v37  ;;  %v843_v37 = vld [vmem:[%s9609_s0 + $0x780] sm:$0xff]  ;;  %v114_v36 = vld [vmem:[%s9610_s1 + $0x2b8] sm:$0xff] }
 0x18c   :  { %2341 = vmatpush2.msra.mxu1 %v845_v28  ;;  %1907 = vmatmul.mubr.f32.gmra.mxu0 %v587_v26  ;;  %v1455_v44 = vpop.f32.mrf.mxu0 }
 0x18d   :  { %2092 = vmatmul.mubr.f32.gmra.mxu1 %v589_v49  ;;  %v1640_v58 = vpop.f32.mrf.mxu1  ;;  %2157 = vmatprep.subr.mxu0 %v5119_v0  ;;  %v7127_v52 = vadd.f32 %v1638_v39, %v1454_v43  ;;  %v112_v49 = vld [vmem:[%s9610_s1 + $0x2a8] sm:$0xff] }
 0x18e   :  { %2342 = vmatprep.subr.mxu1 %v5119_v0  ;;  %2158 = vmatpush2.msra.mxu0 %v812_v40  ;;  %v1458_v55 = vpop.f32.mrf.mxu0  ;;  %v904_v43 = vld [vmem:[%s9609_s0 + $0x968] sm:$0xff] }
 0x18f   :  { %2343 = vmatpush2.msra.mxu1 %v844_v42  ;;  %v1643_v56 = vpop.f32.mrf.mxu1  ;;  %2159 = vmatprep.subr.mxu0 %v5119_v0  ;;  %v1459_v61 = vadd.f32 %v1458_v55, %v6544_v50  ;;  %v138_v55 = vld [vmem:[%s9610_s1 + $0x378] sm:$0xff] }
 0x190   :  { %2344 = vmatprep.subr.mxu1 %v5119_v0  ;;  %2160 = vmatpush2.msra.mxu0 %v811_v45  ;;  %v1460_v3 = vpop.f32.mrf.mxu0  ;;  %v111_v45 = vld [vmem:[%s9610_s1 + $0x2a0] sm:$0xff] }
 0x191   :  { %2161 = vmatprep.mubr.f32.mxu0 %v40_v51  ;;  %v1645_v4 = vpop.f32.mrf.mxu1  ;;  %2345 = vmatpush2.msra.mxu1 %v843_v37  ;;  %v7150_v5 = vadd.f32 %v1643_v56, %v1459_v61  ;;  %v113_v51 = vld [vmem:[%s9610_s1 + $0x2b0] sm:$0xff]  ;;  %v903_v61 = vld [vmem:[%s9609_s0 + $0x960] sm:$0xff] }
 0x192   :  { %2346 = vmatprep.mubr.f32.mxu1 %v42_v53  ;;  %2162 = vmatmul.mubr.f32.vlgmr.msra.gmra.mxu0 %v39_v59  ;;  %v1463_v7 = vpop.f32.mrf.mxu0  ;;  %v136_v53 = vld [vmem:[%s9610_s1 + $0x368] sm:$0xff]  ;;  %v135_v3 = vld [vmem:[%s9610_s1 + $0x360] sm:$0xff]  ;;  %v137_v4 = vld [vmem:[%s9610_s1 + $0x370] sm:$0xff] }
 0x193   :  { %2347 = vmatmul.mubr.f32.vlgmr.msra.gmra.mxu1 %v41_v60  ;;  %v1648_v50 = vpop.f32.mrf.mxu1  ;;  %2166 = vmatprep.mubr.f32.mxu0 %v64_v1  ;;  %v1464_v16 = vadd.f32 %v1463_v7, %v6564_v62  ;;  %v873_v62 = vld [vmem:[%s9609_s0 + $0x870] sm:$0xff] }
 0x194   :  { %2351 = vmatprep.mubr.f32.mxu1 %v66_v6  ;;  %2467 = vmatprep.subr.mxu0 %v5119_v0  ;;  %v1465_v17 = vpop.f32.mrf.mxu0 }
 0x195   :  { %2652 = vmatprep.subr.mxu1 %v5119_v0  ;;  %v1650_v21 = vpop.f32.mrf.mxu1  ;;  %v7173_v22 = vadd.f32 %v1648_v50, %v1464_v16  ;;  %2468 = vmatpush1.msra.mxu0 %v874_v8  ;;  %v160_v50 = vld [vmem:[%s9610_s1 + $0x428] sm:$0xff]  ;;  %v162_v8 = vld [vmem:[%s9610_s1 + $0x438] sm:$0xff]  ;;  %v159_v17 = vld [vmem:[%s9610_s1 + $0x420] sm:$0xff] }
 0x196   :  { %2653 = vmatpush1.msra.mxu1 %v906_v10  ;;  %2167 = vmatmul.mubr.f32.gmra.mxu0 %v63_v12  ;;  %v1468_v25 = vpop.f32.mrf.mxu0  ;;  %v902_v16 = vld [vmem:[%s9609_s0 + $0x958] sm:$0xff]  ;;  %v161_v21 = vld [vmem:[%s9610_s1 + $0x430] sm:$0xff] }
 0x197   :  { %2352 = vmatmul.mubr.f32.gmra.mxu1 %v65_v38  ;;  %v1653_v28 = vpop.f32.mrf.mxu1  ;;  %2171 = vmatprep.mubr.f32.mxu0 %v88_v18  ;;  %v1469_v26 = vadd.f32 %v1468_v25, %v6586_v11  ;;  %v872_v11 = vld [vmem:[%s9609_s0 + $0x868] sm:$0xff]  ;;  %v186_v25 = vld [vmem:[%s9610_s1 + $0x4f8] sm:$0xff] }
 0x198   :  { %2356 = vmatprep.mubr.f32.mxu1 %v90_v20  ;;  %2469 = vmatprep.subr.mxu0 %v5119_v0  ;;  %v1470_v39 = vpop.f32.mrf.mxu0 }
 0x199   :  { %2654 = vmatprep.subr.mxu1 %v5119_v0  ;;  %v1655_v40 = vpop.f32.mrf.mxu1  ;;  %2470 = vmatpush1.msra.mxu0 %v873_v62  ;;  %v7196_v42 = vadd.f32 %v1653_v28, %v1469_v26  ;;  %v901_v26 = vld [vmem:[%s9609_s0 + $0x950] sm:$0xff]  ;;  %v183_v39 = vld [vmem:[%s9610_s1 + $0x4e0] sm:$0xff] }
 0x19a   :  { %2655 = vmatpush1.msra.mxu1 %v905_v24  ;;  %2172 = vmatmul.mubr.f32.gmra.mxu0 %v87_v30  ;;  %v1473_v44 = vpop.f32.mrf.mxu0  ;;  %v184_v24 = vld [vmem:[%s9610_s1 + $0x4e8] sm:$0xff]  ;;  %v185_v40 = vld [vmem:[%s9610_s1 + $0x4f0] sm:$0xff] }
 0x19b   :  { %2357 = vmatmul.mubr.f32.gmra.mxu1 %v89_v33  ;;  %v1658_v58 = vpop.f32.mrf.mxu1  ;;  %2176 = vmatprep.mubr.f32.mxu0 %v112_v49  ;;  %v1474_v37 = vadd.f32 %v1473_v44, %v6608_v23  ;;  %v871_v23 = vld [vmem:[%s9609_s0 + $0x860] sm:$0xff]  ;;  %v210_v44 = vld [vmem:[%s9610_s1 + $0x5b8] sm:$0xff] }
 0x19c   :  { %2361 = vmatprep.mubr.f32.mxu1 %v114_v36  ;;  %2471 = vmatprep.subr.mxu0 %v5119_v0  ;;  %v1475_v56 = vpop.f32.mrf.mxu0 }
 0x19d   :  { %2656 = vmatprep.subr.mxu1 %v5119_v0  ;;  %v1660_v59 = vpop.f32.mrf.mxu1  ;;  %2472 = vmatpush1.msra.mxu0 %v872_v11  ;;  %v7219_v60 = vadd.f32 %v1658_v58, %v1474_v37  ;;  %v900_v37 = vld [vmem:[%s9609_s0 + $0x948] sm:$0xff]  ;;  %v207_v56 = vld [vmem:[%s9610_s1 + $0x5a0] sm:$0xff] }
 0x19e   :  { %2657 = vmatpush1.msra.mxu1 %v904_v43  ;;  %2177 = vmatmul.mubr.f32.gmra.mxu0 %v111_v45  ;;  %v1478_v1 = vpop.f32.mrf.mxu0  ;;  %v208_v43 = vld [vmem:[%s9610_s1 + $0x5a8] sm:$0xff]  ;;  %v209_v59 = vld [vmem:[%s9610_s1 + $0x5b0] sm:$0xff] }
 0x19f   :  { %2362 = vmatmul.mubr.f32.gmra.mxu1 %v113_v51  ;;  %v1663_v6 = vpop.f32.mrf.mxu1  ;;  %2181 = vmatprep.mubr.f32.mxu0 %v136_v53  ;;  %v1479_v7 = vadd.f32 %v1478_v1, %v6630_v35  ;;  %v870_v35 = vld [vmem:[%s9609_s0 + $0x858] sm:$0xff] }
 0x1a0   :  { %2366 = vmatprep.mubr.f32.mxu1 %v138_v55  ;;  %2473 = vmatprep.subr.mxu0 %v5119_v0  ;;  %v1480_v10 = vpop.f32.mrf.mxu0  ;;  %v234_v1 = vld [vmem:[%s9610_s1 + $0x678] sm:$0xff] }
 0x1a1   :  { %2658 = vmatprep.subr.mxu1 %v5119_v0  ;;  %v1665_v12 = vpop.f32.mrf.mxu1  ;;  %2474 = vmatpush1.msra.mxu0 %v871_v23  ;;  %v7242_v38 = vadd.f32 %v1663_v6, %v1479_v7  ;;  %v899_v7 = vld [vmem:[%s9609_s0 + $0x940] sm:$0xff] }
 0x1a2   :  { %2659 = vmatpush1.msra.mxu1 %v903_v61  ;;  %2182 = vmatmul.mubr.f32.gmra.mxu0 %v135_v3  ;;  %v1483_v18 = vpop.f32.mrf.mxu0  ;;  %v232_v61 = vld [vmem:[%s9610_s1 + $0x668] sm:$0xff]  ;;  %v231_v10 = vld [vmem:[%s9610_s1 + $0x660] sm:$0xff]  ;;  %v233_v12 = vld [vmem:[%s9610_s1 + $0x670] sm:$0xff] }
 0x1a3   :  { %2367 = vmatmul.mubr.f32.gmra.mxu1 %v137_v4  ;;  %v1668_v20 = vpop.f32.mrf.mxu1  ;;  %2186 = vmatprep.mubr.f32.mxu0 %v160_v50  ;;  %v1484_v62 = vadd.f32 %v1483_v18, %v6652_v48  ;;  %v869_v48 = vld [vmem:[%s9609_s0 + $0x850] sm:$0xff]  ;;  %v258_v18 = vld [vmem:[%s9610_s1 + $0x738] sm:$0xff] }
 0x1a4   :  { %2371 = vmatprep.mubr.f32.mxu1 %v162_v8  ;;  %2475 = vmatprep.subr.mxu0 %v5119_v0  ;;  %v1485_v28 = vpop.f32.mrf.mxu0 }
 0x1a5   :  { %2660 = vmatprep.subr.mxu1 %v5119_v0  ;;  %v1670_v30 = vpop.f32.mrf.mxu1  ;;  %2476 = vmatpush1.msra.mxu0 %v870_v35  ;;  %v7265_v33 = vadd.f32 %v1668_v20, %v1484_v62  ;;  %v898_v62 = vld [vmem:[%s9609_s0 + $0x938] sm:$0xff]  ;;  %v255_v28 = vld [vmem:[%s9610_s1 + $0x720] sm:$0xff] }
 0x1a6   :  { %2661 = vmatpush1.msra.mxu1 %v902_v16  ;;  %2187 = vmatmul.mubr.f32.gmra.mxu0 %v159_v17  ;;  %v1488_v49 = vpop.f32.mrf.mxu0  ;;  %v256_v16 = vld [vmem:[%s9610_s1 + $0x728] sm:$0xff]  ;;  %v257_v30 = vld [vmem:[%s9610_s1 + $0x730] sm:$0xff] }
 0x1a7   :  { %2372 = vmatmul.mubr.f32.gmra.mxu1 %v161_v21  ;;  %v1673_v36 = vpop.f32.mrf.mxu1  ;;  %2191 = vmatprep.mubr.f32.mxu0 %v184_v24  ;;  %v1489_v11 = vadd.f32 %v1488_v49, %v6674_v63  ;;  %v868_v63 = vld [vmem:[%s9609_s0 + $0x848] sm:$0xff]  ;;  %v282_v49 = vld [vmem:[%s9610_s1 + $0x7f8] sm:$0xff] }
 0x1a8   :  { %2376 = vmatprep.mubr.f32.mxu1 %v186_v25  ;;  %2477 = vmatprep.subr.mxu0 %v5119_v0  ;;  %v1490_v58 = vpop.f32.mrf.mxu0 }
 0x1a9   :  { %2662 = vmatprep.subr.mxu1 %v5119_v0  ;;  %v1675_v45 = vpop.f32.mrf.mxu1  ;;  %2478 = vmatpush1.msra.mxu0 %v869_v48  ;;  %v7288_v51 = vadd.f32 %v1673_v36, %v1489_v11  ;;  %v897_v11 = vld [vmem:[%s9609_s0 + $0x930] sm:$0xff]  ;;  %v304_v58 = vld [vmem:[%s9610_s1 + $0x8a8] sm:$0xff] }
 0x1aa   :  { %2663 = vmatpush1.msra.mxu1 %v901_v26  ;;  %2192 = vmatmul.mubr.f32.gmra.mxu0 %v183_v39  ;;  %v1493_v53 = vpop.f32.mrf.mxu0  ;;  %v280_v26 = vld [vmem:[%s9610_s1 + $0x7e8] sm:$0xff]  ;;  %v306_v45 = vld [vmem:[%s9610_s1 + $0x8b8] sm:$0xff] }
 0x1ab   :  { %2377 = vmatmul.mubr.f32.gmra.mxu1 %v185_v40  ;;  %v1678_v55 = vpop.f32.mrf.mxu1  ;;  %2196 = vmatprep.mubr.f32.mxu0 %v208_v43  ;;  %v1494_v23 = vadd.f32 %v1493_v53, %v6696_v13  ;;  %v867_v13 = vld [vmem:[%s9609_s0 + $0x840] sm:$0xff] }
 0x1ac   :  { %2381 = vmatprep.mubr.f32.mxu1 %v210_v44  ;;  %2479 = vmatprep.subr.mxu0 %v5119_v0  ;;  %v1495_v6 = vpop.f32.mrf.mxu0  ;;  %v279_v43 = vld [vmem:[%s9610_s1 + $0x7e0] sm:$0xff]  ;;  %v281_v44 = vld [vmem:[%s9610_s1 + $0x7f0] sm:$0xff] }
 0x1ad   :  { %2664 = vmatprep.subr.mxu1 %v5119_v0  ;;  %v1680_v3 = vpop.f32.mrf.mxu1  ;;  %2480 = vmatpush1.msra.mxu0 %v868_v63  ;;  %v7311_v4 = vadd.f32 %v1678_v55, %v1494_v23  ;;  %v864_v55 = vld [vmem:[%s9609_s0 + $0x828] sm:$0xff] }
 0x1ae   :  { %2665 = vmatpush1.msra.mxu1 %v900_v37  ;;  %2197 = vmatmul.mubr.f32.gmra.mxu0 %v207_v56  ;;  %v1498_v50 = vpop.f32.mrf.mxu0  ;;  %v896_v56 = vld [vmem:[%s9609_s0 + $0x928] sm:$0xff]  ;;  %v330_v3 = vld [vmem:[%s9610_s1 + $0x978] sm:$0xff] }
 0x1af   :  { %2382 = vmatmul.mubr.f32.gmra.mxu1 %v209_v59  ;;  %v1683_v8 = vpop.f32.mrf.mxu1  ;;  %2201 = vmatprep.mubr.f32.mxu0 %v232_v61  ;;  %v1499_v35 = vadd.f32 %v1498_v50, %v6718_v27  ;;  %v866_v27 = vld [vmem:[%s9609_s0 + $0x838] sm:$0xff]  ;;  %v303_v61 = vld [vmem:[%s9610_s1 + $0x8a0] sm:$0xff]  ;;  %v328_v6 = vld [vmem:[%s9610_s1 + $0x968] sm:$0xff] }
 0x1b0   :  { %2386 = vmatprep.mubr.f32.mxu1 %v234_v1  ;;  %2481 = vmatprep.subr.mxu0 %v5119_v0  ;;  %v1500_v20 = vpop.f32.mrf.mxu0 }
 0x1b1   :  { %2666 = vmatprep.subr.mxu1 %v5119_v0  ;;  %v1685_v17 = vpop.f32.mrf.mxu1  ;;  %2482 = vmatpush1.msra.mxu0 %v867_v13  ;;  %v7334_v21 = vadd.f32 %v1683_v8, %v1499_v35  ;;  %v863_v13 = vld [vmem:[%s9609_s0 + $0x820] sm:$0xff] }
 0x1b2   :  { %2667 = vmatpush1.msra.mxu1 %v899_v7  ;;  %2202 = vmatmul.mubr.f32.gmra.mxu0 %v231_v10  ;;  %v1503_v24 = vpop.f32.mrf.mxu0  ;;  %v895_v7 = vld [vmem:[%s9609_s0 + $0x920] sm:$0xff] }
 0x1b3   :  { %2387 = vmatmul.mubr.f32.gmra.mxu1 %v233_v12  ;;  %v1688_v25 = vpop.f32.mrf.mxu1  ;;  %2206 = vmatprep.mubr.f32.mxu0 %v256_v16  ;;  %v1504_v48 = vadd.f32 %v1503_v24, %v6740_v41  ;;  %v865_v41 = vld [vmem:[%s9609_s0 + $0x830] sm:$0xff]  ;;  %v327_v10 = vld [vmem:[%s9610_s1 + $0x960] sm:$0xff]  ;;  %v352_v16 = vld [vmem:[%s9610_s1 + $0xa28] sm:$0xff] }
 0x1b4   :  { %2391 = vmatprep.mubr.f32.mxu1 %v258_v18  ;;  %2483 = vmatprep.subr.mxu0 %v5119_v0  ;;  %v1505_v36 = vpop.f32.mrf.mxu0  ;;  %v329_v12 = vld [vmem:[%s9610_s1 + $0x970] sm:$0xff]  ;;  %v354_v18 = vld [vmem:[%s9610_s1 + $0xa38] sm:$0xff]  ;;  %v351_v24 = vld [vmem:[%s9610_s1 + $0xa20] sm:$0xff] }
 0x1b5   :  { %2668 = vmatprep.subr.mxu1 %v5119_v0  ;;  %v1690_v39 = vpop.f32.mrf.mxu1  ;;  %2484 = vmatpush1.msra.mxu0 %v866_v27  ;;  %v7357_v40 = vadd.f32 %v1688_v25, %v1504_v48  ;;  %v353_v25 = vld [vmem:[%s9610_s1 + $0xa30] sm:$0xff] }
 0x1b6   :  { %2669 = vmatpush1.msra.mxu1 %v898_v62  ;;  %2207 = vmatmul.mubr.f32.gmra.mxu0 %v255_v28  ;;  %v894_v62 = vld [vmem:[%s9609_s0 + $0x918] sm:$0xff]  ;;  %v376_v28 = vld [vmem:[%s9610_s1 + $0xae8] sm:$0xff]  ;;  %v861_v36 = vld [vmem:[%s9609_s0 + $0x810] sm:$0xff] }
 0x1b7   :  { %2392 = vmatmul.mubr.f32.gmra.mxu1 %v257_v30  ;;  %2211 = vmatprep.mubr.f32.mxu0 %v280_v26  ;;  %v378_v30 = vld [vmem:[%s9610_s1 + $0xaf8] sm:$0xff]  ;;  %v893_v39 = vld [vmem:[%s9609_s0 + $0x910] sm:$0xff] }
 0x1b8   :  { %2396 = vmatprep.mubr.f32.mxu1 %v282_v49  ;;  %2485 = vmatprep.subr.mxu0 %v5119_v0  ;;  %v1508_v63 = vpop.f32.mrf.mxu0 }
 0x1b9   :  { %2670 = vmatprep.subr.mxu1 %v5119_v0  ;;  %v1693_v37 = vpop.f32.mrf.mxu1  ;;  %2486 = vmatpush1.msra.mxu0 %v865_v41  ;;  %v1509_v53 = vadd.f32 %v1508_v63, %v6770_v57  ;;  %v305_v57 = vld [vmem:[%s9610_s1 + $0x8b0] sm:$0xff]  ;;  %v860_v63 = vld [vmem:[%s9609_s0 + $0x808] sm:$0xff] }
 0x1ba   :  { %2671 = vmatpush1.msra.mxu1 %v897_v11  ;;  %2212 = vmatmul.mubr.f32.gmra.mxu0 %v279_v43  ;;  %v1510_v59 = vpop.f32.mrf.mxu0  ;;  %v375_v43 = vld [vmem:[%s9610_s1 + $0xae0] sm:$0xff] }
 0x1bb   :  { %2397 = vmatmul.mubr.f32.gmra.mxu1 %v281_v44  ;;  %v1695_v23 = vpop.f32.mrf.mxu1  ;;  %2216 = vmatprep.mubr.f32.mxu0 %v304_v58  ;;  %v7392_v1 = vadd.f32 %v1693_v37, %v1509_v53  ;;  %v400_v58 = vld [vmem:[%s9610_s1 + $0xba8] sm:$0xff]  ;;  %v401_v59 = vld [vmem:[%s9610_s1 + $0xbb0] sm:$0xff] }
 0x1bc   :  { %2401 = vmatprep.mubr.f32.mxu1 %v306_v45  ;;  %2487 = vmatprep.subr.mxu0 %v5119_v0  ;;  %v402_v45 = vld [vmem:[%s9610_s1 + $0xbb8] sm:$0xff]  ;;  %v892_v37 = vld [vmem:[%s9609_s0 + $0x908] sm:$0xff] }
 0x1bd   :  { %2672 = vmatprep.subr.mxu1 %v5119_v0  ;;  %2488 = vmatpush1.msra.mxu0 %v864_v55 }
 0x1be   :  { %2673 = vmatpush1.msra.mxu1 %v896_v56  ;;  %2217 = vmatmul.mubr.f32.gmra.mxu0 %v303_v61  ;;  %v1513_v50 = vpop.f32.mrf.mxu0  ;;  %v399_v56 = vld [vmem:[%s9610_s1 + $0xba0] sm:$0xff] }
 0x1bf   :  { %2402 = vmatmul.mubr.f32.gmra.mxu1 %v305_v57  ;;  %v1698_v8 = vpop.f32.mrf.mxu1  ;;  %2221 = vmatprep.mubr.f32.mxu0 %v328_v6  ;;  %v1514_v35 = vadd.f32 %v1513_v50, %v6804_v15  ;;  %v862_v15 = vld [vmem:[%s9609_s0 + $0x818] sm:$0xff]  ;;  %v424_v6 = vld [vmem:[%s9610_s1 + $0xc68] sm:$0xff]  ;;  %v423_v50 = vld [vmem:[%s9610_s1 + $0xc60] sm:$0xff] }
 0x1c0   :  { %2406 = vmatprep.mubr.f32.mxu1 %v330_v3  ;;  %2489 = vmatprep.subr.mxu0 %v5119_v0  ;;  %v1515_v20 = vpop.f32.mrf.mxu0  ;;  %v426_v3 = vld [vmem:[%s9610_s1 + $0xc78] sm:$0xff] }
 0x1c1   :  { %2674 = vmatprep.subr.mxu1 %v5119_v0  ;;  %v1700_v17 = vpop.f32.mrf.mxu1  ;;  %2490 = vmatpush1.msra.mxu0 %v863_v13  ;;  %v7423_v27 = vadd.f32 %v1698_v8, %v1514_v35  ;;  %v425_v8 = vld [vmem:[%s9610_s1 + $0xc70] sm:$0xff]  ;;  %v890_v35 = vld [vmem:[%s9609_s0 + $0x8f8] sm:$0xff] }
 0x1c2   :  { %2675 = vmatpush1.msra.mxu1 %v895_v7  ;;  %2222 = vmatmul.mubr.f32.gmra.mxu0 %v327_v10  ;;  %v891_v7 = vld [vmem:[%s9609_s0 + $0x900] sm:$0xff] }
 0x1c3   :  { %2407 = vmatmul.mubr.f32.gmra.mxu1 %v329_v12  ;;  %2226 = vmatprep.mubr.f32.mxu0 %v352_v16  ;;  %v922_v16 = vld [vmem:[%s9609_s0 + $0x9f8] sm:$0xff] }
 0x1c4   :  { %2411 = vmatprep.mubr.f32.mxu1 %v354_v18  ;;  %2491 = vmatprep.subr.mxu0 %v5119_v0  ;;  %v1518_v48 = vpop.f32.mrf.mxu0 }
 0x1c5   :  { %2676 = vmatprep.subr.mxu1 %v5119_v0  ;;  %v1703_v26 = vpop.f32.mrf.mxu1  ;;  %2492 = vmatpush1.msra.mxu0 %v862_v15  ;;  %v1519_v49 = vadd.f32 %v1518_v48, %v6834_v32  ;;  %v377_v32 = vld [vmem:[%s9610_s1 + $0xaf0] sm:$0xff]  ;;  %v448_v15 = vld [vmem:[%s9610_s1 + $0xd28] sm:$0xff] }
 0x1c6   :  { %2677 = vmatpush1.msra.mxu1 %v894_v62  ;;  %2227 = vmatmul.mubr.f32.gmra.mxu0 %v351_v24  ;;  %v1520_v41 = vpop.f32.mrf.mxu0  ;;  %v450_v62 = vld [vmem:[%s9610_s1 + $0xd38] sm:$0xff] }
 0x1c7   :  { %2412 = vmatmul.mubr.f32.gmra.mxu1 %v353_v25  ;;  %v1705_v11 = vpop.f32.mrf.mxu1  ;;  %2231 = vmatprep.mubr.f32.mxu0 %v376_v28  ;;  %v7458_v44 = vadd.f32 %v1703_v26, %v1519_v49  ;;  %v921_v25 = vld [vmem:[%s9609_s0 + $0x9f0] sm:$0xff]  ;;  %v447_v28 = vld [vmem:[%s9610_s1 + $0xd20] sm:$0xff]  ;;  %v888_v49 = vld [vmem:[%s9609_s0 + $0x8e8] sm:$0xff] }
 0x1c8   :  { %2416 = vmatprep.mubr.f32.mxu1 %v378_v30  ;;  %2493 = vmatprep.subr.mxu0 %v5119_v0  ;;  %v449_v30 = vld [vmem:[%s9610_s1 + $0xd30] sm:$0xff] }
 0x1c9   :  { %2678 = vmatprep.subr.mxu1 %v5119_v0  ;;  %2494 = vmatpush1.msra.mxu0 %v861_v36  ;;  %v920_v36 = vld [vmem:[%s9609_s0 + $0x9e8] sm:$0xff] }
 0x1ca   :  { %2679 = vmatpush1.msra.mxu1 %v893_v39  ;;  %2232 = vmatmul.mubr.f32.gmra.mxu0 %v375_v43  ;;  %v1523_v53 = vpop.f32.mrf.mxu0  ;;  %v472_v43 = vld [vmem:[%s9610_s1 + $0xde8] sm:$0xff] }
 0x1cb   :  { %2417 = vmatmul.mubr.f32.gmra.mxu1 %v377_v32  ;;  %v1708_v55 = vpop.f32.mrf.mxu1  ;;  %2236 = vmatprep.mubr.f32.mxu0 %v400_v58  ;;  %v1524_v23 = vadd.f32 %v1523_v53, %v6868_v54  ;;  %v859_v54 = vld [vmem:[%s9609_s0 + $0x800] sm:$0xff]  ;;  %v474_v32 = vld [vmem:[%s9610_s1 + $0xdf8] sm:$0xff] }
 0x1cc   :  { %2421 = vmatprep.mubr.f32.mxu1 %v402_v45  ;;  %2495 = vmatprep.subr.mxu0 %v5119_v0  ;;  %v1525_v61 = vpop.f32.mrf.mxu0  ;;  %v919_v45 = vld [vmem:[%s9609_s0 + $0x9e0] sm:$0xff] }
 0x1cd   :  { %2680 = vmatprep.subr.mxu1 %v5119_v0  ;;  %v1710_v57 = vpop.f32.mrf.mxu1  ;;  %2496 = vmatpush1.msra.mxu0 %v860_v63  ;;  %v7489_v13 = vadd.f32 %v1708_v55, %v1524_v23  ;;  %v471_v63 = vld [vmem:[%s9610_s1 + $0xde0] sm:$0xff] }
 0x1ce   :  { %2681 = vmatpush1.msra.mxu1 %v892_v37  ;;  %2237 = vmatmul.mubr.f32.gmra.mxu0 %v399_v56  ;;  %v473_v37 = vld [vmem:[%s9610_s1 + $0xdf0] sm:$0xff]  ;;  %v886_v56 = vld [vmem:[%s9609_s0 + $0x8d8] sm:$0xff] }
 0x1cf   :  { %2422 = vmatmul.mubr.f32.gmra.mxu1 %v401_v59  ;;  %2497 = vmatprep.subr.mxu0 %v5119_v0  ;;  %v918_v59 = vld [vmem:[%s9609_s0 + $0x9d8] sm:$0xff] }
 0x1d0   :  { %2682 = vmatprep.subr.mxu1 %v5119_v0  ;;  %2241 = vmatprep.mubr.f32.mxu0 %v424_v6  ;;  %v1528_v10 = vpop.f32.mrf.mxu0  ;;  %v496_v6 = vld [vmem:[%s9610_s1 + $0xea8] sm:$0xff] }
 0x1d1   :  { %2426 = vmatprep.mubr.f32.mxu1 %v426_v3  ;;  %v1713_v12 = vpop.f32.mrf.mxu1  ;;  %2498 = vmatpush1.msra.mxu0 %v859_v54  ;;  %v1529_v18 = vadd.f32 %v1528_v10, %v6898_v9  ;;  %v889_v9 = vld [vmem:[%s9609_s0 + $0x8f0] sm:$0xff]  ;;  %v498_v3 = vld [vmem:[%s9610_s1 + $0xeb8] sm:$0xff] }
 0x1d2   :  { %2683 = vmatpush1.msra.mxu1 %v891_v7  ;;  %2242 = vmatmul.mubr.f32.gmra.mxu0 %v423_v50  ;;  %v1530_v20 = vpop.f32.mrf.mxu0  ;;  %v917_v7 = vld [vmem:[%s9609_s0 + $0x9d0] sm:$0xff]  ;;  %v495_v50 = vld [vmem:[%s9610_s1 + $0xea0] sm:$0xff] }
 0x1d3   :  { %2427 = vmatmul.mubr.f32.gmra.mxu1 %v425_v8  ;;  %v1715_v17 = vpop.f32.mrf.mxu1  ;;  %2499 = vmatprep.subr.mxu0 %v5119_v0  ;;  %v7520_v24 = vadd.f32 %v1713_v12, %v1529_v18  ;;  %v497_v8 = vld [vmem:[%s9610_s1 + $0xeb0] sm:$0xff] }
 0x1d4   :  { %2684 = vmatprep.subr.mxu1 %v5119_v0  ;;  %2500 = vmatpush2.msra.mxu0 %v890_v35  ;;  %v884_v35 = vld [vmem:[%s9609_s0 + $0x8c8] sm:$0xff] }
 0x1d5   :  { %2685 = vmatpush2.msra.mxu1 %v922_v16  ;;  %2501 = vmatprep.subr.mxu0 %v5119_v0  ;;  %v916_v16 = vld [vmem:[%s9609_s0 + $0x9c8] sm:$0xff] }
 0x1d6   :  { %2686 = vmatprep.subr.mxu1 %v5119_v0  ;;  %2246 = vmatprep.mubr.f32.mxu0 %v448_v15  ;;  %v1533_v48 = vpop.f32.mrf.mxu0  ;;  %v520_v15 = vld [vmem:[%s9610_s1 + $0xf68] sm:$0xff] }
 0x1d7   :  { %2431 = vmatprep.mubr.f32.mxu1 %v450_v62  ;;  %v1718_v26 = vpop.f32.mrf.mxu1  ;;  %2502 = vmatpush2.msra.mxu0 %v889_v9  ;;  %v1534_v39 = vadd.f32 %v1533_v48, %v6928_v29  ;;  %v887_v29 = vld [vmem:[%s9609_s0 + $0x8e0] sm:$0xff]  ;;  %v522_v62 = vld [vmem:[%s9610_s1 + $0xf78] sm:$0xff] }
 0x1d8   :  { %2687 = vmatpush2.msra.mxu1 %v921_v25  ;;  %2247 = vmatmul.mubr.f32.gmra.mxu0 %v447_v28  ;;  %v1535_v41 = vpop.f32.mrf.mxu0  ;;  %v915_v25 = vld [vmem:[%s9609_s0 + $0x9c0] sm:$0xff] }
 0x1d9   :  { %2432 = vmatmul.mubr.f32.gmra.mxu1 %v449_v30  ;;  %v1720_v11 = vpop.f32.mrf.mxu1  ;;  %2503 = vmatprep.subr.mxu0 %v5119_v0  ;;  %v7551_v58 = vadd.f32 %v1718_v26, %v1534_v39  ;;  %v519_v48 = vld [vmem:[%s9610_s1 + $0xf60] sm:$0xff]  ;;  %v521_v26 = vld [vmem:[%s9610_s1 + $0xf70] sm:$0xff]  ;;  %v882_v41 = vld [vmem:[%s9609_s0 + $0x8b8] sm:$0xff] }
 0x1da   :  { %2688 = vmatprep.subr.mxu1 %v5119_v0  ;;  %2504 = vmatpush2.msra.mxu0 %v888_v49  ;;  %v914_v11 = vld [vmem:[%s9609_s0 + $0x9b8] sm:$0xff] }
 0x1db   :  { %2689 = vmatpush2.msra.mxu1 %v920_v36  ;;  %2505 = vmatprep.subr.mxu0 %v5119_v0 }
 0x1dc   :  { %2690 = vmatprep.subr.mxu1 %v5119_v0  ;;  %2251 = vmatprep.mubr.f32.mxu0 %v472_v43  ;;  %v1538_v53 = vpop.f32.mrf.mxu0 }
 0x1dd   :  { %2436 = vmatprep.mubr.f32.mxu1 %v474_v32  ;;  %v1723_v55 = vpop.f32.mrf.mxu1  ;;  %2506 = vmatpush2.msra.mxu0 %v887_v29  ;;  %v1539_v23 = vadd.f32 %v1538_v53, %v6958_v47  ;;  %v885_v47 = vld [vmem:[%s9609_s0 + $0x8d0] sm:$0xff]  ;;  %v544_v29 = vld [vmem:[%s9610_s1 + $0x1028] sm:$0xff] }
 0x1de   :  { %2691 = vmatpush2.msra.mxu1 %v919_v45  ;;  %2252 = vmatmul.mubr.f32.gmra.mxu0 %v471_v63  ;;  %v1540_v61 = vpop.f32.mrf.mxu0  ;;  %v546_v45 = vld [vmem:[%s9610_s1 + $0x1038] sm:$0xff]  ;;  %v913_v53 = vld [vmem:[%s9609_s0 + $0x9b0] sm:$0xff] }
 0x1df   :  { %2437 = vmatmul.mubr.f32.gmra.mxu1 %v473_v37  ;;  %v1725_v57 = vpop.f32.mrf.mxu1  ;;  %2507 = vmatprep.subr.mxu0 %v5119_v0  ;;  %v7582_v54 = vadd.f32 %v1723_v55, %v1539_v23  ;;  %v881_v37 = vld [vmem:[%s9609_s0 + $0x8b0] sm:$0xff] }
 0x1e0   :  { %2692 = vmatprep.subr.mxu1 %v5119_v0  ;;  %2508 = vmatpush2.msra.mxu0 %v886_v56 }
 0x1e1   :  { %2693 = vmatpush2.msra.mxu1 %v918_v59  ;;  %2509 = vmatprep.subr.mxu0 %v5119_v0  ;;  %v545_v59 = vld [vmem:[%s9610_s1 + $0x1030] sm:$0xff] }
 0x1e2   :  { %2694 = vmatprep.subr.mxu1 %v5119_v0  ;;  %2256 = vmatprep.mubr.f32.mxu0 %v496_v6  ;;  %v1793_v10 = vpop.f32.mrf.mxu0  ;;  %v880_v6 = vld [vmem:[%s9609_s0 + $0x8a8] sm:$0xff] }
 0x1e3   :  { %2441 = vmatprep.mubr.f32.mxu1 %v498_v3  ;;  %v1978_v12 = vpop.f32.mrf.mxu1  ;;  %2510 = vmatpush2.msra.mxu0 %v885_v47  ;;  %v1794_v18 = vadd.f32 %v1793_v10, %v6997_v14  ;;  %v883_v14 = vld [vmem:[%s9609_s0 + $0x8c0] sm:$0xff]  ;;  %v912_v3 = vld [vmem:[%s9609_s0 + $0x9a8] sm:$0xff]  ;;  %v570_v10 = vld [vmem:[%s9610_s1 + $0x10f8] sm:$0xff] }
 0x1e4   :  { %2695 = vmatpush2.msra.mxu1 %v917_v7  ;;  %2257 = vmatmul.mubr.f32.gmra.mxu0 %v495_v50  ;;  %v1795_v20 = vpop.f32.mrf.mxu0 }
 0x1e5   :  { %2442 = vmatmul.mubr.f32.gmra.mxu1 %v497_v8  ;;  %v1980_v17 = vpop.f32.mrf.mxu1  ;;  %2511 = vmatprep.subr.mxu0 %v5119_v0  ;;  %v7613_v9 = vadd.f32 %v1978_v12, %v1794_v18  ;;  %v568_v8 = vld [vmem:[%s9610_s1 + $0x10e8] sm:$0xff]  ;;  %v567_v20 = vld [vmem:[%s9610_s1 + $0x10e0] sm:$0xff] }
 0x1e6   :  { %2696 = vmatprep.subr.mxu1 %v5119_v0  ;;  %2512 = vmatpush2.msra.mxu0 %v884_v35  ;;  %v1798_v28 = vpop.f32.mrf.mxu0  ;;  %v911_v35 = vld [vmem:[%s9609_s0 + $0x9a0] sm:$0xff]  ;;  %v569_v17 = vld [vmem:[%s9610_s1 + $0x10f0] sm:$0xff] }
 0x1e7   :  { %2697 = vmatpush2.msra.mxu1 %v916_v16  ;;  %v1983_v30 = vpop.f32.mrf.mxu1  ;;  %2513 = vmatprep.subr.mxu0 %v5119_v0  ;;  %v1799_v49 = vadd.f32 %v1798_v28, %v7020_v31  ;;  %v910_v28 = vld [vmem:[%s9609_s0 + $0x998] sm:$0xff] }
 0x1e8   :  { %2698 = vmatprep.subr.mxu1 %v5119_v0  ;;  %2261 = vmatprep.mubr.f32.mxu0 %v520_v15  ;;  %v1800_v36 = vpop.f32.mrf.mxu0 }
 0x1e9   :  { %2446 = vmatprep.mubr.f32.mxu1 %v522_v62  ;;  %v1985_v39 = vpop.f32.mrf.mxu1  ;;  %2514 = vmatpush2.msra.mxu0 %v883_v14  ;;  %v7636_v43 = vadd.f32 %v1983_v30, %v1799_v49  ;;  %v594_v49 = vld [vmem:[%s9610_s1 + $0x11b8] sm:$0xff] }
 0x1ea   :  { %2699 = vmatpush2.msra.mxu1 %v915_v25  ;;  %2262 = vmatmul.mubr.f32.gmra.mxu0 %v519_v48  ;;  %v1803_v32 = vpop.f32.mrf.mxu0  ;;  %v878_v25 = vld [vmem:[%s9609_s0 + $0x898] sm:$0xff]  ;;  %v877_v39 = vld [vmem:[%s9609_s0 + $0x890] sm:$0xff] }
 0x1eb   :  { %2447 = vmatmul.mubr.f32.gmra.mxu1 %v521_v26  ;;  %v1988_v31 = vpop.f32.mrf.mxu1  ;;  %2515 = vmatprep.subr.mxu0 %v5119_v0  ;;  %v1804_v63 = vadd.f32 %v1803_v32, %v7045_v46  ;;  %v543_v46 = vld [vmem:[%s9610_s1 + $0x1020] sm:$0xff]  ;;  %v592_v26 = vld [vmem:[%s9610_s1 + $0x11a8] sm:$0xff] }
 0x1ec   :  { %2700 = vmatprep.subr.mxu1 %v5119_v0  ;;  %2516 = vmatpush2.msra.mxu0 %v882_v41  ;;  %v1805_v55 = vpop.f32.mrf.mxu0  ;;  %v909_v41 = vld [vmem:[%s9609_s0 + $0x990] sm:$0xff] }
 0x1ed   :  { %2701 = vmatpush2.msra.mxu1 %v914_v11  ;;  %v1990_v56 = vpop.f32.mrf.mxu1  ;;  %2517 = vmatprep.subr.mxu0 %v5119_v0  ;;  %v7661_v23 = vadd.f32 %v1988_v31, %v1804_v63  ;;  %v593_v31 = vld [vmem:[%s9610_s1 + $0x11b0] sm:$0xff] }
 0x1ee   :  { %2702 = vmatprep.subr.mxu1 %v5119_v0  ;;  %2266 = vmatprep.mubr.f32.mxu0 %v544_v29  ;;  %v1808_v61 = vpop.f32.mrf.mxu0 }
 0x1ef   :  { %2451 = vmatprep.mubr.f32.mxu1 %v546_v45  ;;  %v1993_v57 = vpop.f32.mrf.mxu1  ;;  %2518 = vmatpush2.msra.mxu0 %v881_v37  ;;  %v1809_v47 = vadd.f32 %v1808_v61, %v7062_v2  ;;  %v879_v2 = vld [vmem:[%s9609_s0 + $0x8a0] sm:$0xff]  ;;  %v876_v37 = vld [vmem:[%s9609_s0 + $0x888] sm:$0xff] }
 0x1f0   :  { %2703 = vmatpush2.msra.mxu1 %v913_v53  ;;  %2267 = vmatmul.mubr.f32.gmra.mxu0 %v543_v46  ;;  %v1810_v7 = vpop.f32.mrf.mxu0  ;;  %v908_v53 = vld [vmem:[%s9609_s0 + $0x988] sm:$0xff] }
 0x1f1   :  { %2452 = vmatmul.mubr.f32.gmra.mxu1 %v545_v59  ;;  %v1995_v50 = vpop.f32.mrf.mxu1  ;;  %2519 = vmatprep.subr.mxu0 %v5119_v0  ;;  %v7678_v12 = vadd.f32 %v1993_v57, %v1809_v47  ;;  %v875_v59 = vld [vmem:[%s9609_s0 + $0x880] sm:$0xff]  ;;  %v44_v61 = vld [vmem:[%s9610_s1 + $0x88] sm:$0xff] }
 0x1f2   :  { %2704 = vmatprep.subr.mxu1 %v5119_v0  ;;  %2520 = vmatpush2.msra.mxu0 %v880_v6  ;;  %v1813_v16 = vpop.f32.mrf.mxu0  ;;  %v46_v6 = vld [vmem:[%s9610_s1 + $0x98] sm:$0xff]  ;;  %v43_v7 = vld [vmem:[%s9610_s1 + $0x80] sm:$0xff]  ;;  %v45_v50 = vld [vmem:[%s9610_s1 + $0x90] sm:$0xff] }
 0x1f3   :  { %2705 = vmatpush2.msra.mxu1 %v912_v3  ;;  %v1998_v18 = vpop.f32.mrf.mxu1  ;;  %2521 = vmatprep.subr.mxu0 %v5119_v0  ;;  %v1814_v15 = vadd.f32 %v1813_v16, %v7085_v19 }
 0x1f4   :  { %2706 = vmatprep.subr.mxu1 %v5119_v0  ;;  %2271 = vmatprep.mubr.f32.mxu0 %v568_v8  ;;  %v1815_v62 = vpop.f32.mrf.mxu0 }
 0x1f5   :  { %2456 = vmatprep.mubr.f32.mxu1 %v570_v10  ;;  %v2000_v14 = vpop.f32.mrf.mxu1  ;;  %2522 = vmatpush2.msra.mxu0 %v879_v2  ;;  %v7701_v30 = vadd.f32 %v1998_v18, %v1814_v15  ;;  %v68_v10 = vld [vmem:[%s9610_s1 + $0x148] sm:$0xff]  ;;  %v70_v2 = vld [vmem:[%s9610_s1 + $0x158] sm:$0xff]  ;;  %v67_v62 = vld [vmem:[%s9610_s1 + $0x140] sm:$0xff] }
 0x1f6   :  { %2707 = vmatpush2.msra.mxu1 %v911_v35  ;;  %2272 = vmatmul.mubr.f32.gmra.mxu0 %v567_v20  ;;  %v1818_v48 = vpop.f32.mrf.mxu0  ;;  %v970_v15 = vld [vmem:[%s9609_s0 + $0xb78] sm:$0xff]  ;;  %v69_v14 = vld [vmem:[%s9610_s1 + $0x150] sm:$0xff] }
 0x1f7   :  { %2457 = vmatmul.mubr.f32.gmra.mxu1 %v569_v17  ;;  %v2003_v19 = vpop.f32.mrf.mxu1  ;;  %2523 = vmatprep.subr.mxu0 %v5119_v0  ;;  %v1819_v36 = vadd.f32 %v1818_v48, %v7110_v34  ;;  %v591_v34 = vld [vmem:[%s9610_s1 + $0x11a0] sm:$0xff]  ;;  %v938_v17 = vld [vmem:[%s9609_s0 + $0xa78] sm:$0xff] }
 0x1f8   :  { %2708 = vmatprep.subr.mxu1 %v5119_v0  ;;  %2524 = vmatpush2.msra.mxu0 %v878_v25  ;;  %v1820_v11 = vpop.f32.mrf.mxu0  ;;  %v94_v48 = vld [vmem:[%s9610_s1 + $0x218] sm:$0xff] }
 0x1f9   :  { %2709 = vmatpush2.msra.mxu1 %v910_v28  ;;  %v2005_v32 = vpop.f32.mrf.mxu1  ;;  %2525 = vmatprep.subr.mxu0 %v5119_v0  ;;  %v7726_v29 = vadd.f32 %v2003_v19, %v1819_v36  ;;  %v92_v28 = vld [vmem:[%s9610_s1 + $0x208] sm:$0xff]  ;;  %v969_v36 = vld [vmem:[%s9609_s0 + $0xb70] sm:$0xff]  ;;  %v91_v11 = vld [vmem:[%s9610_s1 + $0x200] sm:$0xff] }
 0x1fa   :  { %2710 = vmatprep.subr.mxu1 %v5119_v0  ;;  %2276 = vmatprep.mubr.f32.mxu0 %v592_v26  ;;  %v1823_v45 = vpop.f32.mrf.mxu0  ;;  %v93_v32 = vld [vmem:[%s9610_s1 + $0x210] sm:$0xff] }
 0x1fb   :  { %2461 = vmatprep.mubr.f32.mxu1 %v594_v49  ;;  %v2008_v63 = vpop.f32.mrf.mxu1  ;;  %2526 = vmatpush2.msra.mxu0 %v877_v39  ;;  %v1824_v55 = vadd.f32 %v1823_v45, %v7127_v52  ;;  %v907_v52 = vld [vmem:[%s9609_s0 + $0x980] sm:$0xff]  ;;  %v118_v45 = vld [vmem:[%s9610_s1 + $0x2d8] sm:$0xff] }
 0x1fc   :  { %2711 = vmatpush2.msra.mxu1 %v909_v41  ;;  %2277 = vmatmul.mubr.f32.gmra.mxu0 %v591_v34  ;;  %v1825_v56 = vpop.f32.mrf.mxu0 }
 0x1fd   :  { %2462 = vmatmul.mubr.f32.gmra.mxu1 %v593_v31  ;;  %v2010_v46 = vpop.f32.mrf.mxu1  ;;  %2527 = vmatprep.subr.mxu0 %v5119_v0  ;;  %v7743_v57 = vadd.f32 %v2008_v63, %v1824_v55  ;;  %v116_v31 = vld [vmem:[%s9610_s1 + $0x2c8] sm:$0xff] }
 0x1fe   :  { %2712 = vmatprep.subr.mxu1 %v5119_v0  ;;  %2528 = vmatpush2.msra.mxu0 %v876_v37  ;;  %v1828_v3 = vpop.f32.mrf.mxu0  ;;  %v968_v55 = vld [vmem:[%s9609_s0 + $0xb68] sm:$0xff] }
 0x1ff   :  { %2713 = vmatpush2.msra.mxu1 %v908_v53  ;;  %v2013_v47 = vpop.f32.mrf.mxu1  ;;  %2529 = vmatprep.subr.mxu0 %v5119_v0  ;;  %v1829_v8 = vadd.f32 %v1828_v3, %v7150_v5  ;;  %v142_v3 = vld [vmem:[%s9610_s1 + $0x398] sm:$0xff] }
 0x200   :  { %2714 = vmatprep.subr.mxu1 %v5119_v0  ;;  %2530 = vmatpush2.msra.mxu0 %v875_v59  ;;  %v1830_v35 = vpop.f32.mrf.mxu0  ;;  %v115_v59 = vld [vmem:[%s9610_s1 + $0x2c0] sm:$0xff] }
 0x201   :  { %2531 = vmatprep.mubr.f32.mxu0 %v44_v61  ;;  %v2015_v16 = vpop.f32.mrf.mxu1  ;;  %2715 = vmatpush2.msra.mxu1 %v907_v52  ;;  %v7766_v18 = vadd.f32 %v2013_v47, %v1829_v8  ;;  %v117_v61 = vld [vmem:[%s9610_s1 + $0x2d0] sm:$0xff]  ;;  %v967_v8 = vld [vmem:[%s9609_s0 + $0xb60] sm:$0xff] }
 0x202   :  { %2716 = vmatprep.mubr.f32.mxu1 %v46_v6  ;;  %2532 = vmatmul.mubr.f32.vlgmr.msra.gmra.mxu0 %v43_v7  ;;  %v1833_v20 = vpop.f32.mrf.mxu0  ;;  %v140_v6 = vld [vmem:[%s9610_s1 + $0x388] sm:$0xff]  ;;  %v139_v35 = vld [vmem:[%s9610_s1 + $0x380] sm:$0xff]  ;;  %v141_v16 = vld [vmem:[%s9610_s1 + $0x390] sm:$0xff] }
 0x203   :  { %2717 = vmatmul.mubr.f32.vlgmr.msra.gmra.mxu1 %v45_v50  ;;  %v2018_v5 = vpop.f32.mrf.mxu1  ;;  %2536 = vmatprep.mubr.f32.mxu0 %v68_v10  ;;  %v1834_v25 = vadd.f32 %v1833_v20, %v7173_v22  ;;  %v937_v22 = vld [vmem:[%s9609_s0 + $0xa70] sm:$0xff] }
 0x204   :  { %2721 = vmatprep.mubr.f32.mxu1 %v70_v2  ;;  %2837 = vmatprep.subr.mxu0 %v5119_v0  ;;  %v1835_v19 = vpop.f32.mrf.mxu0 }
 0x205   :  { %3022 = vmatprep.subr.mxu1 %v5119_v0  ;;  %v2020_v26 = vpop.f32.mrf.mxu1  ;;  %v7789_v49 = vadd.f32 %v2018_v5, %v1834_v25  ;;  %2838 = vmatpush1.msra.mxu0 %v938_v17  ;;  %v164_v5 = vld [vmem:[%s9610_s1 + $0x448] sm:$0xff]  ;;  %v166_v17 = vld [vmem:[%s9610_s1 + $0x458] sm:$0xff]  ;;  %v163_v19 = vld [vmem:[%s9610_s1 + $0x440] sm:$0xff] }
 0x206   :  { %3023 = vmatpush1.msra.mxu1 %v970_v15  ;;  %2537 = vmatmul.mubr.f32.gmra.mxu0 %v67_v62  ;;  %v1838_v39 = vpop.f32.mrf.mxu0  ;;  %v966_v25 = vld [vmem:[%s9609_s0 + $0xb58] sm:$0xff]  ;;  %v165_v26 = vld [vmem:[%s9610_s1 + $0x450] sm:$0xff] }
 0x207   :  { %2722 = vmatmul.mubr.f32.gmra.mxu1 %v69_v14  ;;  %v2023_v41 = vpop.f32.mrf.mxu1  ;;  %2541 = vmatprep.mubr.f32.mxu0 %v92_v28  ;;  %v1839_v34 = vadd.f32 %v1838_v39, %v7196_v42  ;;  %v936_v42 = vld [vmem:[%s9609_s0 + $0xa68] sm:$0xff]  ;;  %v190_v39 = vld [vmem:[%s9610_s1 + $0x518] sm:$0xff] }
 0x208   :  { %2726 = vmatprep.mubr.f32.mxu1 %v94_v48  ;;  %2839 = vmatprep.subr.mxu0 %v5119_v0  ;;  %v1840_v63 = vpop.f32.mrf.mxu0 }
 0x209   :  { %3024 = vmatprep.subr.mxu1 %v5119_v0  ;;  %v2025_v37 = vpop.f32.mrf.mxu1  ;;  %2840 = vmatpush1.msra.mxu0 %v937_v22  ;;  %v7812_v53 = vadd.f32 %v2023_v41, %v1839_v34  ;;  %v965_v34 = vld [vmem:[%s9609_s0 + $0xb50] sm:$0xff]  ;;  %v187_v63 = vld [vmem:[%s9610_s1 + $0x500] sm:$0xff] }
 0x20a   :  { %3025 = vmatpush1.msra.mxu1 %v969_v36  ;;  %2542 = vmatmul.mubr.f32.gmra.mxu0 %v91_v11  ;;  %v1843_v56 = vpop.f32.mrf.mxu0  ;;  %v188_v36 = vld [vmem:[%s9610_s1 + $0x508] sm:$0xff]  ;;  %v189_v37 = vld [vmem:[%s9610_s1 + $0x510] sm:$0xff] }
 0x20b   :  { %2727 = vmatmul.mubr.f32.gmra.mxu1 %v93_v32  ;;  %v2028_v46 = vpop.f32.mrf.mxu1  ;;  %2546 = vmatprep.mubr.f32.mxu0 %v116_v31  ;;  %v1844_v52 = vadd.f32 %v1843_v56, %v7219_v60  ;;  %v935_v60 = vld [vmem:[%s9609_s0 + $0xa60] sm:$0xff]  ;;  %v214_v56 = vld [vmem:[%s9610_s1 + $0x5d8] sm:$0xff] }
 0x20c   :  { %2731 = vmatprep.mubr.f32.mxu1 %v118_v45  ;;  %2841 = vmatprep.subr.mxu0 %v5119_v0  ;;  %v1845_v47 = vpop.f32.mrf.mxu0 }
 0x20d   :  { %3026 = vmatprep.subr.mxu1 %v5119_v0  ;;  %v2030_v7 = vpop.f32.mrf.mxu1  ;;  %2842 = vmatpush1.msra.mxu0 %v936_v42  ;;  %v7835_v50 = vadd.f32 %v2028_v46, %v1844_v52  ;;  %v964_v52 = vld [vmem:[%s9609_s0 + $0xb48] sm:$0xff]  ;;  %v211_v47 = vld [vmem:[%s9610_s1 + $0x5c0] sm:$0xff] }
 0x20e   :  { %3027 = vmatpush1.msra.mxu1 %v968_v55  ;;  %2547 = vmatmul.mubr.f32.gmra.mxu0 %v115_v59  ;;  %v1848_v10 = vpop.f32.mrf.mxu0  ;;  %v212_v55 = vld [vmem:[%s9610_s1 + $0x5c8] sm:$0xff]  ;;  %v213_v7 = vld [vmem:[%s9610_s1 + $0x5d0] sm:$0xff] }
 0x20f   :  { %2732 = vmatmul.mubr.f32.gmra.mxu1 %v117_v61  ;;  %v2033_v2 = vpop.f32.mrf.mxu1  ;;  %2551 = vmatprep.mubr.f32.mxu0 %v140_v6  ;;  %v1849_v20 = vadd.f32 %v1848_v10, %v7242_v38  ;;  %v934_v38 = vld [vmem:[%s9609_s0 + $0xa58] sm:$0xff] }
 0x210   :  { %2736 = vmatprep.mubr.f32.mxu1 %v142_v3  ;;  %2843 = vmatprep.subr.mxu0 %v5119_v0  ;;  %v1850_v15 = vpop.f32.mrf.mxu0  ;;  %v238_v10 = vld [vmem:[%s9610_s1 + $0x698] sm:$0xff] }
 0x211   :  { %3028 = vmatprep.subr.mxu1 %v5119_v0  ;;  %v2035_v62 = vpop.f32.mrf.mxu1  ;;  %2844 = vmatpush1.msra.mxu0 %v935_v60  ;;  %v7858_v14 = vadd.f32 %v2033_v2, %v1849_v20  ;;  %v963_v20 = vld [vmem:[%s9609_s0 + $0xb40] sm:$0xff] }
 0x212   :  { %3029 = vmatpush1.msra.mxu1 %v967_v8  ;;  %2552 = vmatmul.mubr.f32.gmra.mxu0 %v139_v35  ;;  %v1853_v28 = vpop.f32.mrf.mxu0  ;;  %v236_v8 = vld [vmem:[%s9610_s1 + $0x688] sm:$0xff]  ;;  %v235_v15 = vld [vmem:[%s9610_s1 + $0x680] sm:$0xff]  ;;  %v237_v62 = vld [vmem:[%s9610_s1 + $0x690] sm:$0xff] }
 0x213   :  { %2737 = vmatmul.mubr.f32.gmra.mxu1 %v141_v16  ;;  %v2038_v48 = vpop.f32.mrf.mxu1  ;;  %2556 = vmatprep.mubr.f32.mxu0 %v164_v5  ;;  %v1854_v22 = vadd.f32 %v1853_v28, %v7265_v33  ;;  %v933_v33 = vld [vmem:[%s9609_s0 + $0xa50] sm:$0xff]  ;;  %v262_v28 = vld [vmem:[%s9610_s1 + $0x758] sm:$0xff] }
 0x214   :  { %2741 = vmatprep.mubr.f32.mxu1 %v166_v17  ;;  %2845 = vmatprep.subr.mxu0 %v5119_v0  ;;  %v1855_v41 = vpop.f32.mrf.mxu0 }
 0x215   :  { %3030 = vmatprep.subr.mxu1 %v5119_v0  ;;  %v2040_v11 = vpop.f32.mrf.mxu1  ;;  %2846 = vmatpush1.msra.mxu0 %v934_v38  ;;  %v7881_v32 = vadd.f32 %v2038_v48, %v1854_v22  ;;  %v962_v22 = vld [vmem:[%s9609_s0 + $0xb38] sm:$0xff]  ;;  %v259_v41 = vld [vmem:[%s9610_s1 + $0x740] sm:$0xff] }
 0x216   :  { %3031 = vmatpush1.msra.mxu1 %v966_v25  ;;  %2557 = vmatmul.mubr.f32.gmra.mxu0 %v163_v19  ;;  %v1858_v31 = vpop.f32.mrf.mxu0  ;;  %v260_v25 = vld [vmem:[%s9610_s1 + $0x748] sm:$0xff]  ;;  %v261_v11 = vld [vmem:[%s9610_s1 + $0x750] sm:$0xff] }
 0x217   :  { %2742 = vmatmul.mubr.f32.gmra.mxu1 %v165_v26  ;;  %v2043_v45 = vpop.f32.mrf.mxu1  ;;  %2561 = vmatprep.mubr.f32.mxu0 %v188_v36  ;;  %v1859_v42 = vadd.f32 %v1858_v31, %v7288_v51  ;;  %v932_v51 = vld [vmem:[%s9609_s0 + $0xa48] sm:$0xff]  ;;  %v286_v31 = vld [vmem:[%s9610_s1 + $0x818] sm:$0xff] }
 0x218   :  { %2746 = vmatprep.mubr.f32.mxu1 %v190_v39  ;;  %2847 = vmatprep.subr.mxu0 %v5119_v0  ;;  %v1860_v46 = vpop.f32.mrf.mxu0 }
 0x219   :  { %3032 = vmatprep.subr.mxu1 %v5119_v0  ;;  %v2045_v59 = vpop.f32.mrf.mxu1  ;;  %2848 = vmatpush1.msra.mxu0 %v933_v33  ;;  %v7904_v61 = vadd.f32 %v2043_v45, %v1859_v42  ;;  %v961_v42 = vld [vmem:[%s9609_s0 + $0xb30] sm:$0xff]  ;;  %v308_v46 = vld [vmem:[%s9610_s1 + $0x8c8] sm:$0xff] }
 0x21a   :  { %3033 = vmatpush1.msra.mxu1 %v965_v34  ;;  %2562 = vmatmul.mubr.f32.gmra.mxu0 %v187_v63  ;;  %v1863_v6 = vpop.f32.mrf.mxu0  ;;  %v284_v34 = vld [vmem:[%s9610_s1 + $0x808] sm:$0xff]  ;;  %v310_v59 = vld [vmem:[%s9610_s1 + $0x8d8] sm:$0xff] }
 0x21b   :  { %2747 = vmatmul.mubr.f32.gmra.mxu1 %v189_v37  ;;  %v2048_v3 = vpop.f32.mrf.mxu1  ;;  %2566 = vmatprep.mubr.f32.mxu0 %v212_v55  ;;  %v1864_v60 = vadd.f32 %v1863_v6, %v7311_v4  ;;  %v931_v4 = vld [vmem:[%s9609_s0 + $0xa40] sm:$0xff] }
 0x21c   :  { %2751 = vmatprep.mubr.f32.mxu1 %v214_v56  ;;  %2849 = vmatprep.subr.mxu0 %v5119_v0  ;;  %v1865_v2 = vpop.f32.mrf.mxu0  ;;  %v283_v55 = vld [vmem:[%s9610_s1 + $0x800] sm:$0xff]  ;;  %v285_v56 = vld [vmem:[%s9610_s1 + $0x810] sm:$0xff] }
 0x21d   :  { %3034 = vmatprep.subr.mxu1 %v5119_v0  ;;  %v2050_v35 = vpop.f32.mrf.mxu1  ;;  %2850 = vmatpush1.msra.mxu0 %v932_v51  ;;  %v7927_v16 = vadd.f32 %v2048_v3, %v1864_v60  ;;  %v928_v3 = vld [vmem:[%s9609_s0 + $0xa28] sm:$0xff] }
 0x21e   :  { %3035 = vmatpush1.msra.mxu1 %v964_v52  ;;  %2567 = vmatmul.mubr.f32.gmra.mxu0 %v211_v47  ;;  %v1868_v5 = vpop.f32.mrf.mxu0  ;;  %v960_v47 = vld [vmem:[%s9609_s0 + $0xb28] sm:$0xff]  ;;  %v334_v35 = vld [vmem:[%s9610_s1 + $0x998] sm:$0xff] }
 0x21f   :  { %2752 = vmatmul.mubr.f32.gmra.mxu1 %v213_v7  ;;  %v2053_v17 = vpop.f32.mrf.mxu1  ;;  %2571 = vmatprep.mubr.f32.mxu0 %v236_v8  ;;  %v1869_v38 = vadd.f32 %v1868_v5, %v7334_v21  ;;  %v930_v21 = vld [vmem:[%s9609_s0 + $0xa38] sm:$0xff]  ;;  %v307_v8 = vld [vmem:[%s9610_s1 + $0x8c0] sm:$0xff]  ;;  %v332_v2 = vld [vmem:[%s9610_s1 + $0x988] sm:$0xff] }
 0x220   :  { %2756 = vmatprep.mubr.f32.mxu1 %v238_v10  ;;  %2851 = vmatprep.subr.mxu0 %v5119_v0  ;;  %v1870_v48 = vpop.f32.mrf.mxu0 }
 0x221   :  { %3036 = vmatprep.subr.mxu1 %v5119_v0  ;;  %v2055_v19 = vpop.f32.mrf.mxu1  ;;  %2852 = vmatpush1.msra.mxu0 %v931_v4  ;;  %v7950_v26 = vadd.f32 %v2053_v17, %v1869_v38  ;;  %v927_v4 = vld [vmem:[%s9609_s0 + $0xa20] sm:$0xff] }
 0x222   :  { %3037 = vmatpush1.msra.mxu1 %v963_v20  ;;  %2572 = vmatmul.mubr.f32.gmra.mxu0 %v235_v15  ;;  %v1873_v36 = vpop.f32.mrf.mxu0  ;;  %v959_v20 = vld [vmem:[%s9609_s0 + $0xb20] sm:$0xff] }
 0x223   :  { %2757 = vmatmul.mubr.f32.gmra.mxu1 %v237_v62  ;;  %v2058_v39 = vpop.f32.mrf.mxu1  ;;  %2576 = vmatprep.mubr.f32.mxu0 %v260_v25  ;;  %v1874_v33 = vadd.f32 %v1873_v36, %v7357_v40  ;;  %v929_v40 = vld [vmem:[%s9609_s0 + $0xa30] sm:$0xff]  ;;  %v331_v15 = vld [vmem:[%s9610_s1 + $0x980] sm:$0xff]  ;;  %v356_v25 = vld [vmem:[%s9610_s1 + $0xa48] sm:$0xff] }
 0x224   :  { %2761 = vmatprep.mubr.f32.mxu1 %v262_v28  ;;  %2853 = vmatprep.subr.mxu0 %v5119_v0  ;;  %v1875_v45 = vpop.f32.mrf.mxu0  ;;  %v333_v62 = vld [vmem:[%s9610_s1 + $0x990] sm:$0xff]  ;;  %v358_v28 = vld [vmem:[%s9610_s1 + $0xa58] sm:$0xff]  ;;  %v355_v36 = vld [vmem:[%s9610_s1 + $0xa40] sm:$0xff] }
 0x225   :  { %3038 = vmatprep.subr.mxu1 %v5119_v0  ;;  %v2060_v63 = vpop.f32.mrf.mxu1  ;;  %2854 = vmatpush1.msra.mxu0 %v930_v21  ;;  %v7973_v37 = vadd.f32 %v2058_v39, %v1874_v33  ;;  %v357_v39 = vld [vmem:[%s9610_s1 + $0xa50] sm:$0xff] }
 0x226   :  { %3039 = vmatpush1.msra.mxu1 %v962_v22  ;;  %2577 = vmatmul.mubr.f32.gmra.mxu0 %v259_v41  ;;  %v958_v22 = vld [vmem:[%s9609_s0 + $0xb18] sm:$0xff]  ;;  %v380_v41 = vld [vmem:[%s9610_s1 + $0xb08] sm:$0xff]  ;;  %v925_v45 = vld [vmem:[%s9609_s0 + $0xa10] sm:$0xff] }
 0x227   :  { %2762 = vmatmul.mubr.f32.gmra.mxu1 %v261_v11  ;;  %2581 = vmatprep.mubr.f32.mxu0 %v284_v34  ;;  %v382_v11 = vld [vmem:[%s9610_s1 + $0xb18] sm:$0xff]  ;;  %v957_v63 = vld [vmem:[%s9609_s0 + $0xb10] sm:$0xff] }
 0x228   :  { %2766 = vmatprep.mubr.f32.mxu1 %v286_v31  ;;  %2855 = vmatprep.subr.mxu0 %v5119_v0  ;;  %v1878_v51 = vpop.f32.mrf.mxu0 }
 0x229   :  { %3040 = vmatprep.subr.mxu1 %v5119_v0  ;;  %v2063_v52 = vpop.f32.mrf.mxu1  ;;  %2856 = vmatpush1.msra.mxu0 %v929_v40  ;;  %v1879_v6 = vadd.f32 %v1878_v51, %v7392_v1  ;;  %v309_v1 = vld [vmem:[%s9610_s1 + $0x8d0] sm:$0xff]  ;;  %v924_v51 = vld [vmem:[%s9609_s0 + $0xa08] sm:$0xff] }
 0x22a   :  { %3041 = vmatpush1.msra.mxu1 %v961_v42  ;;  %2582 = vmatmul.mubr.f32.gmra.mxu0 %v283_v55  ;;  %v1880_v7 = vpop.f32.mrf.mxu0  ;;  %v379_v55 = vld [vmem:[%s9610_s1 + $0xb00] sm:$0xff] }
 0x22b   :  { %2767 = vmatmul.mubr.f32.gmra.mxu1 %v285_v56  ;;  %v2065_v60 = vpop.f32.mrf.mxu1  ;;  %2586 = vmatprep.mubr.f32.mxu0 %v308_v46  ;;  %v8008_v10 = vadd.f32 %v2063_v52, %v1879_v6  ;;  %v404_v46 = vld [vmem:[%s9610_s1 + $0xbc8] sm:$0xff]  ;;  %v405_v7 = vld [vmem:[%s9610_s1 + $0xbd0] sm:$0xff] }
 0x22c   :  { %2771 = vmatprep.mubr.f32.mxu1 %v310_v59  ;;  %2857 = vmatprep.subr.mxu0 %v5119_v0  ;;  %v406_v59 = vld [vmem:[%s9610_s1 + $0xbd8] sm:$0xff]  ;;  %v956_v52 = vld [vmem:[%s9609_s0 + $0xb08] sm:$0xff] }
 0x22d   :  { %3042 = vmatprep.subr.mxu1 %v5119_v0  ;;  %2858 = vmatpush1.msra.mxu0 %v928_v3 }
 0x22e   :  { %3043 = vmatpush1.msra.mxu1 %v960_v47  ;;  %2587 = vmatmul.mubr.f32.gmra.mxu0 %v307_v8  ;;  %v1883_v5 = vpop.f32.mrf.mxu0  ;;  %v403_v47 = vld [vmem:[%s9610_s1 + $0xbc0] sm:$0xff] }
 0x22f   :  { %2772 = vmatmul.mubr.f32.gmra.mxu1 %v309_v1  ;;  %v2068_v17 = vpop.f32.mrf.mxu1  ;;  %2591 = vmatprep.mubr.f32.mxu0 %v332_v2  ;;  %v1884_v38 = vadd.f32 %v1883_v5, %v7423_v27  ;;  %v926_v27 = vld [vmem:[%s9609_s0 + $0xa18] sm:$0xff]  ;;  %v428_v2 = vld [vmem:[%s9610_s1 + $0xc88] sm:$0xff]  ;;  %v427_v5 = vld [vmem:[%s9610_s1 + $0xc80] sm:$0xff] }
 0x230   :  { %2776 = vmatprep.mubr.f32.mxu1 %v334_v35  ;;  %2859 = vmatprep.subr.mxu0 %v5119_v0  ;;  %v1885_v48 = vpop.f32.mrf.mxu0  ;;  %v430_v35 = vld [vmem:[%s9610_s1 + $0xc98] sm:$0xff] }
 0x231   :  { %3044 = vmatprep.subr.mxu1 %v5119_v0  ;;  %v2070_v19 = vpop.f32.mrf.mxu1  ;;  %2860 = vmatpush1.msra.mxu0 %v927_v4  ;;  %v8039_v21 = vadd.f32 %v2068_v17, %v1884_v38  ;;  %v429_v17 = vld [vmem:[%s9610_s1 + $0xc90] sm:$0xff]  ;;  %v954_v38 = vld [vmem:[%s9609_s0 + $0xaf8] sm:$0xff] }
 0x232   :  { %3045 = vmatpush1.msra.mxu1 %v959_v20  ;;  %2592 = vmatmul.mubr.f32.gmra.mxu0 %v331_v15  ;;  %v955_v20 = vld [vmem:[%s9609_s0 + $0xb00] sm:$0xff] }
 0x233   :  { %2777 = vmatmul.mubr.f32.gmra.mxu1 %v333_v62  ;;  %2596 = vmatprep.mubr.f32.mxu0 %v356_v25  ;;  %v986_v25 = vld [vmem:[%s9609_s0 + $0xbf8] sm:$0xff] }
 0x234   :  { %2781 = vmatprep.mubr.f32.mxu1 %v358_v28  ;;  %2861 = vmatprep.subr.mxu0 %v5119_v0  ;;  %v1888_v33 = vpop.f32.mrf.mxu0 }
 0x235   :  { %3046 = vmatprep.subr.mxu1 %v5119_v0  ;;  %v2073_v34 = vpop.f32.mrf.mxu1  ;;  %2862 = vmatpush1.msra.mxu0 %v926_v27  ;;  %v1889_v31 = vadd.f32 %v1888_v33, %v7458_v44  ;;  %v381_v44 = vld [vmem:[%s9610_s1 + $0xb10] sm:$0xff]  ;;  %v452_v27 = vld [vmem:[%s9610_s1 + $0xd48] sm:$0xff] }
 0x236   :  { %3047 = vmatpush1.msra.mxu1 %v958_v22  ;;  %2597 = vmatmul.mubr.f32.gmra.mxu0 %v355_v36  ;;  %v1890_v40 = vpop.f32.mrf.mxu0  ;;  %v454_v22 = vld [vmem:[%s9610_s1 + $0xd58] sm:$0xff] }
 0x237   :  { %2782 = vmatmul.mubr.f32.gmra.mxu1 %v357_v39  ;;  %v2075_v42 = vpop.f32.mrf.mxu1  ;;  %2601 = vmatprep.mubr.f32.mxu0 %v380_v41  ;;  %v8074_v56 = vadd.f32 %v2073_v34, %v1889_v31  ;;  %v985_v39 = vld [vmem:[%s9609_s0 + $0xbf0] sm:$0xff]  ;;  %v451_v41 = vld [vmem:[%s9610_s1 + $0xd40] sm:$0xff]  ;;  %v952_v31 = vld [vmem:[%s9609_s0 + $0xae8] sm:$0xff] }
 0x238   :  { %2786 = vmatprep.mubr.f32.mxu1 %v382_v11  ;;  %2863 = vmatprep.subr.mxu0 %v5119_v0  ;;  %v453_v11 = vld [vmem:[%s9610_s1 + $0xd50] sm:$0xff] }
 0x239   :  { %3048 = vmatprep.subr.mxu1 %v5119_v0  ;;  %2864 = vmatpush1.msra.mxu0 %v925_v45  ;;  %v984_v45 = vld [vmem:[%s9609_s0 + $0xbe8] sm:$0xff] }
 0x23a   :  { %3049 = vmatpush1.msra.mxu1 %v957_v63  ;;  %2602 = vmatmul.mubr.f32.gmra.mxu0 %v379_v55  ;;  %v1893_v6 = vpop.f32.mrf.mxu0  ;;  %v476_v55 = vld [vmem:[%s9610_s1 + $0xe08] sm:$0xff] }
 0x23b   :  { %2787 = vmatmul.mubr.f32.gmra.mxu1 %v381_v44  ;;  %v2078_v3 = vpop.f32.mrf.mxu1  ;;  %2606 = vmatprep.mubr.f32.mxu0 %v404_v46  ;;  %v1894_v60 = vadd.f32 %v1893_v6, %v7489_v13  ;;  %v923_v13 = vld [vmem:[%s9609_s0 + $0xa00] sm:$0xff]  ;;  %v478_v44 = vld [vmem:[%s9610_s1 + $0xe18] sm:$0xff] }
 0x23c   :  { %2791 = vmatprep.mubr.f32.mxu1 %v406_v59  ;;  %2865 = vmatprep.subr.mxu0 %v5119_v0  ;;  %v1895_v8 = vpop.f32.mrf.mxu0  ;;  %v983_v59 = vld [vmem:[%s9609_s0 + $0xbe0] sm:$0xff] }
 0x23d   :  { %3050 = vmatprep.subr.mxu1 %v5119_v0  ;;  %v2080_v1 = vpop.f32.mrf.mxu1  ;;  %2866 = vmatpush1.msra.mxu0 %v924_v51  ;;  %v8105_v4 = vadd.f32 %v2078_v3, %v1894_v60  ;;  %v475_v51 = vld [vmem:[%s9610_s1 + $0xe00] sm:$0xff] }
 0x23e   :  { %3051 = vmatpush1.msra.mxu1 %v956_v52  ;;  %2607 = vmatmul.mubr.f32.gmra.mxu0 %v403_v47  ;;  %v477_v52 = vld [vmem:[%s9610_s1 + $0xe10] sm:$0xff]  ;;  %v950_v47 = vld [vmem:[%s9609_s0 + $0xad8] sm:$0xff] }
 0x23f   :  { %2792 = vmatmul.mubr.f32.gmra.mxu1 %v405_v7  ;;  %2867 = vmatprep.subr.mxu0 %v5119_v0  ;;  %v982_v7 = vld [vmem:[%s9609_s0 + $0xbd8] sm:$0xff] }
 0x240   :  { %3052 = vmatprep.subr.mxu1 %v5119_v0  ;;  %2611 = vmatprep.mubr.f32.mxu0 %v428_v2  ;;  %v1898_v15 = vpop.f32.mrf.mxu0  ;;  %v500_v2 = vld [vmem:[%s9610_s1 + $0xec8] sm:$0xff] }
 0x241   :  { %2796 = vmatprep.mubr.f32.mxu1 %v430_v35  ;;  %v2083_v62 = vpop.f32.mrf.mxu1  ;;  %2868 = vmatpush1.msra.mxu0 %v923_v13  ;;  %v1899_v28 = vadd.f32 %v1898_v15, %v7520_v24  ;;  %v953_v24 = vld [vmem:[%s9609_s0 + $0xaf0] sm:$0xff]  ;;  %v502_v35 = vld [vmem:[%s9610_s1 + $0xed8] sm:$0xff] }
 0x242   :  { %3053 = vmatpush1.msra.mxu1 %v955_v20  ;;  %2612 = vmatmul.mubr.f32.gmra.mxu0 %v427_v5  ;;  %v1900_v48 = vpop.f32.mrf.mxu0  ;;  %v981_v20 = vld [vmem:[%s9609_s0 + $0xbd0] sm:$0xff]  ;;  %v499_v5 = vld [vmem:[%s9610_s1 + $0xec0] sm:$0xff] }
 0x243   :  { %2797 = vmatmul.mubr.f32.gmra.mxu1 %v429_v17  ;;  %v2085_v19 = vpop.f32.mrf.mxu1  ;;  %2869 = vmatprep.subr.mxu0 %v5119_v0  ;;  %v8136_v36 = vadd.f32 %v2083_v62, %v1899_v28  ;;  %v501_v17 = vld [vmem:[%s9610_s1 + $0xed0] sm:$0xff] }
 0x244   :  { %3054 = vmatprep.subr.mxu1 %v5119_v0  ;;  %2870 = vmatpush2.msra.mxu0 %v954_v38  ;;  %v948_v38 = vld [vmem:[%s9609_s0 + $0xac8] sm:$0xff] }
 0x245   :  { %3055 = vmatpush2.msra.mxu1 %v986_v25  ;;  %2871 = vmatprep.subr.mxu0 %v5119_v0  ;;  %v980_v25 = vld [vmem:[%s9609_s0 + $0xbc8] sm:$0xff] }
 0x246   :  { %3056 = vmatprep.subr.mxu1 %v5119_v0  ;;  %2616 = vmatprep.mubr.f32.mxu0 %v452_v27  ;;  %v1903_v33 = vpop.f32.mrf.mxu0  ;;  %v524_v27 = vld [vmem:[%s9610_s1 + $0xf88] sm:$0xff] }
 0x247   :  { %2801 = vmatprep.mubr.f32.mxu1 %v454_v22  ;;  %v2088_v34 = vpop.f32.mrf.mxu1  ;;  %2872 = vmatpush2.msra.mxu0 %v953_v24  ;;  %v1904_v63 = vadd.f32 %v1903_v33, %v7551_v58  ;;  %v951_v58 = vld [vmem:[%s9609_s0 + $0xae0] sm:$0xff]  ;;  %v526_v22 = vld [vmem:[%s9610_s1 + $0xf98] sm:$0xff] }
 0x248   :  { %3057 = vmatpush2.msra.mxu1 %v985_v39  ;;  %2617 = vmatmul.mubr.f32.gmra.mxu0 %v451_v41  ;;  %v1905_v40 = vpop.f32.mrf.mxu0  ;;  %v979_v39 = vld [vmem:[%s9609_s0 + $0xbc0] sm:$0xff] }
 0x249   :  { %2802 = vmatmul.mubr.f32.gmra.mxu1 %v453_v11  ;;  %v2090_v42 = vpop.f32.mrf.mxu1  ;;  %2873 = vmatprep.subr.mxu0 %v5119_v0  ;;  %v8167_v46 = vadd.f32 %v2088_v34, %v1904_v63  ;;  %v523_v33 = vld [vmem:[%s9610_s1 + $0xf80] sm:$0xff]  ;;  %v525_v34 = vld [vmem:[%s9610_s1 + $0xf90] sm:$0xff]  ;;  %v946_v40 = vld [vmem:[%s9609_s0 + $0xab8] sm:$0xff] }
 0x24a   :  { %3058 = vmatprep.subr.mxu1 %v5119_v0  ;;  %2874 = vmatpush2.msra.mxu0 %v952_v31  ;;  %v978_v42 = vld [vmem:[%s9609_s0 + $0xbb8] sm:$0xff] }
 0x24b   :  { %3059 = vmatpush2.msra.mxu1 %v984_v45  ;;  %2875 = vmatprep.subr.mxu0 %v5119_v0 }
 0x24c   :  { %3060 = vmatprep.subr.mxu1 %v5119_v0  ;;  %2621 = vmatprep.mubr.f32.mxu0 %v476_v55  ;;  %v1908_v6 = vpop.f32.mrf.mxu0 }
 0x24d   :  { %2806 = vmatprep.mubr.f32.mxu1 %v478_v44  ;;  %v2093_v3 = vpop.f32.mrf.mxu1  ;;  %2876 = vmatpush2.msra.mxu0 %v951_v58  ;;  %v1909_v60 = vadd.f32 %v1908_v6, %v7582_v54  ;;  %v949_v54 = vld [vmem:[%s9609_s0 + $0xad0] sm:$0xff]  ;;  %v548_v58 = vld [vmem:[%s9610_s1 + $0x1048] sm:$0xff] }
 0x24e   :  { %3061 = vmatpush2.msra.mxu1 %v983_v59  ;;  %2622 = vmatmul.mubr.f32.gmra.mxu0 %v475_v51  ;;  %v1910_v8 = vpop.f32.mrf.mxu0  ;;  %v550_v59 = vld [vmem:[%s9610_s1 + $0x1058] sm:$0xff]  ;;  %v977_v6 = vld [vmem:[%s9609_s0 + $0xbb0] sm:$0xff] }
 0x24f   :  { %2807 = vmatmul.mubr.f32.gmra.mxu1 %v477_v52  ;;  %v2095_v1 = vpop.f32.mrf.mxu1  ;;  %2877 = vmatprep.subr.mxu0 %v5119_v0  ;;  %v8198_v13 = vadd.f32 %v2093_v3, %v1909_v60  ;;  %v945_v52 = vld [vmem:[%s9609_s0 + $0xab0] sm:$0xff] }
 0x250   :  { %3062 = vmatprep.subr.mxu1 %v5119_v0  ;;  %2878 = vmatpush2.msra.mxu0 %v950_v47 }
 0x251   :  { %3063 = vmatpush2.msra.mxu1 %v982_v7  ;;  %2879 = vmatprep.subr.mxu0 %v5119_v0  ;;  %v549_v7 = vld [vmem:[%s9610_s1 + $0x1050] sm:$0xff] }
 0x252   :  { %3064 = vmatprep.subr.mxu1 %v5119_v0  ;;  %2626 = vmatprep.mubr.f32.mxu0 %v500_v2  ;;  %v2163_v15 = vpop.f32.mrf.mxu0  ;;  %v944_v2 = vld [vmem:[%s9609_s0 + $0xaa8] sm:$0xff] }
 0x253   :  { %2811 = vmatprep.mubr.f32.mxu1 %v502_v35  ;;  %v2348_v62 = vpop.f32.mrf.mxu1  ;;  %2880 = vmatpush2.msra.mxu0 %v949_v54  ;;  %v2164_v28 = vadd.f32 %v2163_v15, %v7613_v9  ;;  %v947_v9 = vld [vmem:[%s9609_s0 + $0xac0] sm:$0xff]  ;;  %v976_v35 = vld [vmem:[%s9609_s0 + $0xba8] sm:$0xff]  ;;  %v574_v15 = vld [vmem:[%s9610_s1 + $0x1118] sm:$0xff] }
 0x254   :  { %3065 = vmatpush2.msra.mxu1 %v981_v20  ;;  %2627 = vmatmul.mubr.f32.gmra.mxu0 %v499_v5  ;;  %v2165_v48 = vpop.f32.mrf.mxu0 }
 0x255   :  { %2812 = vmatmul.mubr.f32.gmra.mxu1 %v501_v17  ;;  %v2350_v19 = vpop.f32.mrf.mxu1  ;;  %2881 = vmatprep.subr.mxu0 %v5119_v0  ;;  %v8229_v24 = vadd.f32 %v2348_v62, %v2164_v28  ;;  %v572_v17 = vld [vmem:[%s9610_s1 + $0x1108] sm:$0xff]  ;;  %v571_v48 = vld [vmem:[%s9610_s1 + $0x1100] sm:$0xff] }
 0x256   :  { %3066 = vmatprep.subr.mxu1 %v5119_v0  ;;  %2882 = vmatpush2.msra.mxu0 %v948_v38  ;;  %v2168_v41 = vpop.f32.mrf.mxu0  ;;  %v975_v38 = vld [vmem:[%s9609_s0 + $0xba0] sm:$0xff]  ;;  %v573_v19 = vld [vmem:[%s9610_s1 + $0x1110] sm:$0xff] }
 0x257   :  { %3067 = vmatpush2.msra.mxu1 %v980_v25  ;;  %v2353_v11 = vpop.f32.mrf.mxu1  ;;  %2883 = vmatprep.subr.mxu0 %v5119_v0  ;;  %v2169_v31 = vadd.f32 %v2168_v41, %v7636_v43  ;;  %v974_v41 = vld [vmem:[%s9609_s0 + $0xb98] sm:$0xff] }
 0x258   :  { %3068 = vmatprep.subr.mxu1 %v5119_v0  ;;  %2631 = vmatprep.mubr.f32.mxu0 %v524_v27  ;;  %v2170_v45 = vpop.f32.mrf.mxu0 }
 0x259   :  { %2816 = vmatprep.mubr.f32.mxu1 %v526_v22  ;;  %v2355_v63 = vpop.f32.mrf.mxu1  ;;  %2884 = vmatpush2.msra.mxu0 %v947_v9  ;;  %v8252_v55 = vadd.f32 %v2353_v11, %v2169_v31  ;;  %v598_v31 = vld [vmem:[%s9610_s1 + $0x11d8] sm:$0xff] }
 0x25a   :  { %3069 = vmatpush2.msra.mxu1 %v979_v39  ;;  %2632 = vmatmul.mubr.f32.gmra.mxu0 %v523_v33  ;;  %v2173_v44 = vpop.f32.mrf.mxu0  ;;  %v942_v39 = vld [vmem:[%s9609_s0 + $0xa98] sm:$0xff]  ;;  %v941_v63 = vld [vmem:[%s9609_s0 + $0xa90] sm:$0xff] }
 0x25b   :  { %2817 = vmatmul.mubr.f32.gmra.mxu1 %v525_v34  ;;  %v2358_v43 = vpop.f32.mrf.mxu1  ;;  %2885 = vmatprep.subr.mxu0 %v5119_v0  ;;  %v2174_v51 = vadd.f32 %v2173_v44, %v7661_v23  ;;  %v547_v23 = vld [vmem:[%s9610_s1 + $0x1040] sm:$0xff]  ;;  %v596_v34 = vld [vmem:[%s9610_s1 + $0x11c8] sm:$0xff] }
 0x25c   :  { %3070 = vmatprep.subr.mxu1 %v5119_v0  ;;  %2886 = vmatpush2.msra.mxu0 %v946_v40  ;;  %v2175_v3 = vpop.f32.mrf.mxu0  ;;  %v973_v40 = vld [vmem:[%s9609_s0 + $0xb90] sm:$0xff] }
 0x25d   :  { %3071 = vmatpush2.msra.mxu1 %v978_v42  ;;  %v2360_v47 = vpop.f32.mrf.mxu1  ;;  %2887 = vmatprep.subr.mxu0 %v5119_v0  ;;  %v8277_v60 = vadd.f32 %v2358_v43, %v2174_v51  ;;  %v597_v43 = vld [vmem:[%s9610_s1 + $0x11d0] sm:$0xff] }
 0x25e   :  { %3072 = vmatprep.subr.mxu1 %v5119_v0  ;;  %2636 = vmatprep.mubr.f32.mxu0 %v548_v58  ;;  %v2178_v8 = vpop.f32.mrf.mxu0 }
 0x25f   :  { %2821 = vmatprep.mubr.f32.mxu1 %v550_v59  ;;  %v2363_v1 = vpop.f32.mrf.mxu1  ;;  %2888 = vmatpush2.msra.mxu0 %v945_v52  ;;  %v2179_v54 = vadd.f32 %v2178_v8, %v7678_v12  ;;  %v943_v12 = vld [vmem:[%s9609_s0 + $0xaa0] sm:$0xff]  ;;  %v940_v52 = vld [vmem:[%s9609_s0 + $0xa88] sm:$0xff] }
 0x260   :  { %3073 = vmatpush2.msra.mxu1 %v977_v6  ;;  %2637 = vmatmul.mubr.f32.gmra.mxu0 %v547_v23  ;;  %v2180_v20 = vpop.f32.mrf.mxu0  ;;  %v972_v6 = vld [vmem:[%s9609_s0 + $0xb88] sm:$0xff] }
 0x261   :  { %2822 = vmatmul.mubr.f32.gmra.mxu1 %v549_v7  ;;  %v2365_v5 = vpop.f32.mrf.mxu1  ;;  %2889 = vmatprep.subr.mxu0 %v5119_v0  ;;  %v8294_v62 = vadd.f32 %v2363_v1, %v2179_v54  ;;  %v939_v7 = vld [vmem:[%s9609_s0 + $0xa80] sm:$0xff]  ;;  %v48_v8 = vld [vmem:[%s9610_s1 + $0xa8] sm:$0xff] }
 0x262   :  { %3074 = vmatprep.subr.mxu1 %v5119_v0  ;;  %2890 = vmatpush2.msra.mxu0 %v944_v2  ;;  %v2183_v25 = vpop.f32.mrf.mxu0  ;;  %v50_v2 = vld [vmem:[%s9610_s1 + $0xb8] sm:$0xff]  ;;  %v47_v20 = vld [vmem:[%s9610_s1 + $0xa0] sm:$0xff]  ;;  %v49_v5 = vld [vmem:[%s9610_s1 + $0xb0] sm:$0xff] }
 0x263   :  { %3075 = vmatpush2.msra.mxu1 %v976_v35  ;;  %v2368_v28 = vpop.f32.mrf.mxu1  ;;  %2891 = vmatprep.subr.mxu0 %v5119_v0  ;;  %v2184_v27 = vadd.f32 %v2183_v25, %v7701_v30 }
 0x264   :  { %3076 = vmatprep.subr.mxu1 %v5119_v0  ;;  %2641 = vmatprep.mubr.f32.mxu0 %v572_v17  ;;  %v2185_v22 = vpop.f32.mrf.mxu0 }
 0x265   :  { %2826 = vmatprep.mubr.f32.mxu1 %v574_v15  ;;  %v2370_v9 = vpop.f32.mrf.mxu1  ;;  %2892 = vmatpush2.msra.mxu0 %v943_v12  ;;  %v8317_v11 = vadd.f32 %v2368_v28, %v2184_v27  ;;  %v72_v15 = vld [vmem:[%s9610_s1 + $0x168] sm:$0xff]  ;;  %v74_v12 = vld [vmem:[%s9610_s1 + $0x178] sm:$0xff]  ;;  %v73_v27 = vld [vmem:[%s9610_s1 + $0x170] sm:$0xff] }
 0x266   :  { %3077 = vmatpush2.msra.mxu1 %v975_v38  ;;  %2642 = vmatmul.mubr.f32.gmra.mxu0 %v571_v48  ;;  %v2188_v33 = vpop.f32.mrf.mxu0  ;;  %v96_v9 = vld [vmem:[%s9610_s1 + $0x228] sm:$0xff] }
 0x267   :  { %2827 = vmatmul.mubr.f32.gmra.mxu1 %v573_v19  ;;  %v2373_v30 = vpop.f32.mrf.mxu1  ;;  %2893 = vmatprep.subr.mxu0 %v5119_v0  ;;  %v2189_v45 = vadd.f32 %v2188_v33, %v7726_v29  ;;  %v595_v29 = vld [vmem:[%s9610_s1 + $0x11c0] sm:$0xff] }
 0x268   :  { %3078 = vmatprep.subr.mxu1 %v5119_v0  ;;  %2894 = vmatpush2.msra.mxu0 %v942_v39  ;;  %v2190_v42 = vpop.f32.mrf.mxu0  ;;  %v71_v19 = vld [vmem:[%s9610_s1 + $0x160] sm:$0xff]  ;;  %v98_v39 = vld [vmem:[%s9610_s1 + $0x238] sm:$0xff] }
 0x269   :  { %3079 = vmatpush2.msra.mxu1 %v974_v41  ;;  %v2375_v44 = vpop.f32.mrf.mxu1  ;;  %2895 = vmatprep.subr.mxu0 %v5119_v0  ;;  %v8342_v58 = vadd.f32 %v2373_v30, %v2189_v45  ;;  %v97_v45 = vld [vmem:[%s9610_s1 + $0x230] sm:$0xff]  ;;  %v122_v42 = vld [vmem:[%s9610_s1 + $0x2f8] sm:$0xff] }
 0x26a   :  { %3080 = vmatprep.subr.mxu1 %v5119_v0  ;;  %2646 = vmatprep.mubr.f32.mxu0 %v596_v34  ;;  %v2193_v59 = vpop.f32.mrf.mxu0 }
 0x26b   :  { %2831 = vmatprep.mubr.f32.mxu1 %v598_v31  ;;  %v2378_v51 = vpop.f32.mrf.mxu1  ;;  %2896 = vmatpush2.msra.mxu0 %v941_v63  ;;  %v2194_v3 = vadd.f32 %v2193_v59, %v7743_v57  ;;  %v971_v57 = vld [vmem:[%s9609_s0 + $0xb80] sm:$0xff] }
 0x26c   :  { %3081 = vmatpush2.msra.mxu1 %v973_v40  ;;  %2647 = vmatmul.mubr.f32.gmra.mxu0 %v595_v29  ;;  %v2195_v47 = vpop.f32.mrf.mxu0  ;;  %v120_v40 = vld [vmem:[%s9610_s1 + $0x2e8] sm:$0xff] }
 0x26d   :  { %2832 = vmatmul.mubr.f32.gmra.mxu1 %v597_v43  ;;  %v2380_v23 = vpop.f32.mrf.mxu1  ;;  %2897 = vmatprep.subr.mxu0 %v5119_v0  ;;  %v8359_v1 = vadd.f32 %v2378_v51, %v2194_v3  ;;  %v144_v3 = vld [vmem:[%s9610_s1 + $0x3a8] sm:$0xff]  ;;  %v146_v47 = vld [vmem:[%s9610_s1 + $0x3b8] sm:$0xff] }
 0x26e   :  { %3082 = vmatprep.subr.mxu1 %v5119_v0  ;;  %2898 = vmatpush2.msra.mxu0 %v940_v52  ;;  %v2198_v35 = vpop.f32.mrf.mxu0  ;;  %v121_v52 = vld [vmem:[%s9610_s1 + $0x2f0] sm:$0xff] }
 0x26f   :  { %3083 = vmatpush2.msra.mxu1 %v972_v6  ;;  %v2383_v54 = vpop.f32.mrf.mxu1  ;;  %2899 = vmatprep.subr.mxu0 %v5119_v0  ;;  %v2199_v17 = vadd.f32 %v2198_v35, %v7766_v18  ;;  %v145_v35 = vld [vmem:[%s9610_s1 + $0x3b0] sm:$0xff] }
 0x270   :  { %3084 = vmatprep.subr.mxu1 %v5119_v0  ;;  %2900 = vmatpush2.msra.mxu0 %v939_v7  ;;  %v2200_v38 = vpop.f32.mrf.mxu0 }
 0x271   :  { %2901 = vmatprep.mubr.f32.mxu0 %v48_v8  ;;  %v2385_v25 = vpop.f32.mrf.mxu1  ;;  %3085 = vmatpush2.msra.mxu1 %v971_v57  ;;  %v8382_v28 = vadd.f32 %v2383_v54, %v2199_v17 }
 0x272   :  { %3086 = vmatprep.mubr.f32.mxu1 %v50_v2  ;;  %2902 = vmatmul.mubr.f32.vlgmr.msra.gmra.mxu0 %v47_v20  ;;  %v2203_v48 = vpop.f32.mrf.mxu0  ;;  %v168_v20 = vld [vmem:[%s9610_s1 + $0x468] sm:$0xff] }
 0x273   :  { %3087 = vmatmul.mubr.f32.vlgmr.msra.gmra.mxu1 %v49_v5  ;;  %v2388_v18 = vpop.f32.mrf.mxu1  ;;  %2906 = vmatprep.mubr.f32.mxu0 %v72_v15  ;;  %v2204_v22 = vadd.f32 %v2203_v48, %v7789_v49  ;;  %v95_v49 = vld [vmem:[%s9610_s1 + $0x220] sm:$0xff]  ;;  %v170_v5 = vld [vmem:[%s9610_s1 + $0x478] sm:$0xff]  ;;  %v169_v48 = vld [vmem:[%s9610_s1 + $0x470] sm:$0xff] }
 0x274   :  { %3091 = vmatprep.mubr.f32.mxu1 %v74_v12  ;;  %v2205_v41 = vpop.f32.mrf.mxu0  ;;  %3698 = vmatprep.subr.mxu1 %v5119_v0 }
 0x275   :  { %v2390_v33 = vpop.f32.mrf.mxu1  ;;  %v8398_v30 = vadd.f32 %v2388_v18, %v2204_v22 }
 0x276   :  { %2907 = vmatmul.mubr.f32.gmra.mxu0 %v71_v19  ;;  %v2208_v34 = vpop.f32.mrf.mxu0  ;;  %v192_v19 = vld [vmem:[%s9610_s1 + $0x528] sm:$0xff] }
 0x277   :  { %3092 = vmatmul.mubr.f32.gmra.mxu1 %v73_v27  ;;  %v2393_v31 = vpop.f32.mrf.mxu1  ;;  %2911 = vmatprep.mubr.f32.mxu0 %v96_v9  ;;  %v2209_v63 = vadd.f32 %v2208_v34, %v7812_v53  ;;  %v119_v53 = vld [vmem:[%s9610_s1 + $0x2e0] sm:$0xff]  ;;  %v194_v27 = vld [vmem:[%s9610_s1 + $0x538] sm:$0xff]  ;;  %v193_v34 = vld [vmem:[%s9610_s1 + $0x530] sm:$0xff] }
 0x278   :  { %3096 = vmatprep.mubr.f32.mxu1 %v98_v39  ;;  %v2210_v44 = vpop.f32.mrf.mxu0 }
 0x279   :  { %v2395_v29 = vpop.f32.mrf.mxu1  ;;  %v8413_v43 = vadd.f32 %v2393_v31, %v2209_v63 }
 0x27a   :  { %2912 = vmatmul.mubr.f32.gmra.mxu0 %v95_v49  ;;  %v2213_v59 = vpop.f32.mrf.mxu0  ;;  %v216_v49 = vld [vmem:[%s9610_s1 + $0x5e8] sm:$0xff] }
 0x27b   :  { %3097 = vmatmul.mubr.f32.gmra.mxu1 %v97_v45  ;;  %v2398_v51 = vpop.f32.mrf.mxu1  ;;  %2916 = vmatprep.mubr.f32.mxu0 %v120_v40  ;;  %v2214_v6 = vadd.f32 %v2213_v59, %v7835_v50  ;;  %v143_v50 = vld [vmem:[%s9610_s1 + $0x3a0] sm:$0xff]  ;;  %v218_v45 = vld [vmem:[%s9610_s1 + $0x5f8] sm:$0xff]  ;;  %v217_v59 = vld [vmem:[%s9610_s1 + $0x5f0] sm:$0xff] }
 0x27c   :  { %3101 = vmatprep.mubr.f32.mxu1 %v122_v42  ;;  %v2215_v23 = vpop.f32.mrf.mxu0 }
 0x27d   :  { %v2400_v7 = vpop.f32.mrf.mxu1  ;;  %v8428_v8 = vadd.f32 %v2398_v51, %v2214_v6 }
 0x27e   :  { %2917 = vmatmul.mubr.f32.gmra.mxu0 %v119_v53  ;;  %v2218_v57 = vpop.f32.mrf.mxu0  ;;  %v240_v53 = vld [vmem:[%s9610_s1 + $0x6a8] sm:$0xff] }
 0x27f   :  { %3102 = vmatmul.mubr.f32.gmra.mxu1 %v121_v52  ;;  %v2403_v2 = vpop.f32.mrf.mxu1  ;;  %2921 = vmatprep.mubr.f32.mxu0 %v144_v3  ;;  %v2219_v54 = vadd.f32 %v2218_v57, %v7858_v14  ;;  %v167_v14 = vld [vmem:[%s9610_s1 + $0x460] sm:$0xff]  ;;  %v242_v52 = vld [vmem:[%s9610_s1 + $0x6b8] sm:$0xff]  ;;  %v241_v57 = vld [vmem:[%s9610_s1 + $0x6b0] sm:$0xff] }
 0x280   :  { %3106 = vmatprep.mubr.f32.mxu1 %v146_v47  ;;  %v2220_v17 = vpop.f32.mrf.mxu0 }
 0x281   :  { %v2405_v15 = vpop.f32.mrf.mxu1  ;;  %v8443_v12 = vadd.f32 %v2403_v2, %v2219_v54 }
 0x282   :  { %2922 = vmatmul.mubr.f32.gmra.mxu0 %v143_v50  ;;  %v2223_v38 = vpop.f32.mrf.mxu0  ;;  %v264_v50 = vld [vmem:[%s9610_s1 + $0x768] sm:$0xff] }
 0x283   :  { %3107 = vmatmul.mubr.f32.gmra.mxu1 %v145_v35  ;;  %v2408_v25 = vpop.f32.mrf.mxu1  ;;  %2926 = vmatprep.mubr.f32.mxu0 %v168_v20  ;;  %v2224_v18 = vadd.f32 %v2223_v38, %v7881_v32  ;;  %v191_v32 = vld [vmem:[%s9610_s1 + $0x520] sm:$0xff]  ;;  %v266_v35 = vld [vmem:[%s9610_s1 + $0x778] sm:$0xff]  ;;  %v265_v38 = vld [vmem:[%s9610_s1 + $0x770] sm:$0xff] }
 0x284   :  { %3111 = vmatprep.mubr.f32.mxu1 %v170_v5  ;;  %v2225_v22 = vpop.f32.mrf.mxu0 }
 0x285   :  { %v2410_v9 = vpop.f32.mrf.mxu1  ;;  %v8458_v39 = vadd.f32 %v2408_v25, %v2224_v18  ;;  %v289_v22 = vld [vmem:[%s9610_s1 + $0x830] sm:$0xff] }
 0x286   :  { %2927 = vmatmul.mubr.f32.gmra.mxu0 %v167_v14  ;;  %v2228_v41 = vpop.f32.mrf.mxu0  ;;  %v288_v14 = vld [vmem:[%s9610_s1 + $0x828] sm:$0xff] }
 0x287   :  { %3112 = vmatmul.mubr.f32.gmra.mxu1 %v169_v48  ;;  %v2413_v33 = vpop.f32.mrf.mxu1  ;;  %2931 = vmatprep.mubr.f32.mxu0 %v192_v19  ;;  %v2229_v31 = vadd.f32 %v2228_v41, %v7904_v61  ;;  %v215_v61 = vld [vmem:[%s9610_s1 + $0x5e0] sm:$0xff]  ;;  %v290_v48 = vld [vmem:[%s9610_s1 + $0x838] sm:$0xff]  ;;  %v312_v9 = vld [vmem:[%s9610_s1 + $0x8e8] sm:$0xff] }
 0x288   :  { %3116 = vmatprep.mubr.f32.mxu1 %v194_v27  ;;  %v2230_v63 = vpop.f32.mrf.mxu0  ;;  %v314_v41 = vld [vmem:[%s9610_s1 + $0x8f8] sm:$0xff] }
 0x289   :  { %v2415_v40 = vpop.f32.mrf.mxu1  ;;  %v8473_v42 = vadd.f32 %v2413_v33, %v2229_v31  ;;  %v313_v63 = vld [vmem:[%s9610_s1 + $0x8f0] sm:$0xff] }
 0x28a   :  { %2932 = vmatmul.mubr.f32.gmra.mxu0 %v191_v32  ;;  %v2233_v44 = vpop.f32.mrf.mxu0 }
 0x28b   :  { %3117 = vmatmul.mubr.f32.gmra.mxu1 %v193_v34  ;;  %v2418_v29 = vpop.f32.mrf.mxu1  ;;  %2936 = vmatprep.mubr.f32.mxu0 %v216_v49  ;;  %v2234_v51 = vadd.f32 %v2233_v44, %v7927_v16  ;;  %v239_v16 = vld [vmem:[%s9610_s1 + $0x6a0] sm:$0xff]  ;;  %v338_v44 = vld [vmem:[%s9610_s1 + $0x9b8] sm:$0xff] }
 0x28c   :  { %3121 = vmatprep.mubr.f32.mxu1 %v218_v45  ;;  %v2235_v6 = vpop.f32.mrf.mxu0  ;;  %v311_v45 = vld [vmem:[%s9610_s1 + $0x8e0] sm:$0xff] }
 0x28d   :  { %v2420_v3 = vpop.f32.mrf.mxu1  ;;  %v8488_v47 = vadd.f32 %v2418_v29, %v2234_v51  ;;  %v337_v51 = vld [vmem:[%s9610_s1 + $0x9b0] sm:$0xff]  ;;  %v362_v6 = vld [vmem:[%s9610_s1 + $0xa78] sm:$0xff] }
 0x28e   :  { %2937 = vmatmul.mubr.f32.gmra.mxu0 %v215_v61  ;;  %v2238_v23 = vpop.f32.mrf.mxu0 }
 0x28f   :  { %3122 = vmatmul.mubr.f32.gmra.mxu1 %v217_v59  ;;  %v2423_v7 = vpop.f32.mrf.mxu1  ;;  %2941 = vmatprep.mubr.f32.mxu0 %v240_v53  ;;  %v2239_v2 = vadd.f32 %v2238_v23, %v7950_v26  ;;  %v263_v26 = vld [vmem:[%s9610_s1 + $0x760] sm:$0xff] }
 0x290   :  { %3126 = vmatprep.mubr.f32.mxu1 %v242_v52  ;;  %v2240_v54 = vpop.f32.mrf.mxu0  ;;  %v335_v59 = vld [vmem:[%s9610_s1 + $0x9a0] sm:$0xff]  ;;  %v360_v52 = vld [vmem:[%s9610_s1 + $0xa68] sm:$0xff] }
 0x291   :  { %v2425_v20 = vpop.f32.mrf.mxu1  ;;  %v8503_v5 = vadd.f32 %v2423_v7, %v2239_v2  ;;  %v386_v2 = vld [vmem:[%s9610_s1 + $0xb38] sm:$0xff] }
 0x292   :  { %2942 = vmatmul.mubr.f32.gmra.mxu0 %v239_v16  ;;  %v2243_v17 = vpop.f32.mrf.mxu0  ;;  %v361_v16 = vld [vmem:[%s9610_s1 + $0xa70] sm:$0xff] }
 0x293   :  { %3127 = vmatmul.mubr.f32.gmra.mxu1 %v241_v57  ;;  %v2428_v15 = vpop.f32.mrf.mxu1  ;;  %2946 = vmatprep.mubr.f32.mxu0 %v264_v50  ;;  %v2244_v25 = vadd.f32 %v2243_v17, %v7973_v37  ;;  %v287_v37 = vld [vmem:[%s9610_s1 + $0x820] sm:$0xff]  ;;  %v384_v57 = vld [vmem:[%s9610_s1 + $0xb28] sm:$0xff] }
 0x294   :  { %3131 = vmatprep.mubr.f32.mxu1 %v266_v35  ;;  %v2245_v18 = vpop.f32.mrf.mxu0 }
 0x295   :  { %v2430_v19 = vpop.f32.mrf.mxu1  ;;  %v8518_v27 = vadd.f32 %v2428_v15, %v2244_v25  ;;  %v383_v15 = vld [vmem:[%s9610_s1 + $0xb20] sm:$0xff]  ;;  %v410_v25 = vld [vmem:[%s9610_s1 + $0xbf8] sm:$0xff] }
 0x296   :  { %2947 = vmatmul.mubr.f32.gmra.mxu0 %v263_v26  ;;  %v385_v26 = vld [vmem:[%s9610_s1 + $0xb30] sm:$0xff]  ;;  %v3214_v18 = vld [vmem:[%s9611_s2 + $0x38] sm:$0xff]  ;;  %v407_v19 = vld [vmem:[%s9610_s1 + $0xbe0] sm:$0xff] }
 0x297   :  { %3132 = vmatmul.mubr.f32.gmra.mxu1 %v265_v38  ;;  %2951 = vmatprep.mubr.f32.mxu0 %v288_v14 }
 0x298   :  { %3136 = vmatprep.mubr.f32.mxu1 %v290_v48  ;;  %v2248_v33 = vpop.f32.mrf.mxu0  ;;  %4964 = vmatprep.subr.mxu0 %v3214_v18 }
 0x299   :  { %v2433_v32 = vpop.f32.mrf.mxu1  ;;  %v2249_v34 = vadd.f32 %v2248_v33, %v8008_v10  ;;  %v336_v10 = vld [vmem:[%s9610_s1 + $0x9a8] sm:$0xff]  ;;  %4965 = vmatpush3.msra.mxu0 %v3214_v18 }
 0x29a   :  { %2952 = vmatmul.mubr.f32.gmra.mxu0 %v287_v37  ;;  %v2250_v31 = vpop.f32.mrf.mxu0  ;;  %v409_v37 = vld [vmem:[%s9610_s1 + $0xbf0] sm:$0xff] }
 0x29b   :  { %3137 = vmatmul.mubr.f32.gmra.mxu1 %v289_v22  ;;  %v2435_v49 = vpop.f32.mrf.mxu1  ;;  %2956 = vmatprep.mubr.f32.mxu0 %v312_v9  ;;  %v8539_v40 = vadd.f32 %v2433_v32, %v2249_v34  ;;  %v432_v9 = vld [vmem:[%s9610_s1 + $0xca8] sm:$0xff]  ;;  %v3213_v31 = vld [vmem:[%s9611_s2 + $0x30] sm:$0xff] }
 0x29c   :  { %3141 = vmatprep.mubr.f32.mxu1 %v314_v41  ;;  %v434_v41 = vld [vmem:[%s9610_s1 + $0xcb8] sm:$0xff]  ;;  %v433_v49 = vld [vmem:[%s9610_s1 + $0xcb0] sm:$0xff]  ;;  %4966 = vmatprep.subr.mxu0 %v3213_v31 }
 0x29d   :  { %4967 = vmatpush3.msra.mxu0 %v3213_v31  ;;  %v554_v31 = vld [vmem:[%s9610_s1 + $0x1078] sm:$0xff] }
 0x29e   :  { %2957 = vmatmul.mubr.f32.gmra.mxu0 %v311_v45  ;;  %v2253_v29 = vpop.f32.mrf.mxu0  ;;  %v456_v45 = vld [vmem:[%s9610_s1 + $0xd68] sm:$0xff] }
 0x29f   :  { %3142 = vmatmul.mubr.f32.gmra.mxu1 %v313_v63  ;;  %v2438_v61 = vpop.f32.mrf.mxu1  ;;  %2961 = vmatprep.mubr.f32.mxu0 %v336_v10  ;;  %v2254_v53 = vadd.f32 %v2253_v29, %v8039_v21  ;;  %v359_v21 = vld [vmem:[%s9610_s1 + $0xa60] sm:$0xff]  ;;  %v458_v63 = vld [vmem:[%s9610_s1 + $0xd78] sm:$0xff] }
 0x2a0   :  { %3146 = vmatprep.mubr.f32.mxu1 %v338_v44  ;;  %v2255_v3 = vpop.f32.mrf.mxu0 }
 0x2a1   :  { %v2440_v23 = vpop.f32.mrf.mxu1  ;;  %v8560_v7 = vadd.f32 %v2438_v61, %v2254_v53  ;;  %v3212_v61 = vld [vmem:[%s9611_s2 + $0x28] sm:$0xff]  ;;  %v455_v53 = vld [vmem:[%s9610_s1 + $0xd60] sm:$0xff]  ;;  %v482_v3 = vld [vmem:[%s9610_s1 + $0xe38] sm:$0xff] }
 0x2a2   :  { %2962 = vmatmul.mubr.f32.gmra.mxu0 %v335_v59  ;;  %4968 = vmatprep.subr.mxu0 %v3212_v61  ;;  %v3211_v23 = vld [vmem:[%s9611_s2 + $0x20] sm:$0xff] }
 0x2a3   :  { %3147 = vmatmul.mubr.f32.gmra.mxu1 %v337_v51  ;;  %2966 = vmatprep.mubr.f32.mxu0 %v360_v52  ;;  %v457_v52 = vld [vmem:[%s9610_s1 + $0xd70] sm:$0xff] }
 0x2a4   :  { %3151 = vmatprep.mubr.f32.mxu1 %v362_v6  ;;  %v2258_v50 = vpop.f32.mrf.mxu0  ;;  %v480_v6 = vld [vmem:[%s9610_s1 + $0xe28] sm:$0xff]  ;;  %4969 = vmatpush3.msra.mxu0 %v3212_v61  ;;  %v578_v61 = vld [vmem:[%s9610_s1 + $0x1138] sm:$0xff] }
 0x2a5   :  { %v2443_v35 = vpop.f32.mrf.mxu1  ;;  %v2259_v54 = vadd.f32 %v2258_v50, %v8074_v56  ;;  %v408_v56 = vld [vmem:[%s9610_s1 + $0xbe8] sm:$0xff]  ;;  %4970 = vmatprep.subr.mxu0 %v3211_v23 }
 0x2a6   :  { %2967 = vmatmul.mubr.f32.gmra.mxu0 %v359_v21  ;;  %v2260_v20 = vpop.f32.mrf.mxu0 }
 0x2a7   :  { %3152 = vmatmul.mubr.f32.gmra.mxu1 %v361_v16  ;;  %v2445_v17 = vpop.f32.mrf.mxu1  ;;  %2971 = vmatprep.mubr.f32.mxu0 %v384_v57  ;;  %v8581_v38 = vadd.f32 %v2443_v35, %v2259_v54  ;;  %v479_v57 = vld [vmem:[%s9610_s1 + $0xe20] sm:$0xff]  ;;  %v504_v35 = vld [vmem:[%s9610_s1 + $0xee8] sm:$0xff]  ;;  %v506_v54 = vld [vmem:[%s9610_s1 + $0xef8] sm:$0xff] }
 0x2a8   :  { %3156 = vmatprep.mubr.f32.mxu1 %v386_v2  ;;  %v481_v2 = vld [vmem:[%s9610_s1 + $0xe30] sm:$0xff]  ;;  %4971 = vmatpush3.msra.mxu0 %v3211_v23 }
 0x2a9   :  { %v577_v23 = vld [vmem:[%s9610_s1 + $0x1130] sm:$0xff] }
 0x2aa   :  { %2972 = vmatmul.mubr.f32.gmra.mxu0 %v383_v15  ;;  %v2263_v14 = vpop.f32.mrf.mxu0 }
 0x2ab   :  { %3157 = vmatmul.mubr.f32.gmra.mxu1 %v385_v26  ;;  %v2448_v48 = vpop.f32.mrf.mxu1  ;;  %2976 = vmatprep.mubr.f32.mxu0 %v408_v56  ;;  %v2264_v22 = vadd.f32 %v2263_v14, %v8105_v4  ;;  %v431_v4 = vld [vmem:[%s9610_s1 + $0xca0] sm:$0xff]  ;;  %v3210_v26 = vld [vmem:[%s9611_s2 + $0x18] sm:$0xff]  ;;  %v505_v56 = vld [vmem:[%s9610_s1 + $0xef0] sm:$0xff] }
 0x2ac   :  { %3161 = vmatprep.mubr.f32.mxu1 %v410_v25  ;;  %v2265_v33 = vpop.f32.mrf.mxu0  ;;  %v528_v25 = vld [vmem:[%s9610_s1 + $0xfa8] sm:$0xff]  ;;  %v530_v14 = vld [vmem:[%s9610_s1 + $0xfb8] sm:$0xff]  ;;  %4972 = vmatprep.subr.mxu0 %v3210_v26 }
 0x2ad   :  { %v2450_v32 = vpop.f32.mrf.mxu1  ;;  %v8605_v34 = vadd.f32 %v2448_v48, %v2264_v22  ;;  %4973 = vmatpush3.msra.mxu0 %v3210_v26  ;;  %v529_v33 = vld [vmem:[%s9610_s1 + $0xfb0] sm:$0xff] }
 0x2ae   :  { %2977 = vmatmul.mubr.f32.gmra.mxu0 %v407_v19  ;;  %v552_v32 = vld [vmem:[%s9610_s1 + $0x1068] sm:$0xff] }
 0x2af   :  { %3162 = vmatmul.mubr.f32.gmra.mxu1 %v409_v37  ;;  %2981 = vmatprep.mubr.f32.mxu0 %v432_v9  ;;  %v3209_v37 = vld [vmem:[%s9611_s2 + $0x10] sm:$0xff] }
 0x2b0   :  { %3166 = vmatprep.mubr.f32.mxu1 %v434_v41  ;;  %v2268_v10 = vpop.f32.mrf.mxu0  ;;  %v527_v41 = vld [vmem:[%s9610_s1 + $0xfa0] sm:$0xff]  ;;  %4974 = vmatprep.subr.mxu0 %v3209_v37 }
 0x2b1   :  { %v2453_v44 = vpop.f32.mrf.mxu1  ;;  %v2269_v29 = vadd.f32 %v2268_v10, %v8136_v36  ;;  %4975 = vmatpush3.msra.mxu0 %v3209_v37  ;;  %v553_v10 = vld [vmem:[%s9610_s1 + $0x1070] sm:$0xff] }
 0x2b2   :  { %2982 = vmatmul.mubr.f32.gmra.mxu0 %v431_v4  ;;  %v2270_v59 = vpop.f32.mrf.mxu0  ;;  %v3208_v4 = vld [vmem:[%s9611_s2 + $0x8] sm:$0xff] }
 0x2b3   :  { %3167 = vmatmul.mubr.f32.gmra.mxu1 %v433_v49  ;;  %v2455_v51 = vpop.f32.mrf.mxu1  ;;  %2986 = vmatprep.mubr.f32.mxu0 %v456_v45  ;;  %v8632_v36 = vadd.f32 %v2453_v44, %v2269_v29  ;;  %v576_v29 = vld [vmem:[%s9610_s1 + $0x1128] sm:$0xff] }
 0x2b4   :  { %3171 = vmatprep.mubr.f32.mxu1 %v458_v63  ;;  %v551_v63 = vld [vmem:[%s9610_s1 + $0x1060] sm:$0xff]  ;;  %4976 = vmatprep.subr.mxu0 %v3208_v4 }
 0x2b5   :  { %4977 = vmatpush3.msra.mxu0 %v3208_v4 }
 0x2b6   :  { %2987 = vmatmul.mubr.f32.gmra.mxu0 %v455_v53  ;;  %v2273_v21 = vpop.f32.mrf.mxu0 }
 0x2b7   :  { %3172 = vmatmul.mubr.f32.gmra.mxu1 %v457_v52  ;;  %v2458_v16 = vpop.f32.mrf.mxu1  ;;  %2991 = vmatprep.mubr.f32.mxu0 %v480_v6  ;;  %v2274_v50 = vadd.f32 %v2273_v21, %v8167_v46  ;;  %v503_v46 = vld [vmem:[%s9610_s1 + $0xee0] sm:$0xff] }
 0x2b8   :  { %3176 = vmatprep.mubr.f32.mxu1 %v482_v3  ;;  %v2275_v20 = vpop.f32.mrf.mxu0  ;;  %v3207_v52 = vld [vmem:[%s9611_s2] sm:$0xff] }
 0x2b9   :  { %v2460_v17 = vpop.f32.mrf.mxu1  ;;  %v8656_v15 = vadd.f32 %v2458_v16, %v2274_v50  ;;  %v575_v3 = vld [vmem:[%s9610_s1 + $0x1120] sm:$0xff]  ;;  %v600_v16 = vld [vmem:[%s9610_s1 + $0x11e8] sm:$0xff]  ;;  %4978 = vmatprep.subr.mxu0 %v3207_v52 }
 0x2ba   :  { %2992 = vmatmul.mubr.f32.gmra.mxu0 %v479_v57  ;;  %v602_v57 = vld [vmem:[%s9610_s1 + $0x11f8] sm:$0xff]  ;;  %v601_v17 = vld [vmem:[%s9610_s1 + $0x11f0] sm:$0xff] }
 0x2bb   :  { %3177 = vmatmul.mubr.f32.gmra.mxu1 %v481_v2  ;;  %2996 = vmatprep.mubr.f32.mxu0 %v504_v35 }
 0x2bc   :  { %3181 = vmatprep.mubr.f32.mxu1 %v506_v54  ;;  %v2278_v48 = vpop.f32.mrf.mxu0  ;;  %4979 = vmatpush3.msra.mxu0 %v3207_v52 }
 0x2bd   :  { %v2463_v18 = vpop.f32.mrf.mxu1  ;;  %v2279_v19 = vadd.f32 %v2278_v48, %v8198_v13 }
 0x2be   :  { %2997 = vmatmul.mubr.f32.gmra.mxu0 %v503_v46  ;;  %v2280_v22 = vpop.f32.mrf.mxu0 }
 0x2bf   :  { %3182 = vmatmul.mubr.f32.gmra.mxu1 %v505_v56  ;;  %v2465_v9 = vpop.f32.mrf.mxu1  ;;  %3001 = vmatprep.mubr.f32.mxu0 %v528_v25  ;;  %v8683_v13 = vadd.f32 %v2463_v18, %v2279_v19 }
 0x2c0   :  { %3186 = vmatprep.mubr.f32.mxu1 %v530_v14 }
 0x2c2   :  { %3002 = vmatmul.mubr.f32.gmra.mxu0 %v527_v41  ;;  %v2533_v49 = vpop.f32.mrf.mxu0 }
 0x2c3   :  { %3187 = vmatmul.mubr.f32.gmra.mxu1 %v529_v33  ;;  %v2718_v45 = vpop.f32.mrf.mxu1  ;;  %3006 = vmatprep.mubr.f32.mxu0 %v552_v32  ;;  %v2534_v44 = vadd.f32 %v2533_v49, %v8229_v24 }
 0x2c4   :  { %3191 = vmatprep.mubr.f32.mxu1 %v554_v31  ;;  %v2535_v59 = vpop.f32.mrf.mxu0 }
 0x2c5   :  { %v2720_v51 = vpop.f32.mrf.mxu1  ;;  %v8707_v53 = vadd.f32 %v2718_v45, %v2534_v44 }
 0x2c6   :  { %3007 = vmatmul.mubr.f32.gmra.mxu0 %v551_v63  ;;  %v2538_v24 = vpop.f32.mrf.mxu0 }
 0x2c7   :  { %3192 = vmatmul.mubr.f32.gmra.mxu1 %v553_v10  ;;  %v2723_v6 = vpop.f32.mrf.mxu1  ;;  %3011 = vmatprep.mubr.f32.mxu0 %v576_v29  ;;  %v2539_v21 = vadd.f32 %v2538_v24, %v8252_v55  ;;  %v599_v55 = vld [vmem:[%s9610_s1 + $0x11e0] sm:$0xff] }
 0x2c8   :  { %3196 = vmatprep.mubr.f32.mxu1 %v578_v61  ;;  %v2540_v2 = vpop.f32.mrf.mxu0 }
 0x2c9   :  { %v2725_v50 = vpop.f32.mrf.mxu1  ;;  %v8725_v35 = vadd.f32 %v2723_v6, %v2539_v21 }
 0x2ca   :  { %3012 = vmatmul.mubr.f32.gmra.mxu0 %v575_v3  ;;  %v2543_v54 = vpop.f32.mrf.mxu0 }
 0x2cb   :  { %3197 = vmatmul.mubr.f32.gmra.mxu1 %v577_v23  ;;  %v2728_v20 = vpop.f32.mrf.mxu1  ;;  %3016 = vmatprep.mubr.f32.mxu0 %v600_v16  ;;  %v2544_v26 = vadd.f32 %v2543_v54, %v8277_v60 }
 0x2cc   :  { %3201 = vmatprep.mubr.f32.mxu1 %v602_v57  ;;  %v2545_v46 = vpop.f32.mrf.mxu0 }
 0x2cd   :  { %v2730_v56 = vpop.f32.mrf.mxu1  ;;  %v8734_v25 = vadd.f32 %v2728_v20, %v2544_v26 }
 0x2ce   :  { %3017 = vmatmul.mubr.f32.gmra.mxu0 %v599_v55  ;;  %v2548_v14 = vpop.f32.mrf.mxu0 }
 0x2cf   :  { %3202 = vmatmul.mubr.f32.gmra.mxu1 %v601_v17  ;;  %v2733_v48 = vpop.f32.mrf.mxu1  ;;  %v2549_v18 = vadd.f32 %v2548_v14, %v8294_v62 }
 0x2d0   :  { %v2550_v19 = vpop.f32.mrf.mxu0 }
 0x2d1   :  { %v2735_v37 = vpop.f32.mrf.mxu1  ;;  %v8737_v22 = vadd.f32 %v2733_v48, %v2549_v18 }
 0x2d2   :  { %v2553_v9 = vpop.f32.mrf.mxu0 }
 0x2d3   :  { %v2738_v41 = vpop.f32.mrf.mxu1  ;;  %v2554_v33 = vadd.f32 %v2553_v9, %v8317_v11 }
 0x2d4   :  { %v2555_v32 = vpop.f32.mrf.mxu0 }
 0x2d5   :  { %v2740_v60 = vpop.f32.mrf.mxu1  ;;  %v8740_v31 = vadd.f32 %v2738_v41, %v2554_v33 }
 0x2d6   :  { %v2558_v4 = vpop.f32.mrf.mxu0 }
 0x2d7   :  { %v2743_v49 = vpop.f32.mrf.mxu1  ;;  %v2559_v45 = vadd.f32 %v2558_v4, %v8342_v58 }
 0x2d8   :  { %v2560_v63 = vpop.f32.mrf.mxu0 }
 0x2d9   :  { %v2745_v10 = vpop.f32.mrf.mxu1  ;;  %v8743_v44 = vadd.f32 %v2743_v49, %v2559_v45 }
 0x2da   :  { %v2563_v62 = vpop.f32.mrf.mxu0 }
 0x2db   :  { %v2748_v29 = vpop.f32.mrf.mxu1  ;;  %v2564_v61 = vadd.f32 %v2563_v62, %v8359_v1 }
 0x2dc   :  { %v2565_v59 = vpop.f32.mrf.mxu0 }
 0x2dd   :  { %v2750_v51 = vpop.f32.mrf.mxu1  ;;  %v8746_v52 = vadd.f32 %v2748_v29, %v2564_v61 }
 0x2de   :  { %v2568_v11 = vpop.f32.mrf.mxu0 }
 0x2df   :  { %v2753_v24 = vpop.f32.mrf.mxu1  ;;  %v2569_v6 = vadd.f32 %v2568_v11, %v8382_v28 }
 0x2e0   :  { %v2570_v3 = vpop.f32.mrf.mxu0 }
 0x2e1   :  { %v2755_v23 = vpop.f32.mrf.mxu1  ;;  %v8749_v21 = vadd.f32 %v2753_v24, %v2569_v6 }
 0x2e2   :  { %v2573_v58 = vpop.f32.mrf.mxu0 }
 0x2e3   :  { %v2758_v16 = vpop.f32.mrf.mxu1  ;;  %v2574_v57 = vadd.f32 %v2573_v58, %v8398_v30 }
 0x2e4   :  { %v2575_v2 = vpop.f32.mrf.mxu0 }
 0x2e5   :  { %v2760_v50 = vpop.f32.mrf.mxu1  ;;  %v8752_v54 = vadd.f32 %v2758_v16, %v2574_v57 }
 0x2e6   :  { %v2578_v1 = vpop.f32.mrf.mxu0 }
 0x2e7   :  { %v2763_v20 = vpop.f32.mrf.mxu1  ;;  %v2579_v55 = vadd.f32 %v2578_v1, %v8413_v43 }
 0x2e8   :  { %v2580_v17 = vpop.f32.mrf.mxu0 }
 0x2e9   :  { %v2765_v26 = vpop.f32.mrf.mxu1  ;;  %v8755_v46 = vadd.f32 %v2763_v20, %v2579_v55 }
 0x2ea   :  { %v2583_v28 = vpop.f32.mrf.mxu0 }
 0x2eb   :  { %v2768_v56 = vpop.f32.mrf.mxu1  ;;  %v2584_v14 = vadd.f32 %v2583_v28, %v8428_v8 }
 0x2ec   :  { %v2585_v48 = vpop.f32.mrf.mxu0 }
 0x2ed   :  { %v2770_v18 = vpop.f32.mrf.mxu1  ;;  %v8758_v19 = vadd.f32 %v2768_v56, %v2584_v14 }
 0x2ee   :  { %v2588_v30 = vpop.f32.mrf.mxu0 }
 0x2ef   :  { %v2773_v37 = vpop.f32.mrf.mxu1  ;;  %v2589_v9 = vadd.f32 %v2588_v30, %v8443_v12 }
 0x2f0   :  { %v2590_v41 = vpop.f32.mrf.mxu0 }
 0x2f1   :  { %v2775_v33 = vpop.f32.mrf.mxu1  ;;  %v8761_v32 = vadd.f32 %v2773_v37, %v2589_v9 }
 0x2f2   :  { %v2593_v43 = vpop.f32.mrf.mxu0 }
 0x2f3   :  { %v2778_v60 = vpop.f32.mrf.mxu1  ;;  %v2594_v4 = vadd.f32 %v2593_v43, %v8458_v39 }
 0x2f4   :  { %v2595_v49 = vpop.f32.mrf.mxu0 }
 0x2f5   :  { %v2780_v45 = vpop.f32.mrf.mxu1  ;;  %v8764_v63 = vadd.f32 %v2778_v60, %v2594_v4 }
 0x2f6   :  { %v2598_v8 = vpop.f32.mrf.mxu0 }
 0x2f7   :  { %v2783_v10 = vpop.f32.mrf.mxu1  ;;  %v2599_v62 = vadd.f32 %v2598_v8, %v8473_v42 }
 0x2f8   :  { %v2600_v29 = vpop.f32.mrf.mxu0 }
 0x2f9   :  { %v2785_v61 = vpop.f32.mrf.mxu1  ;;  %v8767_v59 = vadd.f32 %v2783_v10, %v2599_v62 }
 0x2fa   :  { %v2603_v12 = vpop.f32.mrf.mxu0 }
 0x2fb   :  { %v2788_v51 = vpop.f32.mrf.mxu1  ;;  %v2604_v11 = vadd.f32 %v2603_v12, %v8488_v47 }
 0x2fc   :  { %v2605_v24 = vpop.f32.mrf.mxu0 }
 0x2fd   :  { %v2790_v6 = vpop.f32.mrf.mxu1  ;;  %v8770_v3 = vadd.f32 %v2788_v51, %v2604_v11 }
 0x2fe   :  { %v2608_v39 = vpop.f32.mrf.mxu0 }
 0x2ff   :  { %v2793_v23 = vpop.f32.mrf.mxu1  ;;  %v2609_v58 = vadd.f32 %v2608_v39, %v8503_v5 }
 0x300   :  { %v2610_v16 = vpop.f32.mrf.mxu0 }
 0x301   :  { %v2795_v57 = vpop.f32.mrf.mxu1  ;;  %v8773_v2 = vadd.f32 %v2793_v23, %v2609_v58 }
 0x302   :  { %v2613_v42 = vpop.f32.mrf.mxu0 }
 0x303   :  { %v2798_v50 = vpop.f32.mrf.mxu1  ;;  %v2614_v1 = vadd.f32 %v2613_v42, %v8518_v27 }
 0x304   :  { %v2615_v20 = vpop.f32.mrf.mxu0 }
 0x305   :  { %v2800_v55 = vpop.f32.mrf.mxu1  ;;  %v8776_v17 = vadd.f32 %v2798_v50, %v2614_v1 }
 0x308   :  { %v2618_v47 = vpop.f32.mrf.mxu0 }
 0x309   :  { %v2803_v26 = vpop.f32.mrf.mxu1  ;;  %v2619_v28 = vadd.f32 %v2618_v47, %v8539_v40 }
 0x30a   :  { %v2620_v56 = vpop.f32.mrf.mxu0 }
 0x30b   :  { %v2805_v14 = vpop.f32.mrf.mxu1  ;;  %v8779_v48 = vadd.f32 %v2803_v26, %v2619_v28 }
 0x30e   :  { %v2623_v5 = vpop.f32.mrf.mxu0 }
 0x30f   :  { %v2808_v18 = vpop.f32.mrf.mxu1  ;;  %v2624_v30 = vadd.f32 %v2623_v5, %v8560_v7 }
 0x310   :  { %v2625_v37 = vpop.f32.mrf.mxu0 }
 0x311   :  { %v2810_v9 = vpop.f32.mrf.mxu1  ;;  %v8782_v41 = vadd.f32 %v2808_v18, %v2624_v30 }
 0x314   :  { %v2628_v27 = vpop.f32.mrf.mxu0 }
 0x315   :  { %v2813_v33 = vpop.f32.mrf.mxu1  ;;  %v2629_v43 = vadd.f32 %v2628_v27, %v8581_v38 }
 0x316   :  { %v2630_v60 = vpop.f32.mrf.mxu0 }
 0x317   :  { %v2815_v4 = vpop.f32.mrf.mxu1  ;;  %v8785_v49 = vadd.f32 %v2813_v33, %v2629_v43 }
 0x31a   :  { %v2633_v40 = vpop.f32.mrf.mxu0 }
 0x31b   :  { %v2818_v45 = vpop.f32.mrf.mxu1  ;;  %v2634_v8 = vadd.f32 %v2633_v40, %v8605_v34 }
 0x31c   :  { %v2635_v10 = vpop.f32.mrf.mxu0 }
 0x31d   :  { %v2820_v62 = vpop.f32.mrf.mxu1  ;;  %v8788_v29 = vadd.f32 %v2818_v45, %v2634_v8 }
 0x320   :  { %v2638_v7 = vpop.f32.mrf.mxu0 }
 0x321   :  { %v2823_v61 = vpop.f32.mrf.mxu1  ;;  %v2639_v12 = vadd.f32 %v2638_v7, %v8632_v36 }
 0x322   :  { %v2640_v51 = vpop.f32.mrf.mxu0 }
 0x323   :  { %v2825_v11 = vpop.f32.mrf.mxu1  ;;  %v8791_v24 = vadd.f32 %v2823_v61, %v2639_v12 }
 0x326   :  { %v2643_v38 = vpop.f32.mrf.mxu0 }
 0x327   :  { %v2828_v6 = vpop.f32.mrf.mxu1  ;;  %v2644_v39 = vadd.f32 %v2643_v38, %v8656_v15 }
 0x328   :  { %v2645_v23 = vpop.f32.mrf.mxu0 }
 0x329   :  { %v2830_v58 = vpop.f32.mrf.mxu1  ;;  %v8794_v16 = vadd.f32 %v2828_v6, %v2644_v39 }
 0x32c   :  { %v2648_v34 = vpop.f32.mrf.mxu0 }
 0x32d   :  { %v2833_v57 = vpop.f32.mrf.mxu1  ;;  %v2649_v42 = vadd.f32 %v2648_v34, %v8683_v13 }
 0x32e   :  { %v2650_v50 = vpop.f32.mrf.mxu0 }
 0x32f   :  { %v2835_v1 = vpop.f32.mrf.mxu1  ;;  %v8797_v20 = vadd.f32 %v2833_v57, %v2649_v42 }
 0x332   :  { %v2903_v36 = vpop.f32.mrf.mxu0 }
 0x333   :  { %v3088_v55 = vpop.f32.mrf.mxu1  ;;  %v2904_v47 = vadd.f32 %v2903_v36, %v8707_v53 }
 0x334   :  { %v2905_v26 = vpop.f32.mrf.mxu0 }
 0x335   :  { %v3090_v28 = vpop.f32.mrf.mxu1  ;;  %v3089_v15 = vadd.f32 %v3088_v55, %v2904_v47 }
 0x336   :  { %v2908_v56 = vpop.f32.mrf.mxu0 }
 0x337   :  { %v3093_v14 = vpop.f32.mrf.mxu1  ;;  %v2909_v5 = vadd.f32 %v2908_v56, %v8725_v35  ;;  %4980 = vmatprep.mubr.msk.f32.mxu0 %vm3222_vm0, %v3089_v15 }
 0x338   :  { %v2910_v18 = vpop.f32.mrf.mxu0 }
 0x339   :  { %v3095_v13 = vpop.f32.mrf.mxu1  ;;  %v3094_v30 = vadd.f32 %v3093_v14, %v2909_v5 }
 0x33a   :  { %v2913_v37 = vpop.f32.mrf.mxu0 }
 0x33b   :  { %v3098_v9 = vpop.f32.mrf.mxu1  ;;  %v2914_v27 = vadd.f32 %v2913_v37, %v8734_v25  ;;  %4981 = vmatmul.mubr.msk.f32.vlgmr.msra.gmra.mxu0 %vm3222_vm0, %v3094_v30 }
 0x33c   :  { %v2915_v53 = vpop.f32.mrf.mxu0 }
 0x33d   :  { %v3100_v33 = vpop.f32.mrf.mxu1  ;;  %v3099_v43 = vadd.f32 %v3098_v9, %v2914_v27 }
 0x33e   :  { %v2918_v60 = vpop.f32.mrf.mxu0 }
 0x33f   :  { %v3103_v4 = vpop.f32.mrf.mxu1  ;;  %v2919_v40 = vadd.f32 %v2918_v60, %v8737_v22  ;;  %4983 = vmatprep.mubr.msk.f32.mxu0 %vm3222_vm0, %v3099_v43 }
 0x340   :  { %v2920_v35 = vpop.f32.mrf.mxu0 }
 0x341   :  { %v3105_v45 = vpop.f32.mrf.mxu1  ;;  %v3104_v8 = vadd.f32 %v3103_v4, %v2919_v40 }
 0x342   :  { %v2923_v10 = vpop.f32.mrf.mxu0 }
 0x343   :  { %v3108_v62 = vpop.f32.mrf.mxu1  ;;  %v2924_v7 = vadd.f32 %v2923_v10, %v8740_v31  ;;  %4984 = vmatmul.mubr.msk.f32.gmra.mxu0 %vm3222_vm0, %v3104_v8 }
 0x344   :  { %v2925_v25 = vpop.f32.mrf.mxu0 }
 0x345   :  { %v3110_v61 = vpop.f32.mrf.mxu1  ;;  %v3109_v12 = vadd.f32 %v3108_v62, %v2924_v7 }
 0x346   :  { %v2928_v51 = vpop.f32.mrf.mxu0 }
 0x347   :  { %v3113_v11 = vpop.f32.mrf.mxu1  ;;  %v2929_v38 = vadd.f32 %v2928_v51, %v8743_v44  ;;  %4986 = vmatprep.mubr.msk.f32.mxu0 %vm3222_vm0, %v3109_v12 }
 0x348   :  { %v2930_v22 = vpop.f32.mrf.mxu0 }
 0x349   :  { %v3115_v6 = vpop.f32.mrf.mxu1  ;;  %v3114_v39 = vadd.f32 %v3113_v11, %v2929_v38 }
 0x34a   :  { %v2933_v23 = vpop.f32.mrf.mxu0 }
 0x34b   :  { %v3118_v58 = vpop.f32.mrf.mxu1  ;;  %v2934_v34 = vadd.f32 %v2933_v23, %v8746_v52  ;;  %4987 = vmatmul.mubr.msk.f32.gmra.mxu0 %vm3222_vm0, %v3114_v39 }
 0x34c   :  { %v2935_v31 = vpop.f32.mrf.mxu0 }
 0x34d   :  { %v3120_v57 = vpop.f32.mrf.mxu1  ;;  %v3119_v42 = vadd.f32 %v3118_v58, %v2934_v34 }
 0x34e   :  { %v2938_v50 = vpop.f32.mrf.mxu0 }
 0x34f   :  { %v3123_v1 = vpop.f32.mrf.mxu1  ;;  %v2939_v36 = vadd.f32 %v2938_v50, %v8749_v21  ;;  %4989 = vmatprep.mubr.msk.f32.mxu0 %vm3222_vm0, %v3119_v42 }
 0x350   :  { %v2940_v44 = vpop.f32.mrf.mxu0 }
 0x351   :  { %v3125_v55 = vpop.f32.mrf.mxu1  ;;  %v3124_v47 = vadd.f32 %v3123_v1, %v2939_v36 }
 0x352   :  { %v2943_v26 = vpop.f32.mrf.mxu0 }
 0x353   :  { %v3128_v28 = vpop.f32.mrf.mxu1  ;;  %v2944_v15 = vadd.f32 %v2943_v26, %v8752_v54  ;;  %4990 = vmatmul.mubr.msk.f32.gmra.mxu0 %vm3222_vm0, %v3124_v47 }
 0x354   :  { %v2945_v52 = vpop.f32.mrf.mxu0 }
 0x355   :  { %v3130_v56 = vpop.f32.mrf.mxu1  ;;  %v3129_v14 = vadd.f32 %v3128_v28, %v2944_v15 }
 0x356   :  { %v2948_v5 = vpop.f32.mrf.mxu0 }
 0x357   :  { %v3133_v18 = vpop.f32.mrf.mxu1  ;;  %v2949_v13 = vadd.f32 %v2948_v5, %v8755_v46  ;;  %4992 = vmatprep.mubr.msk.f32.mxu0 %vm3222_vm0, %v3129_v14 }
 0x358   :  { %v2950_v21 = vpop.f32.mrf.mxu0 }
 0x359   :  { %v3135_v30 = vpop.f32.mrf.mxu1  ;;  %v3134_v37 = vadd.f32 %v3133_v18, %v2949_v13 }
 0x35a   :  { %v2953_v9 = vpop.f32.mrf.mxu0 }
 0x35b   :  { %v3138_v27 = vpop.f32.mrf.mxu1  ;;  %v2954_v53 = vadd.f32 %v2953_v9, %v8758_v19  ;;  %4993 = vmatmul.mubr.msk.f32.gmra.mxu0 %vm3222_vm0, %v3134_v37 }
 0x35c   :  { %v2955_v54 = vpop.f32.mrf.mxu0 }
 0x35d   :  { %v3140_v33 = vpop.f32.mrf.mxu1  ;;  %v3139_v43 = vadd.f32 %v3138_v27, %v2954_v53 }
 0x35e   :  { %v2958_v60 = vpop.f32.mrf.mxu0 }
 0x35f   :  { %v3143_v4 = vpop.f32.mrf.mxu1  ;;  %v2959_v40 = vadd.f32 %v2958_v60, %v8761_v32  ;;  %4995 = vmatprep.mubr.msk.f32.mxu0 %vm3222_vm0, %v3139_v43 }
 0x360   :  { %v2960_v46 = vpop.f32.mrf.mxu0 }
 0x361   :  { %v3145_v35 = vpop.f32.mrf.mxu1  ;;  %v3144_v45 = vadd.f32 %v3143_v4, %v2959_v40 }
 0x362   :  { %v2963_v8 = vpop.f32.mrf.mxu0 }
 0x363   :  { %v3148_v10 = vpop.f32.mrf.mxu1  ;;  %v2964_v62 = vadd.f32 %v2963_v8, %v8764_v63  ;;  %4996 = vmatmul.mubr.msk.f32.gmra.mxu0 %vm3222_vm0, %v3144_v45 }
 0x364   :  { %v2965_v19 = vpop.f32.mrf.mxu0 }
 0x365   :  { %v3150_v7 = vpop.f32.mrf.mxu1  ;;  %v3149_v25 = vadd.f32 %v3148_v10, %v2964_v62 }
 0x366   :  { %v2968_v61 = vpop.f32.mrf.mxu0 }
 0x367   :  { %v3153_v12 = vpop.f32.mrf.mxu1  ;;  %v2969_v51 = vadd.f32 %v2968_v61, %v8767_v59  ;;  %4998 = vmatprep.mubr.msk.f32.mxu0 %vm3222_vm0, %v3149_v25 }
 0x368   :  { %v2970_v32 = vpop.f32.mrf.mxu0 }
 0x369   :  { %v3155_v11 = vpop.f32.mrf.mxu1  ;;  %v3154_v38 = vadd.f32 %v3153_v12, %v2969_v51 }
 0x36a   :  { %v2973_v22 = vpop.f32.mrf.mxu0 }
 0x36b   :  { %v3158_v6 = vpop.f32.mrf.mxu1  ;;  %v2974_v39 = vadd.f32 %v2973_v22, %v8770_v3  ;;  %4999 = vmatmul.mubr.msk.f32.gmra.mxu0 %vm3222_vm0, %v3154_v38 }
 0x36c   :  { %v2975_v63 = vpop.f32.mrf.mxu0 }
 0x36d   :  { %v3160_v23 = vpop.f32.mrf.mxu1  ;;  %v3159_v58 = vadd.f32 %v3158_v6, %v2974_v39 }
 0x36e   :  { %v2978_v34 = vpop.f32.mrf.mxu0 }
 0x36f   :  { %v3163_v31 = vpop.f32.mrf.mxu1  ;;  %v2979_v57 = vadd.f32 %v2978_v34, %v8773_v2  ;;  %5001 = vmatprep.mubr.msk.f32.mxu0 %vm3222_vm0, %v3159_v58 }
 0x370   :  { %v2980_v59 = vpop.f32.mrf.mxu0 }
 0x371   :  { %v3165_v42 = vpop.f32.mrf.mxu1  ;;  %v3164_v50 = vadd.f32 %v3163_v31, %v2979_v57 }
 0x372   :  { %v2983_v1 = vpop.f32.mrf.mxu0 }
 0x373   :  { %v3168_v36 = vpop.f32.mrf.mxu1  ;;  %v2984_v44 = vadd.f32 %v2983_v1, %v8776_v17  ;;  %5002 = vmatmul.mubr.msk.f32.gmra.mxu0 %vm3222_vm0, %v3164_v50 }
 0x374   :  { %v2985_v3 = vpop.f32.mrf.mxu0 }
 0x375   :  { %v3170_v55 = vpop.f32.mrf.mxu1  ;;  %v3169_v47 = vadd.f32 %v3168_v36, %v2984_v44 }
 0x376   :  { %v2988_v26 = vpop.f32.mrf.mxu0  ;;  %v4894_v55 = vld [vmem:[%s9612_s3] ss:$0 sm:$0xff]  ;;  %s5120_s3 = smov 32  }
 0x377   :  { %v3173_v28 = vpop.f32.mrf.mxu1  ;;  %v2989_v15 = vadd.f32 %v2988_v26, %v8779_v48  ;;  %5004 = vmatprep.mubr.msk.f32.mxu0 %vm3222_vm0, %v3169_v47 }
 0x378   :  { %v2990_v2 = vpop.f32.mrf.mxu0 }
 0x379   :  { %v3175_v52 = vpop.f32.mrf.mxu1  ;;  %v3174_v56 = vadd.f32 %v3173_v28, %v2989_v15 }
 0x37a   :  { %v2993_v14 = vpop.f32.mrf.mxu0 }
 0x37b   :  { %v3178_v5 = vpop.f32.mrf.mxu1  ;;  %v2994_v18 = vadd.f32 %v2993_v14, %v8782_v41  ;;  %5005 = vmatmul.mubr.msk.f32.gmra.mxu0 %vm3222_vm0, %v3174_v56 }
 0x37c   :  { %v2995_v17 = vpop.f32.mrf.mxu0 }
 0x37d   :  { %v3180_v13 = vpop.f32.mrf.mxu1  ;;  %v3179_v21 = vadd.f32 %v3178_v5, %v2994_v18 }
 0x37e   :  { %v2998_v30 = vpop.f32.mrf.mxu0 }
 0x37f   :  { %v3183_v37 = vpop.f32.mrf.mxu1  ;;  %v2999_v9 = vadd.f32 %v2998_v30, %v8785_v49  ;;  %5007 = vmatprep.mubr.msk.f32.mxu0 %vm3222_vm0, %v3179_v21 }
 0x380   :  { %v3000_v48 = vpop.f32.mrf.mxu0 }
 0x381   :  { %v3185_v27 = vpop.f32.mrf.mxu1  ;;  %v3184_v53 = vadd.f32 %v3183_v37, %v2999_v9 }
 0x382   :  { %v3003_v54 = vpop.f32.mrf.mxu0 }
 0x383   :  { %v3188_v33 = vpop.f32.mrf.mxu1  ;;  %v3004_v43 = vadd.f32 %v3003_v54, %v8788_v29  ;;  %5008 = vmatmul.mubr.msk.f32.gmra.mxu0 %vm3222_vm0, %v3184_v53 }
 0x384   :  { %v3005_v41 = vpop.f32.mrf.mxu0 }
 0x385   :  { %v3190_v60 = vpop.f32.mrf.mxu1  ;;  %v3189_v4 = vadd.f32 %v3188_v33, %v3004_v43 }
 0x386   :  { %v3008_v40 = vpop.f32.mrf.mxu0 }
 0x387   :  { %v3193_v46 = vpop.f32.mrf.mxu1  ;;  %v3009_v35 = vadd.f32 %v3008_v40, %v8791_v24  ;;  %5010 = vmatprep.mubr.msk.f32.mxu0 %vm3222_vm0, %v3189_v4 }
 0x388   :  { %v3010_v49 = vpop.f32.mrf.mxu0 }
 0x389   :  { %v3195_v45 = vpop.f32.mrf.mxu1  ;;  %v3194_v8 = vadd.f32 %v3193_v46, %v3009_v35 }
 0x38a   :  { %v3013_v10 = vpop.f32.mrf.mxu0 }
 0x38b   :  { %v3198_v62 = vpop.f32.mrf.mxu1  ;;  %v3014_v19 = vadd.f32 %v3013_v10, %v8794_v16  ;;  %5011 = vmatmul.mubr.msk.f32.gmra.mxu0 %vm3222_vm0, %v3194_v8 }
 0x38c   :  { %v3015_v29 = vpop.f32.mrf.mxu0 }
 0x38d   :  { %v3200_v7 = vpop.f32.mrf.mxu1  ;;  %v3199_v25 = vadd.f32 %v3198_v62, %v3014_v19 }
 0x38e   :  { %v3018_v61 = vpop.f32.mrf.mxu0 }
 0x38f   :  { %v3203_v12 = vpop.f32.mrf.mxu1  ;;  %v3019_v51 = vadd.f32 %v3018_v61, %v8797_v20  ;;  %5013 = vmatprep.mubr.msk.f32.mxu0 %vm3222_vm0, %v3199_v25 }
 0x390   :  { %v3020_v24 = vpop.f32.mrf.mxu0 }
 0x391   :  { %v3205_v32 = vpop.f32.mrf.mxu1  ;;  %v3204_v11 = vadd.f32 %v3203_v12, %v3019_v51 }
 0x393   :  { %5014 = vmatmul.mubr.msk.f32.gmra.mxu0 %vm3222_vm0, %v3204_v11 }
 0x3fb   :  { %v4982_v38 = vpop.f32.mrf.mxu0 }
 0x3fc   :  { %v3367_v56 = vadd.f32 %v4982_v38, %v4894_v55 }
 0x3fd   :  { %v3361_v22 = vpop.f32.mrf.mxu0 }
 0x3fe   :  { %v3362_v14 = vadd.f32 %v4894_v55, %v3361_v22 }
 0x403   :  { %v4985_v6 = vpop.f32.mrf.mxu0 }
 0x404   :  { %v3377_v5 = vadd.f32 %v4985_v6, %v4894_v55 }
 0x405   :  { %v3371_v16 = vpop.f32.mrf.mxu0 }
 0x406   :  { %v3372_v17 = vadd.f32 %v4894_v55, %v3371_v16 }
 0x40b   :  { %v4988_v39 = vpop.f32.mrf.mxu0 }
 0x40c   :  { %v8850_v26 = vadd.f32 %v4988_v39, %v4894_v55 }
 0x40d   :  { %v3381_v63 = vpop.f32.mrf.mxu0 }
 0x40e   :  { %v8852_v28 = vadd.f32 %v4894_v55, %v3381_v63  ;;  %v3481_v37 = vmax.f32 %v3367_v56, %v8850_v26 }
 0x410   :  { %v3480_v9 = vmax.f32 %v3362_v14, %v8852_v28 }
 0x413   :  { %v4991_v23 = vpop.f32.mrf.mxu0 }
 0x414   :  { %v8854_v15 = vadd.f32 %v4991_v23, %v4894_v55 }
 0x415   :  { %v3391_v58 = vpop.f32.mrf.mxu0 }
 0x416   :  { %v8856_v2 = vadd.f32 %v4894_v55, %v3391_v58  ;;  %v3483_v27 = vmax.f32 %v3377_v5, %v8854_v15 }
 0x418   :  { %v3482_v53 = vmax.f32 %v3372_v17, %v8856_v2 }
 0x41b   :  { %v4994_v34 = vpop.f32.mrf.mxu0 }
 0x41c   :  { %v8860_v13 = vadd.f32 %v4994_v34, %v4894_v55 }
 0x41d   :  { %v3401_v31 = vpop.f32.mrf.mxu0 }
 0x41e   :  { %v8858_v18 = vadd.f32 %v4894_v55, %v3401_v31  ;;  %v3485_v40 = vmax.f32 %v3481_v37, %v8860_v13 }
 0x420   :  { %v3484_v41 = vmax.f32 %v3480_v9, %v8858_v18  ;;  %v3514_v9 = vmul.f32 100.0, %v8852_v28 }
 0x423   :  { %v4997_v57 = vpop.f32.mrf.mxu0 }
 0x424   :  { %v8862_v21 = vadd.f32 %v4997_v57, %v4894_v55 }
 0x425   :  { %v3411_v59 = vpop.f32.mrf.mxu0 }
 0x426   :  { %v8864_v30 = vadd.f32 %v4894_v55, %v3411_v59  ;;  %v3487_v46 = vmax.f32 %v3483_v27, %v8862_v21 }
 0x428   :  { %v3486_v35 = vmax.f32 %v3482_v53, %v8864_v30 }
 0x42b   :  { %v5000_v20 = vpop.f32.mrf.mxu0 }
 0x42c   :  { %v8872_v54 = vadd.f32 %v5000_v20, %v4894_v55 }
 0x42d   :  { %v3421_v42 = vpop.f32.mrf.mxu0 }
 0x42e   :  { %v8868_v48 = vadd.f32 %v4894_v55, %v3421_v42  ;;  %v3489_v19 = vmax.f32 %v3485_v40, %v8872_v54 }
 0x430   :  { %v3488_v45 = vmax.f32 %v3484_v41, %v8868_v48  ;;  %v3516_v41 = vmul.f32 100.0, %v8856_v2 }
 0x433   :  { %v5003_v50 = vpop.f32.mrf.mxu0 }
 0x434   :  { %v8874_v33 = vadd.f32 %v5003_v50, %v4894_v55 }
 0x435   :  { %v3431_v1 = vpop.f32.mrf.mxu0 }
 0x436   :  { %v8877_v60 = vadd.f32 %v4894_v55, %v3431_v1  ;;  %v3491_v29 = vmax.f32 %v3487_v46, %v8874_v33  ;;  %v3517_v46 = vmul.f32 100.0, %v8854_v15  ;;  %v8940_v15 = vld.sshfl [vmem:[%s9613_s4] sm:$0x33 pattern:$0x76325410] }
 0x438   :  { %v3490_v25 = vmax.f32 %v3486_v35, %v8877_v60 }
 0x43b   :  { %v5006_v36 = vpop.f32.mrf.mxu0 }
 0x43c   :  { %v8884_v49 = vadd.f32 %v5006_v36, %v4894_v55  ;;  %v3511_v36 = vmul.f32 100.0, %v3367_v56  ;;  %v3515_v56 = vmul.f32 100.0, %v8850_v26 }
 0x43d   :  { %v3441_v44 = vpop.f32.mrf.mxu0 }
 0x43e   :  { %v8879_v4 = vadd.f32 %v4894_v55, %v3441_v44  ;;  %v3493_v24 = vmax.f32 %v3489_v19, %v8884_v49  ;;  %v3510_v44 = vmul.f32 100.0, %v3362_v14 }
 0x440   :  { %v3492_v61 = vmax.f32 %v3488_v45, %v8879_v4  ;;  %v3518_v45 = vmul.f32 100.0, %v8858_v18 }
 0x443   :  { %v5009_v3 = vpop.f32.mrf.mxu0 }
 0x444   :  { %v8887_v8 = vadd.f32 %v5009_v3, %v4894_v55  ;;  %v3512_v3 = vmul.f32 100.0, %v3372_v17 }
 0x445   :  { %v3451_v47 = vpop.f32.mrf.mxu0 }
 0x446   :  { %v8889_v10 = vadd.f32 %v4894_v55, %v3451_v47  ;;  %v3495_v11 = vmax.f32 %v3491_v29, %v8887_v8  ;;  %v3519_v29 = vmul.f32 100.0, %v8860_v13  ;;  %v3521_v13 = vmul.f32 100.0, %v8862_v21 }
 0x448   :  { %v3494_v38 = vmax.f32 %v3490_v25, %v8889_v10  ;;  %v3520_v25 = vmul.f32 100.0, %v8864_v30 }
 0x44b   :  { %v5012_v52 = vpop.f32.mrf.mxu0 }
 0x44c   :  { %v8897_v12 = vadd.f32 %v5012_v52, %v4894_v55  ;;  %v3513_v52 = vmul.f32 100.0, %v3377_v5 }
 0x44d   :  { %v3461_v43 = vpop.f32.mrf.mxu0 }
 0x44e   :  { %v8891_v62 = vadd.f32 %v4894_v55, %v3461_v43  ;;  %v3497_v16 = vmax.f32 %v3493_v24, %v8897_v12  ;;  %v3694_v24 = vcombine.high %v8940_v15, %v8940_v15 }
 0x450   :  { %v3496_v22 = vmax.f32 %v3492_v61, %v8891_v62  ;;  %4920 = vmatprep.mubr.msk.f32.mxu1 %vm3222_vm0, %v3694_v24 }
 0x452   :  { %v3500_v23 = vmax.f32 %v3496_v22, %v3497_v16 }
 0x453   :  { %v5015_v7 = vpop.f32.mrf.mxu0 }
 0x454   :  { %v8899_v51 = vadd.f32 %v5015_v7, %v4894_v55 }
 0x455   :  { %v3471_v32 = vpop.f32.mrf.mxu0 }
 0x456   :  { %v8905_v6 = vadd.f32 %v4894_v55, %v3471_v32  ;;  %v3499_v39 = vmax.f32 %v3495_v11, %v8899_v51 }
 0x458   :  { %v3498_v63 = vmax.f32 %v3494_v38, %v8905_v6  ;;  %v3522_v38 = vmul.f32 100.0, %v8868_v48 }
 0x45a   :  { %v3501_v58 = vmax.f32 %v3498_v63, %v3499_v39  ;;  %v3523_v63 = vmul.f32 100.0, %v8872_v54  ;;  %v3525_v54 = vmul.f32 100.0, %v8874_v33  ;;  %v3527_v33 = vmul.f32 100.0, %v8884_v49 }
 0x45b   :  { %v3529_v49 = vmul.f32 100.0, %v8887_v8  ;;  %v3531_v8 = vmul.f32 100.0, %v8897_v12 }
 0x45c   :  { %v3502_v34 = vmax.f32 %v3500_v23, %v3501_v58 }
 0x45e   :  { %v3503_v31 = vrot.slane %v3502_v34, 4 }
 0x460   :  { %v3504_v57 = vmax.f32 %v3502_v34, %v3503_v31  ;;  %v3524_v31 = vmul.f32 100.0, %v8877_v60  ;;  %v3526_v60 = vmul.f32 100.0, %v8879_v4  ;;  %v3528_v4 = vmul.f32 100.0, %v8889_v10 }
 0x461   :  { %v3530_v10 = vmul.f32 100.0, %v8891_v62 }
 0x462   :  { %v3505_v59 = vrot.slane %v3504_v57, 2 }
 0x464   :  { %v3506_v20 = vmax.f32 %v3504_v57, %v3505_v59 }
 0x466   :  { %v3507_v42 = vrot.slane %v3506_v20, 1 }
 0x468   :  { %v8910_v50 = vmax.f32 %v3506_v20, %v3507_v42 }
 0x46a   :  { %v8913_v1 = vmul.f32 100.0, %v8910_v50  ;;  %3778 = vrot.lane.b32.xlu1 %v8910_v50, %s5120_s3  ;;  %3770 = vrot.lane.b32.xlu0 %v8910_v50, %s5121_s24 }
 0x46c   :  { %v3534_v55 = vsub.f32 %v3510_v44, %v8913_v1  ;;  %v3535_v47 = vsub.f32 %v3511_v36, %v8913_v1  ;;  %v3536_v37 = vsub.f32 %v3512_v3, %v8913_v1  ;;  %v3537_v27 = vsub.f32 %v3513_v52, %v8913_v1 }
 0x46d   :  { %v3538_v14 = vsub.f32 %v3514_v9, %v8913_v1  ;;  %v3539_v40 = vsub.f32 %v3515_v56, %v8913_v1  ;;  %v3540_v28 = vsub.f32 %v3516_v41, %v8913_v1  ;;  %v3541_v26 = vsub.f32 %v3517_v46, %v8913_v1 }
 0x46e   :  { %3774 = vrot.lane.b32.xlu0 %v8910_v50, %s5122_s25  ;;  %v3558_v53 = vmul.f32 1.442695, %v3534_v55  ;;  %v3560_v43 = vmul.f32 1.442695, %v3535_v47  ;;  %v3562_v17 = vmul.f32 1.442695, %v3536_v37  ;;  %v3542_v2 = vsub.f32 %v3518_v45, %v8913_v1 }
 0x46f   :  { %v3564_v5 = vmul.f32 1.442695, %v3537_v27  ;;  %v3566_v35 = vmul.f32 1.442695, %v3538_v14  ;;  %v3568_v19 = vmul.f32 1.442695, %v3539_v40  ;;  %v3543_v61 = vsub.f32 %v3519_v29, %v8913_v1 }
 0x470   :  { %5037 = vpow2.f32 %v3558_v53  ;;  %v3570_v7 = vmul.f32 1.442695, %v3540_v28  ;;  %v3572_v18 = vmul.f32 1.442695, %v3541_v26  ;;  %v3544_v32 = vsub.f32 %v3520_v25, %v8913_v1 }
 0x471   :  { %5039 = vpow2.f32 %v3560_v43  ;;  %v3574_v11 = vmul.f32 1.442695, %v3542_v2  ;;  %v3545_v22 = vsub.f32 %v3521_v13, %v8913_v1  ;;  %v3576_v16 = vmul.f32 1.442695, %v3543_v61 }
 0x472   :  { %5041 = vpow2.f32 %v3562_v17  ;;  %v3546_v21 = vsub.f32 %v3522_v38, %v8913_v1  ;;  %v3578_v23 = vmul.f32 1.442695, %v3544_v32  ;;  %v3547_v48 = vsub.f32 %v3523_v63, %v8913_v1 }
 0x473   :  { %5043 = vpow2.f32 %v3564_v5  ;;  %v3580_v57 = vmul.f32 1.442695, %v3545_v22  ;;  %v3548_v42 = vsub.f32 %v3524_v31, %v8913_v1  ;;  %v3549_v55 = vsub.f32 %v3525_v54, %v8913_v1 }
 0x474   :  { %5045 = vpow2.f32 %v3566_v35  ;;  %v3582_v36 = vmul.f32 1.442695, %v3546_v21  ;;  %v3584_v47 = vmul.f32 1.442695, %v3547_v48  ;;  %v3550_v9 = vsub.f32 %v3526_v60, %v8913_v1 }
 0x475   :  { %5047 = vpow2.f32 %v3568_v19  ;;  %v3586_v27 = vmul.f32 1.442695, %v3548_v42  ;;  %v3551_v56 = vsub.f32 %v3527_v33, %v8913_v1  ;;  %v3588_v14 = vmul.f32 1.442695, %v3549_v55 }
 0x476   :  { %5049 = vpow2.f32 %v3570_v7  ;;  %v3552_v40 = vsub.f32 %v3528_v4, %v8913_v1  ;;  %v3590_v5 = vmul.f32 1.442695, %v3550_v9  ;;  %v3553_v35 = vsub.f32 %v3529_v49, %v8913_v1 }
 0x477   :  { %5051 = vpow2.f32 %v3572_v18  ;;  %v3592_v45 = vmul.f32 1.442695, %v3551_v56  ;;  %v3554_v29 = vsub.f32 %v3530_v10, %v8913_v1  ;;  %v3532_v61 = vmul.f32 100.0, %v8905_v6 }
 0x478   :  { %5053 = vpow2.f32 %v3574_v11  ;;  %v3594_v2 = vmul.f32 1.442695, %v3552_v40  ;;  %v3555_v62 = vsub.f32 %v3531_v8, %v8913_v1  ;;  %v3596_v18 = vmul.f32 1.442695, %v3553_v35 }
 0x479   :  { %5055 = vpow2.f32 %v3576_v16  ;;  %v3533_v32 = vmul.f32 100.0, %v8899_v51  ;;  %v3556_v11 = vsub.f32 %v3532_v61, %v8913_v1  ;;  %v3598_v12 = vmul.f32 1.442695, %v3554_v29 }
 0x47a   :  { %5057 = vpow2.f32 %v3578_v23  ;;  %v3600_v63 = vmul.f32 1.442695, %v3555_v62 }
 0x47b   :  { %5059 = vpow2.f32 %v3580_v57  ;;  %v3557_v16 = vsub.f32 %v3533_v32, %v8913_v1  ;;  %v3602_v23 = vmul.f32 1.442695, %v3556_v11 }
 0x47c   :  { %5061 = vpow2.f32 %v3582_v36 }
 0x47d   :  { %v8948_v30 = vpop.eup %5037  ;;  %5063 = vpow2.f32 %v3584_v47  ;;  %v3604_v48 = vmul.f32 1.442695, %v3557_v16 }
 0x47e   :  { %v8952_v39 = vpop.eup %5039  ;;  %5065 = vpow2.f32 %v3586_v27 }
 0x47f   :  { %v3606_v58 = vadd.f32 %v8952_v39, %v8948_v30  ;;  %v8958_v34 = vpop.eup %5041  ;;  %5067 = vpow2.f32 %v3588_v14 }
 0x480   :  { %v8963_v20 = vpop.eup %5043  ;;  %5069 = vpow2.f32 %v3590_v5 }
 0x481   :  { %v3607_v59 = vadd.f32 %v8958_v34, %v3606_v58  ;;  %v8968_v3 = vpop.eup %5045  ;;  %5071 = vpow2.f32 %v3592_v45 }
 0x482   :  { %v8973_v37 = vpop.eup %5047  ;;  %5073 = vpow2.f32 %v3594_v2 }
 0x483   :  { %v3608_v44 = vadd.f32 %v8963_v20, %v3607_v59  ;;  %v8978_v43 = vpop.eup %5049  ;;  %5075 = vpow2.f32 %v3596_v18 }
 0x484   :  { %v8983_v41 = vpop.eup %5051  ;;  %5077 = vpow2.f32 %v3598_v12 }
 0x485   :  { %v3609_v52 = vadd.f32 %v8968_v3, %v3608_v44  ;;  %v8988_v28 = vpop.eup %5053  ;;  %5079 = vpow2.f32 %v3600_v63 }
 0x486   :  { %v8993_v19 = vpop.eup %5055  ;;  %5081 = vpow2.f32 %v3602_v23  ;;  %v4924_v23 = vld [vmem:[%s9615_s5 + $0x10] sm:$0xf] }
 0x487   :  { %v3610_v53 = vadd.f32 %v8973_v37, %v3609_v52  ;;  %v5058_v25 = vpop.eup %5057  ;;  %5083 = vpow2.f32 %v3604_v48  ;;  %v4928_v48 = vld [vmem:[%s9615_s5 + $0x20] sm:$0xf] }
 0x488   :  { %v5060_v13 = vpop.eup %5059 }
 0x489   :  { %v3611_v17 = vadd.f32 %v8978_v43, %v3610_v53  ;;  %v5062_v22 = vpop.eup %5061 }
 0x48a   :  { %v5064_v6 = vpop.eup %5063 }
 0x48b   :  { %v3612_v46 = vadd.f32 %v8983_v41, %v3611_v17  ;;  %v5066_v31 = vpop.eup %5065 }
 0x48c   :  { %v5068_v51 = vpop.eup %5067 }
 0x48d   :  { %v3613_v26 = vadd.f32 %v8988_v28, %v3612_v46  ;;  %v9003_v54 = vpop.eup %5069 }
 0x48e   :  { %v9006_v1 = vpop.eup %5071 }
 0x48f   :  { %v3614_v7 = vadd.f32 %v8993_v19, %v3613_v26  ;;  %v5074_v44 = vpop.eup %5073 }
 0x490   :  { %v5076_v55 = vpop.eup %5075 }
 0x491   :  { %v3615_v24 = vadd.f32 %v5058_v25, %v3614_v7  ;;  %v5078_v52 = vpop.eup %5077 }
 0x492   :  { %v5080_v9 = vpop.eup %5079 }
 0x493   :  { %v3616_v38 = vadd.f32 %v5060_v13, %v3615_v24  ;;  %v5082_v53 = vpop.eup %5081 }
 0x494   :  { %v5084_v56 = vpop.eup %5083 }
 0x495   :  { %v3617_v21 = vadd.f32 %v5062_v22, %v3616_v38 }
 0x497   :  { %v3618_v58 = vadd.f32 %v5064_v6, %v3617_v21 }
 0x499   :  { %v3619_v57 = vadd.f32 %v5066_v31, %v3618_v58  ;;  %v4923_v58 = vld [vmem:[%s9615_s5 + $0xc] sm:$0xf] }
 0x49b   :  { %v3620_v59 = vadd.f32 %v5068_v51, %v3619_v57  ;;  %v4931_v57 = vld [vmem:[%s9615_s5 + $0x2c] sm:$0xf] }
 0x49d   :  { %v3621_v42 = vadd.f32 %v9003_v54, %v3620_v59  ;;  %v4930_v59 = vld [vmem:[%s9615_s5 + $0x28] sm:$0xf] }
 0x49f   :  { %v3622_v36 = vadd.f32 %v9006_v1, %v3621_v42 }
 0x4a1   :  { %v3623_v60 = vadd.f32 %v5074_v44, %v3622_v36  ;;  %v3832_v36 = vlaneseq }
 0x4a3   :  { %v3624_v47 = vadd.f32 %v5076_v55, %v3623_v60 }
 0x4a5   :  { %v3625_v33 = vadd.f32 %v5078_v52, %v3624_v47  ;;  %v3833_v47 = vshrl.u32 %v3832_v36, 7 }
 0x4a7   :  { %v3626_v27 = vadd.f32 %v5080_v9, %v3625_v33 }
 0x4a9   :  { %v3627_v4 = vadd.f32 %v5082_v53, %v3626_v27  ;;  %v9191_v27 = vsub.s32 1, %v3833_v47 }
 0x4ab   :  { %v3628_v14 = vadd.f32 %v5084_v56, %v3627_v4 }
 0x4ad   :  { %v3629_v17 = vrot.slane %v3628_v14, 4 }
 0x4af   :  { %v3630_v49 = vadd.f32 %v3629_v17, %v3628_v14  ;;  %v4922_v17 = vld [vmem:[%s9615_s5 + $0x8] sm:$0xf] }
 0x4b1   :  { %v3631_v40 = vrot.slane %v3630_v49, 2 }
 0x4b3   :  { %v3632_v5 = vadd.f32 %v3631_v40, %v3630_v49 }
 0x4b5   :  { %v3633_v46 = vrot.slane %v3632_v5, 1 }
 0x4b7   :  { %v3634_v10 = vadd.f32 %v3633_v46, %v3632_v5 }
 0x4b9   :  { %5085 = vrcp.f32 %v3634_v10  ;;  %v3827_v10 = vld [vmem:[%s9615_s5] sm:$0xf] }
 0x4c6   :  { %v5086_v35 = vpop.eup %5085 }
 0x4c7   :  { %v3652_v45 = vmul.f32 %v5086_v35, %v5068_v51  ;;  %v3651_v26 = vmul.f32 %v5086_v35, %v5066_v31  ;;  %v3650_v8 = vmul.f32 %v5086_v35, %v5064_v6  ;;  %v3649_v29 = vmul.f32 %v5086_v35, %v5062_v22  ;;  %v4925_v6 = vld [vmem:[%s9615_s5 + $0x14] sm:$0xf]  ;;  %v4926_v31 = vld [vmem:[%s9615_s5 + $0x18] sm:$0xf]  ;;  %v4927_v51 = vld [vmem:[%s9615_s5 + $0x1c] sm:$0xf] }
 0x4c8   :  { %v3648_v2 = vmul.f32 %v5086_v35, %v5060_v13  ;;  %v3647_v7 = vmul.f32 %v5086_v35, %v5058_v25  ;;  %v3646_v61 = vmul.f32 %v5086_v35, %v8993_v19  ;;  %v3645_v62 = vmul.f32 %v5086_v35, %v8988_v28 }
 0x4c9   :  { %3676 = vst [vmem:[%s9614_s6 + $0x78] sm:$0xff] %v3652_v45  ;;  %3699 = vmatpush1.msra.mxu1 %v3652_v45  ;;  %3675 = vst [vmem:[%s9614_s6 + $0x70] sm:$0xff] %v3651_v26  ;;  %v3644_v19 = vmul.f32 %v5086_v35, %v8983_v41  ;;  %v3643_v28 = vmul.f32 %v5086_v35, %v8978_v43  ;;  %v3642_v25 = vmul.f32 %v5086_v35, %v8973_v37 }
 0x4ca   :  { %3674 = vst [vmem:[%s9614_s6 + $0x68] sm:$0xff] %v3650_v8  ;;  %3673 = vst [vmem:[%s9614_s6 + $0x60] sm:$0xff] %v3649_v29  ;;  %v3641_v18 = vmul.f32 %v5086_v35, %v8968_v3  ;;  %3700 = vmatprep.subr.mxu1 %v5119_v0  ;;  %v3640_v3 = vmul.f32 %v5086_v35, %v8963_v20  ;;  %v3639_v37 = vmul.f32 %v5086_v35, %v8958_v34 }
 0x4cb   :  { %3672 = vst [vmem:[%s9614_s6 + $0x58] sm:$0xff] %v3648_v2  ;;  %3671 = vst [vmem:[%s9614_s6 + $0x50] sm:$0xff] %v3647_v7  ;;  %v3638_v43 = vmul.f32 %v5086_v35, %v8952_v39  ;;  %v9044_v41 = vmul.f32 %v5086_v35, %v8948_v30  ;;  %3701 = vmatpush1.msra.mxu1 %v3651_v26  ;;  %v3660_v39 = vmul.f32 %v5086_v35, %v5084_v56 }
 0x4cc   :  { %3670 = vst [vmem:[%s9614_s6 + $0x48] sm:$0xff] %v3646_v61  ;;  %3669 = vst [vmem:[%s9614_s6 + $0x40] sm:$0xff] %v3645_v62  ;;  %v9058_v30 = vmul.f32 %v5086_v35, %v5082_v53  ;;  %v9060_v34 = vmul.f32 %v5086_v35, %v5080_v9  ;;  %v9062_v20 = vmul.f32 %v5086_v35, %v5078_v52  ;;  %3702 = vmatprep.subr.mxu1 %v5119_v0 }
 0x4cd   :  { %3668 = vst [vmem:[%s9614_s6 + $0x38] sm:$0xff] %v3644_v19  ;;  %3667 = vst [vmem:[%s9614_s6 + $0x30] sm:$0xff] %v3643_v28  ;;  %v9078_v24 = vmul.f32 %v5086_v35, %v5076_v55  ;;  %v9080_v13 = vmul.f32 %v5086_v35, %v5074_v44  ;;  %v9083_v32 = vmul.f32 %v5086_v35, %v9006_v1  ;;  %3703 = vmatpush1.msra.mxu1 %v3650_v8 }
 0x4ce   :  { %3666 = vst [vmem:[%s9614_s6 + $0x28] sm:$0xff] %v3642_v25  ;;  %3665 = vst [vmem:[%s9614_s6 + $0x20] sm:$0xff] %v3641_v18  ;;  %v9086_v11 = vmul.f32 %v5086_v35, %v9003_v54  ;;  %3704 = vmatprep.subr.mxu1 %v5119_v0  ;;  %v4929_v54 = vld [vmem:[%s9615_s5 + $0x24] sm:$0xf] }
 0x4cf   :  { %3664 = vst [vmem:[%s9614_s6 + $0x18] sm:$0xff] %v3640_v3  ;;  %3663 = vst [vmem:[%s9614_s6 + $0x10] sm:$0xff] %v3639_v37  ;;  %3705 = vmatpush1.msra.mxu1 %v3649_v29  ;;  %v4921_v35 = vld [vmem:[%s9615_s5 + $0x4] sm:$0xf] }
 0x4d0   :  { %3662 = vst [vmem:[%s9614_s6 + $0x8] sm:$0xff] %v3638_v43  ;;  %3661 = vst [vmem:[%s9614_s6] sm:$0xff] %v9044_v41  ;;  %3706 = vmatprep.subr.mxu1 %v5119_v0 }
 0x4d1   :  { %3684 = vst [vmem:[%s9614_s6 + $0xb8] sm:$0xff] %v3660_v39  ;;  %3683 = vst [vmem:[%s9614_s6 + $0xb0] sm:$0xff] %v9058_v30  ;;  %3707 = vmatpush1.msra.mxu1 %v3648_v2 }
 0x4d2   :  { %3682 = vst [vmem:[%s9614_s6 + $0xa8] sm:$0xff] %v9060_v34  ;;  %3681 = vst [vmem:[%s9614_s6 + $0xa0] sm:$0xff] %v9062_v20  ;;  %3708 = vmatprep.subr.mxu1 %v5119_v0 }
 0x4d3   :  { %3680 = vst [vmem:[%s9614_s6 + $0x98] sm:$0xff] %v9078_v24  ;;  %3679 = vst [vmem:[%s9614_s6 + $0x90] sm:$0xff] %v9080_v13  ;;  %3709 = vmatpush1.msra.mxu1 %v3647_v7 }
 0x4d4   :  { %3678 = vst [vmem:[%s9614_s6 + $0x88] sm:$0xff] %v9083_v32  ;;  %3677 = vst [vmem:[%s9614_s6 + $0x80] sm:$0xff] %v9086_v11  ;;  %3710 = vmatprep.subr.mxu1 %v5119_v0 }
 0x4d5   :  { %3711 = vmatpush1.msra.mxu1 %v3646_v61 }
 0x4d6   :  { %3712 = vmatprep.subr.mxu1 %v5119_v0 }
 0x4d7   :  { %3713 = vmatpush1.msra.mxu1 %v3645_v62 }
 0x4d8   :  { %3714 = vmatprep.subr.mxu1 %v5119_v0 }
 0x4d9   :  { %3715 = vmatpush1.msra.mxu1 %v3644_v19 }
 0x4da   :  { %3716 = vmatprep.subr.mxu1 %v5119_v0 }
 0x4db   :  { %3717 = vmatpush1.msra.mxu1 %v3643_v28 }
 0x4dc   :  { %v3771_v12 = vpop.permute.xlu0 %3770  ;;  %3718 = vmatprep.subr.mxu1 %v5119_v0  ;;  %v3779_v63 = vpop.permute.xlu1 %3778 }
 0x4dd   :  { %v3773_v38 = vadd.f32 %v3771_v12, %v8910_v50  ;;  %3719 = vmatpush1.msra.mxu1 %v3642_v25 }
 0x4de   :  { %3720 = vmatprep.subr.mxu1 %v5119_v0 }
 0x4df   :  { %3721 = vmatpush1.msra.mxu1 %v3641_v18 }
 0x4e0   :  { %v3775_v22 = vpop.permute.xlu0 %3774  ;;  %3722 = vmatprep.subr.mxu1 %v5119_v0 }
 0x4e1   :  { %v3777_v16 = vadd.f32 %v3775_v22, %v3773_v38  ;;  %3723 = vmatpush1.msra.mxu1 %v3640_v3 }
 0x4e2   :  { %3724 = vmatprep.subr.mxu1 %v5119_v0 }
 0x4e3   :  { %v3781_v21 = vadd.f32 %v3779_v63, %v3777_v16  ;;  %3725 = vmatpush1.msra.mxu1 %v3639_v37 }
 0x4e4   :  { %3726 = vmatprep.subr.mxu1 %v5119_v0 }
 0x4e5   :  { %3792 = vrot.lane.b32.xlu0 %v3781_v21, %s5122_s25  ;;  %3786 = vrot.lane.b32.xlu1 %v3781_v21, %s5120_s3  ;;  %5087 = vrcp.f32 %v3781_v21 }
 0x4e6   :  { %3727 = vmatpush1.msra.mxu1 %v3638_v43  ;;  %v9224_v43 = vsub.s32 2, %v3833_v47 }
 0x4e7   :  { %3728 = vmatprep.subr.mxu1 %v5119_v0 }
 0x4e8   :  { %3729 = vmatpush1.msra.mxu1 %v9044_v41 }
 0x4e9   :  { %3905 = vrot.lane.b32.xlu0 %v4925_v6, %s5120_s3  ;;  %3798 = vrot.lane.b32.xlu1 %v3781_v21, %s5121_s24 }
 0x4ea   :  { %3746 = vmatprep.subr.mxu1 %v5119_v0 }
 0x4eb   :  { %3747 = vmatpush2.msra.mxu1 %v3660_v39 }
 0x4ec   :  { %3748 = vmatprep.subr.mxu1 %v5119_v0 }
 0x4ed   :  { %3921 = vrot.lane.b32.xlu0 %v4924_v23, %s5120_s3  ;;  %3910 = vrot.lane.b32.xlu1 %v4923_v58, %s5120_s3  ;;  %v9235_v23 = vsub.s32 3, %v3833_v47 }
 0x4ee   :  { %3749 = vmatpush2.msra.mxu1 %v9058_v30 }
 0x4ef   :  { %3750 = vmatprep.subr.mxu1 %v5119_v0 }
 0x4f0   :  { %3751 = vmatpush2.msra.mxu1 %v9060_v34 }
 0x4f1   :  { %4018 = vrot.lane.b32.xlu0 %v4926_v31, %s5122_s25  ;;  %3752 = vmatprep.subr.mxu1 %v5119_v0 }
 0x4f2   :  { %4013 = vrot.lane.b32.xlu1 %v4928_v48, %s5122_s25  ;;  %3753 = vmatpush2.msra.mxu1 %v9062_v20  ;;  %v5088_v44 = vpop.eup %5087 }
 0x4f3   :  { %3754 = vmatprep.subr.mxu1 %v5119_v0  ;;  %v3783_v33 = vmul.f32 %v5088_v44, %v8910_v50 }
 0x4f4   :  { %3755 = vmatpush2.msra.mxu1 %v9078_v24 }
 0x4f5   :  { %4121 = vrot.lane.b32.xlu0 %v4931_v57, %s5121_s24  ;;  %3756 = vmatprep.subr.mxu1 %v5119_v0  ;;  %v9195_v4 = vadd.f32 1e-05, %v3783_v33 }
 0x4f6   :  { %4029 = vrot.lane.b32.xlu1 %v4927_v51, %s5122_s25  ;;  %3757 = vmatpush2.msra.mxu1 %v9080_v13 }
 0x4f7   :  { %3758 = vmatprep.subr.mxu1 %v5119_v0 }
 0x4f8   :  { %3759 = vmatpush2.msra.mxu1 %v9083_v32 }
 0x4f9   :  { %4137 = vrot.lane.b32.xlu0 %v4930_v59, %s5121_s24  ;;  %3760 = vmatprep.subr.mxu1 %v5119_v0 }
 0x4fa   :  { %4126 = vrot.lane.b32.xlu1 %v4929_v54, %s5121_s24  ;;  %3761 = vmatpush2.msra.mxu1 %v9086_v11 }
 0x4fb   :  { %3763 = vmatmul.mubr.f32.vlgmr.msra.gmra.mxu1 %v8940_v15  ;;  %v9193_v15 = vsub.s32 0, %v3833_v47 }
 0x4fd   :  { %v3841_v61 = vrot.slane %v9195_v4, %v9193_v15 }
 0x557   :  { %v3787_v42 = vpop.permute.xlu1 %3786  ;;  %v3793_v1 = vpop.permute.xlu0 %3792 }
 0x558   :  { %5089 = vrcp.f32 %v3787_v42 }
 0x559   :  { %5091 = vrcp.f32 %v3793_v1 }
 0x55b   :  { %v3799_v55 = vpop.permute.xlu1 %3798  ;;  %v3906_v52 = vpop.permute.xlu0 %3905 }
 0x55c   :  { %5093 = vrcp.f32 %v3799_v55 }
 0x55f   :  { %v3911_v9 = vpop.permute.xlu1 %3910  ;;  %v3922_v49 = vpop.permute.xlu0 %3921 }
 0x563   :  { %v4019_v41 = vpop.permute.xlu0 %4018 }
 0x564   :  { %v4014_v26 = vpop.permute.xlu1 %4013 }
 0x565   :  { %v5090_v60 = vpop.eup %5089 }
 0x566   :  { %v3790_v0 = vmul.f32 %v5090_v60, %v8910_v50  ;;  %v5092_v53 = vpop.eup %5091 }
 0x567   :  { %v3796_v46 = vmul.f32 %v5092_v53, %v8910_v50  ;;  %v4122_v31 = vpop.permute.xlu0 %4121 }
 0x568   :  { %v9197_v56 = vadd.f32 1e-05, %v3790_v0  ;;  %v4030_v12 = vpop.permute.xlu1 %4029 }
 0x569   :  { %v9222_v37 = vadd.f32 1e-05, %v3796_v46  ;;  %v5094_v58 = vpop.eup %5093 }
 0x56a   :  { %v3917_v62 = vrot.slane %v9197_v56, %v9193_v15  ;;  %v3802_v44 = vmul.f32 %v5094_v58, %v8910_v50 }
 0x56b   :  { %v4025_v11 = vrot.slane %v9222_v37, %v9193_v15 }
 0x56c   :  { %v4127_v60 = vpop.permute.xlu1 %4126  ;;  %v9248_v53 = vadd.f32 1e-05, %v3802_v44 }
 0x5bb   :  { %v3764_v14 = vpop.f32.mrf.mxu1 }
 0x5bc   :  { %3768 = vst [vmem:[%s9616_s7] sm:$0x3] %v3764_v14  ;;  %v3835_v40 = vrot.slane %v3764_v14, %v9193_v15  ;;  %v9207_v5 = vrot.slane %v3764_v14, %v9191_v27 }
 0x5bd   :  { %v3766_v45 = vpop.f32.mrf.mxu1 }
 0x5be   :  { %v3836_v8 = vmul.f32 %v4922_v17, %v3835_v40  ;;  %v3847_v29 = vmul.f32 %v4922_v17, %v9207_v5  ;;  %v3908_v2 = vmul.f32 %v3906_v52, %v3835_v40  ;;  %v3919_v7 = vmul.f32 %v3906_v52, %v9207_v5 }
 0x5bf   :  { %v4016_v19 = vmul.f32 %v4014_v26, %v3835_v40  ;;  %v4027_v6 = vmul.f32 %v4014_v26, %v9207_v5  ;;  %v4124_v42 = vmul.f32 %v4122_v31, %v3835_v40 }
 0x5c0   :  { %v3837_v28 = vsub.f32 %v3836_v8, %v3827_v10  ;;  %v3848_v25 = vsub.f32 %v3847_v29, %v4921_v35  ;;  %v3913_v18 = vsub.f32 %v3908_v2, %v3911_v9  ;;  %v3924_v3 = vsub.f32 %v3919_v7, %v3922_v49 }
 0x5c1   :  { %v4021_v24 = vsub.f32 %v4016_v19, %v4019_v41  ;;  %v4032_v54 = vsub.f32 %v4027_v6, %v4030_v12  ;;  %v4129_v33 = vsub.f32 %v4124_v42, %v4127_v60  ;;  %v4138_v12 = vpop.permute.xlu0 %4137 }
 0x5c2   :  { %v3842_v39 = vmul.f32 %v3841_v61, %v3837_v28  ;;  %v3849_v30 = vmul.f32 %v3848_v25, %v3841_v61  ;;  %v3918_v34 = vmul.f32 %v3917_v62, %v3913_v18  ;;  %v3925_v20 = vmul.f32 %v3924_v3, %v3917_v62 }
 0x5c3   :  { %v9232_v21 = vmul.f32 %v4025_v11, %v4021_v24  ;;  %v4033_v52 = vmul.f32 %v4032_v54, %v4025_v11  ;;  %v4133_v11 = vrot.slane %v9248_v53, %v9193_v15 }
 0x5c4   :  { %v3949_v13 = vrot.slane %v3918_v34, %v9191_v27  ;;  %v3929_v32 = vrot.slane %v3918_v34, %v9193_v15  ;;  %v3959_v16 = vrot.slane %v3925_v20, %v9191_v27  ;;  %v3969_v63 = vrot.slane %v3918_v34, %v9224_v43 }
 0x5c5   :  { %v3939_v51 = vrot.slane %v3925_v20, %v9193_v15  ;;  %v3979_v59 = vrot.slane %v3925_v20, %v9224_v43  ;;  %v3989_v1 = vrot.slane %v3918_v34, %v9235_v23  ;;  %v4057_v36 = vrot.slane %v9232_v21, %v9191_v27 }
 0x5c6   :  { %v3950_v38 = vmul.f32 %v3949_v13, %v3918_v34  ;;  %v3930_v22 = vmul.f32 %v3929_v32, %v3918_v34  ;;  %v3960_v48 = vmul.f32 %v3959_v16, %v3925_v20  ;;  %v3970_v57 = vmul.f32 %v3969_v63, %v3918_v34 }
 0x5c7   :  { %v3940_v55 = vmul.f32 %v3939_v51, %v3925_v20  ;;  %v3980_v47 = vmul.f32 %v3979_v59, %v3925_v20  ;;  %v3990_v0 = vmul.f32 %v3989_v1, %v3918_v34  ;;  %v4058_v9 = vmul.f32 %v4057_v36, %v9232_v21 }
 0x5c8   :  { %3952 = vrot.lane.b32.xlu1 %v3950_v38, %s5121_s24  ;;  %3932 = vrot.lane.b32.xlu0 %v3930_v22, %s5121_s24  ;;  %v3999_v50 = vrot.slane %v3925_v20, %v9235_v23  ;;  %v4037_v14 = vrot.slane %v9232_v21, %v9193_v15  ;;  %v3871_v17 = vrot.slane %v3849_v30, %v9191_v27 }
 0x5c9   :  { %v3865_v49 = vrot.slane %v3842_v39, %v9191_v27  ;;  %v3859_v40 = vrot.slane %v3849_v30, %v9193_v15  ;;  %v3853_v46 = vrot.slane %v3842_v39, %v9193_v15  ;;  %v3883_v10 = vrot.slane %v3849_v30, %v9224_v43 }
 0x5ca   :  { %v3872_v35 = vmul.f32 %v3871_v17, %v3849_v30  ;;  %v3877_v45 = vrot.slane %v3842_v39, %v9224_v43  ;;  %v3895_v26 = vrot.slane %v3849_v30, %v9235_v23  ;;  %v3889_v8 = vrot.slane %v3842_v39, %v9235_v23 }
 0x5cb   :  { %v3866_v29 = vmul.f32 %v3865_v49, %v3842_v39  ;;  %v3860_v2 = vmul.f32 %v3859_v40, %v3849_v30  ;;  %v3854_v7 = vmul.f32 %v3853_v46, %v3842_v39  ;;  %v3884_v61 = vmul.f32 %v3883_v10, %v3849_v30 }
 0x5cc   :  { %3962 = vrot.lane.b32.xlu1 %v3960_v48, %s5121_s24  ;;  %3972 = vrot.lane.b32.xlu0 %v3970_v57, %s5121_s24  ;;  %v3878_v62 = vmul.f32 %v3877_v45, %v3842_v39  ;;  %v3896_v19 = vmul.f32 %v3895_v26, %v3849_v30  ;;  %v3890_v28 = vmul.f32 %v3889_v8, %v3842_v39 }
 0x5cd   :  { %v4067_v25 = vrot.slane %v4033_v52, %v9191_v27  ;;  %v4077_v18 = vrot.slane %v9232_v21, %v9224_v43  ;;  %v3873_v3 = vadd.f32 %v3872_v35, %v3866_v29  ;;  %v3861_v41 = vadd.f32 %v3860_v2, %v3854_v7 }
 0x5ce   :  { %v4000_v34 = vmul.f32 %v3999_v50, %v3925_v20  ;;  %v4038_v24 = vmul.f32 %v4037_v14, %v9232_v21  ;;  %v9269_v13 = vadd.f32 %v3884_v61, %v3878_v62  ;;  %v9271_v32 = vadd.f32 %v3896_v19, %v3890_v28 }
 0x5cf   :  { %v4135_v39 = vmul.f32 %v4122_v31, %v9207_v5  ;;  %v4134_v30 = vmul.f32 %v4133_v11, %v4129_v33  ;;  %v4068_v38 = vmul.f32 %v4067_v25, %v4033_v52  ;;  %v4078_v20 = vmul.f32 %v4077_v18, %v9232_v21 }
 0x5d0   :  { %3942 = vrot.lane.b32.xlu1 %v3940_v55, %s5121_s24  ;;  %3982 = vrot.lane.b32.xlu0 %v3980_v47, %s5121_s24  ;;  %v4047_v22 = vrot.slane %v4033_v52, %v9193_v15  ;;  %v4087_v16 = vrot.slane %v4033_v52, %v9224_v43  ;;  %v4097_v48 = vrot.slane %v9232_v21, %v9235_v23  ;;  %v3815_v14 = vrot.slane %v9248_v53, 5 }
 0x5d1   :  { %v4140_v63 = vsub.f32 %v4135_v39, %v4138_v12  ;;  %v4165_v5 = vrot.slane %v4134_v30, %v9191_v27  ;;  %v4107_v59 = vrot.slane %v4033_v52, %v9235_v23  ;;  %v4145_v54 = vrot.slane %v4134_v30, %v9193_v15 }
 0x5d2   :  { %v4048_v6 = vmul.f32 %v4047_v22, %v4033_v52  ;;  %v4088_v58 = vmul.f32 %v4087_v16, %v4033_v52  ;;  %v4098_v57 = vmul.f32 %v4097_v48, %v9232_v21  ;;  %v4185_v44 = vrot.slane %v4134_v30, %v9224_v43 }
 0x5d3   :  { %v4141_v31 = vmul.f32 %v4140_v63, %v4133_v11  ;;  %v4166_v51 = vmul.f32 %v4165_v5, %v4134_v30  ;;  %v4108_v42 = vmul.f32 %v4107_v59, %v4033_v52  ;;  %v4146_v1 = vmul.f32 %v4145_v54, %v4134_v30 }
 0x5d4   :  { %3992 = vrot.lane.b32.xlu1 %v3990_v0, %s5121_s24  ;;  %4060 = vrot.lane.b32.xlu0 %v4058_v9, %s5122_s25  ;;  %v4186_v60 = vmul.f32 %v4185_v44, %v4134_v30 }
 0x5d5   :  { %v4175_v36 = vrot.slane %v4141_v31, %v9191_v27  ;;  %v4155_v55 = vrot.slane %v4141_v31, %v9193_v15  ;;  %v4195_v47 = vrot.slane %v4141_v31, %v9224_v43  ;;  %v4205_v27 = vrot.slane %v4134_v30, %v9235_v23 }
 0x5d6   :  { %v4215_v0 = vrot.slane %v4141_v31, %v9235_v23  ;;  %v3805_v15 = vrot.slane %v9197_v56, 7  ;;  %v3810_v43 = vrot.slane %v9222_v37, 6 }
 0x5d7   :  { %v4176_v21 = vmul.f32 %v4175_v36, %v4141_v31  ;;  %v4156_v52 = vmul.f32 %v4155_v55, %v4141_v31  ;;  %v4196_v33 = vmul.f32 %v4195_v47, %v4141_v31  ;;  %v4206_v9 = vmul.f32 %v4205_v27, %v4134_v30 }
 0x5d8   :  { %4002 = vrot.lane.b32.xlu1 %v4000_v34, %s5121_s24  ;;  %4040 = vrot.lane.b32.xlu0 %v4038_v24, %s5122_s25  ;;  %v4216_v50 = vmul.f32 %v4215_v0, %v4141_v31 }
 0x5dc   :  { %4070 = vrot.lane.b32.xlu1 %v4068_v38, %s5122_s25  ;;  %4080 = vrot.lane.b32.xlu0 %v4078_v20, %s5122_s25 }
 0x5e0   :  { %4050 = vrot.lane.b32.xlu1 %v4048_v6, %s5122_s25  ;;  %4090 = vrot.lane.b32.xlu0 %v4088_v58, %s5122_s25 }
 0x5e4   :  { %4100 = vrot.lane.b32.xlu1 %v4098_v57, %s5122_s25  ;;  %4168 = vrot.lane.b32.xlu0 %v4166_v51, %s5120_s3 }
 0x5e8   :  { %4110 = vrot.lane.b32.xlu1 %v4108_v42, %s5122_s25  ;;  %4148 = vrot.lane.b32.xlu0 %v4146_v1, %s5120_s3 }
 0x5ec   :  { %4178 = vrot.lane.b32.xlu1 %v4176_v21, %s5120_s3  ;;  %4188 = vrot.lane.b32.xlu0 %v4186_v60, %s5120_s3 }
 0x5f0   :  { %4158 = vrot.lane.b32.xlu1 %v4156_v52, %s5120_s3  ;;  %4198 = vrot.lane.b32.xlu0 %v4196_v33, %s5120_s3 }
 0x5f4   :  { %4208 = vrot.lane.b32.xlu1 %v4206_v9, %s5120_s3  ;;  %4218 = vrot.lane.b32.xlu0 %v4216_v50, %s5120_s3 }
 0x5f8   :  { %3806 = vrot.lane.b32.xlu1 %v3805_v15, %s5121_s24  ;;  %3811 = vrot.lane.b32.xlu0 %v3810_v43, %s5122_s25 }
 0x5fc   :  { %3816 = vrot.lane.b32.xlu1 %v3815_v14, %s5120_s3 }
 0x63a   :  { %v3953_v17 = vpop.permute.xlu1 %3952  ;;  %v3933_v49 = vpop.permute.xlu0 %3932 }
 0x63b   :  { %v3955_v40 = vadd.f32 %v3953_v17, %v3873_v3  ;;  %v3935_v46 = vadd.f32 %v3933_v49, %v3861_v41 }
 0x63e   :  { %v3963_v10 = vpop.permute.xlu1 %3962  ;;  %v3973_v35 = vpop.permute.xlu0 %3972 }
 0x63f   :  { %v3965_v45 = vadd.f32 %v3963_v10, %v3955_v40  ;;  %v3975_v26 = vadd.f32 %v3973_v35, %v9269_v13 }
 0x642   :  { %v3943_v56 = vpop.permute.xlu1 %3942  ;;  %v3983_v8 = vpop.permute.xlu0 %3982 }
 0x643   :  { %v3945_v37 = vadd.f32 %v3943_v56, %v3935_v46  ;;  %v3985_v29 = vadd.f32 %v3983_v8, %v3975_v26 }
 0x646   :  { %v3993_v2 = vpop.permute.xlu1 %3992  ;;  %v4061_v7 = vpop.permute.xlu0 %4060 }
 0x647   :  { %v3995_v61 = vadd.f32 %v3993_v2, %v9271_v32  ;;  %v4063_v53 = vadd.f32 %v4061_v7, %v3965_v45 }
 0x64a   :  { %v4003_v62 = vpop.permute.xlu1 %4002  ;;  %v4041_v19 = vpop.permute.xlu0 %4040 }
 0x64b   :  { %v4005_v28 = vadd.f32 %v4003_v62, %v3995_v61  ;;  %v4043_v25 = vadd.f32 %v4041_v19, %v3945_v37 }
 0x64e   :  { %v4071_v18 = vpop.permute.xlu1 %4070  ;;  %v4081_v3 = vpop.permute.xlu0 %4080 }
 0x64f   :  { %v4073_v41 = vadd.f32 %v4071_v18, %v4063_v53  ;;  %v4083_v34 = vadd.f32 %v4081_v3, %v3985_v29 }
 0x652   :  { %v4051_v24 = vpop.permute.xlu1 %4050  ;;  %v4091_v11 = vpop.permute.xlu0 %4090 }
 0x653   :  { %v4053_v13 = vadd.f32 %v4051_v24, %v4043_v25  ;;  %v4093_v39 = vadd.f32 %v4091_v11, %v4083_v34 }
 0x656   :  { %v4101_v30 = vpop.permute.xlu1 %4100  ;;  %v4169_v12 = vpop.permute.xlu0 %4168 }
 0x657   :  { %v4103_v38 = vadd.f32 %v4101_v30, %v4005_v28  ;;  %v4171_v16 = vadd.f32 %v4169_v12, %v4073_v41 }
 0x65a   :  { %v4111_v20 = vpop.permute.xlu1 %4110  ;;  %v4149_v22 = vpop.permute.xlu0 %4148 }
 0x65b   :  { %v4151_v58 = vadd.f32 %v4149_v22, %v4053_v13  ;;  %v4113_v54 = vadd.f32 %v4111_v20, %v4103_v38 }
 0x65e   :  { %v4179_v32 = vpop.permute.xlu1 %4178  ;;  %v4189_v63 = vpop.permute.xlu0 %4188 }
 0x65f   :  { %v4181_v6 = vadd.f32 %v4179_v32, %v4171_v16  ;;  %v4191_v48 = vadd.f32 %v4189_v63, %v4093_v39 }
 0x661   :  { %v4223_v57 = vrot.slane %v4181_v6, 1 }
 0x662   :  { %v4159_v5 = vpop.permute.xlu1 %4158  ;;  %v4199_v31 = vpop.permute.xlu0 %4198 }
 0x663   :  { %v4161_v51 = vadd.f32 %v4159_v5, %v4151_v58  ;;  %v4201_v59 = vadd.f32 %v4199_v31, %v4191_v48 }
 0x665   :  { %v4225_v42 = vadd.f32 %v4223_v57, %v4161_v51  ;;  %v4227_v1 = vrot.slane %v4201_v59, 2 }
 0x666   :  { %v4209_v36 = vpop.permute.xlu1 %4208  ;;  %v4219_v44 = vpop.permute.xlu0 %4218 }
 0x667   :  { %v4229_v21 = vadd.f32 %v4227_v1, %v4225_v42  ;;  %v4211_v60 = vadd.f32 %v4209_v36, %v4113_v54 }
 0x669   :  { %v4221_v55 = vadd.f32 %v4219_v44, %v4211_v60 }
 0x66a   :  { %v3807_v47 = vpop.permute.xlu1 %3806  ;;  %v3812_v27 = vpop.permute.xlu0 %3811 }
 0x66b   :  { %v4231_v52 = vrot.slane %v4221_v55, 3  ;;  %v3820_v33 = vsel %vm3819_vm1, %v9195_v4, %v3807_v47 }
 0x66c   :  { %v3822_v9 = vsel %vm3821_vm2, %v3820_v33, %v3812_v27 }
 0x66d   :  { %v4233_v0 = vadd.f32 %v4231_v52, %v4229_v21 }
 0x66e   :  { %v3817_v50 = vpop.permute.xlu1 %3816 }
 0x66f   :  { %v4234_v15 = vadd.f32 1e-20, %v4233_v0  ;;  %v3824_v43 = vsel %vm3823_vm3, %v3822_v9, %v3817_v50 }
 0x670   :  { %3826 = vst.msk [vmem:[%s9617_s8] sm:$0xf] %vm3825_vm4, %v3824_v43  ;;  %s9584_s8 = smov 0  }
 0x671   :  { %5095 = vrcp.f32 %v4234_v15 }
 0x67e   :  { %v5096_v14 = vpop.eup %5095 }
 0x67f   :  { %v4239_v17 = vrot.slane %v5096_v14, 7  ;;  %v4242_v4 = vrot.slane %v5096_v14, 6  ;;  %v4245_v49 = vrot.slane %v5096_v14, 5  ;;  %v9323_v40 = vmul.f32 %v5096_v14, %v4181_v6 }
 0x680   :  { %v9325_v46 = vmul.f32 %v5096_v14, %v4201_v59  ;;  %v9327_v10 = vmul.f32 %v5096_v14, %v4221_v55  ;;  %v9329_v35 = vmul.f32 %v5096_v14, %v4161_v51 }
 0x681   :  { %v9331_v45 = vmul.f32 %v4239_v17, %v4161_v51  ;;  %v9333_v26 = vmul.f32 %v4242_v4, %v4161_v51  ;;  %v9335_v56 = vmul.f32 %v4245_v49, %v4161_v51  ;;  %v9337_v8 = vmul.f32 %v4239_v17, %v4181_v6 }
 0x682   :  { %v9339_v37 = vmul.f32 %v4242_v4, %v4181_v6  ;;  %v9341_v29 = vmul.f32 %v4245_v49, %v4181_v6  ;;  %v9343_v2 = vmul.f32 %v4239_v17, %v4201_v59  ;;  %v9345_v7 = vmul.f32 %v4242_v4, %v4201_v59 }
 0x683   :  { %v9347_v61 = vmul.f32 %v4245_v49, %v4201_v59  ;;  %v9349_v53 = vmul.f32 %v4239_v17, %v4221_v55  ;;  %v4258_v62 = vmul.f32 %v4242_v4, %v4221_v55  ;;  %v4259_v19 = vmul.f32 %v4245_v49, %v4221_v55 }
 0x684   :  { %v4436_v28 = vrot.slane %v9327_v10, 5  ;;  %v4454_v25 = vrot.slane %v9327_v10, 6  ;;  %v4578_v18 = vrot.slane %v9327_v10, 7 }
 0x685   :  { %v4261_v41 = vrot.slane %v4259_v19, 1  ;;  %v4265_v34 = vrot.slane %v4258_v62, 7  ;;  %v4276_v24 = vrot.slane %v4259_v19, 2  ;;  %v4280_v11 = vrot.slane %v9349_v53, 6 }
 0x686   :  { %v4295_v13 = vrot.slane %v4258_v62, 1  ;;  %v4298_v39 = vrot.slane %v9349_v53, 7  ;;  %v4432_v30 = vrot.slane %v4259_v19, 3  ;;  %v4438_v12 = vmul.f32 %v4436_v28, %v9347_v61 }
 0x687   :  { %v4263_v38 = vmul.f32 %v4261_v41, %v9345_v7  ;;  %v4267_v20 = vmul.f32 %v4265_v34, %v9347_v61  ;;  %v4278_v22 = vmul.f32 %v4276_v24, %v9343_v2  ;;  %v4282_v16 = vmul.f32 %v4280_v11, %v9347_v61 }
 0x688   :  { %v4297_v32 = vmul.f32 %v4295_v13, %v9343_v2  ;;  %v4300_v63 = vmul.f32 %v4298_v39, %v9345_v7  ;;  %v4325_v6 = vmul.f32 %v4261_v41, %v9339_v37  ;;  %v4326_v58 = vmul.f32 %v4265_v34, %v9341_v29 }
 0x689   :  { %v4269_v48 = vrot.slane %v4267_v20, 1  ;;  %v4284_v5 = vrot.slane %v4282_v16, 2  ;;  %v4335_v31 = vmul.f32 %v4276_v24, %v9337_v8  ;;  %v4336_v57 = vmul.f32 %v4280_v11, %v9341_v29 }
 0x68a   :  { %v4302_v51 = vrot.slane %v4300_v63, 1  ;;  %v4328_v59 = vrot.slane %v4326_v58, 1  ;;  %v4349_v54 = vmul.f32 %v4295_v13, %v9337_v8  ;;  %v4350_v42 = vmul.f32 %v4298_v39, %v9339_v37 }
 0x68b   :  { %v9370_v1 = vsub.f32 %v4263_v38, %v4269_v48  ;;  %v9372_v36 = vsub.f32 %v4278_v22, %v4284_v5  ;;  %v4338_v44 = vrot.slane %v4336_v57, 2  ;;  %v4434_v21 = vmul.f32 %v4432_v30, %v9325_v46 }
 0x68c   :  { %v9375_v60 = vsub.f32 %v4297_v32, %v4302_v51  ;;  %v9377_v55 = vsub.f32 %v4325_v6, %v4328_v59  ;;  %v4352_v47 = vrot.slane %v4350_v42, 1  ;;  %v4440_v52 = vrot.slane %v4438_v12, 3 }
 0x68d   :  { %v4273_v33 = vrot.slane %v9370_v1, 1  ;;  %v4288_v27 = vrot.slane %v9372_v36, 7  ;;  %v9381_v0 = vsub.f32 %v4335_v31, %v4338_v44  ;;  %v4429_v9 = vrot.slane %v9370_v1, 2 }
 0x68e   :  { %v4306_v50 = vrot.slane %v9375_v60, 6  ;;  %v4332_v15 = vrot.slane %v9377_v55, 1  ;;  %v9386_v43 = vsub.f32 %v4349_v54, %v4352_v47  ;;  %v9388_v14 = vsub.f32 %v4434_v21, %v4440_v52 }
 0x68f   :  { %v4342_v17 = vrot.slane %v9381_v0, 7  ;;  %v4451_v4 = vrot.slane %v4258_v62, 2  ;;  %v4456_v49 = vmul.f32 %v4454_v25, %v9345_v7  ;;  %v4481_v19 = vrot.slane %v9377_v55, 2 }
 0x690   :  { %v4356_v41 = vrot.slane %v9386_v43, 6  ;;  %v4444_v34 = vrot.slane %v9388_v14, 6  ;;  %v4484_v24 = vmul.f32 %v4432_v30, %v9323_v40  ;;  %v4485_v11 = vmul.f32 %v4436_v28, %v9341_v29 }
 0x691   :  { %v4453_v13 = vmul.f32 %v4451_v4, %v9325_v46  ;;  %v4458_v39 = vrot.slane %v4456_v49, 2  ;;  %v4498_v12 = vmul.f32 %v4451_v4, %v9323_v40  ;;  %v4499_v38 = vmul.f32 %v4454_v25, %v9339_v37 }
 0x692   :  { %v4487_v62 = vrot.slane %v4485_v11, 3  ;;  %v4565_v20 = vrot.slane %v9372_v36, 1  ;;  %v4568_v22 = vrot.slane %v9388_v14, 7  ;;  %v4575_v16 = vrot.slane %v9349_v53, 1 }
 0x693   :  { %v9403_v32 = vsub.f32 %v4453_v13, %v4458_v39  ;;  %v4501_v63 = vrot.slane %v4499_v38, 2  ;;  %v4580_v28 = vmul.f32 %v4578_v18, %v9343_v2  ;;  %v4605_v30 = vrot.slane %v9381_v0, 1 }
 0x694   :  { %v9409_v6 = vsub.f32 %v4484_v24, %v4487_v62  ;;  %v4577_v25 = vmul.f32 %v4575_v16, %v9325_v46  ;;  %v4615_v58 = vmul.f32 %v4575_v16, %v9323_v40  ;;  %v4616_v48 = vmul.f32 %v4578_v18, %v9337_v8 }
 0x695   :  { %v4462_v53 = vrot.slane %v9403_v32, 5  ;;  %v9417_v5 = vsub.f32 %v4498_v12, %v4501_v63  ;;  %v4582_v31 = vrot.slane %v4580_v28, 1  ;;  %v4670_v57 = vrot.slane %v9375_v60, 1 }
 0x696   :  { %v4491_v51 = vrot.slane %v9409_v6, 6  ;;  %v4608_v59 = vrot.slane %v9409_v6, 7  ;;  %v4618_v54 = vrot.slane %v4616_v48, 1  ;;  %v4673_v42 = vrot.slane %v9403_v32, 7 }
 0x697   :  { %v4505_v1 = vrot.slane %v9417_v5, 5  ;;  %v9424_v36 = vsub.f32 %v4577_v25, %v4582_v31  ;;  %v4699_v10 = vrot.slane %v9386_v43, 1  ;;  %v4702_v18 = vrot.slane %v9417_v5, 7 }
 0x698   :  { %v9428_v44 = vsub.f32 %v4615_v58, %v4618_v54  ;;  %v4275_v21 = vmul.f32 %v4273_v33, %v9337_v8  ;;  %v4290_v47 = vmul.f32 %v4288_v27, %v9339_v37  ;;  %v4308_v52 = vmul.f32 %v4306_v50, %v9341_v29 }
 0x699   :  { %v4680_v14 = vrot.slane %v9424_v36, 6  ;;  %v4313_v4 = vmul.f32 %v4273_v33, %v9331_v45  ;;  %v4314_v49 = vmul.f32 %v4288_v27, %v9333_v26  ;;  %v4319_v24 = vmul.f32 %v4306_v50, %v9335_v56 }
 0x69a   :  { %v4622_v11 = vrot.slane %v9428_v44, 5  ;;  %v4292_v39 = vrot.slane %v4290_v47, 1  ;;  %v4310_v12 = vrot.slane %v4308_v52, 2  ;;  %v4431_v16 = vmul.f32 %v4429_v9, %v9323_v40 }
 0x69b   :  { %v4316_v38 = vrot.slane %v4314_v49, 1  ;;  %v4321_v62 = vrot.slane %v4319_v24, 2  ;;  %v4446_v32 = vmul.f32 %v4444_v34, %v9339_v37  ;;  %v4464_v28 = vmul.f32 %v4462_v53, %v9341_v29 }
 0x69c   :  { %v4294_v63 = vsub.f32 %v4275_v21, %v4292_v39  ;;  %v4470_v33 = vmul.f32 %v4429_v9, %v9329_v35  ;;  %v4471_v27 = vmul.f32 %v4444_v34, %v9333_v26  ;;  %v4476_v58 = vmul.f32 %v4462_v53, %v9335_v56 }
 0x69d   :  { %v4318_v50 = vsub.f32 %v4313_v4, %v4316_v38  ;;  %v4448_v25 = vrot.slane %v4446_v32, 2  ;;  %v4567_v48 = vmul.f32 %v4565_v20, %v9323_v40  ;;  %v4466_v54 = vrot.slane %v4464_v28, 3 }
 0x69e   :  { %v4312_v31 = vadd.f32 %v4310_v12, %v4294_v63  ;;  %v4473_v47 = vrot.slane %v4471_v27, 2  ;;  %v4570_v52 = vmul.f32 %v4568_v22, %v9337_v8  ;;  %v4478_v21 = vrot.slane %v4476_v58, 3 }
 0x69f   :  { %v4323_v49 = vadd.f32 %v4321_v62, %v4318_v50  ;;  %v4450_v24 = vsub.f32 %v4431_v16, %v4448_v25  ;;  %v4586_v39 = vrot.slane %v9424_v36, 5  ;;  %v4593_v34 = vmul.f32 %v4565_v20, %v9329_v35 }
 0x6a0   :  { %v4418_v3 = vrot.slane %v4312_v31, 1  ;;  %v4475_v9 = vsub.f32 %v4470_v33, %v4473_v47  ;;  %v4572_v13 = vrot.slane %v4570_v52, 1  ;;  %v4594_v12 = vmul.f32 %v4568_v22, %v9331_v45 }
 0x6a1   :  { %v4324_v4 = vmul.f32 -1.0, %v4323_v49  ;;  %v4468_v38 = vadd.f32 %v4466_v54, %v4450_v24  ;;  %v4588_v53 = vmul.f32 %v4586_v39, %v9341_v29  ;;  %v4599_v28 = vmul.f32 %v4586_v39, %v9335_v56 }
 0x6a2   :  { %v4480_v32 = vadd.f32 %v4478_v21, %v4475_v9  ;;  %v4574_v63 = vsub.f32 %v4567_v48, %v4572_v13  ;;  %v4672_v62 = vmul.f32 %v4670_v57, %v9323_v40  ;;  %v4596_v27 = vrot.slane %v4594_v12, 1 }
 0x6a3   :  { %v4426_v36 = vsel %vm3819_vm1, %v4418_v3, %v4324_v4  ;;  %v4469_v16 = vmul.f32 -1.0, %v4468_v38  ;;  %v4590_v33 = vrot.slane %v4588_v53, 3  ;;  %v4601_v50 = vrot.slane %v4599_v28, 3 }
 0x6a4   :  { %v4554_v20 = vrot.slane %v4480_v32, 7  ;;  %v4675_v25 = vmul.f32 %v4673_v42, %v9337_v8  ;;  %v4682_v58 = vmul.f32 %v4680_v14, %v9339_v37  ;;  %v4598_v31 = vsub.f32 %v4593_v34, %v4596_v27 }
 0x6a5   :  { %v4592_v22 = vadd.f32 %v4590_v33, %v4574_v63  ;;  %v4688_v13 = vmul.f32 %v4670_v57, %v9329_v35  ;;  %v4689_v48 = vmul.f32 %v4673_v42, %v9331_v45  ;;  %v4694_v52 = vmul.f32 %v4680_v14, %v9333_v26 }
 0x6a6   :  { %v4562_v54 = vsel %vm3819_vm1, %v4469_v16, %v4554_v20  ;;  %v4677_v3 = vrot.slane %v4675_v25, 1  ;;  %v4684_v47 = vrot.slane %v4682_v58, 2  ;;  %v4603_v49 = vadd.f32 %v4601_v50, %v4598_v31 }
 0x6a7   :  { %v4691_v24 = vrot.slane %v4689_v48, 1  ;;  %v4334_v21 = vmul.f32 %v4332_v15, %v9331_v45  ;;  %v4344_v39 = vmul.f32 %v4342_v17, %v9333_v26  ;;  %v4696_v57 = vrot.slane %v4694_v52, 2 }
 0x6a8   :  { %v4679_v60 = vsub.f32 %v4672_v62, %v4677_v3  ;;  %v4358_v42 = vmul.f32 %v4356_v41, %v9335_v56  ;;  %v4483_v14 = vmul.f32 %v4481_v19, %v9329_v35  ;;  %v4604_v9 = vmul.f32 -1.0, %v4603_v49 }
 0x6a9   :  { %v4693_v34 = vsub.f32 %v4688_v13, %v4691_v24  ;;  %v4346_v4 = vrot.slane %v4344_v39, 1  ;;  %v4493_v15 = vmul.f32 %v4491_v51, %v9333_v26  ;;  %v4507_v17 = vmul.f32 %v4505_v1, %v9335_v56 }
 0x6aa   :  { %v4686_v38 = vadd.f32 %v4684_v47, %v4679_v60  ;;  %v4360_v53 = vrot.slane %v4358_v42, 2  ;;  %v4607_v41 = vmul.f32 %v4605_v30, %v9329_v35  ;;  %v4659_v12 = vrot.slane %v4604_v9, 7 }
 0x6ab   :  { %v4698_v55 = vadd.f32 %v4696_v57, %v4693_v34  ;;  %v4348_v19 = vsub.f32 %v4334_v21, %v4346_v4  ;;  %v4495_v32 = vrot.slane %v4493_v15, 2  ;;  %v4509_v28 = vrot.slane %v4507_v17, 3 }
 0x6ac   :  { %v4687_v63 = vmul.f32 -1.0, %v4686_v38  ;;  %v4610_v51 = vmul.f32 %v4608_v59, %v9331_v45  ;;  %v4624_v62 = vmul.f32 %v4622_v11, %v9335_v56  ;;  %v4667_v1 = vsel %vm3819_vm1, %v4592_v22, %v4659_v12 }
 0x6ad   :  { %v4735_v16 = vrot.slane %v4698_v55, 7  ;;  %v4362_v33 = vadd.f32 %v4360_v53, %v4348_v19  ;;  %v4497_v0 = vsub.f32 %v4483_v14, %v4495_v32  ;;  %v4701_v20 = vmul.f32 %v4699_v10, %v9329_v35 }
 0x6ae   :  { %v4612_v30 = vrot.slane %v4610_v51, 1  ;;  %v4626_v27 = vrot.slane %v4624_v62, 3  ;;  %v4704_v6 = vmul.f32 %v4702_v18, %v9331_v45  ;;  %v9618_v11 = vrot.slane %v9428_v44, 6 }
 0x6af   :  { %v4743_v59 = vsel %vm3819_vm1, %v4687_v63, %v4735_v16  ;;  %v4421_v50 = vrot.slane %v4362_v33, 7  ;;  %v4511_v25 = vadd.f32 %v4509_v28, %v4497_v0  ;;  %v4364_v13 = vrot.slane %v9347_v61, 1 }
 0x6b0   :  { %v4711_v58 = vmul.f32 %v9618_v11, %v9333_v26  ;;  %v4614_v22 = vsub.f32 %v4607_v41, %v4612_v30  ;;  %v4706_v31 = vrot.slane %v4704_v6, 1  ;;  %v9619_v43 = vrot.slane %v9345_v7, 7 }
 0x6b1   :  { %v9507_v48 = vsel %vm3821_vm2, %v4426_v36, %v4421_v50  ;;  %v4512_v5 = vmul.f32 -1.0, %v4511_v25  ;;  %v4379_v3 = vrot.slane %v9347_v61, 2  ;;  %v4366_v44 = vmul.f32 %v4364_v13, %v9339_v37 }
 0x6b2   :  { %v4370_v10 = vmul.f32 %v9619_v43, %v9341_v29  ;;  %v4713_v18 = vrot.slane %v4711_v58, 2  ;;  %v4628_v47 = vadd.f32 %v4626_v27, %v4614_v22  ;;  %v4708_v52 = vsub.f32 %v4701_v20, %v4706_v31 }
 0x6b3   :  { %v4557_v24 = vrot.slane %v4512_v5, 6  ;;  %v4381_v21 = vmul.f32 %v4379_v3, %v9337_v8  ;;  %v4383_v39 = vrot.slane %v9343_v2, 6  ;;  %v4398_v60 = vrot.slane %v9345_v7, 1 }
 0x6b4   :  { %v4372_v49 = vrot.slane %v4370_v10, 1  ;;  %v4662_v57 = vrot.slane %v4628_v47, 6  ;;  %v4715_v42 = vadd.f32 %v4713_v18, %v4708_v52  ;;  %v4401_v14 = vrot.slane %v9343_v2, 7 }
 0x6b5   :  { %v9516_v9 = vsel %vm3821_vm2, %v4562_v54, %v4557_v24  ;;  %v4385_v34 = vmul.f32 %v4383_v39, %v9341_v29  ;;  %v4400_v4 = vmul.f32 %v4398_v60, %v9337_v8  ;;  %v4516_v15 = vrot.slane %v9347_v61, 3 }
 0x6b6   :  { %v4374_v36 = vsub.f32 %v4366_v44, %v4372_v49  ;;  %v9522_v38 = vsel %vm3821_vm2, %v4667_v1, %v4662_v57  ;;  %v4716_v53 = vmul.f32 -1.0, %v4715_v42  ;;  %v4403_v41 = vmul.f32 %v4401_v14, %v9339_v37 }
 0x6b7   :  { %v4387_v12 = vrot.slane %v4385_v34, 2  ;;  %v4518_v19 = vmul.f32 %v4516_v15, %v9323_v40  ;;  %v4520_v54 = vrot.slane %v9325_v46, 5  ;;  %v4535_v51 = vrot.slane %v9345_v7, 2 }
 0x6b8   :  { %v4376_v17 = vrot.slane %v4374_v36, 1  ;;  %v4513_v55 = vrot.slane %v4374_v36, 2  ;;  %v4738_v32 = vrot.slane %v4716_v53, 6  ;;  %v4405_v28 = vrot.slane %v4403_v41, 1 }
 0x6b9   :  { %v4389_v61 = vsub.f32 %v4381_v21, %v4387_v12  ;;  %v4522_v1 = vmul.f32 %v4520_v54, %v9341_v29  ;;  %v4538_v16 = vrot.slane %v9325_v46, 6  ;;  %v4537_v30 = vmul.f32 %v4535_v51, %v9323_v40 }
 0x6ba   :  { %v4378_v63 = vmul.f32 %v4376_v17, %v9331_v45  ;;  %v4515_v62 = vmul.f32 %v4513_v55, %v9329_v35  ;;  %v9533_v33 = vsel %vm3821_vm2, %v4743_v59, %v4738_v32  ;;  %v4407_v0 = vsub.f32 %v4400_v4, %v4405_v28 }
 0x6bb   :  { %v4639_v27 = vrot.slane %v9343_v2, 1  ;;  %v4391_v20 = vrot.slane %v4389_v61, 7  ;;  %v4524_v6 = vrot.slane %v4522_v1, 3  ;;  %v4540_v50 = vmul.f32 %v4538_v16, %v9339_v37 }
 0x6bc   :  { %v4629_v7 = vrot.slane %v4389_v61, 1  ;;  %v4409_v25 = vrot.slane %v4407_v0, 6  ;;  %v4642_v29 = vrot.slane %v9325_v46, 7  ;;  %v4717_v58 = vrot.slane %v4407_v0, 1 }
 0x6bd   :  { %v4641_v11 = vmul.f32 %v4639_v27, %v9323_v40  ;;  %v4393_v22 = vmul.f32 %v4391_v20, %v9333_v26  ;;  %v4526_v59 = vsub.f32 %v4518_v19, %v4524_v6  ;;  %v4542_v31 = vrot.slane %v4540_v50, 2 }
 0x6be   :  { %v4631_v13 = vmul.f32 %v4629_v7, %v9329_v35  ;;  %v4411_v43 = vmul.f32 %v4409_v25, %v9335_v56  ;;  %v4644_v2 = vmul.f32 %v4642_v29, %v9337_v8  ;;  %v4719_v10 = vmul.f32 %v4717_v58, %v9329_v35 }
 0x6bf   :  { %v4395_v37 = vrot.slane %v4393_v22, 1  ;;  %v4528_v5 = vrot.slane %v4526_v59, 6  ;;  %v4544_v18 = vsub.f32 %v4537_v30, %v4542_v31  ;;  %v4632_v3 = vrot.slane %v4526_v59, 7 }
 0x6c0   :  { %v4413_v40 = vrot.slane %v4411_v43, 2  ;;  %v4646_v47 = vrot.slane %v4644_v2, 1 }
 0x6c1   :  { %v4397_v46 = vsub.f32 %v4378_v63, %v4395_v37  ;;  %v4530_v52 = vmul.f32 %v4528_v5, %v9333_v26  ;;  %v4546_v44 = vrot.slane %v4544_v18, 5  ;;  %v4634_v49 = vmul.f32 %v4632_v3, %v9331_v45 }
 0x6c2   :  { %v4648_v24 = vsub.f32 %v4641_v11, %v4646_v47  ;;  %v4720_v21 = vrot.slane %v4544_v18, 7 }
 0x6c3   :  { %v4415_v39 = vadd.f32 %v4413_v40, %v4397_v46  ;;  %v4532_v60 = vrot.slane %v4530_v52, 2  ;;  %v4548_v8 = vmul.f32 %v4546_v44, %v9335_v56  ;;  %v4636_v57 = vrot.slane %v4634_v49, 1 }
 0x6c4   :  { %v4650_v35 = vrot.slane %v4648_v24, 5  ;;  %v4722_v42 = vmul.f32 %v4720_v21, %v9331_v45  ;;  %v4727_v36 = vrot.slane %v4648_v24, 6 }
 0x6c5   :  { %v4416_v14 = vmul.f32 -1.0, %v4415_v39  ;;  %v4534_v34 = vsub.f32 %v4515_v62, %v4532_v60  ;;  %v4550_v4 = vrot.slane %v4548_v8, 3  ;;  %v4638_v15 = vsub.f32 %v4631_v13, %v4636_v57 }
 0x6c6   :  { %v4652_v53 = vmul.f32 %v4650_v35, %v9335_v56  ;;  %v4724_v17 = vrot.slane %v4722_v42, 1  ;;  %v4729_v41 = vmul.f32 %v4727_v36, %v9333_v26 }
 0x6c7   :  { %v4424_v12 = vrot.slane %v4416_v14, 6  ;;  %v4552_v55 = vadd.f32 %v4550_v4, %v4534_v34 }
 0x6c8   :  { %v4654_v19 = vrot.slane %v4652_v53, 3  ;;  %v4726_v54 = vsub.f32 %v4719_v10, %v4724_v17  ;;  %v4731_v32 = vrot.slane %v4729_v41, 2 }
 0x6c9   :  { %v9553_v63 = vsel %vm3823_vm3, %v9507_v48, %v4424_v12  ;;  %v4560_v45 = vrot.slane %v4552_v55, 5 }
 0x6ca   :  { %v4656_v28 = vadd.f32 %v4654_v19, %v4638_v15  ;;  %v4733_v51 = vadd.f32 %v4731_v32, %v4726_v54  ;;  %v4746_v61 = vmul.f32 %v9553_v63, %v9553_v63 }
 0x6cb   :  { %v9559_v56 = vsel %vm3823_vm3, %v9516_v9, %v4560_v45 }
 0x6cc   :  { %v4657_v26 = vmul.f32 -1.0, %v4656_v28  ;;  %v4741_v62 = vrot.slane %v4733_v51, 5  ;;  %v4747_v1 = vsel %vm3825_vm4, %v4746_v61, 0.0  ;;  %v4754_v16 = vmul.f32 %v9559_v56, %v9559_v56 }
 0x6cd   :  { %v4748_v0 = vrot.slane %v4747_v1, 4 }
 0x6ce   :  { %v4665_v48 = vrot.slane %v4657_v26, 5  ;;  %v9566_v30 = vsel %vm3823_vm3, %v9533_v33, %v4741_v62  ;;  %v4755_v27 = vsel %vm3825_vm4, %v4754_v16, 0.0 }
 0x6cf   :  { %v4749_v20 = vadd.f32 %v4748_v0, %v4747_v1  ;;  %v4756_v6 = vrot.slane %v4755_v27, 4  ;;  %v4780_v9 = vmul.f32 %v9566_v30, %v9566_v30 }
 0x6d0   :  { %v9573_v50 = vsel %vm3823_vm3, %v9522_v38, %v4665_v48 }
 0x6d1   :  { %v4750_v7 = vrot.slane %v4749_v20, 2  ;;  %v4757_v25 = vadd.f32 %v4756_v6, %v4755_v27  ;;  %v4767_v11 = vmul.f32 %v9573_v50, %v9573_v50  ;;  %v4781_v29 = vsel %vm3825_vm4, %v4780_v9, 0.0 }
 0x6d2   :  { %v4782_v33 = vrot.slane %v4781_v29, 4 }
 0x6d3   :  { %v4751_v58 = vadd.f32 %v4750_v7, %v4749_v20  ;;  %v4758_v22 = vrot.slane %v4757_v25, 2  ;;  %v4768_v59 = vsel %vm3825_vm4, %v4767_v11, 0.0 }
 0x6d4   :  { %v4769_v31 = vrot.slane %v4768_v59, 4  ;;  %v4783_v13 = vadd.f32 %v4782_v33, %v4781_v29 }
 0x6d5   :  { %v4752_v43 = vrot.slane %v4751_v58, 1  ;;  %v4759_v2 = vadd.f32 %v4758_v22, %v4757_v25 }
 0x6d6   :  { %v4770_v10 = vadd.f32 %v4769_v31, %v4768_v59  ;;  %v4784_v37 = vrot.slane %v4783_v13, 2 }
 0x6d7   :  { %v4753_v38 = vadd.f32 %v4752_v43, %v4751_v58  ;;  %v4760_v5 = vrot.slane %v4759_v2, 1 }
 0x6d8   :  { %v4771_v18 = vrot.slane %v4770_v10, 2  ;;  %v4785_v3 = vadd.f32 %v4784_v37, %v4783_v13 }
 0x6d9   :  { %v4761_v40 = vadd.f32 %v4760_v5, %v4759_v2 }
 0x6da   :  { %v4772_v47 = vadd.f32 %v4771_v18, %v4770_v10  ;;  %v4786_v49 = vrot.slane %v4785_v3, 1 }
 0x6db   :  { %vm4762_vm5 = vcmp.gt.f32.partialorder %v4761_v40, %v4753_v38  ;;  %v4766_v46 = vmax.f32 %v4753_v38, %v4761_v40 }
 0x6dc   :  { %v4765_v52 = vsel %vm4762_vm5, %v9559_v56, %v9553_v63  ;;  %v4773_v44 = vrot.slane %v4772_v47, 1  ;;  %v4787_v39 = vadd.f32 %v4786_v49, %v4785_v3 }
 0x6de   :  { %v4774_v24 = vadd.f32 %v4773_v44, %v4772_v47 }
 0x6e0   :  { %vm4775_vm6 = vcmp.gt.f32.partialorder %v4774_v24, %v4766_v46  ;;  %v4779_v21 = vmax.f32 %v4766_v46, %v4774_v24 }
 0x6e1   :  { %v4778_v60 = vsel %vm4775_vm6, %v9573_v50, %v4765_v52 }
 0x6e2   :  { %vm4788_vm7 = vcmp.gt.f32.partialorder %v4787_v39, %v4779_v21 }
 0x6e3   :  { %v4791_v8 = vsel %vm4788_vm7, %v9566_v30, %v4778_v60 }
 0x6e4   :  { %v4792_v57 = vmul.f32 %v4791_v8, %v4791_v8 }
 0x6e6   :  { %v4793_v35 = vsel %vm3825_vm4, %v4792_v57, 0.0 }
 0x6e7   :  { %v4794_v42 = vrot.slane %v4793_v35, 4 }
 0x6e9   :  { %v4795_v36 = vadd.f32 %v4794_v42, %v4793_v35 }
 0x6eb   :  { %v4796_v14 = vrot.slane %v4795_v36, 2 }
 0x6ed   :  { %v4797_v34 = vadd.f32 %v4796_v14, %v4795_v36 }
 0x6ef   :  { %v4798_v4 = vrot.slane %v4797_v34, 1 }
 0x6f1   :  { %v4799_v15 = vadd.f32 %v4798_v4, %v4797_v34 }
 0x6f3   :  { %v4800_v53 = vadd.f32 1e-30, %v4799_v15 }
 0x6f5   :  { %5097 = vrsqrt.f32 %v4800_v53 }
 0x702   :  { %v5098_v17 = vpop.eup %5097 }
 0x703   :  { %v4802_v41 = vmul.f32 %v5098_v17, %v4791_v8  }
 0x705   :  { %v5111_v12 = vmov %v4802_v41  }
 0x706 LB: > { %v4810_v55 = vmul.f32 %v5113_v12, %v9553_v63  ;;  %v4818_v19 = vmul.f32 %v5113_v12, %v9559_v56  ;;  %v4826_v54 = vmul.f32 %v5113_v12, %v9573_v50  ;;  %v4834_v32 = vmul.f32 %v5113_v12, %v9566_v30  ;;  %s4808_s8 = sadd.s32 1, %s5117_s8   ;;  %s5117_s8 = sphi %s9584_s8, %s4808_s8   ;;  %v5113_v12 = vphi %v5111_v12, %v5112_v12  }
 0x707   : > { %p4805_p0 = scmp.ge.s32.totalorder %s4808_s8, 20  }
 0x708   : > { %v4811_v45 = vsel %vm3825_vm4, %v4810_v55, 0.0  ;;  %v4819_v28 = vsel %vm3825_vm4, %v4818_v19, 0.0  ;;  %v4827_v51 = vsel %vm3825_vm4, %v4826_v54, 0.0  ;;  %v4835_v61 = vsel %vm3825_vm4, %v4834_v32, 0.0 }
 0x709   : > { %v4812_v26 = vrot.slane %v4811_v45, 4  ;;  %v4820_v62 = vrot.slane %v4819_v28, 4  ;;  %v4828_v1 = vrot.slane %v4827_v51, 4  ;;  %v4836_v16 = vrot.slane %v4835_v61, 4 }
 0x70a   :  { %v5123_v57 = vmov (%p4805_p0), -1e-12   ;;  %vm4868_vm10 = vcmask (%p4805_p0), 256000  }
 0x70b   : > { %v4813_v0 = vadd.f32 %v4812_v26, %v4811_v45  ;;  %v4821_v48 = vadd.f32 %v4820_v62, %v4819_v28  ;;  %v4829_v27 = vadd.f32 %v4828_v1, %v4827_v51  ;;  %v4837_v20 = vadd.f32 %v4836_v16, %v4835_v61 }
 0x70d   : > { %v4814_v6 = vrot.slane %v4813_v0, 2  ;;  %v4822_v9 = vrot.slane %v4821_v48, 2  ;;  %v4830_v7 = vrot.slane %v4829_v27, 2  ;;  %v4838_v25 = vrot.slane %v4837_v20, 2 }
 0x70f   : > { %v4815_v11 = vadd.f32 %v4814_v6, %v4813_v0  ;;  %v4823_v29 = vadd.f32 %v4822_v9, %v4821_v48  ;;  %v4831_v33 = vadd.f32 %v4830_v7, %v4829_v27  ;;  %v4839_v58 = vadd.f32 %v4838_v25, %v4837_v20 }
 0x711   : > { %v4816_v22 = vrot.slane %v4815_v11, 1  ;;  %v4824_v59 = vrot.slane %v4823_v29, 1  ;;  %v4832_v31 = vrot.slane %v4831_v33, 1  ;;  %v4840_v13 = vrot.slane %v4839_v58, 1 }
 0x713   : > { %v4817_v43 = vadd.f32 %v4816_v22, %v4815_v11  ;;  %v4825_v2 = vadd.f32 %v4824_v59, %v4823_v29  ;;  %v4833_v10 = vadd.f32 %v4832_v31, %v4831_v33  ;;  %v4841_v37 = vadd.f32 %v4840_v13, %v4839_v58 }
 0x715   : > { %v4842_v38 = vsel %vm3819_vm1, %v4817_v43, %v4825_v2 }
 0x716   : > { %v4843_v5 = vsel %vm3821_vm2, %v4842_v38, %v4833_v10 }
 0x717   : > { %v4844_v18 = vsel %vm3823_vm3, %v4843_v5, %v4841_v37 }
 0x718   : > { %v4845_v3 = vmul.f32 %v4844_v18, %v4844_v18 }
 0x71a   : > { %v4846_v40 = vsel %vm3825_vm4, %v4845_v3, 0.0 }
 0x71b   : > { %v4847_v47 = vrot.slane %v4846_v40, 4 }
 0x71d   : > { %v4848_v46 = vadd.f32 %v4847_v47, %v4846_v40 }
 0x71f   : > { %v4849_v52 = vrot.slane %v4848_v46, 2 }
 0x721   : > { %v4850_v44 = vadd.f32 %v4849_v52, %v4848_v46 }
 0x723   : > { %v4851_v49 = vrot.slane %v4850_v44, 1 }
 0x725   : > { %v4852_v24 = vadd.f32 %v4851_v49, %v4850_v44 }
 0x727   : > { %v4853_v21 = vadd.f32 1e-30, %v4852_v24 }
 0x729   : > { %5099 = vrsqrt.f32 %v4853_v21 }
 0x735   :  { %4807 = sbr.rel (!%p4805_p0) target bundleno = 1798 (0x706), region = 86 }
 0x736   : > { %v5100_v39 = vpop.eup %5099 }
 0x737   : > { %v4855_v60 = vmul.f32 %v5100_v39, %v4844_v18  }
 0x739   : > { %v5112_v12 = vmov %v4855_v60   ;;  %v4856_v8 = vand.u32 (%p4805_p0), 2147483647, %v4855_v60  ;;  %vm4858_vm8 = vcmp.ge.f32.partialorder (%p4805_p0), %v4855_v60, 0.0 }
 0x73a   :  { %v4859_v35 = vsel %vm4858_vm8, 1e-12, %v5123_v57 }
 0x73b   :  { %vm4857_vm9 = vcmp.lt.f32.partialorder %v4856_v8, 1e-12 }
 0x73c   :  { %v4860_v42 = vsel %vm4857_vm9, %v4859_v35, %v4855_v60 }
 0x73d   :  { %5101 = vrcp.f32 %v4860_v42 }
 0x74a   :  { %v5102_v36 = vpop.eup %5101 }
 0x74b   :  { %v4866_v14 = vrot.slane %v5102_v36, %v9235_v23 }
 0x74d   :  { %v4867_v34 = vmul.f32 %v4866_v14, %v4855_v60 }
 0x74f   :  { %4869 = vst.msk [vmem:[%s9608_s9] sm:$0x7] %vm4868_vm10, %v4867_v34 }

</bundles_post_ra>
